<compile_context>
chip_gen: v6e
topology: v6e:2x2x1
jax: 0.10.0
libtpu: 0.0.40
codegen_flags: <defaults>
</compile_context>

<pallas_src>
import math

import jax
import jax.numpy as jnp
from jax.experimental import pallas as pl
from jax.experimental.pallas import tpu as pltpu

# ---------------- flat-domain geometry (row stride padded 28 -> 32) ----------------
WS = 32                                                       # padded row stride
OFFS = tuple(i * WS + j for i in range(3) for j in range(3))  # 3x3 tap offsets (max 66)
R2 = 768      # conv2 rows computed (>= 760 rows read by the fused maxpool)
R1 = 848      # conv1 rows computed (>= R2 + 66)
XLEN = 928    # padded flat input length (>= R1 + 66, >= 28*32 real data)
NFEAT = 9216  # real fc1 features: 64 channels * 12 * 12


def _ceil_to(a, m):
    return ((a + m - 1) // m) * m


def _full_spec(shape):
    """Whole-array BlockSpec with a constant index_map (stays VMEM-resident)."""
    nd = len(shape)
    return pl.BlockSpec(shape, lambda *_: (0,) * nd)


# --------------------------------- kernels ----------------------------------------

def _make_conv_pool_kernel(bb):
    """Fused conv1 + ReLU + conv2 + ReLU + 2x2 maxpool for `bb` images per step."""

    def kernel(x_ref, w1_ref, b1_ref, w2_ref, b2_ref, o_ref, xb_ref, aw1_ref, a2_ref):
        for bi in range(bb):                                  # static, fully unrolled
            # Hoisted lane-broadcast of the input column to 32 lanes (ONCE per image,
            # not once per tap) into a VMEM scratch.
            xb_ref[...] = jnp.broadcast_to(x_ref[bi], (XLEN, 32))

            # conv1 (1->32) on the VPU: 9 shifted multiply-accumulates with a
            # register accumulator; single scratch write at the end.
            acc1 = jnp.broadcast_to(b1_ref[...], (R1, 32))
            for t, off in enumerate(OFFS):
                acc1 = acc1 + xb_ref[pl.ds(off, R1), :] * w1_ref[t:t + 1, :]
            aw1_ref[...] = jnp.maximum(acc1, 0.0)             # ReLU

            # conv2 (32->64): in-kernel im2col (lane-concat of 9 shifted slices)
            # -> ONE (R2, 288) @ (288, 64) bf16 MXU matmul with f32 accumulation.
            lhs = jnp.concatenate(
                [aw1_ref[pl.ds(off, R2), :].astype(jnp.bfloat16) for off in OFFS],
                axis=1)                                        # (R2, 288)
            a2 = jnp.dot(lhs, w2_ref[...], preferred_element_type=jnp.float32)
            a2_ref[...] = jnp.maximum(a2 + b2_ref[...], 0.0)   # bias + ReLU

            # Fused 2x2 / stride-2 maxpool, compacted straight into a lane-dense
            # (72, 128) feature block: row = (ph//2)*12 + pw, lane = (ph%2)*64 + c.
            blocks = []
            for pp in range(6):
                halves = []
                for par in range(2):                           # ph = 2*pp + par
                    base = 2 * (2 * pp + par) * WS
                    v = jnp.maximum(
                        jnp.maximum(a2_ref[pl.ds(base, 12, stride=2), :],
                                    a2_ref[pl.ds(base + 1, 12, stride=2), :]),
                        jnp.maximum(a2_ref[pl.ds(base + WS, 12, stride=2), :],
                                    a2_ref[pl.ds(base + WS + 1, 12, stride=2), :]))
                    halves.append(v)                           # (12, 64)
                blocks.append(jnp.concatenate(halves, axis=1)) # (12, 128)
            feat = jnp.concatenate(blocks, axis=0)             # (72, 128)
            o_ref[bi] = feat.astype(jnp.bfloat16)

    return kernel


def _fc_head_kernel(x_ref, w1_ref, b1_ref, w2_ref, b2_ref, o_ref):
    # fc1 (bf16 MXU, f32 accumulate) + ReLU
    h = jnp.dot(x_ref[...], w1_ref[...], preferred_element_type=jnp.float32)
    h = jnp.maximum(h + b1_ref[...], 0.0)
    # fc2 + log_softmax (f32)
    logits = jnp.dot(h, w2_ref[...], preferred_element_type=jnp.float32) + b2_ref[...]
    z = logits - jnp.max(logits, axis=1, keepdims=True)
    o_ref[...] = (z - jnp.log(jnp.sum(jnp.exp(z), axis=1, keepdims=True))).astype(o_ref.dtype)


# ------------------------- one-time parameter preprocessing ------------------------

def prepare_params(params):
    """Hoist all weight reshapes/transposes/permutations out of the forward pass."""
    c1w, c1b, c2w, c2b, f1w, f1b, f2w, f2b = params
    w1 = jnp.transpose(c1w.reshape(32, 9), (1, 0)).astype(jnp.float32)        # (9,32)  [tap, cout]
    b1 = c1b.reshape(1, 32).astype(jnp.float32)
    # conv2 weight flattened for the single K=288 matmul: row = tap*32 + cin
    w2 = jnp.transpose(c2w.reshape(64, 32, 9), (2, 1, 0)).reshape(288, 64).astype(jnp.bfloat16)
    b2 = c2b.reshape(1, 64).astype(jnp.float32)
    # fc1 weight permuted to the kernel's pooled-feature order:
    #   torch feature f = c*144 + ph*12 + pw  ->  k = (ph//2)*1536 + pw*128 + (ph%2)*64 + c
    wf1 = jnp.transpose(f1w.reshape(128, 64, 6, 2, 12), (0, 2, 4, 3, 1))      # [o, pp, pw, par, c]
    wf1 = jnp.transpose(wf1.reshape(128, NFEAT), (1, 0)).astype(jnp.bfloat16) # (9216, 128)
    bf1 = f1b.reshape(1, 128).astype(jnp.float32)
    wf2 = jnp.transpose(f2w, (1, 0)).astype(jnp.float32)                      # (128, 10)
    bf2 = f2b.reshape(1, 10).astype(jnp.float32)
    return (w1, b1, w2, b2, wf1, bf1, wf2, bf2)


# --------------------------------- forward -----------------------------------------

def net_forward(x, prep):
    (w1, b1, w2, b2, wf1, bf1, wf2, bf2) = prep
    n = x.shape[0]

    # embed each 28x28 image as a zero-padded column in the stride-32 flat domain
    xp = jnp.pad(x[:, 0].astype(jnp.float32), ((0, 0), (0, 0), (0, WS - 28)))   # (n, 28, 32)
    xcol = jnp.pad(xp.reshape(n, 28 * WS),
                   ((0, 0), (0, XLEN - 28 * WS))).reshape(n, XLEN, 1)           # (n, XLEN, 1)

    bb = 8 if n >= 16 else 1          # several images per grid step for big batches;
    n_conv = _ceil_to(n, bb)          # bb=1 keeps grid>=2 (both v7x TCs) for tiny ones
    if n_conv != n:
        xcol = jnp.pad(xcol, ((0, n_conv - n), (0, 0), (0, 0)))

    # fused conv1 + conv2 + maxpool (batch-parallel over the grid)
    feat = pl.pallas_call(
        _make_conv_pool_kernel(bb),
        out_shape=jax.ShapeDtypeStruct((n_conv, 72, 128), jnp.bfloat16),
        grid_spec=pltpu.PrefetchScalarGridSpec(
            num_scalar_prefetch=0,
            grid=(n_conv // bb,),
            in_specs=[
                pl.BlockSpec((bb, XLEN, 1), lambda b: (b, 0, 0)),
                _full_spec(w1.shape), _full_spec(b1.shape),
                _full_spec(w2.shape), _full_spec(b2.shape),
            ],
            out_specs=pl.BlockSpec((bb, 72, 128), lambda b: (b, 0, 0)),
            scratch_shapes=[
                pltpu.VMEM((XLEN, 32), jnp.float32),   # lane-broadcast input
                pltpu.VMEM((R1, 32), jnp.float32),     # conv1 activations
                pltpu.VMEM((R2, 64), jnp.float32),     # conv2 activations
            ],
        ),
        compiler_params=pltpu.CompilerParams(
            dimension_semantics=("parallel",),
            vmem_limit_bytes=32 * 1024 * 1024,
        ),
    )(xcol, w1, b1, w2, b2)

    feat_flat = feat.reshape(n_conv, NFEAT)    # free row-major reinterpretation in HBM

    if n_conv >= 512:
        tb = 512
    elif n_conv >= 256:
        tb = 256
    else:
        tb = _ceil_to(n_conv, 8)
    n_fc = _ceil_to(n_conv, tb)
    if n_fc != n_conv:
        feat_flat = jnp.pad(feat_flat, ((0, n_fc - n_conv), (0, 0)))

    # batched FC head: fc1 + ReLU + fc2 + log_softmax, weights VMEM-resident
    out = pl.pallas_call(
        _fc_head_kernel,
        out_shape=jax.ShapeDtypeStruct((n_fc, 10), jnp.float32),
        grid_spec=pltpu.PrefetchScalarGridSpec(
            num_scalar_prefetch=0,
            grid=(n_fc // tb,),
            in_specs=[
                pl.BlockSpec((tb, NFEAT), lambda i: (i, 0)),
                _full_spec(wf1.shape), _full_spec(bf1.shape),
                _full_spec(wf2.shape), _full_spec(bf2.shape),
            ],
            out_specs=pl.BlockSpec((tb, 10), lambda i: (i, 0)),
        ),
        compiler_params=pltpu.CompilerParams(
            dimension_semantics=("parallel",),
            vmem_limit_bytes=48 * 1024 * 1024,
        ),
    )(feat_flat, wf1, bf1, wf2, bf2)
    return out[:n]


# ----------------------------- plain-JAX reference ----------------------------------

def _reference_forward(x, params):
    c1w, c1b, c2w, c2b, f1w, f1b, f2w, f2b = params
    dn = ("NCHW", "OIHW", "NCHW")
    y = jax.lax.conv_general_dilated(x, c1w, (1, 1), "VALID", dimension_numbers=dn)
    y = jnp.maximum(y + c1b[None, :, None, None], 0.0)
    y = jax.lax.conv_general_dilated(y, c2w, (1, 1), "VALID", dimension_numbers=dn)
    y = jnp.maximum(y + c2b[None, :, None, None], 0.0)
    y = jax.lax.reduce_window(y, -jnp.inf, jax.lax.max, (1, 1, 2, 2), (1, 1, 2, 2), "VALID")
    y = y.reshape(x.shape[0], -1)
    y = jnp.maximum(y @ f1w.T + f1b, 0.0)
    y = y @ f2w.T + f2b
    return jax.nn.log_softmax(y, axis=1)


# ------------------------------------ main -------------------------------------------

if __name__ == "__main__":
    key = jax.random.PRNGKey(0)
    ks = jax.random.split(key, 9)

    def u(k, shape, fan_in):
        bound = 1.0 / math.sqrt(fan_in)
        return jax.random.uniform(k, shape, jnp.float32, -bound, bound)

    # Deterministic synthetic parameters (shapes match nn.Module __init__).
    conv1_w = u(ks[0], (32, 1, 3, 3), 1 * 3 * 3)
    conv1_b = u(ks[1], (32,), 1 * 3 * 3)
    conv2_w = u(ks[2], (64, 32, 3, 3), 32 * 3 * 3)
    conv2_b = u(ks[3], (64,), 32 * 3 * 3)
    fc1_w = u(ks[4], (128, 9216), 9216)
    fc1_b = u(ks[5], (128,), 9216)
    fc2_w = u(ks[6], (10, 128), 128)
    fc2_b = u(ks[7], (10,), 128)
    params = (conv1_w, conv1_b, conv2_w, conv2_b, fc1_w, fc1_b, fc2_w, fc2_b)

    # Input: fc1's 9216 = 64*12*12 forces 28x28 spatial; batch=2, NCHW like PyTorch.
    x = jax.random.normal(ks[8], (2, 1, 28, 28), jnp.float32)

    prep = prepare_params(params)                 # one-time weight preprocessing
    out = jax.jit(net_forward)(x, prep)
    out = jax.block_until_ready(out)

    assert out.shape == (2, 10) and out.dtype == jnp.float32
    # log_softmax rows must sum (in prob space) to 1
    assert jnp.allclose(jnp.sum(jnp.exp(out), axis=1), 1.0, atol=1e-4)
    # cross-check against a plain-JAX reference of the same module (bf16 MXU tolerance)
    ref = _reference_forward(x, params)
    assert float(jnp.max(jnp.abs(out - ref))) < 1e-1, float(jnp.max(jnp.abs(out - ref)))

    print("KERNEL_OK")
</pallas_src>

<mosaic_0001>
module attributes {stable_mosaic.version = 11 : i64} {
  func.func @kernel(%arg0: i32, %arg1: memref<1x928x1xf32, #tpu.memory_space<vmem>>, %arg2: memref<9x32xf32, #tpu.memory_space<vmem>>, %arg3: memref<1x32xf32, #tpu.memory_space<vmem>>, %arg4: memref<288x64xbf16, #tpu.memory_space<vmem>>, %arg5: memref<1x64xf32, #tpu.memory_space<vmem>>, %arg6: memref<1x72x128xbf16, #tpu.memory_space<vmem>>, %arg7: memref<928x32xf32, #tpu.memory_space<vmem>>, %arg8: memref<848x32xf32, #tpu.memory_space<vmem>>, %arg9: memref<768x64xf32, #tpu.memory_space<vmem>>) attributes {dimension_semantics = [#tpu.dimension_semantics<parallel>], iteration_bounds = array<i64: 2>, scalar_prefetch = 0 : i64, scratch_operands = 3 : i64, tpu.core_type = #tpu.core_type<tc>, window_params = [{transform_indices = @transform_0, window_bounds = array<i64: 1, 928, 1>}, {pipeline_mode = #tpu.pipeline_mode<synchronous>, transform_indices = @transform_1, window_bounds = array<i64: 9, 32>}, {pipeline_mode = #tpu.pipeline_mode<synchronous>, transform_indices = @transform_2, window_bounds = array<i64: 1, 32>}, {pipeline_mode = #tpu.pipeline_mode<synchronous>, transform_indices = @transform_3, window_bounds = array<i64: 288, 64>}, {pipeline_mode = #tpu.pipeline_mode<synchronous>, transform_indices = @transform_4, window_bounds = array<i64: 1, 64>}, {transform_indices = @transform_5, window_bounds = array<i64: 1, 72, 128>}]} {
    %c0 = arith.constant 0 : index
    %c0_0 = arith.constant 0 : index
    %c0_1 = arith.constant 0 : index
    %0 = vector.load %arg1[%c0, %c0_0, %c0_1] : memref<1x928x1xf32, #tpu.memory_space<vmem>>, vector<1x928x1xf32>
    %1 = vector.shape_cast %0 : vector<1x928x1xf32> to vector<928x1xf32>
    %2 = vector.shape_cast %1 : vector<928x1xf32> to vector<928x1xf32>
    %3 = vector.broadcast %2 : vector<928x1xf32> to vector<928x32xf32>
    %c0_2 = arith.constant 0 : index
    %c0_3 = arith.constant 0 : index
    %4 = vector.load %arg7[%c0_2, %c0_3] : memref<928x32xf32, #tpu.memory_space<vmem>>, vector<928x32xf32>
    tpu.vector_store %arg7[%c0_2, %c0_3], %3 {strides = array<i32>} : memref<928x32xf32, #tpu.memory_space<vmem>>, vector<928x32xf32>,
    %c0_4 = arith.constant 0 : index
    %c0_5 = arith.constant 0 : index
    %5 = vector.load %arg3[%c0_4, %c0_5] : memref<1x32xf32, #tpu.memory_space<vmem>>, vector<1x32xf32>
    %6 = vector.shape_cast %5 : vector<1x32xf32> to vector<1x32xf32>
    %7 = vector.broadcast %6 : vector<1x32xf32> to vector<848x32xf32>
    %c0_6 = arith.constant 0 : index
    %c0_7 = arith.constant 0 : index
    %8 = vector.load %arg7[%c0_6, %c0_7] : memref<928x32xf32, #tpu.memory_space<vmem>>, vector<848x32xf32>
    %c0_8 = arith.constant 0 : index
    %c0_9 = arith.constant 0 : index
    %9 = vector.load %arg2[%c0_8, %c0_9] : memref<9x32xf32, #tpu.memory_space<vmem>>, vector<1x32xf32>
    %10 = vector.broadcast %9 : vector<1x32xf32> to vector<848x32xf32>
    %11 = arith.mulf %8, %10 : vector<848x32xf32>
    %12 = arith.addf %7, %11 : vector<848x32xf32>
    %c1 = arith.constant 1 : index
    %c0_10 = arith.constant 0 : index
    %13 = vector.load %arg7[%c1, %c0_10] : memref<928x32xf32, #tpu.memory_space<vmem>>, vector<848x32xf32>
    %c1_11 = arith.constant 1 : index
    %c0_12 = arith.constant 0 : index
    %14 = vector.load %arg2[%c1_11, %c0_12] : memref<9x32xf32, #tpu.memory_space<vmem>>, vector<1x32xf32>
    %15 = vector.broadcast %14 : vector<1x32xf32> to vector<848x32xf32>
    %16 = arith.mulf %13, %15 : vector<848x32xf32>
    %17 = arith.addf %12, %16 : vector<848x32xf32>
    %c2 = arith.constant 2 : index
    %c0_13 = arith.constant 0 : index
    %18 = vector.load %arg7[%c2, %c0_13] : memref<928x32xf32, #tpu.memory_space<vmem>>, vector<848x32xf32>
    %c2_14 = arith.constant 2 : index
    %c0_15 = arith.constant 0 : index
    %19 = vector.load %arg2[%c2_14, %c0_15] : memref<9x32xf32, #tpu.memory_space<vmem>>, vector<1x32xf32>
    %20 = vector.broadcast %19 : vector<1x32xf32> to vector<848x32xf32>
    %21 = arith.mulf %18, %20 : vector<848x32xf32>
    %22 = arith.addf %17, %21 : vector<848x32xf32>
    %c32 = arith.constant 32 : index
    %c0_16 = arith.constant 0 : index
    %23 = vector.load %arg7[%c32, %c0_16] : memref<928x32xf32, #tpu.memory_space<vmem>>, vector<848x32xf32>
    %c3 = arith.constant 3 : index
    %c0_17 = arith.constant 0 : index
    %24 = vector.load %arg2[%c3, %c0_17] : memref<9x32xf32, #tpu.memory_space<vmem>>, vector<1x32xf32>
    %25 = vector.broadcast %24 : vector<1x32xf32> to vector<848x32xf32>
    %26 = arith.mulf %23, %25 : vector<848x32xf32>
    %27 = arith.addf %22, %26 : vector<848x32xf32>
    %c33 = arith.constant 33 : index
    %c0_18 = arith.constant 0 : index
    %28 = vector.load %arg7[%c33, %c0_18] : memref<928x32xf32, #tpu.memory_space<vmem>>, vector<848x32xf32>
    %c4 = arith.constant 4 : index
    %c0_19 = arith.constant 0 : index
    %29 = vector.load %arg2[%c4, %c0_19] : memref<9x32xf32, #tpu.memory_space<vmem>>, vector<1x32xf32>
    %30 = vector.broadcast %29 : vector<1x32xf32> to vector<848x32xf32>
    %31 = arith.mulf %28, %30 : vector<848x32xf32>
    %32 = arith.addf %27, %31 : vector<848x32xf32>
    %c34 = arith.constant 34 : index
    %c0_20 = arith.constant 0 : index
    %33 = vector.load %arg7[%c34, %c0_20] : memref<928x32xf32, #tpu.memory_space<vmem>>, vector<848x32xf32>
    %c5 = arith.constant 5 : index
    %c0_21 = arith.constant 0 : index
    %34 = vector.load %arg2[%c5, %c0_21] : memref<9x32xf32, #tpu.memory_space<vmem>>, vector<1x32xf32>
    %35 = vector.broadcast %34 : vector<1x32xf32> to vector<848x32xf32>
    %36 = arith.mulf %33, %35 : vector<848x32xf32>
    %37 = arith.addf %32, %36 : vector<848x32xf32>
    %c64 = arith.constant 64 : index
    %c0_22 = arith.constant 0 : index
    %38 = vector.load %arg7[%c64, %c0_22] : memref<928x32xf32, #tpu.memory_space<vmem>>, vector<848x32xf32>
    %c6 = arith.constant 6 : index
    %c0_23 = arith.constant 0 : index
    %39 = vector.load %arg2[%c6, %c0_23] : memref<9x32xf32, #tpu.memory_space<vmem>>, vector<1x32xf32>
    %40 = vector.broadcast %39 : vector<1x32xf32> to vector<848x32xf32>
    %41 = arith.mulf %38, %40 : vector<848x32xf32>
    %42 = arith.addf %37, %41 : vector<848x32xf32>
    %c65 = arith.constant 65 : index
    %c0_24 = arith.constant 0 : index
    %43 = vector.load %arg7[%c65, %c0_24] : memref<928x32xf32, #tpu.memory_space<vmem>>, vector<848x32xf32>
    %c7 = arith.constant 7 : index
    %c0_25 = arith.constant 0 : index
    %44 = vector.load %arg2[%c7, %c0_25] : memref<9x32xf32, #tpu.memory_space<vmem>>, vector<1x32xf32>
    %45 = vector.broadcast %44 : vector<1x32xf32> to vector<848x32xf32>
    %46 = arith.mulf %43, %45 : vector<848x32xf32>
    %47 = arith.addf %42, %46 : vector<848x32xf32>
    %c66 = arith.constant 66 : index
    %c0_26 = arith.constant 0 : index
    %48 = vector.load %arg7[%c66, %c0_26] : memref<928x32xf32, #tpu.memory_space<vmem>>, vector<848x32xf32>
    %c8 = arith.constant 8 : index
    %c0_27 = arith.constant 0 : index
    %49 = vector.load %arg2[%c8, %c0_27] : memref<9x32xf32, #tpu.memory_space<vmem>>, vector<1x32xf32>
    %50 = vector.broadcast %49 : vector<1x32xf32> to vector<848x32xf32>
    %51 = arith.mulf %48, %50 : vector<848x32xf32>
    %52 = arith.addf %47, %51 : vector<848x32xf32>
    %cst = arith.constant 0.000000e+00 : f32
    %53 = vector.broadcast %cst : f32 to vector<848x32xf32>
    %54 = arith.maximumf %52, %53 : vector<848x32xf32>
    %c0_28 = arith.constant 0 : index
    %c0_29 = arith.constant 0 : index
    %55 = vector.load %arg8[%c0_28, %c0_29] : memref<848x32xf32, #tpu.memory_space<vmem>>, vector<848x32xf32>
    tpu.vector_store %arg8[%c0_28, %c0_29], %54 {strides = array<i32>} : memref<848x32xf32, #tpu.memory_space<vmem>>, vector<848x32xf32>,
    %c0_30 = arith.constant 0 : index
    %c0_31 = arith.constant 0 : index
    %56 = vector.load %arg8[%c0_30, %c0_31] : memref<848x32xf32, #tpu.memory_space<vmem>>, vector<768x32xf32>
    %57 = arith.truncf %56 : vector<768x32xf32> to vector<768x32xbf16>
    %c1_32 = arith.constant 1 : index
    %c0_33 = arith.constant 0 : index
    %58 = vector.load %arg8[%c1_32, %c0_33] : memref<848x32xf32, #tpu.memory_space<vmem>>, vector<768x32xf32>
    %59 = arith.truncf %58 : vector<768x32xf32> to vector<768x32xbf16>
    %c2_34 = arith.constant 2 : index
    %c0_35 = arith.constant 0 : index
    %60 = vector.load %arg8[%c2_34, %c0_35] : memref<848x32xf32, #tpu.memory_space<vmem>>, vector<768x32xf32>
    %61 = arith.truncf %60 : vector<768x32xf32> to vector<768x32xbf16>
    %c32_36 = arith.constant 32 : index
    %c0_37 = arith.constant 0 : index
    %62 = vector.load %arg8[%c32_36, %c0_37] : memref<848x32xf32, #tpu.memory_space<vmem>>, vector<768x32xf32>
    %63 = arith.truncf %62 : vector<768x32xf32> to vector<768x32xbf16>
    %c33_38 = arith.constant 33 : index
    %c0_39 = arith.constant 0 : index
    %64 = vector.load %arg8[%c33_38, %c0_39] : memref<848x32xf32, #tpu.memory_space<vmem>>, vector<768x32xf32>
    %65 = arith.truncf %64 : vector<768x32xf32> to vector<768x32xbf16>
    %c34_40 = arith.constant 34 : index
    %c0_41 = arith.constant 0 : index
    %66 = vector.load %arg8[%c34_40, %c0_41] : memref<848x32xf32, #tpu.memory_space<vmem>>, vector<768x32xf32>
    %67 = arith.truncf %66 : vector<768x32xf32> to vector<768x32xbf16>
    %c64_42 = arith.constant 64 : index
    %c0_43 = arith.constant 0 : index
    %68 = vector.load %arg8[%c64_42, %c0_43] : memref<848x32xf32, #tpu.memory_space<vmem>>, vector<768x32xf32>
    %69 = arith.truncf %68 : vector<768x32xf32> to vector<768x32xbf16>
    %c65_44 = arith.constant 65 : index
    %c0_45 = arith.constant 0 : index
    %70 = vector.load %arg8[%c65_44, %c0_45] : memref<848x32xf32, #tpu.memory_space<vmem>>, vector<768x32xf32>
    %71 = arith.truncf %70 : vector<768x32xf32> to vector<768x32xbf16>
    %c66_46 = arith.constant 66 : index
    %c0_47 = arith.constant 0 : index
    %72 = vector.load %arg8[%c66_46, %c0_47] : memref<848x32xf32, #tpu.memory_space<vmem>>, vector<768x32xf32>
    %73 = arith.truncf %72 : vector<768x32xf32> to vector<768x32xbf16>
    %74 = tpu.concatenate %57, %59, %61, %63, %65, %67, %69, %71, %73 in 1 : vector<768x32xbf16>, vector<768x32xbf16>, vector<768x32xbf16>, vector<768x32xbf16>, vector<768x32xbf16>, vector<768x32xbf16>, vector<768x32xbf16>, vector<768x32xbf16>, vector<768x32xbf16> -> vector<768x288xbf16>
    %c0_48 = arith.constant 0 : index
    %c0_49 = arith.constant 0 : index
    %75 = vector.load %arg4[%c0_48, %c0_49] : memref<288x64xbf16, #tpu.memory_space<vmem>>, vector<288x64xbf16>
    %cst_50 = arith.constant dense<0.000000e+00> : vector<768x64xf32>
    %76 = tpu.matmul %74, %75, %cst_50 {dimension_numbers = #tpu.dot_dimension_numbers<[1], [0], [0], [1], [0, 0, 1, 1], [], []>} : vector<768x288xbf16>, vector<288x64xbf16>, vector<768x64xf32> -> vector<768x64xf32>
    %c0_51 = arith.constant 0 : index
    %c0_52 = arith.constant 0 : index
    %77 = vector.load %arg5[%c0_51, %c0_52] : memref<1x64xf32, #tpu.memory_space<vmem>>, vector<1x64xf32>
    %78 = vector.broadcast %77 : vector<1x64xf32> to vector<768x64xf32>
    %79 = arith.addf %76, %78 : vector<768x64xf32>
    %cst_53 = arith.constant 0.000000e+00 : f32
    %80 = vector.broadcast %cst_53 : f32 to vector<768x64xf32>
    %81 = arith.maximumf %79, %80 : vector<768x64xf32>
    %c0_54 = arith.constant 0 : index
    %c0_55 = arith.constant 0 : index
    %82 = vector.load %arg9[%c0_54, %c0_55] : memref<768x64xf32, #tpu.memory_space<vmem>>, vector<768x64xf32>
    tpu.vector_store %arg9[%c0_54, %c0_55], %81 {strides = array<i32>} : memref<768x64xf32, #tpu.memory_space<vmem>>, vector<768x64xf32>,
    %c0_56 = arith.constant 0 : index
    %c0_57 = arith.constant 0 : index
    %83 = tpu.strided_load %arg9[%c0_56, %c0_57] {strides = array<i32: 2, 1>} : memref<768x64xf32, #tpu.memory_space<vmem>>, vector<12x64xf32>
    %c1_58 = arith.constant 1 : index
    %c0_59 = arith.constant 0 : index
    %84 = tpu.strided_load %arg9[%c1_58, %c0_59] {strides = array<i32: 2, 1>} : memref<768x64xf32, #tpu.memory_space<vmem>>, vector<12x64xf32>
    %85 = arith.maximumf %83, %84 : vector<12x64xf32>
    %c32_60 = arith.constant 32 : index
    %c0_61 = arith.constant 0 : index
    %86 = tpu.strided_load %arg9[%c32_60, %c0_61] {strides = array<i32: 2, 1>} : memref<768x64xf32, #tpu.memory_space<vmem>>, vector<12x64xf32>
    %c33_62 = arith.constant 33 : index
    %c0_63 = arith.constant 0 : index
    %87 = tpu.strided_load %arg9[%c33_62, %c0_63] {strides = array<i32: 2, 1>} : memref<768x64xf32, #tpu.memory_space<vmem>>, vector<12x64xf32>
    %88 = arith.maximumf %86, %87 : vector<12x64xf32>
    %89 = arith.maximumf %85, %88 : vector<12x64xf32>
    %c64_64 = arith.constant 64 : index
    %c0_65 = arith.constant 0 : index
    %90 = tpu.strided_load %arg9[%c64_64, %c0_65] {strides = array<i32: 2, 1>} : memref<768x64xf32, #tpu.memory_space<vmem>>, vector<12x64xf32>
    %c65_66 = arith.constant 65 : index
    %c0_67 = arith.constant 0 : index
    %91 = tpu.strided_load %arg9[%c65_66, %c0_67] {strides = array<i32: 2, 1>} : memref<768x64xf32, #tpu.memory_space<vmem>>, vector<12x64xf32>
    %92 = arith.maximumf %90, %91 : vector<12x64xf32>
    %c96 = arith.constant 96 : index
    %c0_68 = arith.constant 0 : index
    %93 = tpu.strided_load %arg9[%c96, %c0_68] {strides = array<i32: 2, 1>} : memref<768x64xf32, #tpu.memory_space<vmem>>, vector<12x64xf32>
    %c97 = arith.constant 97 : index
    %c0_69 = arith.constant 0 : index
    %94 = tpu.strided_load %arg9[%c97, %c0_69] {strides = array<i32: 2, 1>} : memref<768x64xf32, #tpu.memory_space<vmem>>, vector<12x64xf32>
    %95 = arith.maximumf %93, %94 : vector<12x64xf32>
    %96 = arith.maximumf %92, %95 : vector<12x64xf32>
    %97 = tpu.concatenate %89, %96 in 1 : vector<12x64xf32>, vector<12x64xf32> -> vector<12x128xf32>
    %c128 = arith.constant 128 : index
    %c0_70 = arith.constant 0 : index
    %98 = tpu.strided_load %arg9[%c128, %c0_70] {strides = array<i32: 2, 1>} : memref<768x64xf32, #tpu.memory_space<vmem>>, vector<12x64xf32>
    %c129 = arith.constant 129 : index
    %c0_71 = arith.constant 0 : index
    %99 = tpu.strided_load %arg9[%c129, %c0_71] {strides = array<i32: 2, 1>} : memref<768x64xf32, #tpu.memory_space<vmem>>, vector<12x64xf32>
    %100 = arith.maximumf %98, %99 : vector<12x64xf32>
    %c160 = arith.constant 160 : index
    %c0_72 = arith.constant 0 : index
    %101 = tpu.strided_load %arg9[%c160, %c0_72] {strides = array<i32: 2, 1>} : memref<768x64xf32, #tpu.memory_space<vmem>>, vector<12x64xf32>
    %c161 = arith.constant 161 : index
    %c0_73 = arith.constant 0 : index
    %102 = tpu.strided_load %arg9[%c161, %c0_73] {strides = array<i32: 2, 1>} : memref<768x64xf32, #tpu.memory_space<vmem>>, vector<12x64xf32>
    %103 = arith.maximumf %101, %102 : vector<12x64xf32>
    %104 = arith.maximumf %100, %103 : vector<12x64xf32>
    %c192 = arith.constant 192 : index
    %c0_74 = arith.constant 0 : index
    %105 = tpu.strided_load %arg9[%c192, %c0_74] {strides = array<i32: 2, 1>} : memref<768x64xf32, #tpu.memory_space<vmem>>, vector<12x64xf32>
    %c193 = arith.constant 193 : index
    %c0_75 = arith.constant 0 : index
    %106 = tpu.strided_load %arg9[%c193, %c0_75] {strides = array<i32: 2, 1>} : memref<768x64xf32, #tpu.memory_space<vmem>>, vector<12x64xf32>
    %107 = arith.maximumf %105, %106 : vector<12x64xf32>
    %c224 = arith.constant 224 : index
    %c0_76 = arith.constant 0 : index
    %108 = tpu.strided_load %arg9[%c224, %c0_76] {strides = array<i32: 2, 1>} : memref<768x64xf32, #tpu.memory_space<vmem>>, vector<12x64xf32>
    %c225 = arith.constant 225 : index
    %c0_77 = arith.constant 0 : index
    %109 = tpu.strided_load %arg9[%c225, %c0_77] {strides = array<i32: 2, 1>} : memref<768x64xf32, #tpu.memory_space<vmem>>, vector<12x64xf32>
    %110 = arith.maximumf %108, %109 : vector<12x64xf32>
    %111 = arith.maximumf %107, %110 : vector<12x64xf32>
    %112 = tpu.concatenate %104, %111 in 1 : vector<12x64xf32>, vector<12x64xf32> -> vector<12x128xf32>
    %c256 = arith.constant 256 : index
    %c0_78 = arith.constant 0 : index
    %113 = tpu.strided_load %arg9[%c256, %c0_78] {strides = array<i32: 2, 1>} : memref<768x64xf32, #tpu.memory_space<vmem>>, vector<12x64xf32>
    %c257 = arith.constant 257 : index
    %c0_79 = arith.constant 0 : index
    %114 = tpu.strided_load %arg9[%c257, %c0_79] {strides = array<i32: 2, 1>} : memref<768x64xf32, #tpu.memory_space<vmem>>, vector<12x64xf32>
    %115 = arith.maximumf %113, %114 : vector<12x64xf32>
    %c288 = arith.constant 288 : index
    %c0_80 = arith.constant 0 : index
    %116 = tpu.strided_load %arg9[%c288, %c0_80] {strides = array<i32: 2, 1>} : memref<768x64xf32, #tpu.memory_space<vmem>>, vector<12x64xf32>
    %c289 = arith.constant 289 : index
    %c0_81 = arith.constant 0 : index
    %117 = tpu.strided_load %arg9[%c289, %c0_81] {strides = array<i32: 2, 1>} : memref<768x64xf32, #tpu.memory_space<vmem>>, vector<12x64xf32>
    %118 = arith.maximumf %116, %117 : vector<12x64xf32>
    %119 = arith.maximumf %115, %118 : vector<12x64xf32>
    %c320 = arith.constant 320 : index
    %c0_82 = arith.constant 0 : index
    %120 = tpu.strided_load %arg9[%c320, %c0_82] {strides = array<i32: 2, 1>} : memref<768x64xf32, #tpu.memory_space<vmem>>, vector<12x64xf32>
    %c321 = arith.constant 321 : index
    %c0_83 = arith.constant 0 : index
    %121 = tpu.strided_load %arg9[%c321, %c0_83] {strides = array<i32: 2, 1>} : memref<768x64xf32, #tpu.memory_space<vmem>>, vector<12x64xf32>
    %122 = arith.maximumf %120, %121 : vector<12x64xf32>
    %c352 = arith.constant 352 : index
    %c0_84 = arith.constant 0 : index
    %123 = tpu.strided_load %arg9[%c352, %c0_84] {strides = array<i32: 2, 1>} : memref<768x64xf32, #tpu.memory_space<vmem>>, vector<12x64xf32>
    %c353 = arith.constant 353 : index
    %c0_85 = arith.constant 0 : index
    %124 = tpu.strided_load %arg9[%c353, %c0_85] {strides = array<i32: 2, 1>} : memref<768x64xf32, #tpu.memory_space<vmem>>, vector<12x64xf32>
    %125 = arith.maximumf %123, %124 : vector<12x64xf32>
    %126 = arith.maximumf %122, %125 : vector<12x64xf32>
    %127 = tpu.concatenate %119, %126 in 1 : vector<12x64xf32>, vector<12x64xf32> -> vector<12x128xf32>
    %c384 = arith.constant 384 : index
    %c0_86 = arith.constant 0 : index
    %128 = tpu.strided_load %arg9[%c384, %c0_86] {strides = array<i32: 2, 1>} : memref<768x64xf32, #tpu.memory_space<vmem>>, vector<12x64xf32>
    %c385 = arith.constant 385 : index
    %c0_87 = arith.constant 0 : index
    %129 = tpu.strided_load %arg9[%c385, %c0_87] {strides = array<i32: 2, 1>} : memref<768x64xf32, #tpu.memory_space<vmem>>, vector<12x64xf32>
    %130 = arith.maximumf %128, %129 : vector<12x64xf32>
    %c416 = arith.constant 416 : index
    %c0_88 = arith.constant 0 : index
    %131 = tpu.strided_load %arg9[%c416, %c0_88] {strides = array<i32: 2, 1>} : memref<768x64xf32, #tpu.memory_space<vmem>>, vector<12x64xf32>
    %c417 = arith.constant 417 : index
    %c0_89 = arith.constant 0 : index
    %132 = tpu.strided_load %arg9[%c417, %c0_89] {strides = array<i32: 2, 1>} : memref<768x64xf32, #tpu.memory_space<vmem>>, vector<12x64xf32>
    %133 = arith.maximumf %131, %132 : vector<12x64xf32>
    %134 = arith.maximumf %130, %133 : vector<12x64xf32>
    %c448 = arith.constant 448 : index
    %c0_90 = arith.constant 0 : index
    %135 = tpu.strided_load %arg9[%c448, %c0_90] {strides = array<i32: 2, 1>} : memref<768x64xf32, #tpu.memory_space<vmem>>, vector<12x64xf32>
    %c449 = arith.constant 449 : index
    %c0_91 = arith.constant 0 : index
    %136 = tpu.strided_load %arg9[%c449, %c0_91] {strides = array<i32: 2, 1>} : memref<768x64xf32, #tpu.memory_space<vmem>>, vector<12x64xf32>
    %137 = arith.maximumf %135, %136 : vector<12x64xf32>
    %c480 = arith.constant 480 : index
    %c0_92 = arith.constant 0 : index
    %138 = tpu.strided_load %arg9[%c480, %c0_92] {strides = array<i32: 2, 1>} : memref<768x64xf32, #tpu.memory_space<vmem>>, vector<12x64xf32>
    %c481 = arith.constant 481 : index
    %c0_93 = arith.constant 0 : index
    %139 = tpu.strided_load %arg9[%c481, %c0_93] {strides = array<i32: 2, 1>} : memref<768x64xf32, #tpu.memory_space<vmem>>, vector<12x64xf32>
    %140 = arith.maximumf %138, %139 : vector<12x64xf32>
    %141 = arith.maximumf %137, %140 : vector<12x64xf32>
    %142 = tpu.concatenate %134, %141 in 1 : vector<12x64xf32>, vector<12x64xf32> -> vector<12x128xf32>
    %c512 = arith.constant 512 : index
    %c0_94 = arith.constant 0 : index
    %143 = tpu.strided_load %arg9[%c512, %c0_94] {strides = array<i32: 2, 1>} : memref<768x64xf32, #tpu.memory_space<vmem>>, vector<12x64xf32>
    %c513 = arith.constant 513 : index
    %c0_95 = arith.constant 0 : index
    %144 = tpu.strided_load %arg9[%c513, %c0_95] {strides = array<i32: 2, 1>} : memref<768x64xf32, #tpu.memory_space<vmem>>, vector<12x64xf32>
    %145 = arith.maximumf %143, %144 : vector<12x64xf32>
    %c544 = arith.constant 544 : index
    %c0_96 = arith.constant 0 : index
    %146 = tpu.strided_load %arg9[%c544, %c0_96] {strides = array<i32: 2, 1>} : memref<768x64xf32, #tpu.memory_space<vmem>>, vector<12x64xf32>
    %c545 = arith.constant 545 : index
    %c0_97 = arith.constant 0 : index
    %147 = tpu.strided_load %arg9[%c545, %c0_97] {strides = array<i32: 2, 1>} : memref<768x64xf32, #tpu.memory_space<vmem>>, vector<12x64xf32>
    %148 = arith.maximumf %146, %147 : vector<12x64xf32>
    %149 = arith.maximumf %145, %148 : vector<12x64xf32>
    %c576 = arith.constant 576 : index
    %c0_98 = arith.constant 0 : index
    %150 = tpu.strided_load %arg9[%c576, %c0_98] {strides = array<i32: 2, 1>} : memref<768x64xf32, #tpu.memory_space<vmem>>, vector<12x64xf32>
    %c577 = arith.constant 577 : index
    %c0_99 = arith.constant 0 : index
    %151 = tpu.strided_load %arg9[%c577, %c0_99] {strides = array<i32: 2, 1>} : memref<768x64xf32, #tpu.memory_space<vmem>>, vector<12x64xf32>
    %152 = arith.maximumf %150, %151 : vector<12x64xf32>
    %c608 = arith.constant 608 : index
    %c0_100 = arith.constant 0 : index
    %153 = tpu.strided_load %arg9[%c608, %c0_100] {strides = array<i32: 2, 1>} : memref<768x64xf32, #tpu.memory_space<vmem>>, vector<12x64xf32>
    %c609 = arith.constant 609 : index
    %c0_101 = arith.constant 0 : index
    %154 = tpu.strided_load %arg9[%c609, %c0_101] {strides = array<i32: 2, 1>} : memref<768x64xf32, #tpu.memory_space<vmem>>, vector<12x64xf32>
    %155 = arith.maximumf %153, %154 : vector<12x64xf32>
    %156 = arith.maximumf %152, %155 : vector<12x64xf32>
    %157 = tpu.concatenate %149, %156 in 1 : vector<12x64xf32>, vector<12x64xf32> -> vector<12x128xf32>
    %c640 = arith.constant 640 : index
    %c0_102 = arith.constant 0 : index
    %158 = tpu.strided_load %arg9[%c640, %c0_102] {strides = array<i32: 2, 1>} : memref<768x64xf32, #tpu.memory_space<vmem>>, vector<12x64xf32>
    %c641 = arith.constant 641 : index
    %c0_103 = arith.constant 0 : index
    %159 = tpu.strided_load %arg9[%c641, %c0_103] {strides = array<i32: 2, 1>} : memref<768x64xf32, #tpu.memory_space<vmem>>, vector<12x64xf32>
    %160 = arith.maximumf %158, %159 : vector<12x64xf32>
    %c672 = arith.constant 672 : index
    %c0_104 = arith.constant 0 : index
    %161 = tpu.strided_load %arg9[%c672, %c0_104] {strides = array<i32: 2, 1>} : memref<768x64xf32, #tpu.memory_space<vmem>>, vector<12x64xf32>
    %c673 = arith.constant 673 : index
    %c0_105 = arith.constant 0 : index
    %162 = tpu.strided_load %arg9[%c673, %c0_105] {strides = array<i32: 2, 1>} : memref<768x64xf32, #tpu.memory_space<vmem>>, vector<12x64xf32>
    %163 = arith.maximumf %161, %162 : vector<12x64xf32>
    %164 = arith.maximumf %160, %163 : vector<12x64xf32>
    %c704 = arith.constant 704 : index
    %c0_106 = arith.constant 0 : index
    %165 = tpu.strided_load %arg9[%c704, %c0_106] {strides = array<i32: 2, 1>} : memref<768x64xf32, #tpu.memory_space<vmem>>, vector<12x64xf32>
    %c705 = arith.constant 705 : index
    %c0_107 = arith.constant 0 : index
    %166 = tpu.strided_load %arg9[%c705, %c0_107] {strides = array<i32: 2, 1>} : memref<768x64xf32, #tpu.memory_space<vmem>>, vector<12x64xf32>
    %167 = arith.maximumf %165, %166 : vector<12x64xf32>
    %c736 = arith.constant 736 : index
    %c0_108 = arith.constant 0 : index
    %168 = tpu.strided_load %arg9[%c736, %c0_108] {strides = array<i32: 2, 1>} : memref<768x64xf32, #tpu.memory_space<vmem>>, vector<12x64xf32>
    %c737 = arith.constant 737 : index
    %c0_109 = arith.constant 0 : index
    %169 = tpu.strided_load %arg9[%c737, %c0_109] {strides = array<i32: 2, 1>} : memref<768x64xf32, #tpu.memory_space<vmem>>, vector<12x64xf32>
    %170 = arith.maximumf %168, %169 : vector<12x64xf32>
    %171 = arith.maximumf %167, %170 : vector<12x64xf32>
    %172 = tpu.concatenate %164, %171 in 1 : vector<12x64xf32>, vector<12x64xf32> -> vector<12x128xf32>
    %173 = tpu.concatenate %97, %112, %127, %142, %157, %172 in 0 : vector<12x128xf32>, vector<12x128xf32>, vector<12x128xf32>, vector<12x128xf32>, vector<12x128xf32>, vector<12x128xf32> -> vector<72x128xf32>
    %174 = arith.truncf %173 : vector<72x128xf32> to vector<72x128xbf16>
    %c0_110 = arith.constant 0 : index
    %c0_111 = arith.constant 0 : index
    %c0_112 = arith.constant 0 : index
    %175 = vector.load %arg6[%c0_110, %c0_111, %c0_112] : memref<1x72x128xbf16, #tpu.memory_space<vmem>>, vector<1x72x128xbf16>
    %176 = vector.shape_cast %175 : vector<1x72x128xbf16> to vector<72x128xbf16>
    %177 = vector.shape_cast %174 : vector<72x128xbf16> to vector<1x72x128xbf16>
    tpu.vector_store %arg6[%c0_110, %c0_111, %c0_112], %177 {strides = array<i32>} : memref<1x72x128xbf16, #tpu.memory_space<vmem>>, vector<1x72x128xbf16>,
    return
  }
  func.func @transform_0(%arg0: i32) -> (i32, i32, i32) {
    %c0_i32 = arith.constant 0 : i32
    %c0_i32_0 = arith.constant 0 : i32
    %c0_i32_1 = arith.constant 0 : i32
    return %arg0, %c0_i32, %c0_i32_0 : i32, i32, i32
  }
  func.func @transform_1(%arg0: i32) -> (i32, i32) {
    %c0_i32 = arith.constant 0 : i32
    %c0_i32_0 = arith.constant 0 : i32
    %c0_i32_1 = arith.constant 0 : i32
    return %c0_i32, %c0_i32_0 : i32, i32
  }
  func.func @transform_2(%arg0: i32) -> (i32, i32) {
    %c0_i32 = arith.constant 0 : i32
    %c0_i32_0 = arith.constant 0 : i32
    %c0_i32_1 = arith.constant 0 : i32
    return %c0_i32, %c0_i32_0 : i32, i32
  }
  func.func @transform_3(%arg0: i32) -> (i32, i32) {
    %c0_i32 = arith.constant 0 : i32
    %c0_i32_0 = arith.constant 0 : i32
    %c0_i32_1 = arith.constant 0 : i32
    return %c0_i32, %c0_i32_0 : i32, i32
  }
  func.func @transform_4(%arg0: i32) -> (i32, i32) {
    %c0_i32 = arith.constant 0 : i32
    %c0_i32_0 = arith.constant 0 : i32
    %c0_i32_1 = arith.constant 0 : i32
    return %c0_i32, %c0_i32_0 : i32, i32
  }
  func.func @transform_5(%arg0: i32) -> (i32, i32, i32) {
    %c0_i32 = arith.constant 0 : i32
    %c0_i32_0 = arith.constant 0 : i32
    %c0_i32_1 = arith.constant 0 : i32
    return %arg0, %c0_i32, %c0_i32_0 : i32, i32, i32
  }
}

module attributes {stable_mosaic.version = 11 : i64} {
  func.func @_fc_head_kernel(%arg0: i32, %arg1: memref<8x9216xbf16, #tpu.memory_space<vmem>>, %arg2: memref<9216x128xbf16, #tpu.memory_space<vmem>>, %arg3: memref<1x128xf32, #tpu.memory_space<vmem>>, %arg4: memref<128x10xf32, #tpu.memory_space<vmem>>, %arg5: memref<1x10xf32, #tpu.memory_space<vmem>>, %arg6: memref<8x10xf32, #tpu.memory_space<vmem>>) attributes {dimension_semantics = [#tpu.dimension_semantics<parallel>], iteration_bounds = array<i64: 1>, scalar_prefetch = 0 : i64, scratch_operands = 0 : i64, tpu.core_type = #tpu.core_type<tc>, window_params = [{transform_indices = @transform_0, window_bounds = array<i64: 8, 9216>}, {pipeline_mode = #tpu.pipeline_mode<synchronous>, transform_indices = @transform_1, window_bounds = array<i64: 9216, 128>}, {pipeline_mode = #tpu.pipeline_mode<synchronous>, transform_indices = @transform_2, window_bounds = array<i64: 1, 128>}, {pipeline_mode = #tpu.pipeline_mode<synchronous>, transform_indices = @transform_3, window_bounds = array<i64: 128, 10>}, {pipeline_mode = #tpu.pipeline_mode<synchronous>, transform_indices = @transform_4, window_bounds = array<i64: 1, 10>}, {transform_indices = @transform_5, window_bounds = array<i64: 8, 10>}]} {
    %c0 = arith.constant 0 : index
    %c0_0 = arith.constant 0 : index
    %0 = vector.load %arg1[%c0, %c0_0] : memref<8x9216xbf16, #tpu.memory_space<vmem>>, vector<8x9216xbf16>
    %c0_1 = arith.constant 0 : index
    %c0_2 = arith.constant 0 : index
    %1 = vector.load %arg2[%c0_1, %c0_2] : memref<9216x128xbf16, #tpu.memory_space<vmem>>, vector<9216x128xbf16>
    %cst = arith.constant dense<0.000000e+00> : vector<8x128xf32>
    %2 = tpu.matmul %0, %1, %cst {dimension_numbers = #tpu.dot_dimension_numbers<[1], [0], [0], [1], [0, 0, 1, 1], [], []>} : vector<8x9216xbf16>, vector<9216x128xbf16>, vector<8x128xf32> -> vector<8x128xf32>
    %c0_3 = arith.constant 0 : index
    %c0_4 = arith.constant 0 : index
    %3 = vector.load %arg3[%c0_3, %c0_4] : memref<1x128xf32, #tpu.memory_space<vmem>>, vector<1x128xf32>
    %4 = vector.broadcast %3 : vector<1x128xf32> to vector<8x128xf32>
    %5 = arith.addf %2, %4 : vector<8x128xf32>
    %cst_5 = arith.constant 0.000000e+00 : f32
    %6 = vector.broadcast %cst_5 : f32 to vector<8x128xf32>
    %7 = arith.maximumf %5, %6 : vector<8x128xf32>
    %c0_6 = arith.constant 0 : index
    %c0_7 = arith.constant 0 : index
    %8 = vector.load %arg4[%c0_6, %c0_7] : memref<128x10xf32, #tpu.memory_space<vmem>>, vector<128x10xf32>
    %cst_8 = arith.constant dense<0.000000e+00> : vector<8x10xf32>
    %9 = tpu.matmul %7, %8, %cst_8 {dimension_numbers = #tpu.dot_dimension_numbers<[1], [0], [0], [1], [0, 0, 1, 1], [], []>} : vector<8x128xf32>, vector<128x10xf32>, vector<8x10xf32> -> vector<8x10xf32>
    %c0_9 = arith.constant 0 : index
    %c0_10 = arith.constant 0 : index
    %10 = vector.load %arg5[%c0_9, %c0_10] : memref<1x10xf32, #tpu.memory_space<vmem>>, vector<1x10xf32>
    %11 = vector.broadcast %10 : vector<1x10xf32> to vector<8x10xf32>
    %12 = arith.addf %9, %11 : vector<8x10xf32>
    %cst_11 = arith.constant dense<0xFF800000> : vector<8xf32>
    %13 = vector.multi_reduction <maximumf>, %12, %cst_11 [1] : vector<8x10xf32> to vector<8xf32>
    %14 = vector.shape_cast %13 : vector<8xf32> to vector<8x1xf32>
    %15 = vector.broadcast %14 : vector<8x1xf32> to vector<8x10xf32>
    %16 = arith.subf %12, %15 : vector<8x10xf32>
    %17 = math.exp %16 : vector<8x10xf32>
    %cst_12 = arith.constant dense<0.000000e+00> : vector<8xf32>
    %18 = vector.multi_reduction <add>, %17, %cst_12 [1] : vector<8x10xf32> to vector<8xf32>
    %19 = vector.shape_cast %18 : vector<8xf32> to vector<8x1xf32>
    %20 = math.log %19 : vector<8x1xf32>
    %21 = vector.broadcast %20 : vector<8x1xf32> to vector<8x10xf32>
    %22 = arith.subf %16, %21 : vector<8x10xf32>
    %c0_13 = arith.constant 0 : index
    %c0_14 = arith.constant 0 : index
    %23 = vector.load %arg6[%c0_13, %c0_14] : memref<8x10xf32, #tpu.memory_space<vmem>>, vector<8x10xf32>
    tpu.vector_store %arg6[%c0_13, %c0_14], %22 {strides = array<i32>} : memref<8x10xf32, #tpu.memory_space<vmem>>, vector<8x10xf32>,
    return
  }
  func.func @transform_0(%arg0: i32) -> (i32, i32) {
    %c0_i32 = arith.constant 0 : i32
    %c0_i32_0 = arith.constant 0 : i32
    return %arg0, %c0_i32 : i32, i32
  }
  func.func @transform_1(%arg0: i32) -> (i32, i32) {
    %c0_i32 = arith.constant 0 : i32
    %c0_i32_0 = arith.constant 0 : i32
    %c0_i32_1 = arith.constant 0 : i32
    return %c0_i32, %c0_i32_0 : i32, i32
  }
  func.func @transform_2(%arg0: i32) -> (i32, i32) {
    %c0_i32 = arith.constant 0 : i32
    %c0_i32_0 = arith.constant 0 : i32
    %c0_i32_1 = arith.constant 0 : i32
    return %c0_i32, %c0_i32_0 : i32, i32
  }
  func.func @transform_3(%arg0: i32) -> (i32, i32) {
    %c0_i32 = arith.constant 0 : i32
    %c0_i32_0 = arith.constant 0 : i32
    %c0_i32_1 = arith.constant 0 : i32
    return %c0_i32, %c0_i32_0 : i32, i32
  }
  func.func @transform_4(%arg0: i32) -> (i32, i32) {
    %c0_i32 = arith.constant 0 : i32
    %c0_i32_0 = arith.constant 0 : i32
    %c0_i32_1 = arith.constant 0 : i32
    return %c0_i32, %c0_i32_0 : i32, i32
  }
  func.func @transform_5(%arg0: i32) -> (i32, i32) {
    %c0_i32 = arith.constant 0 : i32
    %c0_i32_0 = arith.constant 0 : i32
    return %arg0, %c0_i32 : i32, i32
  }
}

</mosaic_0001>

<bundles_post_ra>
// kernel: net_forward.2
= control target key start
LH: loop header
LB: loop body
LE: loop exit
PB: predicated region body
PF: predicated region fallthrough
CT: control target
= control target key end

     0   :  { %10 = vsyncpa [#allocation6], 0  ;;  %s11981_s0 = inlined_call_operand.vmem [shape: f32[2,928,1], index: 0, kind: input, shape index: {}]   ;;  %s11982_s1 = inlined_call_operand.hbm [shape: f32[9,32], index: 1, kind: input, shape index: {}]   ;;  %s11983_s2 = inlined_call_operand.hbm [shape: f32[1,32], index: 2, kind: input, shape index: {}]   ;;  %s11984_s3 = inlined_call_operand.vmem [shape: bf16[288,64], index: 3, kind: input, shape index: {}]   ;;  %s11985_s4 = inlined_call_operand.hbm [shape: f32[1,64], index: 4, kind: input, shape index: {}]   ;;  %s11986_s5 = inlined_call_operand.vmem [shape: bf16[2,72,128], index: 5, kind: output, shape index: {}]  }
   0x1   :  { %11 = vsyncpa [#allocation8], 0  ;;  %s7959_s18 = smov 0  }
   0x2 LB: > { %s7920_s19 = smov [#allocation7]   ;;  %s7965_s21 = sadd.s32 4294967295, %s7918_s18   ;;  %s7918_s18 = sphi %s7959_s18, %s17_s18  }
   0x3   : > { %s184_s20 = sshll.u32 %s7920_s19, 4  ;;  %p7362_p0 = scmp.ge.s32.totalorder %s7918_s18, 1  ;;  %s185_s20 = int_to_ptr.vmem [resolvable:$true] %s184_s20 }
   0x4   : > { %p158_p1 = scmp.lt.s32.totalorder %s7918_s18, 3  ;;  %p11987_p2 = scmp.eq.s32.totalorder %s7965_s21, 0 }
   0x5   : > { %s7921_s23 = smov [#allocation5]   ;;  %s7922_s26 = smov [#allocation9]  }
   0x6   : > { %p7970_p3 = pnand %p7362_p0, %p158_p1  ;;  %s170_s24 = sshll.u32 %s7921_s23, 4  ;;  %s171_s24 = int_to_ptr.vmem [resolvable:$true] %s170_s24 }
   0x7   : > { %s198_s27 = sshll.u32 %s7922_s26, 4  ;;  %s7837_s28 = scalar_lea.vmem %s185_s20, 16  ;;  %s7982_s27 = int_to_ptr.vmem [resolvable:$true] %s198_s27 }
   0x8   : > { %s12007_s22 = scalar_select %p7970_p3, 1, 0 }
   0x9   : > { %p7689_p4 = pneg %p7970_p3  ;;  %p7838_p7 = scmp.ne.s32.totalorder %s185_s20, %s7837_s28 }
   0xa   : > { %s7844_s29 = scalar_lea.vmem %s185_s20, 32  ;;  %p7845_p10 = scmp.lt.s32.totalorder %s185_s20, %s185_s20 }
   0xb   : > { %p7978_p5 = pnand %p11987_p2, %p7689_p4  ;;  %p7846_p11 = scmp.lt.s32.totalorder %s7844_s29, %s7837_s28 }
   0xd   : > { %p7828_p6 = pneg %p7978_p5  ;;  %p7847_p12 = por %p7846_p11, %p7845_p10 }
   0xf   : > { %p7840_p8 = pnand %p7838_p7, %p7828_p6 }
  0x11   : > { %p7841_p9 = pneg %p7840_p8 }
  0x13   : > { %p7848_p13 = pnand %p7847_p12, %p7841_p9 }
  0x15   : > { %7851 = shalt.err (!%p7848_p13)
}
  0x16   : > { %7695 = dma.hbm_to_vmem [thread:$0]  (!%p7978_p5), %s11983_s2, 16, %s185_s20, [#allocation8]  }
  0x17   : > { %s7863_s7 = scalar_lea.vmem %s171_s24, 256  ;;  %p7871_p7 = scmp.lt.s32.totalorder %s171_s24, %s171_s24 }
  0x18   : > { %p7864_p0 = scmp.ne.s32.totalorder %s171_s24, %s7863_s7  ;;  %p7872_p8 = scmp.lt.s32.totalorder %s7863_s7, %s7863_s7 }
  0x1a   : > { %p7866_p1 = pnand %p7864_p0, %p7828_p6  ;;  %p7873_p2 = por %p7872_p8, %p7871_p7 }
  0x1c   : > { %p7867_p4 = pneg %p7866_p1 }
  0x1e   : > { %p7874_p3 = pnand %p7873_p2, %p7867_p4 }
  0x20   : > { %7877 = shalt.err (!%p7874_p3)
}
  0x21   : > { %s7923_s8 = smov 128   ;;  %s7924_s9 = smov 8  }
  0x22   : > { %7692 = dma.hbm_to_vmem [thread:$0]  (!%p7978_p5), %s11982_s1, 256, %s171_s24, [#allocation6], %s7923_s8, %s7923_s8, %s7924_s9  }
  0x23   : > { %s7889_s12 = scalar_lea.vmem %s7982_s27, 16  ;;  %s7896_s13 = scalar_lea.vmem %s7982_s27, 32 }
  0x24   : > { %p7890_p9 = scmp.ne.s32.totalorder %s7982_s27, %s7889_s12  ;;  %p7897_p3 = scmp.lt.s32.totalorder %s7982_s27, %s7982_s27 }
  0x25   : > { %p7898_p11 = scmp.lt.s32.totalorder %s7896_s13, %s7889_s12 }
  0x26   : > { %p7892_p10 = pnand %p7890_p9, %p7828_p6 }
  0x27   : > { %p7899_p12 = por %p7898_p11, %p7897_p3 }
  0x28   : > { %p7893_p2 = pneg %p7892_p10 }
  0x2a   : > { %p7900_p13 = pnand %p7899_p12, %p7893_p2 }
  0x2c   : > { %7903 = shalt.err (!%p7900_p13)
}
  0x2d   : > { %7698 = dma.hbm_to_vmem [thread:$0]  (!%p7978_p5), %s11985_s4, 16, %s7982_s27, [#allocation8]  }
  0x2e   : > { %p12009_p0 = scmp.ne.s32.totalorder %s12007_s22, 0 }
  0x30   : > { %219 = sbr.rel (%p12009_p0) target bundleno = 1681 (0x691), region = 40 }
  0x35   : > { %p12010_p6 = scmp.eq.s32.totalorder %s7965_s21, 0 }
  0x37   : > { %7909 = dma.done.wait (%p12010_p6), [#allocation6], 256   ;;  %p12011_p1 = pmov %p12010_p6 }
  0x39   : > { %7911 = vsyncadd (%p12011_p1), [#allocation6], 4294967040  ;;  %p12012_p4 = pmov %p12011_p1 }
  0x3a   : > { %p12013_p7 = pmov %p12011_p1 }
  0x3b   : > { %7913 = dma.done.wait (%p12012_p4), [#allocation8], 32  }
  0x3c   : > { %7915 = vsyncadd (%p12013_p7), [#allocation8], 4294967264  ;;  %p255_p8 = scmp.lt.s32.totalorder %s7965_s21, 1  ;;  %v7925_v0 = vmov 0   ;;  %vm962_vm0 = vcmask 261120   ;;  %s7926_s22 = smov 32  }
  0x3d   : > { %7723 = vset.pattern.permute.xlu1 %v7925_v0  ;;  %7722 = vset.pattern.permute.xlu0 %v7925_v0  ;;  %s7927_s29 = smov 64   ;;  %s7928_s9 = smov 96   ;;  %vm4933_vm1 = vcmask 523264   ;;  %vm5030_vm2 = vcmask 785408   ;;  %vm7205_vm3 = vcmask 1043456  }
  0x3e   : > { %s12071_s21 = smov (!%p255_p8, %s7965_s21), 1  ;;  %7643 = vmatprep.subr.bf16.mxu1 %v7925_v0  ;;  %5854 = vmatprep.subr.bf16.mxu0 %v7925_v0 }
  0x3f   : > { %s7675_s16 = smul.u32 928, %s12071_s21 }
  0x41   : > { %s8038_s20 = scalar_lea.vmem %s11981_s0, %s7675_s16 }
  0x42   : > { %v268_v1 = vld [vmem:[%s8038_s20 + $0x10] sm:$0xff]  ;;  %v266_v2 = vld [vmem:[%s8038_s20] sm:$0xff]  ;;  %v269_v3 = vld [vmem:[%s8038_s20 + $0x18] sm:$0xff] }
  0x43   : > { %394 = vperm.xlu1 %7723, %v268_v1   ;;  %384 = vperm.xlu0 %7722, %v266_v2   ;;  %v267_v4 = vld [vmem:[%s8038_s20 + $0x8] sm:$0xff]  ;;  %v270_v6 = vld [vmem:[%s8038_s20 + $0x20] sm:$0xff]  ;;  %v273_v7 = vld [vmem:[%s8038_s20 + $0x38] sm:$0xff] }
  0x44   : > { %v271_v5 = vld [vmem:[%s8038_s20 + $0x28] sm:$0xff]  ;;  %v272_v8 = vld [vmem:[%s8038_s20 + $0x30] sm:$0xff]  ;;  %v274_v10 = vld [vmem:[%s8038_s20 + $0x40] sm:$0xff] }
  0x45   : > { %v275_v9 = vld [vmem:[%s8038_s20 + $0x48] sm:$0xff]  ;;  %v277_v11 = vld [vmem:[%s8038_s20 + $0x58] sm:$0xff]  ;;  %v276_v12 = vld [vmem:[%s8038_s20 + $0x50] sm:$0xff] }
  0x46   : > { %v279_v13 = vld [vmem:[%s8038_s20 + $0x68] sm:$0xff]  ;;  %v278_v14 = vld [vmem:[%s8038_s20 + $0x60] sm:$0xff]  ;;  %v281_v15 = vld [vmem:[%s8038_s20 + $0x78] sm:$0xff] }
  0x47   : > { %399 = vperm.xlu1 %7723, %v269_v3   ;;  %389 = vperm.xlu0 %7722, %v267_v4   ;;  %v280_v16 = vld [vmem:[%s8038_s20 + $0x70] sm:$0xff]  ;;  %v283_v17 = vld [vmem:[%s8038_s20 + $0x88] sm:$0xff]  ;;  %v282_v18 = vld [vmem:[%s8038_s20 + $0x80] sm:$0xff] }
  0x48   : > { %v285_v19 = vld [vmem:[%s8038_s20 + $0x98] sm:$0xff]  ;;  %v284_v20 = vld [vmem:[%s8038_s20 + $0x90] sm:$0xff]  ;;  %v287_v21 = vld [vmem:[%s8038_s20 + $0xa8] sm:$0xff] }
  0x49   : > { %v286_v22 = vld [vmem:[%s8038_s20 + $0xa0] sm:$0xff]  ;;  %v289_v23 = vld [vmem:[%s8038_s20 + $0xb8] sm:$0xff]  ;;  %v288_v24 = vld [vmem:[%s8038_s20 + $0xb0] sm:$0xff] }
  0x4a   : > { %v291_v25 = vld [vmem:[%s8038_s20 + $0xc8] sm:$0xff]  ;;  %v290_v26 = vld [vmem:[%s8038_s20 + $0xc0] sm:$0xff]  ;;  %v293_v27 = vld [vmem:[%s8038_s20 + $0xd8] sm:$0xff] }
  0x4b   : > { %409 = vperm.xlu1 %7723, %v271_v5   ;;  %404 = vperm.xlu0 %7722, %v270_v6   ;;  %v292_v28 = vld [vmem:[%s8038_s20 + $0xd0] sm:$0xff]  ;;  %v295_v29 = vld [vmem:[%s8038_s20 + $0xe8] sm:$0xff]  ;;  %v294_v30 = vld [vmem:[%s8038_s20 + $0xe0] sm:$0xff] }
  0x4c   : > { %v297_v31 = vld [vmem:[%s8038_s20 + $0xf8] sm:$0xff]  ;;  %v296_v32 = vld [vmem:[%s8038_s20 + $0xf0] sm:$0xff]  ;;  %v299_v33 = vld [vmem:[%s8038_s20 + $0x108] sm:$0xff] }
  0x4d   : > { %v298_v34 = vld [vmem:[%s8038_s20 + $0x100] sm:$0xff]  ;;  %v301_v35 = vld [vmem:[%s8038_s20 + $0x118] sm:$0xff]  ;;  %v300_v36 = vld [vmem:[%s8038_s20 + $0x110] sm:$0xff] }
  0x4e   : > { %v303_v37 = vld [vmem:[%s8038_s20 + $0x128] sm:$0xff]  ;;  %v302_v38 = vld [vmem:[%s8038_s20 + $0x120] sm:$0xff]  ;;  %v305_v39 = vld [vmem:[%s8038_s20 + $0x138] sm:$0xff] }
  0x4f   : > { %419 = vperm.xlu1 %7723, %v273_v7   ;;  %414 = vperm.xlu0 %7722, %v272_v8   ;;  %v304_v40 = vld [vmem:[%s8038_s20 + $0x130] sm:$0xff]  ;;  %v307_v41 = vld [vmem:[%s8038_s20 + $0x148] sm:$0xff]  ;;  %v306_v42 = vld [vmem:[%s8038_s20 + $0x140] sm:$0xff] }
  0x50   : > { %v309_v43 = vld [vmem:[%s8038_s20 + $0x158] sm:$0xff]  ;;  %v308_v44 = vld [vmem:[%s8038_s20 + $0x150] sm:$0xff]  ;;  %v311_v45 = vld [vmem:[%s8038_s20 + $0x168] sm:$0xff] }
  0x51   : > { %v310_v46 = vld [vmem:[%s8038_s20 + $0x160] sm:$0xff]  ;;  %v313_v47 = vld [vmem:[%s8038_s20 + $0x178] sm:$0xff]  ;;  %v312_v48 = vld [vmem:[%s8038_s20 + $0x170] sm:$0xff] }
  0x52   : > { %v315_v49 = vld [vmem:[%s8038_s20 + $0x188] sm:$0xff]  ;;  %v314_v50 = vld [vmem:[%s8038_s20 + $0x180] sm:$0xff]  ;;  %v317_v51 = vld [vmem:[%s8038_s20 + $0x198] sm:$0xff] }
  0x53   : > { %429 = vperm.xlu1 %7723, %v275_v9   ;;  %424 = vperm.xlu0 %7722, %v274_v10   ;;  %v316_v52 = vld [vmem:[%s8038_s20 + $0x190] sm:$0xff]  ;;  %v319_v53 = vld [vmem:[%s8038_s20 + $0x1a8] sm:$0xff]  ;;  %v318_v54 = vld [vmem:[%s8038_s20 + $0x1a0] sm:$0xff] }
  0x54   : > { %v321_v55 = vld [vmem:[%s8038_s20 + $0x1b8] sm:$0xff]  ;;  %v320_v56 = vld [vmem:[%s8038_s20 + $0x1b0] sm:$0xff]  ;;  %v323_v57 = vld [vmem:[%s8038_s20 + $0x1c8] sm:$0xff] }
  0x55   : > { %v322_v58 = vld [vmem:[%s8038_s20 + $0x1c0] sm:$0xff]  ;;  %v325_v59 = vld [vmem:[%s8038_s20 + $0x1d8] sm:$0xff]  ;;  %v324_v60 = vld [vmem:[%s8038_s20 + $0x1d0] sm:$0xff] }
  0x56   : > { %v327_v61 = vld [vmem:[%s8038_s20 + $0x1e8] sm:$0xff]  ;;  %v326_v62 = vld [vmem:[%s8038_s20 + $0x1e0] sm:$0xff]  ;;  %v329_v63 = vld [vmem:[%s8038_s20 + $0x1f8] sm:$0xff] }
  0x57   : > { %439 = vperm.xlu1 %7723, %v277_v11   ;;  %434 = vperm.xlu0 %7722, %v276_v12   ;;  %v328_v1 = vld [vmem:[%s8038_s20 + $0x1f0] sm:$0xff]  ;;  %v331_v4 = vld [vmem:[%s8038_s20 + $0x208] sm:$0xff]  ;;  %v330_v5 = vld [vmem:[%s8038_s20 + $0x200] sm:$0xff] }
  0x58   : > { %v333_v8 = vld [vmem:[%s8038_s20 + $0x218] sm:$0xff]  ;;  %v332_v9 = vld [vmem:[%s8038_s20 + $0x210] sm:$0xff] }
  0x59   : > { %v8112_v10 = vld [vmem:[#allocation5] ss:$0 sm:$0xff] }
  0x5b   : > { %449 = vperm.xlu1 %7723, %v279_v13   ;;  %444 = vperm.xlu0 %7722, %v278_v14  }
  0x5f   : > { %459 = vperm.xlu1 %7723, %v281_v15   ;;  %454 = vperm.xlu0 %7722, %v280_v16   ;;  %v8114_v15 = vld [vmem:[#allocation7] ss:$0 sm:$0xff] }
  0x63   : > { %469 = vperm.xlu1 %7723, %v283_v17   ;;  %464 = vperm.xlu0 %7722, %v282_v18   ;;  %v8120_v18 = vld [vmem:[#allocation5 + $0x1] ss:$0 sm:$0xff] }
  0x67   : > { %479 = vperm.xlu1 %7723, %v285_v19   ;;  %474 = vperm.xlu0 %7722, %v284_v20   ;;  %v335_v19 = vld [vmem:[%s8038_s20 + $0x228] sm:$0xff]  ;;  %v334_v20 = vld [vmem:[%s8038_s20 + $0x220] sm:$0xff] }
  0x6b   : > { %489 = vperm.xlu1 %7723, %v287_v21   ;;  %484 = vperm.xlu0 %7722, %v286_v22   ;;  %v8125_v22 = vld [vmem:[#allocation5 + $0x2] ss:$0 sm:$0xff] }
  0x6f   : > { %499 = vperm.xlu1 %7723, %v289_v23   ;;  %494 = vperm.xlu0 %7722, %v288_v24  }
  0x73   : > { %509 = vperm.xlu1 %7723, %v291_v25   ;;  %504 = vperm.xlu0 %7722, %v290_v26  }
  0x77   : > { %519 = vperm.xlu1 %7723, %v293_v27   ;;  %514 = vperm.xlu0 %7722, %v292_v28  }
  0x7b   : > { %529 = vperm.xlu1 %7723, %v295_v29   ;;  %524 = vperm.xlu0 %7722, %v294_v30  }
  0x7f   : > { %539 = vperm.xlu1 %7723, %v297_v31   ;;  %534 = vperm.xlu0 %7722, %v296_v32  }
  0x83   : > { %549 = vperm.xlu1 %7723, %v299_v33   ;;  %544 = vperm.xlu0 %7722, %v298_v34  }
  0x87   : > { %559 = vperm.xlu1 %7723, %v301_v35   ;;  %554 = vperm.xlu0 %7722, %v300_v36  }
  0x8b   : > { %569 = vperm.xlu1 %7723, %v303_v37   ;;  %564 = vperm.xlu0 %7722, %v302_v38   ;;  %v337_v38 = vld [vmem:[%s8038_s20 + $0x238] sm:$0xff] }
  0x8f   : > { %579 = vperm.xlu1 %7723, %v305_v39   ;;  %574 = vperm.xlu0 %7722, %v304_v40  }
  0x93   : > { %589 = vperm.xlu1 %7723, %v307_v41   ;;  %584 = vperm.xlu0 %7722, %v306_v42   ;;  %v8136_v41 = vld [vmem:[#allocation5 + $0x3] ss:$0 sm:$0xff] }
  0x94   : > { %v336_v42 = vld [vmem:[%s8038_s20 + $0x230] sm:$0xff] }
  0x97   : > { %599 = vperm.xlu1 %7723, %v309_v43   ;;  %594 = vperm.xlu0 %7722, %v308_v44  }
  0x9b   : > { %609 = vperm.xlu1 %7723, %v311_v45   ;;  %604 = vperm.xlu0 %7722, %v310_v46  }
  0x9f   : > { %619 = vperm.xlu1 %7723, %v313_v47   ;;  %614 = vperm.xlu0 %7722, %v312_v48  }
  0xa3   : > { %629 = vperm.xlu1 %7723, %v315_v49   ;;  %624 = vperm.xlu0 %7722, %v314_v50  }
  0xa7   : > { %639 = vperm.xlu1 %7723, %v317_v51   ;;  %634 = vperm.xlu0 %7722, %v316_v52  }
  0xab   : > { %649 = vperm.xlu1 %7723, %v319_v53   ;;  %644 = vperm.xlu0 %7722, %v318_v54  }
  0xaf   : > { %659 = vperm.xlu1 %7723, %v321_v55   ;;  %654 = vperm.xlu0 %7722, %v320_v56  }
  0xb3   : > { %669 = vperm.xlu1 %7723, %v323_v57   ;;  %664 = vperm.xlu0 %7722, %v322_v58  }
  0xb7   : > { %679 = vperm.xlu1 %7723, %v325_v59   ;;  %674 = vperm.xlu0 %7722, %v324_v60  }
  0xbb   : > { %689 = vperm.xlu1 %7723, %v327_v61   ;;  %684 = vperm.xlu0 %7722, %v326_v62   ;;  %v8150_v61 = vld [vmem:[#allocation5 + $0x4] ss:$0 sm:$0xff] }
  0xbe   : > { %v395_v2 = vpop.permute.xlu1 %394  ;;  %v385_v3 = vpop.permute.xlu0 %384 }
  0xbf   : > { %965 = vst.msk [vmem:[#allocation2 + $0x10] sm:$0xff] %vm962_vm0, %v395_v2  ;;  %963 = vst.msk [vmem:[#allocation2] sm:$0xff] %vm962_vm0, %v385_v3  ;;  %699 = vperm.xlu1 %7723, %v329_v63   ;;  %694 = vperm.xlu0 %7722, %v328_v1   ;;  %v339_v1 = vld [vmem:[%s8038_s20 + $0x248] sm:$0xff] }
  0xc2   : > { %v400_v6 = vpop.permute.xlu1 %399  ;;  %v390_v7 = vpop.permute.xlu0 %389 }
  0xc3   : > { %966 = vst.msk [vmem:[#allocation2 + $0x18] sm:$0xff] %vm962_vm0, %v400_v6  ;;  %964 = vst.msk [vmem:[#allocation2 + $0x8] sm:$0xff] %vm962_vm0, %v390_v7  ;;  %709 = vperm.xlu1 %7723, %v331_v4   ;;  %704 = vperm.xlu0 %7722, %v330_v5   ;;  %v8156_v4 = vld [vmem:[#allocation5 + $0x5] ss:$0 sm:$0xff]  ;;  %v338_v7 = vld [vmem:[%s8038_s20 + $0x240] sm:$0xff] }
  0xc6   : > { %v1088_v11 = vld [vmem:[#allocation2 + $0x10] sm:$0xff]  ;;  %v1086_v12 = vld [vmem:[#allocation2] sm:$0xff]  ;;  %v410_v13 = vpop.permute.xlu1 %409  ;;  %v405_v14 = vpop.permute.xlu0 %404 }
  0xc7   : > { %v1199_v16 = vmul.f32 %v8112_v10, %v1088_v11  ;;  %968 = vst.msk [vmem:[#allocation2 + $0x28] sm:$0xff] %vm962_vm0, %v410_v13  ;;  %967 = vst.msk [vmem:[#allocation2 + $0x20] sm:$0xff] %vm962_vm0, %v405_v14  ;;  %719 = vperm.xlu1 %7723, %v333_v8   ;;  %714 = vperm.xlu0 %7722, %v332_v9   ;;  %v1197_v17 = vmul.f32 %v8112_v10, %v1086_v12 }
  0xc9   : > { %v1305_v21 = vadd.f32 %v8114_v15, %v1199_v16  ;;  %v1303_v33 = vadd.f32 %v8114_v15, %v1197_v17 }
  0xca   : > { %v1089_v23 = vld [vmem:[#allocation2 + $0x18] sm:$0xff]  ;;  %v420_v26 = vpop.permute.xlu1 %419  ;;  %v415_v27 = vpop.permute.xlu0 %414  ;;  %v1087_v30 = vld [vmem:[#allocation2 + $0x8] sm:$0xff] }
  0xcb   : > { %v1411_v24 = vld [vmem:[#allocation2 + $0x11] sm:$0xff]  ;;  %v1200_v28 = vmul.f32 %v8112_v10, %v1089_v23  ;;  %v1409_v31 = vld [vmem:[#allocation2 + $0x1] sm:$0xff]  ;;  %v1410_v32 = vld [vmem:[#allocation2 + $0x9] sm:$0xff]  ;;  %970 = vst.msk [vmem:[#allocation2 + $0x38] sm:$0xff] %vm962_vm0, %v420_v26  ;;  %729 = vperm.xlu1 %7723, %v335_v19   ;;  %724 = vperm.xlu0 %7722, %v334_v20   ;;  %v1198_v34 = vmul.f32 %v8112_v10, %v1087_v30 }
  0xcc   : > { %v1734_v25 = vld [vmem:[#allocation2 + $0x12] sm:$0xff]  ;;  %v1522_v29 = vmul.f32 %v8120_v18, %v1411_v24  ;;  %969 = vst.msk [vmem:[#allocation2 + $0x30] sm:$0xff] %vm962_vm0, %v415_v27  ;;  %v1520_v35 = vmul.f32 %v8120_v18, %v1409_v31  ;;  %v1732_v36 = vld [vmem:[#allocation2 + $0x2] sm:$0xff]  ;;  %v1733_v37 = vld [vmem:[#allocation2 + $0xa] sm:$0xff]  ;;  %v1521_v44 = vmul.f32 %v8120_v18, %v1410_v32 }
  0xcd   : > { %v1845_v40 = vmul.f32 %v8125_v22, %v1734_v25  ;;  %v1304_v43 = vadd.f32 %v8114_v15, %v1198_v34  ;;  %v1843_v46 = vmul.f32 %v8125_v22, %v1732_v36  ;;  %v1306_v52 = vadd.f32 %v8114_v15, %v1200_v28  ;;  %v341_v31 = vld [vmem:[%s8038_s20 + $0x258] sm:$0xff] }
  0xce   : > { %v1628_v39 = vadd.f32 %v1522_v29, %v1305_v21  ;;  %v1626_v45 = vadd.f32 %v1520_v35, %v1303_v33  ;;  %v1091_v47 = vld [vmem:[#allocation2 + $0x28] sm:$0xff]  ;;  %v1090_v48 = vld [vmem:[#allocation2 + $0x20] sm:$0xff]  ;;  %v430_v50 = vpop.permute.xlu1 %429  ;;  %v425_v51 = vpop.permute.xlu0 %424  ;;  %v1844_v53 = vmul.f32 %v8125_v22, %v1733_v37  ;;  %v340_v37 = vld [vmem:[%s8038_s20 + $0x250] sm:$0xff] }
  0xcf   : > { %v1412_v49 = vld [vmem:[#allocation2 + $0x19] sm:$0xff]  ;;  %v1202_v54 = vmul.f32 %v8112_v10, %v1091_v47  ;;  %v1201_v55 = vmul.f32 %v8112_v10, %v1090_v48  ;;  %v1413_v56 = vld [vmem:[#allocation2 + $0x21] sm:$0xff]  ;;  %972 = vst.msk [vmem:[#allocation2 + $0x48] sm:$0xff] %vm962_vm0, %v430_v50  ;;  %971 = vst.msk [vmem:[#allocation2 + $0x40] sm:$0xff] %vm962_vm0, %v425_v51  ;;  %739 = vperm.xlu1 %7723, %v337_v38   ;;  %v1627_v59 = vadd.f32 %v1521_v44, %v1304_v43 }
  0xd0   : > { %v1735_v57 = vld [vmem:[#allocation2 + $0x1a] sm:$0xff]  ;;  %v8148_v58 = vadd.f32 %v1845_v40, %v1628_v39  ;;  %v1949_v60 = vadd.f32 %v1843_v46, %v1626_v45  ;;  %v1523_v62 = vmul.f32 %v8120_v18, %v1412_v49  ;;  %v1736_v63 = vld [vmem:[#allocation2 + $0x22] sm:$0xff]  ;;  %734 = vperm.xlu0 %7722, %v336_v42   ;;  %v2065_v3 = vmul.f32 %v8136_v41, %v1091_v47  ;;  %v8182_v49 = vld [vmem:[#allocation5 + $0x6] ss:$0 sm:$0xff] }
  0xd1   : > { %v1308_v2 = vadd.f32 %v8114_v15, %v1202_v54  ;;  %v1307_v5 = vadd.f32 %v8114_v15, %v1201_v55  ;;  %v1524_v6 = vmul.f32 %v8120_v18, %v1413_v56  ;;  %v1950_v8 = vadd.f32 %v1844_v53, %v1627_v59 }
  0xd2   : > { %v1629_v9 = vadd.f32 %v1523_v62, %v1306_v52  ;;  %v1846_v11 = vmul.f32 %v8125_v22, %v1735_v57  ;;  %v2064_v12 = vmul.f32 %v8136_v41, %v1090_v48  ;;  %v1093_v13 = vld [vmem:[#allocation2 + $0x38] sm:$0xff]  ;;  %v440_v17 = vpop.permute.xlu1 %439  ;;  %v435_v19 = vpop.permute.xlu0 %434  ;;  %v1847_v21 = vmul.f32 %v8125_v22, %v1736_v63  ;;  %v343_v57 = vld [vmem:[%s8038_s20 + $0x268] sm:$0xff] }
  0xd3   : > { %v1092_v14 = vld [vmem:[#allocation2 + $0x30] sm:$0xff]  ;;  %v1630_v20 = vadd.f32 %v1524_v6, %v1307_v5  ;;  %v2285_v23 = vmul.f32 %v8150_v61, %v1413_v56  ;;  %v1204_v24 = vmul.f32 %v8112_v10, %v1093_v13  ;;  %974 = vst.msk [vmem:[#allocation2 + $0x58] sm:$0xff] %vm962_vm0, %v440_v17  ;;  %973 = vst.msk [vmem:[#allocation2 + $0x50] sm:$0xff] %vm962_vm0, %v435_v19  ;;  %749 = vperm.xlu1 %7723, %v339_v1   ;;  %v342_v1 = vld [vmem:[%s8038_s20 + $0x260] sm:$0xff] }
  0xd4   : > { %v1414_v16 = vld [vmem:[#allocation2 + $0x29] sm:$0xff]  ;;  %v1415_v25 = vld [vmem:[#allocation2 + $0x31] sm:$0xff]  ;;  %v1952_v26 = vadd.f32 %v1846_v11, %v1629_v9  ;;  %v2170_v27 = vadd.f32 %v2064_v12, %v1949_v60  ;;  %v2067_v28 = vmul.f32 %v8136_v41, %v1093_v13  ;;  %v1203_v29 = vmul.f32 %v8112_v10, %v1092_v14  ;;  %744 = vperm.xlu0 %7722, %v338_v7  }
  0xd5   : > { %v1737_v30 = vld [vmem:[#allocation2 + $0x2a] sm:$0xff]  ;;  %v2171_v32 = vadd.f32 %v2065_v3, %v1950_v8  ;;  %v8171_v33 = vadd.f32 %v1847_v21, %v1630_v20  ;;  %v2506_v34 = vmul.f32 %v8156_v4, %v1736_v63  ;;  %v1525_v35 = vmul.f32 %v8120_v18, %v1414_v16  ;;  %v1738_v36 = vld [vmem:[#allocation2 + $0x32] sm:$0xff] }
  0xd6   : > { %v2391_v38 = vadd.f32 %v2285_v23, %v2170_v27  ;;  %v1310_v39 = vadd.f32 %v8114_v15, %v1204_v24  ;;  %v1309_v40 = vadd.f32 %v8114_v15, %v1203_v29  ;;  %v1526_v42 = vmul.f32 %v8120_v18, %v1415_v25  ;;  %v450_v43 = vpop.permute.xlu1 %449  ;;  %v445_v44 = vpop.permute.xlu0 %444  ;;  %v1095_v50 = vld [vmem:[#allocation2 + $0x48] sm:$0xff]  ;;  %v1094_v55 = vld [vmem:[#allocation2 + $0x40] sm:$0xff]  ;;  %v345_v23 = vld [vmem:[%s8038_s20 + $0x278] sm:$0xff] }
  0xd7   : > { %v1631_v45 = vadd.f32 %v1525_v35, %v1308_v2  ;;  %v1848_v46 = vmul.f32 %v8125_v22, %v1737_v30  ;;  %v2066_v47 = vmul.f32 %v8136_v41, %v1092_v14  ;;  %v2286_v48 = vmul.f32 %v8150_v61, %v1414_v16  ;;  %976 = vst.msk [vmem:[#allocation2 + $0x68] sm:$0xff] %vm962_vm0, %v450_v43  ;;  %v1416_v56 = vld [vmem:[#allocation2 + $0x39] sm:$0xff]  ;;  %v1417_v7 = vld [vmem:[#allocation2 + $0x41] sm:$0xff] }
  0xd8   : > { %975 = vst.msk [vmem:[#allocation2 + $0x60] sm:$0xff] %vm962_vm0, %v445_v44  ;;  %759 = vperm.xlu1 %7723, %v341_v31   ;;  %v2173_v51 = vadd.f32 %v2067_v28, %v1952_v26  ;;  %v1632_v52 = vadd.f32 %v1526_v42, %v1309_v40  ;;  %v1849_v53 = vmul.f32 %v8125_v22, %v1738_v36  ;;  %v1739_v8 = vld [vmem:[#allocation2 + $0x3a] sm:$0xff]  ;;  %v1740_v21 = vld [vmem:[#allocation2 + $0x42] sm:$0xff]  ;;  %v344_v28 = vld [vmem:[%s8038_s20 + $0x270] sm:$0xff] }
  0xd9   : > { %v2287_v54 = vmul.f32 %v8150_v61, %v1415_v25  ;;  %754 = vperm.xlu0 %7722, %v340_v37   ;;  %v1954_v59 = vadd.f32 %v1848_v46, %v1631_v45  ;;  %v2172_v60 = vadd.f32 %v2066_v47, %v8148_v58  ;;  %v2392_v62 = vadd.f32 %v2286_v48, %v2171_v32  ;;  %v8216_v31 = vld [vmem:[#allocation5 + $0x7] ss:$0 sm:$0xff] }
  0xda   : > { %v2507_v63 = vmul.f32 %v8156_v4, %v1737_v30  ;;  %v2612_v2 = vadd.f32 %v2506_v34, %v2391_v38  ;;  %v1206_v3 = vmul.f32 %v8112_v10, %v1095_v50  ;;  %v2069_v5 = vmul.f32 %v8136_v41, %v1095_v50  ;;  %v460_v9 = vpop.permute.xlu1 %459  ;;  %v455_v11 = vpop.permute.xlu0 %454  ;;  %v1097_v35 = vld [vmem:[#allocation2 + $0x58] sm:$0xff]  ;;  %v1096_v48 = vld [vmem:[#allocation2 + $0x50] sm:$0xff] }
  0xdb   : > { %v2728_v6 = vmul.f32 %v8182_v49, %v1095_v50  ;;  %v2393_v12 = vadd.f32 %v2287_v54, %v2172_v60  ;;  %v1205_v58 = vmul.f32 %v8112_v10, %v1094_v55  ;;  %v1527_v14 = vmul.f32 %v8120_v18, %v1416_v56  ;;  %978 = vst.msk [vmem:[#allocation2 + $0x78] sm:$0xff] %vm962_vm0, %v460_v9  ;;  %v8220_v38 = vld [vmem:[#allocation5 + $0x8] ss:$0 sm:$0xff]  ;;  %v1418_v50 = vld [vmem:[#allocation2 + $0x49] sm:$0xff] }
  0xdc   : > { %v2613_v13 = vadd.f32 %v2507_v63, %v2392_v62  ;;  %977 = vst.msk [vmem:[#allocation2 + $0x70] sm:$0xff] %vm962_vm0, %v455_v11  ;;  %769 = vperm.xlu1 %7723, %v343_v57   ;;  %v8199_v16 = vadd.f32 %v1849_v53, %v1632_v52  ;;  %v2508_v17 = vmul.f32 %v8156_v4, %v1738_v36  ;;  %v347_v52 = vld [vmem:[%s8038_s20 + $0x288] sm:$0xff]  ;;  %v1419_v63 = vld [vmem:[#allocation2 + $0x51] sm:$0xff] }
  0xdd   : > { %v8203_v19 = vadd.f32 %v8114_v15, %v1206_v3  ;;  %v8205_v20 = vadd.f32 %v2069_v5, %v1954_v59  ;;  %764 = vperm.xlu0 %7722, %v342_v1   ;;  %v1311_v24 = vadd.f32 %v8114_v15, %v1205_v58  ;;  %v1528_v25 = vmul.f32 %v8120_v18, %v1417_v7  ;;  %v346_v59 = vld [vmem:[%s8038_s20 + $0x280] sm:$0xff]  ;;  %v349_v58 = vld [vmem:[%s8038_s20 + $0x298] sm:$0xff] }
  0xde   : > { %v1633_v26 = vadd.f32 %v1527_v14, %v1310_v39  ;;  %v1850_v27 = vmul.f32 %v8125_v22, %v1739_v8  ;;  %v8212_v29 = vadd.f32 %v2508_v17, %v2393_v12  ;;  %v8214_v30 = vadd.f32 %v2728_v6, %v2613_v13  ;;  %v470_v36 = vpop.permute.xlu1 %469  ;;  %v465_v37 = vpop.permute.xlu0 %464  ;;  %v1742_v13 = vld [vmem:[#allocation2 + $0x52] sm:$0xff] }
  0xdf   : > { %v2068_v32 = vmul.f32 %v8136_v41, %v1094_v55  ;;  %v2288_v34 = vmul.f32 %v8150_v61, %v1416_v56  ;;  %v1634_v39 = vadd.f32 %v1528_v25, %v1311_v24  ;;  %v1851_v40 = vmul.f32 %v8125_v22, %v1740_v21  ;;  %980 = vst.msk [vmem:[#allocation2 + $0x88] sm:$0xff] %vm962_vm0, %v470_v36  ;;  %v348_v24 = vld [vmem:[%s8038_s20 + $0x290] sm:$0xff] }
  0xe0   : > { %v1956_v42 = vadd.f32 %v1850_v27, %v1633_v26  ;;  %v2289_v43 = vmul.f32 %v8150_v61, %v1417_v7  ;;  %979 = vst.msk [vmem:[#allocation2 + $0x80] sm:$0xff] %vm962_vm0, %v465_v37  ;;  %779 = vperm.xlu1 %7723, %v345_v23   ;;  %v2509_v46 = vmul.f32 %v8156_v4, %v1739_v8  ;;  %v1741_v8 = vld [vmem:[#allocation2 + $0x4a] sm:$0xff] }
  0xe1   : > { %v2174_v44 = vadd.f32 %v2068_v32, %v8171_v33  ;;  %v2394_v45 = vadd.f32 %v2288_v34, %v2173_v51  ;;  %v2727_v47 = vmul.f32 %v8182_v49, %v1094_v55  ;;  %774 = vperm.xlu0 %7722, %v344_v28   ;;  %v2510_v53 = vmul.f32 %v8156_v4, %v1740_v21 }
  0xe2   : > { %v2948_v54 = vmul.f32 %v8216_v31, %v1417_v7  ;;  %v1208_v56 = vmul.f32 %v8112_v10, %v1097_v35  ;;  %v2071_v57 = vmul.f32 %v8136_v41, %v1097_v35  ;;  %v2730_v62 = vmul.f32 %v8182_v49, %v1097_v35  ;;  %v480_v55 = vpop.permute.xlu1 %479  ;;  %v475_v1 = vpop.permute.xlu0 %474 }
  0xe3   : > { %v2395_v60 = vadd.f32 %v2289_v43, %v2174_v44  ;;  %v2615_v33 = vadd.f32 %v2509_v46, %v2394_v45  ;;  %v2833_v51 = vadd.f32 %v2727_v47, %v2612_v2  ;;  %v8236_v3 = vadd.f32 %v1851_v40, %v1634_v39  ;;  %982 = vst.msk [vmem:[#allocation2 + $0x98] sm:$0xff] %vm962_vm0, %v480_v55  ;;  %v1099_v44 = vld [vmem:[#allocation2 + $0x68] sm:$0xff] }
  0xe4   : > { %v3169_v5 = vmul.f32 %v8220_v38, %v1740_v21  ;;  %v1207_v6 = vmul.f32 %v8112_v10, %v1096_v48  ;;  %v1529_v7 = vmul.f32 %v8120_v18, %v1418_v50  ;;  %981 = vst.msk [vmem:[#allocation2 + $0x90] sm:$0xff] %vm962_vm0, %v475_v1  ;;  %789 = vperm.xlu1 %7723, %v347_v52   ;;  %v351_v45 = vld [vmem:[%s8038_s20 + $0x2a8] sm:$0xff] }
  0xe5   : > { %v8243_v2 = vadd.f32 %v2510_v53, %v2395_v60  ;;  %v3054_v9 = vadd.f32 %v2948_v54, %v2833_v51  ;;  %v8246_v11 = vadd.f32 %v8114_v15, %v1208_v56  ;;  %v8248_v12 = vadd.f32 %v2071_v57, %v1956_v42  ;;  %784 = vperm.xlu0 %7722, %v346_v59   ;;  %v1098_v54 = vld [vmem:[#allocation2 + $0x60] sm:$0xff] }
  0xe6   : > { %v8251_v14 = vadd.f32 %v2730_v62, %v2615_v33  ;;  %v1313_v17 = vadd.f32 %v8114_v15, %v1207_v6  ;;  %v1530_v21 = vmul.f32 %v8120_v18, %v1419_v63  ;;  %v1635_v23 = vadd.f32 %v1529_v7, %v8203_v19  ;;  %v490_v32 = vpop.permute.xlu1 %489  ;;  %v485_v34 = vpop.permute.xlu0 %484  ;;  %v1420_v56 = vld [vmem:[#allocation2 + $0x59] sm:$0xff]  ;;  %v1421_v55 = vld [vmem:[#allocation2 + $0x61] sm:$0xff] }
  0xe7   : > { %v3275_v25 = vadd.f32 %v3169_v5, %v3054_v9  ;;  %v1852_v26 = vmul.f32 %v8125_v22, %v1741_v8  ;;  %v2070_v27 = vmul.f32 %v8136_v41, %v1096_v48  ;;  %v2290_v28 = vmul.f32 %v8150_v61, %v1418_v50  ;;  %984 = vst.msk [vmem:[#allocation2 + $0xa8] sm:$0xff] %vm962_vm0, %v490_v32  ;;  %v350_v57 = vld [vmem:[%s8038_s20 + $0x2a0] sm:$0xff]  ;;  %v353_v7 = vld [vmem:[%s8038_s20 + $0x2b8] sm:$0xff] }
  0xe8   : > { %v1636_v35 = vadd.f32 %v1530_v21, %v1313_v17  ;;  %v1853_v36 = vmul.f32 %v8125_v22, %v1742_v13  ;;  %v2291_v37 = vmul.f32 %v8150_v61, %v1419_v63  ;;  %v2511_v39 = vmul.f32 %v8156_v4, %v1741_v8  ;;  %983 = vst.msk [vmem:[#allocation2 + $0xa0] sm:$0xff] %vm962_vm0, %v485_v34  ;;  %v1743_v6 = vld [vmem:[#allocation2 + $0x5a] sm:$0xff]  ;;  %v352_v17 = vld [vmem:[%s8038_s20 + $0x2b0] sm:$0xff] }
  0xe9   : > { %799 = vperm.xlu1 %7723, %v349_v58   ;;  %v3381_v19 = vmax.f32 %v3275_v25, 0.0  ;;  %v2176_v40 = vadd.f32 %v2070_v27, %v8199_v16  ;;  %v2396_v42 = vadd.f32 %v2290_v28, %v8205_v20  ;;  %v2729_v43 = vmul.f32 %v8182_v49, %v1096_v48  ;;  %794 = vperm.xlu0 %7722, %v348_v24  }
  0xea   : > { %v1958_v46 = vadd.f32 %v1852_v26, %v1635_v23  ;;  %v2512_v47 = vmul.f32 %v8156_v4, %v1742_v13  ;;  %v2949_v52 = vmul.f32 %v8216_v31, %v1418_v50  ;;  %v2950_v53 = vmul.f32 %v8216_v31, %v1419_v63  ;;  %v500_v60 = vpop.permute.xlu1 %499  ;;  %v495_v33 = vpop.permute.xlu0 %494  ;;  %v1744_v26 = vld [vmem:[#allocation2 + $0x62] sm:$0xff] }
  0xeb   : > { %3487 = vst.msk [vmem:[#allocation3] sm:$0xff] %vm962_vm0, %v3381_v19  ;;  %v2397_v16 = vadd.f32 %v2291_v37, %v2176_v40  ;;  %v2617_v59 = vadd.f32 %v2511_v39, %v2396_v42  ;;  %v2835_v20 = vadd.f32 %v2729_v43, %v8212_v29  ;;  %v3170_v48 = vmul.f32 %v8220_v38, %v1741_v8  ;;  %v355_v40 = vld [vmem:[%s8038_s20 + $0x2c8] sm:$0xff] }
  0xec   : > { %v3055_v51 = vadd.f32 %v2949_v52, %v8214_v30  ;;  %v3171_v50 = vmul.f32 %v8220_v38, %v1742_v13  ;;  %v1210_v62 = vmul.f32 %v8112_v10, %v1099_v44  ;;  %v2073_v63 = vmul.f32 %v8136_v41, %v1099_v44  ;;  %986 = vst.msk [vmem:[#allocation2 + $0xb8] sm:$0xff] %vm962_vm0, %v500_v60 }
  0xed   : > { %985 = vst.msk [vmem:[#allocation2 + $0xb0] sm:$0xff] %vm962_vm0, %v495_v33  ;;  %809 = vperm.xlu1 %7723, %v351_v45   ;;  %v3056_v29 = vadd.f32 %v2950_v53, %v2835_v20  ;;  %v2732_v1 = vmul.f32 %v8182_v49, %v1099_v44  ;;  %v1209_v5 = vmul.f32 %v8112_v10, %v1098_v54 }
  0xee   : > { %v1531_v30 = vmul.f32 %v8120_v18, %v1420_v56  ;;  %804 = vperm.xlu0 %7722, %v350_v57   ;;  %v8286_v8 = vadd.f32 %v1853_v36, %v1636_v35  ;;  %v8288_v9 = vadd.f32 %v2512_v47, %v2397_v16  ;;  %v3276_v13 = vadd.f32 %v3170_v48, %v3055_v51  ;;  %v510_v27 = vpop.permute.xlu1 %509  ;;  %v505_v28 = vpop.permute.xlu0 %504  ;;  %v354_v47 = vld [vmem:[%s8038_s20 + $0x2c0] sm:$0xff] }
  0xef   : > { %v8291_v58 = vadd.f32 %v8114_v15, %v1210_v62  ;;  %v3277_v21 = vadd.f32 %v3171_v50, %v3056_v29  ;;  %v1315_v23 = vadd.f32 %v8114_v15, %v1209_v5  ;;  %v1532_v24 = vmul.f32 %v8120_v18, %v1421_v55  ;;  %988 = vst.msk [vmem:[#allocation2 + $0xc8] sm:$0xff] %vm962_vm0, %v510_v27  ;;  %v1422_v50 = vld [vmem:[#allocation2 + $0x69] sm:$0xff]  ;;  %v357_v29 = vld [vmem:[%s8038_s20 + $0x2d8] sm:$0xff] }
  0xf0   : > { %v1637_v25 = vadd.f32 %v1531_v30, %v8246_v11  ;;  %v3382_v32 = vmax.f32 %v3276_v13, 0.0  ;;  %v8297_v34 = vadd.f32 %v2073_v63, %v1958_v46  ;;  %v1854_v35 = vmul.f32 %v8125_v22, %v1743_v6  ;;  %987 = vst.msk [vmem:[#allocation2 + $0xc0] sm:$0xff] %vm962_vm0, %v505_v28  ;;  %v1101_v46 = vld [vmem:[#allocation2 + $0x78] sm:$0xff]  ;;  %v356_v13 = vld [vmem:[%s8038_s20 + $0x2d0] sm:$0xff] }
  0xf1   : > { %v2072_v36 = vmul.f32 %v8136_v41, %v1098_v54  ;;  %819 = vperm.xlu1 %7723, %v353_v7   ;;  %v3383_v37 = vmax.f32 %v3277_v21, 0.0  ;;  %v8303_v39 = vadd.f32 %v2732_v1, %v2617_v59  ;;  %v1638_v11 = vadd.f32 %v1532_v24, %v1315_v23  ;;  %v8317_v59 = vld [vmem:[#allocation2 + $0x70] sm:$0xff] }
  0xf2   : > { %v2292_v19 = vmul.f32 %v8150_v61, %v1420_v56  ;;  %814 = vperm.xlu0 %7722, %v352_v17   ;;  %3488 = vst.msk [vmem:[#allocation3 + $0x8] sm:$0xff] %vm962_vm0, %v3382_v32  ;;  %v1855_v42 = vmul.f32 %v8125_v22, %v1744_v26  ;;  %v1960_v43 = vadd.f32 %v1854_v35, %v1637_v25  ;;  %v520_v20 = vpop.permute.xlu1 %519  ;;  %v515_v48 = vpop.permute.xlu0 %514  ;;  %v1423_v63 = vld [vmem:[#allocation2 + $0x71] sm:$0xff] }
  0xf3   : > { %v2178_v44 = vadd.f32 %v2072_v36, %v8236_v3  ;;  %v2293_v45 = vmul.f32 %v8150_v61, %v1421_v55  ;;  %3489 = vst.msk [vmem:[#allocation3 + $0x10] sm:$0xff] %vm962_vm0, %v3383_v37  ;;  %v2513_v53 = vmul.f32 %v8156_v4, %v1743_v6  ;;  %v2731_v57 = vmul.f32 %v8182_v49, %v1098_v54  ;;  %v1745_v7 = vld [vmem:[#allocation2 + $0x6a] sm:$0xff]  ;;  %v1746_v28 = vld [vmem:[#allocation2 + $0x72] sm:$0xff] }
  0xf4   : > { %v2398_v52 = vadd.f32 %v2292_v19, %v8248_v12  ;;  %v2951_v16 = vmul.f32 %v8216_v31, %v1420_v56  ;;  %v8319_v3 = vadd.f32 %v1855_v42, %v1638_v11  ;;  %v2514_v33 = vmul.f32 %v8156_v4, %v1744_v26  ;;  %990 = vst.msk [vmem:[#allocation2 + $0xd8] sm:$0xff] %vm962_vm0, %v520_v20  ;;  %v359_v11 = vld [vmem:[%s8038_s20 + $0x2e8] sm:$0xff] }
  0xf5   : > { %v2399_v60 = vadd.f32 %v2293_v45, %v2178_v44  ;;  %v2952_v51 = vmul.f32 %v8216_v31, %v1421_v55  ;;  %989 = vst.msk [vmem:[#allocation2 + $0xd0] sm:$0xff] %vm962_vm0, %v515_v48  ;;  %829 = vperm.xlu1 %7723, %v355_v40   ;;  %v2837_v12 = vadd.f32 %v2731_v57, %v8243_v2  ;;  %v358_v45 = vld [vmem:[%s8038_s20 + $0x2e0] sm:$0xff] }
  0xf6   : > { %v3057_v54 = vadd.f32 %v2951_v16, %v8251_v14  ;;  %v3172_v56 = vmul.f32 %v8220_v38, %v1743_v6  ;;  %v1212_v62 = vmul.f32 %v8112_v10, %v1101_v46  ;;  %824 = vperm.xlu0 %7722, %v354_v47   ;;  %v2619_v1 = vadd.f32 %v2513_v53, %v2398_v52  ;;  %v530_v21 = vpop.permute.xlu1 %529  ;;  %v525_v23 = vpop.permute.xlu0 %524  ;;  %v1103_v53 = vld [vmem:[#allocation2 + $0x88] sm:$0xff] }
  0xf7   : > { %v3173_v55 = vmul.f32 %v8220_v38, %v1744_v26  ;;  %v2075_v5 = vmul.f32 %v8136_v41, %v1101_v46  ;;  %v1211_v30 = vmul.f32 %v8112_v10, %v8317_v59  ;;  %v3058_v2 = vadd.f32 %v2952_v51, %v2837_v12  ;;  %992 = vst.msk [vmem:[#allocation2 + $0xe8] sm:$0xff] %vm962_vm0, %v530_v21 }
  0xf8   : > { %v3278_v17 = vadd.f32 %v3172_v56, %v3057_v54  ;;  %v2734_v14 = vmul.f32 %v8182_v49, %v1101_v46  ;;  %v1533_v6 = vmul.f32 %v8120_v18, %v1422_v50  ;;  %v8337_v24 = vadd.f32 %v2514_v33, %v2399_v60  ;;  %991 = vst.msk [vmem:[#allocation2 + $0xe0] sm:$0xff] %vm962_vm0, %v525_v23  ;;  %v1424_v54 = vld [vmem:[#allocation2 + $0x79] sm:$0xff] }
  0xf9   : > { %v8340_v25 = vadd.f32 %v8114_v15, %v1212_v62  ;;  %v1317_v26 = vadd.f32 %v8114_v15, %v1211_v30  ;;  %v1534_v27 = vmul.f32 %v8120_v18, %v1423_v63  ;;  %839 = vperm.xlu1 %7723, %v357_v29   ;;  %v3279_v32 = vadd.f32 %v3173_v55, %v3058_v2  ;;  %v361_v56 = vld [vmem:[%s8038_s20 + $0x2f8] sm:$0xff] }
  0xfa   : > { %v3384_v35 = vmax.f32 %v3278_v17, 0.0  ;;  %v1639_v36 = vadd.f32 %v1533_v6, %v8291_v58  ;;  %v1856_v37 = vmul.f32 %v8125_v22, %v1745_v7  ;;  %834 = vperm.xlu0 %7722, %v356_v13   ;;  %v8349_v19 = vadd.f32 %v2075_v5, %v1960_v43  ;;  %v540_v57 = vpop.permute.xlu1 %539  ;;  %v535_v16 = vpop.permute.xlu0 %534  ;;  %v360_v5 = vld [vmem:[%s8038_s20 + $0x2f0] sm:$0xff]  ;;  %v1747_v23 = vld [vmem:[#allocation2 + $0x7a] sm:$0xff] }
  0xfb   : > { %v1640_v40 = vadd.f32 %v1534_v27, %v1317_v26  ;;  %v2074_v42 = vmul.f32 %v8136_v41, %v8317_v59  ;;  %v2294_v44 = vmul.f32 %v8150_v61, %v1422_v50  ;;  %v3385_v46 = vmax.f32 %v3279_v32, 0.0  ;;  %994 = vst.msk [vmem:[#allocation2 + $0xf8] sm:$0xff] %vm962_vm0, %v540_v57  ;;  %993 = vst.msk [vmem:[#allocation2 + $0xf0] sm:$0xff] %vm962_vm0, %v535_v16  ;;  %v363_v32 = vld [vmem:[%s8038_s20 + $0x308] sm:$0xff] }
  0xfc   : > { %3490 = vst.msk [vmem:[#allocation3 + $0x18] sm:$0xff] %vm962_vm0, %v3384_v35  ;;  %v8356_v47 = vadd.f32 %v2734_v14, %v2619_v1  ;;  %v1857_v58 = vmul.f32 %v8125_v22, %v1746_v28  ;;  %v1962_v52 = vadd.f32 %v1856_v37, %v1639_v36  ;;  %v2295_v20 = vmul.f32 %v8150_v61, %v1423_v63 }
  0xfd   : > { %v2180_v43 = vadd.f32 %v2074_v42, %v8286_v8  ;;  %v2400_v48 = vadd.f32 %v2294_v44, %v8297_v34  ;;  %v2515_v60 = vmul.f32 %v8156_v4, %v1745_v7  ;;  %849 = vperm.xlu1 %7723, %v359_v11   ;;  %3491 = vst.msk [vmem:[#allocation3 + $0x20] sm:$0xff] %vm962_vm0, %v3385_v46  ;;  %v1102_v34 = vld [vmem:[#allocation2 + $0x80] sm:$0xff] }
  0xfe   : > { %v8366_v33 = vadd.f32 %v1857_v58, %v1640_v40  ;;  %v2516_v51 = vmul.f32 %v8156_v4, %v1746_v28  ;;  %v2733_v8 = vmul.f32 %v8182_v49, %v8317_v59  ;;  %v2953_v12 = vmul.f32 %v8216_v31, %v1422_v50  ;;  %844 = vperm.xlu0 %7722, %v358_v45   ;;  %v1425_v50 = vld [vmem:[#allocation2 + $0x81] sm:$0xff]  ;;  %v550_v17 = vpop.permute.xlu1 %549  ;;  %v545_v14 = vpop.permute.xlu0 %544 }
  0xff   : > { %v2401_v62 = vadd.f32 %v2295_v20, %v2180_v43  ;;  %v2954_v29 = vmul.f32 %v8216_v31, %v1423_v63  ;;  %v3174_v1 = vmul.f32 %v8220_v38, %v1745_v7  ;;  %v1214_v55 = vmul.f32 %v8112_v10, %v1103_v53  ;;  %996 = vst.msk [vmem:[#allocation2 + $0x108] sm:$0xff] %vm962_vm0, %v550_v17  ;;  %v362_v40 = vld [vmem:[%s8038_s20 + $0x300] sm:$0xff] }
 0x100   : > { %v2621_v30 = vadd.f32 %v2515_v60, %v2400_v48  ;;  %v2839_v13 = vadd.f32 %v2733_v8, %v8288_v9  ;;  %v3059_v2 = vadd.f32 %v2953_v12, %v8303_v39  ;;  %v2077_v59 = vmul.f32 %v8136_v41, %v1103_v53  ;;  %995 = vst.msk [vmem:[#allocation2 + $0x100] sm:$0xff] %vm962_vm0, %v545_v14  ;;  %v365_v8 = vld [vmem:[%s8038_s20 + $0x318] sm:$0xff] }
 0x101   : > { %v3175_v6 = vmul.f32 %v8220_v38, %v1746_v28  ;;  %v2736_v63 = vmul.f32 %v8182_v49, %v1103_v53  ;;  %v1213_v7 = vmul.f32 %v8112_v10, %v1102_v34  ;;  %v1535_v21 = vmul.f32 %v8120_v18, %v1424_v54  ;;  %859 = vperm.xlu1 %7723, %v361_v56   ;;  %v1748_v28 = vld [vmem:[#allocation2 + $0x82] sm:$0xff] }
 0x102   : > { %v8386_v9 = vadd.f32 %v2516_v51, %v2401_v62  ;;  %v3060_v39 = vadd.f32 %v2954_v29, %v2839_v13  ;;  %v3280_v26 = vadd.f32 %v3174_v1, %v3059_v2  ;;  %v8389_v27 = vadd.f32 %v8114_v15, %v1214_v55  ;;  %854 = vperm.xlu0 %7722, %v360_v5   ;;  %v560_v58 = vpop.permute.xlu1 %559  ;;  %v555_v53 = vpop.permute.xlu0 %554  ;;  %v1105_v51 = vld [vmem:[#allocation2 + $0x98] sm:$0xff]  ;;  %v8414_v1 = vld [vmem:[#allocation2 + $0x90] sm:$0xff] }
 0x103   : > { %v8392_v35 = vadd.f32 %v2077_v59, %v1962_v52  ;;  %v1319_v36 = vadd.f32 %v8114_v15, %v1213_v7  ;;  %v1536_v37 = vmul.f32 %v8120_v18, %v1425_v50  ;;  %v1641_v11 = vadd.f32 %v1535_v21, %v8340_v25  ;;  %998 = vst.msk [vmem:[#allocation2 + $0x118] sm:$0xff] %vm962_vm0, %v560_v58  ;;  %v364_v55 = vld [vmem:[%s8038_s20 + $0x310] sm:$0xff]  ;;  %v367_v21 = vld [vmem:[%s8038_s20 + $0x328] sm:$0xff] }
 0x104   : > { %v3281_v42 = vadd.f32 %v3175_v6, %v3060_v39  ;;  %v3386_v44 = vmax.f32 %v3280_v26, 0.0  ;;  %v1858_v45 = vmul.f32 %v8125_v22, %v1747_v23  ;;  %v2076_v46 = vmul.f32 %v8136_v41, %v1102_v34  ;;  %997 = vst.msk [vmem:[#allocation2 + $0x110] sm:$0xff] %vm962_vm0, %v555_v53  ;;  %v1426_v2 = vld [vmem:[#allocation2 + $0x89] sm:$0xff]  ;;  %v1427_v6 = vld [vmem:[#allocation2 + $0x91] sm:$0xff] }
 0x105   : > { %v8400_v57 = vadd.f32 %v2736_v63, %v2621_v30  ;;  %v1642_v52 = vadd.f32 %v1536_v37, %v1319_v36  ;;  %v1859_v16 = vmul.f32 %v8125_v22, %v1748_v28  ;;  %v2296_v43 = vmul.f32 %v8150_v61, %v1424_v54  ;;  %869 = vperm.xlu1 %7723, %v363_v32   ;;  %v366_v36 = vld [vmem:[%s8038_s20 + $0x320] sm:$0xff] }
 0x106   : > { %v3387_v25 = vmax.f32 %v3281_v42, 0.0  ;;  %3492 = vst.msk [vmem:[#allocation3 + $0x28] sm:$0xff] %vm962_vm0, %v3386_v44  ;;  %v1964_v20 = vadd.f32 %v1858_v45, %v1641_v11  ;;  %v2182_v48 = vadd.f32 %v2076_v46, %v8319_v3  ;;  %v2297_v60 = vmul.f32 %v8150_v61, %v1425_v50  ;;  %864 = vperm.xlu0 %7722, %v362_v40   ;;  %v565_v59 = vpop.permute.xlu0 %564  ;;  %v1750_v42 = vld [vmem:[#allocation2 + $0x92] sm:$0xff] }
 0x107   : > { %v2402_v12 = vadd.f32 %v2296_v43, %v8349_v19  ;;  %v2517_v56 = vmul.f32 %v8156_v4, %v1747_v23  ;;  %v2735_v62 = vmul.f32 %v8182_v49, %v1102_v34  ;;  %v2955_v29 = vmul.f32 %v8216_v31, %v1424_v54  ;;  %v570_v19 = vpop.permute.xlu1 %569  ;;  %999 = vst.msk [vmem:[#allocation2 + $0x120] sm:$0xff] %vm962_vm0, %v565_v59  ;;  %v8469_v59 = vld [vmem:[#allocation2 + $0xa0] sm:$0xff] }
 0x108   : > { %3493 = vst.msk [vmem:[#allocation3 + $0x30] sm:$0xff] %vm962_vm0, %v3387_v25  ;;  %v8418_v5 = vadd.f32 %v1859_v16, %v1642_v52  ;;  %v2403_v3 = vadd.f32 %v2297_v60, %v2182_v48  ;;  %v2518_v30 = vmul.f32 %v8156_v4, %v1748_v28  ;;  %v2956_v13 = vmul.f32 %v8216_v31, %v1425_v50  ;;  %v369_v48 = vld [vmem:[%s8038_s20 + $0x338] sm:$0xff] }
 0x109   : > { %v2841_v34 = vadd.f32 %v2735_v62, %v8337_v24  ;;  %v3061_v54 = vadd.f32 %v2955_v29, %v8356_v47  ;;  %v3176_v17 = vmul.f32 %v8220_v38, %v1747_v23  ;;  %v1216_v14 = vmul.f32 %v8112_v10, %v1105_v51  ;;  %1000 = vst.msk [vmem:[#allocation2 + $0x128] sm:$0xff] %vm962_vm0, %v570_v19  ;;  %v1749_v47 = vld [vmem:[#allocation2 + $0x8a] sm:$0xff] }
 0x10a   : > { %879 = vperm.xlu1 %7723, %v365_v8   ;;  %v2623_v50 = vadd.f32 %v2517_v56, %v2402_v12  ;;  %v3177_v63 = vmul.f32 %v8220_v38, %v1748_v28  ;;  %v2079_v7 = vmul.f32 %v8136_v41, %v1105_v51  ;;  %v1215_v24 = vmul.f32 %v8112_v10, %v8414_v1  ;;  %v575_v45 = vpop.permute.xlu0 %574  ;;  %v1107_v12 = vld [vmem:[#allocation2 + $0xa8] sm:$0xff]  ;;  %v368_v56 = vld [vmem:[%s8038_s20 + $0x330] sm:$0xff] }
 0x10b   : > { %874 = vperm.xlu0 %7722, %v364_v55   ;;  %v3062_v23 = vadd.f32 %v2956_v13, %v2841_v34  ;;  %v3282_v39 = vadd.f32 %v3176_v17, %v3061_v54  ;;  %v2738_v26 = vmul.f32 %v8182_v49, %v1105_v51  ;;  %v1537_v32 = vmul.f32 %v8120_v18, %v1426_v2  ;;  %v580_v44 = vpop.permute.xlu1 %579 }
 0x10c   : > { %v8436_v37 = vadd.f32 %v2518_v30, %v2403_v3  ;;  %v8439_v11 = vadd.f32 %v8114_v15, %v1216_v14  ;;  %v1321_v28 = vadd.f32 %v8114_v15, %v1215_v24  ;;  %v1538_v40 = vmul.f32 %v8120_v18, %v1427_v6  ;;  %1002 = vst.msk [vmem:[#allocation2 + $0x138] sm:$0xff] %vm962_vm0, %v580_v44  ;;  %v1429_v24 = vld [vmem:[#allocation2 + $0xa1] sm:$0xff] }
 0x10d   : > { %v3283_v46 = vadd.f32 %v3177_v63, %v3062_v23  ;;  %v3388_v58 = vmax.f32 %v3282_v39, 0.0  ;;  %v1643_v53 = vadd.f32 %v1537_v32, %v8389_v27  ;;  %v1860_v52 = vmul.f32 %v8125_v22, %v1749_v47  ;;  %1001 = vst.msk [vmem:[#allocation2 + $0x130] sm:$0xff] %vm962_vm0, %v575_v45  ;;  %v1752_v44 = vld [vmem:[#allocation2 + $0xa2] sm:$0xff] }
 0x10e   : > { %889 = vperm.xlu1 %7723, %v367_v21   ;;  %v8447_v16 = vadd.f32 %v2079_v7, %v1964_v20  ;;  %v1644_v15 = vadd.f32 %v1538_v40, %v1321_v28  ;;  %v2078_v43 = vmul.f32 %v8136_v41, %v8414_v1  ;;  %v2298_v25 = vmul.f32 %v8150_v61, %v1426_v2  ;;  %v585_v30 = vpop.permute.xlu0 %584  ;;  %v370_v21 = vld [vmem:[%s8038_s20 + $0x340] sm:$0xff] }
 0x10f   : > { %884 = vperm.xlu0 %7722, %v366_v36   ;;  %v3389_v60 = vmax.f32 %v3283_v46, 0.0  ;;  %3494 = vst.msk [vmem:[#allocation3 + $0x38] sm:$0xff] %vm962_vm0, %v3388_v58  ;;  %v8454_v27 = vadd.f32 %v2738_v26, %v2623_v50  ;;  %v1861_v51 = vmul.f32 %v8125_v22, %v1750_v42  ;;  %v1966_v8 = vadd.f32 %v1860_v52, %v1643_v53  ;;  %v590_v3 = vpop.permute.xlu1 %589  ;;  %v1751_v26 = vld [vmem:[#allocation2 + $0x9a] sm:$0xff]  ;;  %v8503_v46 = vld [vmem:[#allocation5 + $0x1] ss:$0 sm:$0xff] }
 0x110   : > { %v2184_v20 = vadd.f32 %v2078_v43, %v8366_v33  ;;  %v2299_v62 = vmul.f32 %v8150_v61, %v1427_v6  ;;  %v2404_v29 = vadd.f32 %v2298_v25, %v8392_v35  ;;  %v2519_v55 = vmul.f32 %v8156_v4, %v1749_v47  ;;  %v8471_v35 = vld [vmem:[#allocation2 + $0x99] sm:$0xff]  ;;  %1004 = vst.msk [vmem:[#allocation2 + $0x148] sm:$0xff] %vm962_vm0, %v590_v3  ;;  %v8508_v25 = vld [vmem:[#allocation5 + $0x2] ss:$0 sm:$0xff] }
 0x111   : > { %3495 = vst.msk [vmem:[#allocation3 + $0x40] sm:$0xff] %vm962_vm0, %v3389_v60  ;;  %v8463_v13 = vadd.f32 %v1861_v51, %v1644_v15  ;;  %v2520_v22 = vmul.f32 %v8156_v4, %v1750_v42  ;;  %v2737_v19 = vmul.f32 %v8182_v49, %v8414_v1  ;;  %v2957_v33 = vmul.f32 %v8216_v31, %v1426_v2  ;;  %v371_v1 = vld [vmem:[%s8038_s20 + $0x348] sm:$0xff]  ;;  %v8493_v40 = vld [vmem:[#allocation7] ss:$0 sm:$0xff]  ;;  %v373_v52 = vld [vmem:[%s8038_s20 + $0x358] sm:$0xff] }
 0x112   : > { %1003 = vst.msk [vmem:[#allocation2 + $0x140] sm:$0xff] %vm962_vm0, %v585_v30  ;;  %899 = vperm.xlu1 %7723, %v369_v48   ;;  %v2405_v34 = vadd.f32 %v2299_v62, %v2184_v20  ;;  %v2958_v54 = vmul.f32 %v8216_v31, %v1427_v6  ;;  %v3178_v17 = vmul.f32 %v8220_v38, %v1749_v47  ;;  %v8485_v6 = vld [vmem:[#allocation5] ss:$0 sm:$0xff]  ;;  %v595_v32 = vpop.permute.xlu0 %594  ;;  %v1109_v30 = vld [vmem:[#allocation2 + $0xb8] sm:$0xff] }
 0x113   : > { %v1218_v14 = vmul.f32 %v8112_v10, %v1107_v12  ;;  %894 = vperm.xlu0 %7722, %v368_v56   ;;  %v2625_v2 = vadd.f32 %v2519_v55, %v2404_v29  ;;  %v2843_v50 = vadd.f32 %v2737_v19, %v8386_v9  ;;  %v3063_v63 = vadd.f32 %v2957_v33, %v8400_v57  ;;  %v600_v9 = vpop.permute.xlu1 %599  ;;  %v372_v51 = vld [vmem:[%s8038_s20 + $0x350] sm:$0xff] }
 0x114   : > { %v2081_v7 = vmul.f32 %v8136_v41, %v1107_v12  ;;  %v3179_v23 = vmul.f32 %v8220_v38, %v1750_v42  ;;  %v2740_v39 = vmul.f32 %v8182_v49, %v1107_v12  ;;  %v1217_v10 = vmul.f32 %v8485_v6, %v8469_v59  ;;  %1006 = vst.msk [vmem:[#allocation2 + $0x158] sm:$0xff] %vm962_vm0, %v600_v9 }
 0x115   : > { %v1539_v47 = vmul.f32 %v8120_v18, %v8471_v35  ;;  %v8491_v57 = vadd.f32 %v2520_v22, %v2405_v34  ;;  %v3064_v36 = vadd.f32 %v2958_v54, %v2843_v50  ;;  %v3284_v28 = vadd.f32 %v3178_v17, %v3063_v63  ;;  %1005 = vst.msk [vmem:[#allocation2 + $0x150] sm:$0xff] %vm962_vm0, %v595_v32 }
 0x116   : > { %v8496_v42 = vadd.f32 %v8493_v40, %v1218_v14  ;;  %909 = vperm.xlu1 %7723, %v371_v1   ;;  %v8500_v18 = vadd.f32 %v2081_v7, %v1966_v8  ;;  %v1323_v45 = vadd.f32 %v8493_v40, %v1217_v10  ;;  %v1540_v58 = vmul.f32 %v8503_v46, %v1429_v24  ;;  %v605_v62 = vpop.permute.xlu0 %604  ;;  %v1430_v1 = vld [vmem:[#allocation2 + $0xa9] sm:$0xff]  ;;  %v1431_v7 = vld [vmem:[#allocation2 + $0xb1] sm:$0xff] }
 0x117   : > { %v1645_v53 = vadd.f32 %v1539_v47, %v8439_v11  ;;  %904 = vperm.xlu0 %7722, %v370_v21   ;;  %v3285_v15 = vadd.f32 %v3179_v23, %v3064_v36  ;;  %v3390_v43 = vmax.f32 %v3284_v28, 0.0  ;;  %v1862_v48 = vmul.f32 %v8508_v25, %v1751_v26  ;;  %v610_v20 = vpop.permute.xlu1 %609  ;;  %1007 = vst.msk [vmem:[#allocation2 + $0x160] sm:$0xff] %vm962_vm0, %v605_v62  ;;  %v377_v36 = vld [vmem:[%s8038_s20 + $0x378] sm:$0xff] }
 0x118   : > { %v2080_v60 = vmul.f32 %v8136_v41, %v8469_v59  ;;  %v8514_v8 = vadd.f32 %v2740_v39, %v2625_v2  ;;  %v1646_v12 = vadd.f32 %v1540_v58, %v1323_v45  ;;  %v1863_v56 = vmul.f32 %v8508_v25, %v1752_v44  ;;  %1008 = vst.msk [vmem:[#allocation2 + $0x168] sm:$0xff] %vm962_vm0, %v610_v20  ;;  %v374_v2 = vld [vmem:[%s8038_s20 + $0x360] sm:$0xff]  ;;  %v8568_v20 = vld [vmem:[#allocation5 + $0x4] ss:$0 sm:$0xff] }
 0x119   : > { %v2300_v11 = vmul.f32 %v8150_v61, %v8471_v35  ;;  %v3391_v29 = vmax.f32 %v3285_v15, 0.0  ;;  %3496 = vst.msk [vmem:[#allocation3 + $0x48] sm:$0xff] %vm962_vm0, %v3390_v43  ;;  %v1968_v55 = vadd.f32 %v1862_v48, %v1645_v53  ;;  %v2301_v41 = vmul.f32 %v8150_v61, %v1429_v24  ;;  %v375_v61 = vld [vmem:[%s8038_s20 + $0x368] sm:$0xff]  ;;  %v1754_v53 = vld [vmem:[#allocation2 + $0xb2] sm:$0xff] }
 0x11a   : > { %v2186_v3 = vadd.f32 %v2080_v60, %v8418_v5  ;;  %919 = vperm.xlu1 %7723, %v373_v52   ;;  %v2521_v19 = vmul.f32 %v8156_v4, %v1751_v26  ;;  %v2739_v33 = vmul.f32 %v8182_v49, %v8469_v59  ;;  %v2959_v34 = vmul.f32 %v8216_v31, %v8471_v35  ;;  %v8530_v5 = vld [vmem:[#allocation2 + $0xb0] sm:$0xff]  ;;  %v615_v23 = vpop.permute.xlu0 %614 }
 0x11b   : > { %v2406_v22 = vadd.f32 %v2300_v11, %v8447_v16  ;;  %914 = vperm.xlu0 %7722, %v372_v51   ;;  %3497 = vst.msk [vmem:[#allocation3 + $0x50] sm:$0xff] %vm962_vm0, %v3391_v29  ;;  %v8534_v54 = vadd.f32 %v1863_v56, %v1646_v12  ;;  %v2522_v14 = vmul.f32 %v8156_v4, %v1752_v44  ;;  %v620_v21 = vpop.permute.xlu1 %619  ;;  %v8544_v4 = vld [vmem:[#allocation5 + $0x3] ss:$0 sm:$0xff]  ;;  %1009 = vst.msk [vmem:[#allocation2 + $0x170] sm:$0xff] %vm962_vm0, %v615_v23 }
 0x11c   : > { %v2407_v17 = vadd.f32 %v2301_v41, %v2186_v3  ;;  %v2960_v16 = vmul.f32 %v8216_v31, %v1429_v24  ;;  %v2845_v59 = vadd.f32 %v2739_v33, %v8436_v37  ;;  %v3065_v50 = vadd.f32 %v2959_v34, %v8454_v27  ;;  %v1753_v27 = vld [vmem:[#allocation2 + $0xaa] sm:$0xff]  ;;  %1010 = vst.msk [vmem:[#allocation2 + $0x178] sm:$0xff] %vm962_vm0, %v620_v21  ;;  %v8580_v33 = vld [vmem:[#allocation5 + $0x5] ss:$0 sm:$0xff] }
 0x11d   : > { %v3180_v35 = vmul.f32 %v8220_v38, %v1751_v26  ;;  %v1220_v63 = vmul.f32 %v8485_v6, %v1109_v30  ;;  %v2627_v39 = vadd.f32 %v2521_v19, %v2406_v22  ;;  %v3181_v10 = vmul.f32 %v8220_v38, %v1752_v44  ;;  %v376_v52 = vld [vmem:[%s8038_s20 + $0x370] sm:$0xff]  ;;  %v1111_v41 = vld [vmem:[#allocation2 + $0xc8] sm:$0xff] }
 0x11e   : > { %v2083_v24 = vmul.f32 %v8544_v4, %v1109_v30  ;;  %v1219_v37 = vmul.f32 %v8485_v6, %v8530_v5  ;;  %929 = vperm.xlu1 %7723, %v375_v61   ;;  %v3066_v47 = vadd.f32 %v2960_v16, %v2845_v59  ;;  %v2742_v9 = vmul.f32 %v8182_v49, %v1109_v30  ;;  %v625_v51 = vpop.permute.xlu0 %624  ;;  %v378_v61 = vld [vmem:[%s8038_s20 + $0x380] sm:$0xff]  ;;  %v8588_v16 = vld [vmem:[#allocation5 + $0x6] ss:$0 sm:$0xff] }
 0x11f   : > { %v3286_v26 = vadd.f32 %v3180_v35, %v3065_v50  ;;  %v1541_v32 = vmul.f32 %v8503_v46, %v1430_v1  ;;  %924 = vperm.xlu0 %7722, %v374_v2   ;;  %v8554_v28 = vadd.f32 %v2522_v14, %v2407_v17  ;;  %v8557_v44 = vadd.f32 %v8493_v40, %v1220_v63  ;;  %v630_v60 = vpop.permute.xlu1 %629  ;;  %v1110_v59 = vld [vmem:[#allocation2 + $0xc0] sm:$0xff] }
 0x120   : > { %v1325_v45 = vadd.f32 %v8493_v40, %v1219_v37  ;;  %v1542_v58 = vmul.f32 %v8503_v46, %v1431_v7  ;;  %v3287_v15 = vadd.f32 %v3181_v10, %v3066_v47  ;;  %v1864_v49 = vmul.f32 %v8508_v25, %v1753_v27  ;;  %1012 = vst.msk [vmem:[#allocation2 + $0x188] sm:$0xff] %vm962_vm0, %v630_v60  ;;  %v1433_v37 = vld [vmem:[#allocation2 + $0xc1] sm:$0xff] }
 0x121   : > { %v3392_v43 = vmax.f32 %v3286_v26, 0.0  ;;  %v1647_v48 = vadd.f32 %v1541_v32, %v8496_v42  ;;  %v8564_v12 = vadd.f32 %v2083_v24, %v1968_v55  ;;  %v2082_v11 = vmul.f32 %v8544_v4, %v8530_v5  ;;  %1011 = vst.msk [vmem:[#allocation2 + $0x180] sm:$0xff] %vm962_vm0, %v625_v51  ;;  %v1755_v26 = vld [vmem:[#allocation2 + $0xba] sm:$0xff]  ;;  %v379_v51 = vld [vmem:[%s8038_s20 + $0x388] sm:$0xff] }
 0x122   : > { %v1648_v56 = vadd.f32 %v1542_v58, %v1325_v45  ;;  %v2302_v62 = vmul.f32 %v8568_v20, %v1430_v1  ;;  %939 = vperm.xlu1 %7723, %v377_v36   ;;  %v3393_v42 = vmax.f32 %v3287_v15, 0.0  ;;  %v8574_v29 = vadd.f32 %v2742_v9, %v2627_v39  ;;  %v635_v35 = vpop.permute.xlu0 %634  ;;  %v1756_v36 = vld [vmem:[#allocation2 + $0xc2] sm:$0xff] }
 0x123   : > { %3498 = vst.msk [vmem:[#allocation3 + $0x58] sm:$0xff] %vm962_vm0, %v3392_v43  ;;  %v1865_v55 = vmul.f32 %v8508_v25, %v1754_v53  ;;  %v1970_v3 = vadd.f32 %v1864_v49, %v1647_v48  ;;  %934 = vperm.xlu0 %7722, %v376_v52   ;;  %v2188_v30 = vadd.f32 %v2082_v11, %v8463_v13  ;;  %v640_v50 = vpop.permute.xlu1 %639  ;;  %1013 = vst.msk [vmem:[#allocation2 + $0x190] sm:$0xff] %vm962_vm0, %v635_v35 }
 0x124   : > { %v2303_v22 = vmul.f32 %v8568_v20, %v1431_v7  ;;  %v2408_v19 = vadd.f32 %v2302_v62, %v8500_v18  ;;  %v2523_v34 = vmul.f32 %v8580_v33, %v1753_v27  ;;  %3499 = vst.msk [vmem:[#allocation3 + $0x60] sm:$0xff] %vm962_vm0, %v3393_v42  ;;  %v2524_v14 = vmul.f32 %v8580_v33, %v1754_v53  ;;  %v1432_v18 = vld [vmem:[#allocation2 + $0xb9] sm:$0xff] }
 0x125   : > { %v8585_v17 = vadd.f32 %v1865_v55, %v1648_v56  ;;  %v2741_v13 = vmul.f32 %v8588_v16, %v8530_v5  ;;  %v2961_v2 = vmul.f32 %v8216_v31, %v1430_v1  ;;  %v2962_v21 = vmul.f32 %v8216_v31, %v1431_v7  ;;  %1014 = vst.msk [vmem:[#allocation2 + $0x198] sm:$0xff] %vm962_vm0, %v640_v50 }
 0x126   : > { %v2409_v63 = vadd.f32 %v2303_v22, %v2188_v30  ;;  %v3182_v23 = vmul.f32 %v8220_v38, %v1753_v27  ;;  %v1222_v39 = vmul.f32 %v8485_v6, %v1111_v41  ;;  %v2629_v10 = vadd.f32 %v2523_v34, %v2408_v19  ;;  %v645_v58 = vpop.permute.xlu0 %644  ;;  %v1113_v30 = vld [vmem:[#allocation2 + $0xd8] sm:$0xff] }
 0x127   : > { %v2847_v5 = vadd.f32 %v2741_v13, %v8491_v57  ;;  %v3067_v1 = vadd.f32 %v2961_v2, %v8514_v8  ;;  %v2085_v24 = vmul.f32 %v8544_v4, %v1111_v41  ;;  %944 = vperm.xlu0 %7722, %v378_v61   ;;  %v3183_v47 = vmul.f32 %v8220_v38, %v1754_v53  ;;  %v650_v45 = vpop.permute.xlu1 %649  ;;  %v8630_v61 = vld [vmem:[#allocation5 + $0x7] ss:$0 sm:$0xff] }
 0x128   : > { %v2744_v31 = vmul.f32 %v8588_v16, %v1111_v41  ;;  %v1221_v7 = vmul.f32 %v8485_v6, %v1110_v59  ;;  %v1543_v27 = vmul.f32 %v8503_v46, %v1432_v18  ;;  %v8605_v9 = vadd.f32 %v2524_v14, %v2409_v63  ;;  %1016 = vst.msk [vmem:[#allocation2 + $0x1a8] sm:$0xff] %vm962_vm0, %v650_v45  ;;  %v1112_v13 = vld [vmem:[#allocation2 + $0xd0] sm:$0xff] }
 0x129   : > { %v3068_v32 = vadd.f32 %v2962_v21, %v2847_v5  ;;  %v3288_v57 = vadd.f32 %v3182_v23, %v3067_v1  ;;  %v8608_v8 = vadd.f32 %v8493_v40, %v1222_v39  ;;  %v8610_v52 = vadd.f32 %v2085_v24, %v1970_v3  ;;  %1015 = vst.msk [vmem:[#allocation2 + $0x1a0] sm:$0xff] %vm962_vm0, %v645_v58  ;;  %v1434_v63 = vld [vmem:[#allocation2 + $0xc9] sm:$0xff]  ;;  %v8640_v39 = vld [vmem:[#allocation5 + $0x8] ss:$0 sm:$0xff] }
 0x12a   : > { %v1327_v38 = vadd.f32 %v8493_v40, %v1221_v7  ;;  %v1544_v53 = vmul.f32 %v8503_v46, %v1433_v37  ;;  %v1649_v15 = vadd.f32 %v1543_v27, %v8557_v44  ;;  %v1866_v49 = vmul.f32 %v8508_v25, %v1755_v26  ;;  %v655_v21 = vpop.permute.xlu0 %654  ;;  %v1435_v5 = vld [vmem:[#allocation2 + $0xd1] sm:$0xff] }
 0x12b   : > { %v3289_v43 = vadd.f32 %v3183_v47, %v3068_v32  ;;  %v3394_v48 = vmax.f32 %v3288_v57, 0.0  ;;  %v2084_v60 = vmul.f32 %v8544_v4, %v1110_v59  ;;  %v8620_v56 = vadd.f32 %v2744_v31, %v2629_v10  ;;  %949 = vperm.xlu0 %7722, %v379_v51   ;;  %1017 = vst.msk [vmem:[#allocation2 + $0x1b0] sm:$0xff] %vm962_vm0, %v655_v21  ;;  %v1757_v47 = vld [vmem:[#allocation2 + $0xca] sm:$0xff] }
 0x12c   : > { %v1650_v11 = vadd.f32 %v1544_v53, %v1327_v38  ;;  %v1867_v62 = vmul.f32 %v8508_v25, %v1756_v36  ;;  %v2304_v42 = vmul.f32 %v8568_v20, %v1432_v18  ;;  %v1972_v55 = vadd.f32 %v1866_v49, %v1649_v15 }
 0x12d   : > { %v3395_v44 = vmax.f32 %v3289_v43, 0.0  ;;  %3500 = vst.msk [vmem:[#allocation3 + $0x68] sm:$0xff] %vm962_vm0, %v3394_v48  ;;  %v2190_v3 = vadd.f32 %v2084_v60, %v8534_v54  ;;  %v2305_v41 = vmul.f32 %v8568_v20, %v1433_v37  ;;  %v2525_v19 = vmul.f32 %v8580_v33, %v1755_v26 }
 0x12e   : > { %v2410_v22 = vadd.f32 %v2304_v42, %v8564_v12  ;;  %v2743_v34 = vmul.f32 %v8588_v16, %v1110_v59  ;;  %v2963_v14 = vmul.f32 %v8630_v61, %v1432_v18  ;;  %v8634_v2 = vadd.f32 %v1867_v62, %v1650_v11  ;;  %v660_v12 = vpop.permute.xlu1 %659  ;;  %v665_v21 = vpop.permute.xlu0 %664 }
 0x12f   : > { %3501 = vst.msk [vmem:[#allocation3 + $0x70] sm:$0xff] %vm962_vm0, %v3395_v44  ;;  %v2411_v50 = vadd.f32 %v2305_v41, %v2190_v3  ;;  %v2526_v54 = vmul.f32 %v8580_v33, %v1756_v36  ;;  %v2964_v35 = vmul.f32 %v8630_v61, %v1433_v37  ;;  %v3184_v18 = vmul.f32 %v8640_v39, %v1755_v26  ;;  %v1115_v44 = vld [vmem:[#allocation2 + $0xe8] sm:$0xff] }
 0x130   : > { %v2849_v23 = vadd.f32 %v2743_v34, %v8554_v28  ;;  %v3069_v59 = vadd.f32 %v2963_v14, %v8574_v29  ;;  %v1224_v10 = vmul.f32 %v8485_v6, %v1113_v30  ;;  %1018 = vst.msk [vmem:[#allocation2 + $0x1b8] sm:$0xff] %vm962_vm0, %v660_v12  ;;  %v2631_v1 = vadd.f32 %v2525_v19, %v2410_v22  ;;  %v1114_v14 = vld [vmem:[#allocation2 + $0xe0] sm:$0xff] }
 0x131   : > { %v3185_v24 = vmul.f32 %v8640_v39, %v1756_v36  ;;  %v2087_v37 = vmul.f32 %v8544_v4, %v1113_v30  ;;  %v1223_v28 = vmul.f32 %v8485_v6, %v1112_v13  ;;  %v2746_v7 = vmul.f32 %v8588_v16, %v1113_v30  ;;  %v1758_v36 = vld [vmem:[#allocation2 + $0xd2] sm:$0xff]  ;;  %1019 = vst.msk [vmem:[#allocation2 + $0x1c0] sm:$0xff] %vm962_vm0, %v665_v21 }
 0x132   : > { %v3070_v29 = vadd.f32 %v2964_v35, %v2849_v23  ;;  %v3290_v31 = vadd.f32 %v3184_v18, %v3069_v59  ;;  %v1545_v27 = vmul.f32 %v8503_v46, %v1434_v63  ;;  %v8651_v26 = vadd.f32 %v2526_v54, %v2411_v50  ;;  %v1436_v50 = vld [vmem:[#allocation2 + $0xd9] sm:$0xff]  ;;  %v670_v12 = vpop.permute.xlu1 %669 }
 0x133   : > { %v1330_v32 = vadd.f32 %v8493_v40, %v1224_v10  ;;  %v1329_v57 = vadd.f32 %v8493_v40, %v1223_v28  ;;  %v1546_v45 = vmul.f32 %v8503_v46, %v1435_v5  ;;  %v1868_v15 = vmul.f32 %v8508_v25, %v1757_v47  ;;  %v1437_v10 = vld [vmem:[#allocation2 + $0xe1] sm:$0xff]  ;;  %1020 = vst.msk [vmem:[#allocation2 + $0x1c8] sm:$0xff] %vm962_vm0, %v670_v12  ;;  %v1439_v12 = vld [vmem:[#allocation2 + $0xf1] sm:$0xff] }
 0x134   : > { %v3291_v58 = vadd.f32 %v3185_v24, %v3070_v29  ;;  %v3396_v38 = vmax.f32 %v3290_v31, 0.0  ;;  %v1651_v53 = vadd.f32 %v1545_v27, %v8608_v8  ;;  %v2193_v43 = vadd.f32 %v2087_v37, %v1972_v55  ;;  %v1759_v37 = vld [vmem:[#allocation2 + $0xda] sm:$0xff]  ;;  %v1760_v29 = vld [vmem:[#allocation2 + $0xe2] sm:$0xff] }
 0x135   : > { %v1652_v48 = vadd.f32 %v1546_v45, %v1329_v57  ;;  %v2086_v49 = vmul.f32 %v8544_v4, %v1112_v13  ;;  %v2306_v60 = vmul.f32 %v8568_v20, %v1434_v63  ;;  %v8661_v11 = vadd.f32 %v2746_v7, %v2631_v1 }
 0x136   : > { %v3397_v51 = vmax.f32 %v3291_v58, 0.0  ;;  %3502 = vst.msk [vmem:[#allocation3 + $0x78] sm:$0xff] %vm962_vm0, %v3396_v38  ;;  %v1869_v62 = vmul.f32 %v8508_v25, %v1758_v36  ;;  %v1974_v42 = vadd.f32 %v1868_v15, %v1651_v53  ;;  %v2307_v8 = vmul.f32 %v8568_v20, %v1435_v5 }
 0x137   : > { %v2192_v3 = vadd.f32 %v2086_v49, %v8585_v17  ;;  %v2412_v55 = vadd.f32 %v2306_v60, %v8610_v52  ;;  %v2527_v41 = vmul.f32 %v8580_v33, %v1757_v47  ;;  %v2528_v22 = vmul.f32 %v8580_v33, %v1758_v36 }
 0x138   : > { %3503 = vst.msk [vmem:[#allocation3 + $0x80] sm:$0xff] %vm962_vm0, %v3397_v51  ;;  %v8669_v30 = vadd.f32 %v1869_v62, %v1652_v48  ;;  %v2745_v19 = vmul.f32 %v8588_v16, %v1112_v13  ;;  %v2965_v34 = vmul.f32 %v8630_v61, %v1434_v63  ;;  %v2966_v17 = vmul.f32 %v8630_v61, %v1435_v5 }
 0x139   : > { %v2413_v54 = vadd.f32 %v2307_v8, %v2192_v3  ;;  %v3186_v35 = vmul.f32 %v8640_v39, %v1757_v47  ;;  %v1226_v52 = vmul.f32 %v8485_v6, %v1115_v44  ;;  %v2633_v23 = vadd.f32 %v2527_v41, %v2412_v55  ;;  %v1116_v41 = vld [vmem:[#allocation2 + $0xf0] sm:$0xff] }
 0x13a   : > { %v2851_v59 = vadd.f32 %v2745_v19, %v8605_v9  ;;  %v3071_v18 = vadd.f32 %v2965_v34, %v8620_v56  ;;  %v2089_v13 = vmul.f32 %v8544_v4, %v1115_v44  ;;  %v3187_v63 = vmul.f32 %v8640_v39, %v1758_v36 }
 0x13b   : > { %v2748_v5 = vmul.f32 %v8588_v16, %v1115_v44  ;;  %v1225_v1 = vmul.f32 %v8485_v6, %v1114_v14  ;;  %v1547_v24 = vmul.f32 %v8503_v46, %v1436_v50  ;;  %v8686_v28 = vadd.f32 %v2528_v22, %v2413_v54  ;;  %v1438_v54 = vld [vmem:[#allocation2 + $0xe9] sm:$0xff] }
 0x13c   : > { %v3072_v9 = vadd.f32 %v2966_v17, %v2851_v59  ;;  %v3292_v56 = vadd.f32 %v3186_v35, %v3071_v18  ;;  %v1332_v47 = vadd.f32 %v8493_v40, %v1226_v52  ;;  %v8689_v31 = vadd.f32 %v2089_v13, %v1974_v42  ;;  %v1117_v42 = vld [vmem:[#allocation2 + $0xf8] sm:$0xff]  ;;  %v680_v17 = vpop.permute.xlu1 %679  ;;  %v675_v35 = vpop.permute.xlu0 %674  ;;  %v1761_v13 = vld [vmem:[#allocation2 + $0xea] sm:$0xff] }
 0x13d   : > { %v1331_v7 = vadd.f32 %v8493_v40, %v1225_v1  ;;  %v1548_v27 = vmul.f32 %v8503_v46, %v1437_v10  ;;  %v1653_v57 = vadd.f32 %v1547_v24, %v1330_v32  ;;  %v1870_v58 = vmul.f32 %v8508_v25, %v1759_v37  ;;  %1022 = vst.msk [vmem:[#allocation2 + $0x1d8] sm:$0xff] %vm962_vm0, %v680_v17 }
 0x13e   : > { %v3293_v45 = vadd.f32 %v3187_v63, %v3072_v9  ;;  %v3398_v36 = vmax.f32 %v3292_v56, 0.0  ;;  %v2088_v38 = vmul.f32 %v8544_v4, %v1114_v14  ;;  %v8695_v53 = vadd.f32 %v2748_v5, %v2633_v23  ;;  %1021 = vst.msk [vmem:[#allocation2 + $0x1d0] sm:$0xff] %vm962_vm0, %v675_v35  ;;  %v1762_v9 = vld [vmem:[#allocation2 + $0xf2] sm:$0xff] }
 0x13f   : > { %v1654_v15 = vadd.f32 %v1548_v27, %v1331_v7  ;;  %v1871_v48 = vmul.f32 %v8508_v25, %v1760_v29  ;;  %v2308_v49 = vmul.f32 %v8568_v20, %v1436_v50  ;;  %v1976_v51 = vadd.f32 %v1870_v58, %v1653_v57 }
 0x140   : > { %v3399_v60 = vmax.f32 %v3293_v45, 0.0  ;;  %3504 = vst.msk [vmem:[#allocation3 + $0x88] sm:$0xff] %vm962_vm0, %v3398_v36  ;;  %v2194_v62 = vadd.f32 %v2088_v38, %v8634_v2  ;;  %v2309_v32 = vmul.f32 %v8568_v20, %v1437_v10  ;;  %v2529_v3 = vmul.f32 %v8580_v33, %v1759_v37  ;;  %v690_v17 = vpop.permute.xlu1 %689  ;;  %v685_v35 = vpop.permute.xlu0 %684 }
 0x141   : > { %v2414_v44 = vadd.f32 %v2308_v49, %v2193_v43  ;;  %v2747_v8 = vmul.f32 %v8588_v16, %v1114_v14  ;;  %v2967_v55 = vmul.f32 %v8630_v61, %v1436_v50  ;;  %v8706_v22 = vadd.f32 %v1871_v48, %v1654_v15  ;;  %1024 = vst.msk [vmem:[#allocation2 + $0x1e8] sm:$0xff] %vm962_vm0, %v690_v17  ;;  %v1443_v17 = vld [vmem:[#allocation2 + $0x111] sm:$0xff] }
 0x142   : > { %3505 = vst.msk [vmem:[#allocation3 + $0x90] sm:$0xff] %vm962_vm0, %v3399_v60  ;;  %v2415_v19 = vadd.f32 %v2309_v32, %v2194_v62  ;;  %v2530_v34 = vmul.f32 %v8580_v33, %v1760_v29  ;;  %v2968_v2 = vmul.f32 %v8630_v61, %v1437_v10  ;;  %v3188_v14 = vmul.f32 %v8640_v39, %v1759_v37  ;;  %v1119_v60 = vld [vmem:[#allocation2 + $0x108] sm:$0xff] }
 0x143   : > { %v2853_v43 = vadd.f32 %v2747_v8, %v8651_v26  ;;  %v3073_v52 = vadd.f32 %v2967_v55, %v8661_v11  ;;  %v1228_v50 = vmul.f32 %v8485_v6, %v1117_v42  ;;  %v2635_v21 = vadd.f32 %v2529_v3, %v2414_v44  ;;  %v1118_v55 = vld [vmem:[#allocation2 + $0x100] sm:$0xff]  ;;  %1023 = vst.msk [vmem:[#allocation2 + $0x1e0] sm:$0xff] %vm962_vm0, %v685_v35 }
 0x144   : > { %v3189_v23 = vmul.f32 %v8640_v39, %v1760_v29  ;;  %v2091_v59 = vmul.f32 %v8544_v4, %v1117_v42  ;;  %v1227_v18 = vmul.f32 %v8485_v6, %v1116_v41  ;;  %v2750_v11 = vmul.f32 %v8588_v16, %v1117_v42 }
 0x145   : > { %v3074_v26 = vadd.f32 %v2968_v2, %v2853_v43  ;;  %v3294_v10 = vadd.f32 %v3188_v14, %v3073_v52  ;;  %v1549_v63 = vmul.f32 %v8503_v46, %v1438_v54  ;;  %v8721_v5 = vadd.f32 %v2530_v34, %v2415_v19  ;;  %v1440_v19 = vld [vmem:[#allocation2 + $0xf9] sm:$0xff] }
 0x146   : > { %v1334_v1 = vadd.f32 %v8493_v40, %v1228_v50  ;;  %v1333_v24 = vadd.f32 %v8493_v40, %v1227_v18  ;;  %v1550_v37 = vmul.f32 %v8503_v46, %v1439_v12  ;;  %v1872_v27 = vmul.f32 %v8508_v25, %v1761_v13  ;;  %v1441_v50 = vld [vmem:[#allocation2 + $0x101] sm:$0xff] }
 0x147   : > { %v3295_v56 = vadd.f32 %v3189_v23, %v3074_v26  ;;  %v3400_v29 = vmax.f32 %v3294_v10, 0.0  ;;  %v1655_v7 = vadd.f32 %v1549_v63, %v1332_v47  ;;  %v2197_v57 = vadd.f32 %v2091_v59, %v1976_v51  ;;  %v1763_v59 = vld [vmem:[#allocation2 + $0xfa] sm:$0xff]  ;;  %v1764_v26 = vld [vmem:[#allocation2 + $0x102] sm:$0xff] }
 0x148   : > { %v1656_v45 = vadd.f32 %v1550_v37, %v1333_v24  ;;  %v2090_v36 = vmul.f32 %v8544_v4, %v1116_v41  ;;  %v2310_v58 = vmul.f32 %v8568_v20, %v1438_v54  ;;  %v8730_v15 = vadd.f32 %v2750_v11, %v2635_v21 }
 0x149   : > { %v3401_v38 = vmax.f32 %v3295_v56, 0.0  ;;  %3506 = vst.msk [vmem:[#allocation3 + $0x98] sm:$0xff] %vm962_vm0, %v3400_v29  ;;  %v1873_v48 = vmul.f32 %v8508_v25, %v1762_v9  ;;  %v1978_v49 = vadd.f32 %v1872_v27, %v1655_v7  ;;  %v2311_v47 = vmul.f32 %v8568_v20, %v1439_v12 }
 0x14a   : > { %v2196_v62 = vadd.f32 %v2090_v36, %v8669_v30  ;;  %v2416_v51 = vadd.f32 %v2310_v58, %v8689_v31  ;;  %v2531_v32 = vmul.f32 %v8580_v33, %v1761_v13  ;;  %v2532_v44 = vmul.f32 %v8580_v33, %v1762_v9 }
 0x14b   : > { %3507 = vst.msk [vmem:[#allocation3 + $0xa0] sm:$0xff] %vm962_vm0, %v3401_v38  ;;  %v8738_v42 = vadd.f32 %v1873_v48, %v1656_v45  ;;  %v2749_v3 = vmul.f32 %v8588_v16, %v1116_v41  ;;  %v2969_v8 = vmul.f32 %v8630_v61, %v1438_v54  ;;  %v2970_v30 = vmul.f32 %v8630_v61, %v1439_v12 }
 0x14c   : > { %v2417_v34 = vadd.f32 %v2311_v47, %v2196_v62  ;;  %v3190_v2 = vmul.f32 %v8640_v39, %v1761_v13  ;;  %v1230_v31 = vmul.f32 %v8485_v6, %v1119_v60  ;;  %v2637_v43 = vadd.f32 %v2531_v32, %v2416_v51  ;;  %v1120_v32 = vld [vmem:[#allocation2 + $0x110] sm:$0xff] }
 0x14d   : > { %v2855_v52 = vadd.f32 %v2749_v3, %v8686_v28  ;;  %v3075_v14 = vadd.f32 %v2969_v8, %v8695_v53  ;;  %v2093_v41 = vmul.f32 %v8544_v4, %v1119_v60  ;;  %v3191_v54 = vmul.f32 %v8640_v39, %v1762_v9 }
 0x14e   : > { %v2752_v12 = vmul.f32 %v8588_v16, %v1119_v60  ;;  %v1229_v21 = vmul.f32 %v8485_v6, %v1118_v55  ;;  %v1551_v23 = vmul.f32 %v8503_v46, %v1440_v19  ;;  %v8755_v18 = vadd.f32 %v2532_v44, %v2417_v34  ;;  %v1442_v34 = vld [vmem:[#allocation2 + $0x109] sm:$0xff] }
 0x14f   : > { %v3076_v28 = vadd.f32 %v2970_v30, %v2855_v52  ;;  %v3296_v53 = vadd.f32 %v3190_v2, %v3075_v14  ;;  %v1336_v13 = vadd.f32 %v8493_v40, %v1230_v31  ;;  %v8758_v10 = vadd.f32 %v2093_v41, %v1978_v49  ;;  %v1121_v49 = vld [vmem:[#allocation2 + $0x118] sm:$0xff]  ;;  %v700_v30 = vpop.permute.xlu1 %699  ;;  %v695_v2 = vpop.permute.xlu0 %694  ;;  %v1765_v41 = vld [vmem:[#allocation2 + $0x10a] sm:$0xff] }
 0x150   : > { %v1335_v11 = vadd.f32 %v8493_v40, %v1229_v21  ;;  %v1552_v63 = vmul.f32 %v8503_v46, %v1441_v50  ;;  %v1657_v24 = vadd.f32 %v1551_v23, %v1334_v1  ;;  %v1874_v56 = vmul.f32 %v8508_v25, %v1763_v59  ;;  %1026 = vst.msk [vmem:[#allocation2 + $0x1f8] sm:$0xff] %vm962_vm0, %v700_v30 }
 0x151   : > { %v3297_v37 = vadd.f32 %v3191_v54, %v3076_v28  ;;  %v3402_v9 = vmax.f32 %v3296_v53, 0.0  ;;  %v2092_v29 = vmul.f32 %v8544_v4, %v1118_v55  ;;  %v8764_v7 = vadd.f32 %v2752_v12, %v2637_v43  ;;  %1025 = vst.msk [vmem:[#allocation2 + $0x1f0] sm:$0xff] %vm962_vm0, %v695_v2  ;;  %v1766_v28 = vld [vmem:[#allocation2 + $0x112] sm:$0xff] }
 0x152   : > { %v1658_v27 = vadd.f32 %v1552_v63, %v1335_v11  ;;  %v1875_v45 = vmul.f32 %v8508_v25, %v1764_v26  ;;  %v2312_v36 = vmul.f32 %v8568_v20, %v1440_v19  ;;  %v1980_v38 = vadd.f32 %v1874_v56, %v1657_v24 }
 0x153   : > { %v3403_v58 = vmax.f32 %v3297_v37, 0.0  ;;  %3508 = vst.msk [vmem:[#allocation3 + $0xa8] sm:$0xff] %vm962_vm0, %v3402_v9  ;;  %v2198_v48 = vadd.f32 %v2092_v29, %v8706_v22  ;;  %v2313_v1 = vmul.f32 %v8568_v20, %v1441_v50  ;;  %v2533_v62 = vmul.f32 %v8580_v33, %v1763_v59  ;;  %v710_v30 = vpop.permute.xlu1 %709  ;;  %v705_v2 = vpop.permute.xlu0 %704 }
 0x154   : > { %v2418_v60 = vadd.f32 %v2312_v36, %v2197_v57  ;;  %v2751_v47 = vmul.f32 %v8588_v16, %v1118_v55  ;;  %v2971_v51 = vmul.f32 %v8630_v61, %v1440_v19  ;;  %v8775_v44 = vadd.f32 %v1875_v45, %v1658_v27  ;;  %1028 = vst.msk [vmem:[#allocation2 + $0x208] sm:$0xff] %vm962_vm0, %v710_v30  ;;  %v1447_v30 = vld [vmem:[#allocation2 + $0x131] sm:$0xff] }
 0x155   : > { %3509 = vst.msk [vmem:[#allocation3 + $0xb0] sm:$0xff] %vm962_vm0, %v3403_v58  ;;  %v2419_v3 = vadd.f32 %v2313_v1, %v2198_v48  ;;  %v2534_v8 = vmul.f32 %v8580_v33, %v1764_v26  ;;  %v2972_v22 = vmul.f32 %v8630_v61, %v1441_v50  ;;  %v3192_v55 = vmul.f32 %v8640_v39, %v1763_v59  ;;  %v1123_v58 = vld [vmem:[#allocation2 + $0x128] sm:$0xff] }
 0x156   : > { %v2857_v57 = vadd.f32 %v2751_v47, %v8721_v5  ;;  %v3077_v31 = vadd.f32 %v2971_v51, %v8730_v15  ;;  %v1232_v19 = vmul.f32 %v8485_v6, %v1121_v49  ;;  %v2639_v35 = vadd.f32 %v2533_v62, %v2418_v60  ;;  %v1122_v51 = vld [vmem:[#allocation2 + $0x120] sm:$0xff]  ;;  %1027 = vst.msk [vmem:[#allocation2 + $0x200] sm:$0xff] %vm962_vm0, %v705_v2 }
 0x157   : > { %v3193_v43 = vmul.f32 %v8640_v39, %v1764_v26  ;;  %v2095_v52 = vmul.f32 %v8544_v4, %v1121_v49  ;;  %v1231_v14 = vmul.f32 %v8485_v6, %v1120_v32  ;;  %v2754_v15 = vmul.f32 %v8588_v16, %v1121_v49 }
 0x158   : > { %v3078_v5 = vadd.f32 %v2972_v22, %v2857_v57  ;;  %v3298_v50 = vadd.f32 %v3192_v55, %v3077_v31  ;;  %v1553_v54 = vmul.f32 %v8503_v46, %v1442_v34  ;;  %v8790_v12 = vadd.f32 %v2534_v8, %v2419_v3  ;;  %v1444_v3 = vld [vmem:[#allocation2 + $0x119] sm:$0xff] }
 0x159   : > { %v1338_v21 = vadd.f32 %v8493_v40, %v1232_v19  ;;  %v1337_v23 = vadd.f32 %v8493_v40, %v1231_v14  ;;  %v1554_v59 = vmul.f32 %v8503_v46, %v1443_v17  ;;  %v1876_v63 = vmul.f32 %v8508_v25, %v1765_v41  ;;  %v1445_v19 = vld [vmem:[#allocation2 + $0x121] sm:$0xff] }
 0x15a   : > { %v3299_v53 = vadd.f32 %v3193_v43, %v3078_v5  ;;  %v3404_v26 = vmax.f32 %v3298_v50, 0.0  ;;  %v1659_v11 = vadd.f32 %v1553_v54, %v1336_v13  ;;  %v2201_v24 = vadd.f32 %v2095_v52, %v1980_v38  ;;  %v1767_v52 = vld [vmem:[#allocation2 + $0x11a] sm:$0xff]  ;;  %v1768_v5 = vld [vmem:[#allocation2 + $0x122] sm:$0xff] }
 0x15b   : > { %v1660_v37 = vadd.f32 %v1554_v59, %v1337_v23  ;;  %v2094_v9 = vmul.f32 %v8544_v4, %v1120_v32  ;;  %v2314_v56 = vmul.f32 %v8568_v20, %v1442_v34  ;;  %v8799_v27 = vadd.f32 %v2754_v15, %v2639_v35 }
 0x15c   : > { %v3405_v29 = vmax.f32 %v3299_v53, 0.0  ;;  %3510 = vst.msk [vmem:[#allocation3 + $0xb8] sm:$0xff] %vm962_vm0, %v3404_v26  ;;  %v1877_v45 = vmul.f32 %v8508_v25, %v1766_v28  ;;  %v1982_v36 = vadd.f32 %v1876_v63, %v1659_v11  ;;  %v2315_v13 = vmul.f32 %v8568_v20, %v1443_v17 }
 0x15d   : > { %v2200_v48 = vadd.f32 %v2094_v9, %v8738_v42  ;;  %v2420_v38 = vadd.f32 %v2314_v56, %v8758_v10  ;;  %v2535_v1 = vmul.f32 %v8580_v33, %v1765_v41  ;;  %v2536_v60 = vmul.f32 %v8580_v33, %v1766_v28 }
 0x15e   : > { %3511 = vst.msk [vmem:[#allocation3 + $0xc0] sm:$0xff] %vm962_vm0, %v3405_v29  ;;  %v8807_v49 = vadd.f32 %v1877_v45, %v1660_v37  ;;  %v2753_v62 = vmul.f32 %v8588_v16, %v1120_v32  ;;  %v2973_v47 = vmul.f32 %v8630_v61, %v1442_v34  ;;  %v2974_v42 = vmul.f32 %v8630_v61, %v1443_v17 }
 0x15f   : > { %v2421_v8 = vadd.f32 %v2315_v13, %v2200_v48  ;;  %v3194_v22 = vmul.f32 %v8640_v39, %v1765_v41  ;;  %v1234_v10 = vmul.f32 %v8485_v6, %v1123_v58  ;;  %v2641_v57 = vadd.f32 %v2535_v1, %v2420_v38  ;;  %v1124_v1 = vld [vmem:[#allocation2 + $0x130] sm:$0xff] }
 0x160   : > { %v2859_v31 = vadd.f32 %v2753_v62, %v8755_v18  ;;  %v3079_v55 = vadd.f32 %v2973_v47, %v8764_v7  ;;  %v2097_v32 = vmul.f32 %v8544_v4, %v1123_v58  ;;  %v3195_v34 = vmul.f32 %v8640_v39, %v1766_v28 }
 0x161   : > { %v2756_v17 = vmul.f32 %v8588_v16, %v1123_v58  ;;  %v1233_v35 = vmul.f32 %v8485_v6, %v1122_v51  ;;  %v1555_v43 = vmul.f32 %v8503_v46, %v1444_v3  ;;  %v8824_v14 = vadd.f32 %v2536_v60, %v2421_v8  ;;  %v1446_v8 = vld [vmem:[#allocation2 + $0x129] sm:$0xff] }
 0x162   : > { %v3080_v18 = vadd.f32 %v2974_v42, %v2859_v31  ;;  %v3300_v7 = vadd.f32 %v3194_v22, %v3079_v55  ;;  %v1340_v41 = vadd.f32 %v8493_v40, %v1234_v10  ;;  %v8827_v50 = vadd.f32 %v2097_v32, %v1982_v36  ;;  %v1125_v36 = vld [vmem:[#allocation2 + $0x138] sm:$0xff]  ;;  %v720_v42 = vpop.permute.xlu1 %719  ;;  %v715_v22 = vpop.permute.xlu0 %714  ;;  %v1769_v32 = vld [vmem:[#allocation2 + $0x12a] sm:$0xff] }
 0x163   : > { %v1339_v15 = vadd.f32 %v8493_v40, %v1233_v35  ;;  %v1556_v54 = vmul.f32 %v8503_v46, %v1445_v19  ;;  %v1661_v23 = vadd.f32 %v1555_v43, %v1338_v21  ;;  %v1878_v53 = vmul.f32 %v8508_v25, %v1767_v52  ;;  %1030 = vst.msk [vmem:[#allocation2 + $0x218] sm:$0xff] %vm962_vm0, %v720_v42 }
 0x164   : > { %v3301_v59 = vadd.f32 %v3195_v34, %v3080_v18  ;;  %v3406_v28 = vmax.f32 %v3300_v7, 0.0  ;;  %v2096_v26 = vmul.f32 %v8544_v4, %v1122_v51  ;;  %v8833_v11 = vadd.f32 %v2756_v17, %v2641_v57  ;;  %1029 = vst.msk [vmem:[#allocation2 + $0x210] sm:$0xff] %vm962_vm0, %v715_v22  ;;  %v1770_v18 = vld [vmem:[#allocation2 + $0x132] sm:$0xff]  ;;  %v1449_v22 = vld [vmem:[#allocation2 + $0x141] sm:$0xff] }
 0x165   : > { %v1662_v63 = vadd.f32 %v1556_v54, %v1339_v15  ;;  %v1879_v37 = vmul.f32 %v8508_v25, %v1768_v5  ;;  %v2316_v9 = vmul.f32 %v8568_v20, %v1444_v3  ;;  %v1984_v29 = vadd.f32 %v1878_v53, %v1661_v23 }
 0x166   : > { %v3407_v56 = vmax.f32 %v3301_v59, 0.0  ;;  %3512 = vst.msk [vmem:[#allocation3 + $0xc8] sm:$0xff] %vm962_vm0, %v3406_v28  ;;  %v2202_v45 = vadd.f32 %v2096_v26, %v8775_v44  ;;  %v2317_v21 = vmul.f32 %v8568_v20, %v1445_v19  ;;  %v2537_v48 = vmul.f32 %v8580_v33, %v1767_v52 }
 0x167   : > { %v2422_v58 = vadd.f32 %v2316_v9, %v2201_v24  ;;  %v2755_v13 = vmul.f32 %v8588_v16, %v1122_v51  ;;  %v2975_v38 = vmul.f32 %v8630_v61, %v1444_v3  ;;  %v8844_v60 = vadd.f32 %v1879_v37, %v1662_v63  ;;  %v1127_v63 = vld [vmem:[#allocation2 + $0x148] sm:$0xff] }
 0x168   : > { %3513 = vst.msk [vmem:[#allocation3 + $0xd0] sm:$0xff] %vm962_vm0, %v3407_v56  ;;  %v2423_v62 = vadd.f32 %v2317_v21, %v2202_v45  ;;  %v2538_v47 = vmul.f32 %v8580_v33, %v1768_v5  ;;  %v2976_v44 = vmul.f32 %v8630_v61, %v1445_v19  ;;  %v3196_v51 = vmul.f32 %v8640_v39, %v1767_v52 }
 0x169   : > { %v2861_v24 = vadd.f32 %v2755_v13, %v8790_v12  ;;  %v3081_v10 = vadd.f32 %v2975_v38, %v8799_v27  ;;  %v1236_v3 = vmul.f32 %v8485_v6, %v1125_v36  ;;  %v2643_v2 = vadd.f32 %v2537_v48, %v2422_v58  ;;  %v1448_v58 = vld [vmem:[#allocation2 + $0x139] sm:$0xff] }
 0x16a   : > { %v3197_v57 = vmul.f32 %v8640_v39, %v1768_v5  ;;  %v2099_v31 = vmul.f32 %v8544_v4, %v1125_v36  ;;  %v1235_v55 = vmul.f32 %v8485_v6, %v1124_v1  ;;  %v2758_v27 = vmul.f32 %v8588_v16, %v1125_v36  ;;  %v1126_v36 = vld [vmem:[#allocation2 + $0x140] sm:$0xff] }
 0x16b   : > { %v3082_v12 = vadd.f32 %v2976_v44, %v2861_v24  ;;  %v3302_v19 = vadd.f32 %v3196_v51, %v3081_v10  ;;  %v1557_v34 = vmul.f32 %v8503_v46, %v1446_v8  ;;  %v8859_v17 = vadd.f32 %v2538_v47, %v2423_v62  ;;  %v730_v62 = vpop.permute.xlu1 %729  ;;  %v725_v47 = vpop.permute.xlu0 %724 }
 0x16c   : > { %v1342_v35 = vadd.f32 %v8493_v40, %v1236_v3  ;;  %v1341_v43 = vadd.f32 %v8493_v40, %v1235_v55  ;;  %v1558_v52 = vmul.f32 %v8503_v46, %v1447_v30  ;;  %v1880_v6 = vmul.f32 %v8508_v25, %v1769_v32  ;;  %1032 = vst.msk [vmem:[#allocation2 + $0x228] sm:$0xff] %vm962_vm0, %v730_v62  ;;  %v8896_v3 = vld [vmem:[#allocation5 + $0x1] ss:$0 sm:$0xff] }
 0x16d   : > { %v3303_v7 = vadd.f32 %v3197_v57, %v3082_v12  ;;  %v3408_v5 = vmax.f32 %v3302_v19, 0.0  ;;  %v1663_v15 = vadd.f32 %v1557_v34, %v1340_v41  ;;  %v8865_v54 = vadd.f32 %v2099_v31, %v1984_v29  ;;  %1031 = vst.msk [vmem:[#allocation2 + $0x220] sm:$0xff] %vm962_vm0, %v725_v47  ;;  %v8901_v31 = vld [vmem:[#allocation7] ss:$0 sm:$0xff]  ;;  %v8935_v47 = vld [vmem:[#allocation5 + $0x3] ss:$0 sm:$0xff] }
 0x16e   : > { %v1664_v23 = vadd.f32 %v1558_v52, %v1341_v43  ;;  %v2098_v59 = vmul.f32 %v8544_v4, %v1124_v1  ;;  %v2318_v28 = vmul.f32 %v8568_v20, %v1446_v8  ;;  %v8870_v26 = vadd.f32 %v2758_v27, %v2643_v2 }
 0x16f   : > { %v3409_v53 = vmax.f32 %v3303_v7, 0.0  ;;  %3514 = vst.msk [vmem:[#allocation3 + $0xd8] sm:$0xff] %vm962_vm0, %v3408_v5  ;;  %v1881_v40 = vmul.f32 %v8508_v25, %v1770_v18  ;;  %v1986_v46 = vadd.f32 %v1880_v6, %v1663_v15  ;;  %v2319_v37 = vmul.f32 %v8568_v20, %v1447_v30 }
 0x170   : > { %v2204_v41 = vadd.f32 %v2098_v59, %v8807_v49  ;;  %v2424_v9 = vadd.f32 %v2318_v28, %v8827_v50  ;;  %v2539_v56 = vmul.f32 %v8580_v33, %v1769_v32  ;;  %v2540_v45 = vmul.f32 %v8580_v33, %v1770_v18  ;;  %v8885_v50 = vld [vmem:[#allocation5] ss:$0 sm:$0xff] }
 0x171   : > { %3515 = vst.msk [vmem:[#allocation3 + $0xe0] sm:$0xff] %vm962_vm0, %v3409_v53  ;;  %v8878_v29 = vadd.f32 %v1881_v40, %v1664_v23  ;;  %v2757_v21 = vmul.f32 %v8588_v16, %v1124_v1  ;;  %v2977_v25 = vmul.f32 %v8630_v61, %v1446_v8  ;;  %v2978_v49 = vmul.f32 %v8630_v61, %v1447_v30 }
 0x172   : > { %v2425_v48 = vadd.f32 %v2319_v37, %v2204_v41  ;;  %v3198_v13 = vmul.f32 %v8640_v39, %v1769_v32  ;;  %v1238_v38 = vmul.f32 %v8885_v50, %v1127_v63  ;;  %v2645_v44 = vadd.f32 %v2539_v56, %v2424_v9  ;;  %v1772_v32 = vld [vmem:[#allocation2 + $0x142] sm:$0xff]  ;;  %v1128_v9 = vld [vmem:[#allocation2 + $0x150] sm:$0xff] }
 0x173   : > { %v2863_v42 = vadd.f32 %v2757_v21, %v8824_v14  ;;  %v3083_v1 = vadd.f32 %v2977_v25, %v8833_v11  ;;  %v2101_v8 = vmul.f32 %v8544_v4, %v1127_v63  ;;  %v3199_v24 = vmul.f32 %v8640_v39, %v1770_v18  ;;  %v1771_v14 = vld [vmem:[#allocation2 + $0x13a] sm:$0xff]  ;;  %v8908_v18 = vld [vmem:[#allocation5 + $0x2] ss:$0 sm:$0xff]  ;;  %v740_v25 = vpop.permute.xlu1 %739 }
 0x174   : > { %v2760_v10 = vmul.f32 %v8588_v16, %v1127_v63  ;;  %v1237_v51 = vmul.f32 %v8885_v50, %v1126_v36  ;;  %v1559_v30 = vmul.f32 %v8896_v3, %v1448_v58  ;;  %v8899_v2 = vadd.f32 %v2540_v45, %v2425_v48  ;;  %v735_v48 = vpop.permute.xlu0 %734  ;;  %1034 = vst.msk [vmem:[#allocation2 + $0x238] sm:$0xff] %vm962_vm0, %v740_v25 }
 0x175   : > { %v3084_v11 = vadd.f32 %v2978_v49, %v2863_v42  ;;  %v3304_v57 = vadd.f32 %v3198_v13, %v3083_v1  ;;  %v1344_v55 = vadd.f32 %v8901_v31, %v1238_v38  ;;  %v8904_v12 = vadd.f32 %v2101_v8, %v1986_v46  ;;  %v1129_v46 = vld [vmem:[#allocation2 + $0x158] sm:$0xff]  ;;  %1033 = vst.msk [vmem:[#allocation2 + $0x230] sm:$0xff] %vm962_vm0, %v735_v48  ;;  %v1773_v42 = vld [vmem:[#allocation2 + $0x14a] sm:$0xff] }
 0x176   : > { %v1343_v19 = vadd.f32 %v8901_v31, %v1237_v51  ;;  %v1560_v27 = vmul.f32 %v8896_v3, %v1449_v22  ;;  %v1665_v34 = vadd.f32 %v1559_v30, %v1342_v35  ;;  %v1882_v7 = vmul.f32 %v8908_v18, %v1771_v14  ;;  %v1451_v13 = vld [vmem:[#allocation2 + $0x151] sm:$0xff] }
 0x177   : > { %v3305_v43 = vadd.f32 %v3199_v24, %v3084_v11  ;;  %v3410_v52 = vmax.f32 %v3304_v57, 0.0  ;;  %v2100_v5 = vmul.f32 %v8544_v4, %v1126_v36  ;;  %v8912_v15 = vadd.f32 %v2760_v10, %v2645_v44  ;;  %v750_v25 = vpop.permute.xlu1 %749 }
 0x178   : > { %v1666_v6 = vadd.f32 %v1560_v27, %v1343_v19  ;;  %v1883_v23 = vmul.f32 %v8908_v18, %v1772_v32  ;;  %v2320_v59 = vmul.f32 %v8568_v20, %v1448_v58  ;;  %v1988_v53 = vadd.f32 %v1882_v7, %v1665_v34  ;;  %v745_v48 = vpop.permute.xlu0 %744  ;;  %1036 = vst.msk [vmem:[#allocation2 + $0x248] sm:$0xff] %vm962_vm0, %v750_v25  ;;  %v1455_v25 = vld [vmem:[#allocation2 + $0x171] sm:$0xff] }
 0x179   : > { %v3411_v28 = vmax.f32 %v3305_v43, 0.0  ;;  %3516 = vst.msk [vmem:[#allocation3 + $0xe8] sm:$0xff] %vm962_vm0, %v3410_v52  ;;  %v2206_v35 = vadd.f32 %v2100_v5, %v8844_v60  ;;  %v2321_v40 = vmul.f32 %v8568_v20, %v1449_v22  ;;  %v2541_v4 = vmul.f32 %v8580_v33, %v1771_v14  ;;  %v1450_v20 = vld [vmem:[#allocation2 + $0x149] sm:$0xff]  ;;  %v8950_v52 = vld [vmem:[#allocation5 + $0x4] ss:$0 sm:$0xff]  ;;  %1035 = vst.msk [vmem:[#allocation2 + $0x240] sm:$0xff] %vm962_vm0, %v745_v48 }
 0x17a   : > { %v2426_v63 = vadd.f32 %v2320_v59, %v8865_v54  ;;  %v2759_v41 = vmul.f32 %v8588_v16, %v1126_v36  ;;  %v2979_v37 = vmul.f32 %v8630_v61, %v1448_v58  ;;  %v8924_v56 = vadd.f32 %v1883_v23, %v1666_v6 }
 0x17b   : > { %3517 = vst.msk [vmem:[#allocation3 + $0xf0] sm:$0xff] %vm962_vm0, %v3411_v28  ;;  %v2427_v45 = vadd.f32 %v2321_v40, %v2206_v35  ;;  %v2542_v21 = vmul.f32 %v8580_v33, %v1772_v32  ;;  %v2980_v60 = vmul.f32 %v8630_v61, %v1449_v22  ;;  %v3200_v36 = vmul.f32 %v8640_v39, %v1771_v14  ;;  %v1774_v14 = vld [vmem:[#allocation2 + $0x152] sm:$0xff] }
 0x17c   : > { %v2865_v54 = vadd.f32 %v2759_v41, %v8859_v17  ;;  %v3085_v49 = vadd.f32 %v2979_v37, %v8870_v26  ;;  %v1240_v58 = vmul.f32 %v8885_v50, %v1129_v46  ;;  %v2647_v38 = vadd.f32 %v2541_v4, %v2426_v63  ;;  %v1130_v37 = vld [vmem:[#allocation2 + $0x160] sm:$0xff] }
 0x17d   : > { %v3201_v62 = vmul.f32 %v8640_v39, %v1772_v32  ;;  %v2103_v44 = vmul.f32 %v8935_v47, %v1129_v46  ;;  %v1239_v17 = vmul.f32 %v8885_v50, %v1128_v9  ;;  %v2762_v8 = vmul.f32 %v8588_v16, %v1129_v46 }
 0x17e   : > { %v3086_v26 = vadd.f32 %v2980_v60, %v2865_v54  ;;  %v3306_v1 = vadd.f32 %v3200_v36, %v3085_v49  ;;  %v1561_v22 = vmul.f32 %v8896_v3, %v1450_v20  ;;  %v8941_v24 = vadd.f32 %v2542_v21, %v2427_v45  ;;  %v1452_v45 = vld [vmem:[#allocation2 + $0x159] sm:$0xff]  ;;  %v8976_v36 = vld [vmem:[#allocation5 + $0x6] ss:$0 sm:$0xff] }
 0x17f   : > { %v1346_v10 = vadd.f32 %v8901_v31, %v1240_v58  ;;  %v1345_v51 = vadd.f32 %v8901_v31, %v1239_v17  ;;  %v1562_v30 = vmul.f32 %v8896_v3, %v1451_v13  ;;  %v1884_v19 = vmul.f32 %v8908_v18, %v1773_v42 }
 0x180   : > { %v3307_v11 = vadd.f32 %v3201_v62, %v3086_v26  ;;  %v3412_v57 = vmax.f32 %v3306_v1, 0.0  ;;  %v1667_v32 = vadd.f32 %v1561_v22, %v1344_v55  ;;  %v8947_v27 = vadd.f32 %v2103_v44, %v1988_v53  ;;  %v1131_v55 = vld [vmem:[#allocation2 + $0x168] sm:$0xff] }
 0x181   : > { %v1668_v34 = vadd.f32 %v1562_v30, %v1345_v51  ;;  %v2102_v43 = vmul.f32 %v8935_v47, %v1128_v9  ;;  %v2322_v7 = vmul.f32 %v8950_v52, %v1450_v20  ;;  %v8954_v6 = vadd.f32 %v2762_v8, %v2647_v38 }
 0x182   : > { %v3413_v5 = vmax.f32 %v3307_v11, 0.0  ;;  %3518 = vst.msk [vmem:[#allocation3 + $0xf8] sm:$0xff] %vm962_vm0, %v3412_v57  ;;  %v1885_v23 = vmul.f32 %v8908_v18, %v1774_v14  ;;  %v1990_v59 = vadd.f32 %v1884_v19, %v1667_v32  ;;  %v2323_v53 = vmul.f32 %v8950_v52, %v1451_v13 }
 0x183   : > { %v2208_v28 = vadd.f32 %v2102_v43, %v8878_v29  ;;  %v2428_v35 = vadd.f32 %v2322_v7, %v8904_v12  ;;  %v2543_v40 = vmul.f32 %v8580_v33, %v1773_v42  ;;  %v2544_v63 = vmul.f32 %v8580_v33, %v1774_v14 }
 0x184   : > { %3519 = vst.msk [vmem:[#allocation3 + $0x100] sm:$0xff] %vm962_vm0, %v3413_v5  ;;  %v8962_v46 = vadd.f32 %v1885_v23, %v1668_v34  ;;  %v2761_v4 = vmul.f32 %v8588_v16, %v1128_v9  ;;  %v2981_v41 = vmul.f32 %v8630_v61, %v1450_v20  ;;  %v2982_v29 = vmul.f32 %v8630_v61, %v1451_v13  ;;  %v1453_v9 = vld [vmem:[#allocation2 + $0x161] sm:$0xff]  ;;  %v1133_v23 = vld [vmem:[#allocation2 + $0x178] sm:$0xff] }
 0x185   : > { %v2429_v21 = vadd.f32 %v2323_v53, %v2208_v28  ;;  %v3202_v60 = vmul.f32 %v8640_v39, %v1773_v42  ;;  %v1242_v12 = vmul.f32 %v8885_v50, %v1131_v55  ;;  %v2649_v54 = vadd.f32 %v2543_v40, %v2428_v35  ;;  %v1776_v42 = vld [vmem:[#allocation2 + $0x162] sm:$0xff]  ;;  %v1132_v40 = vld [vmem:[#allocation2 + $0x170] sm:$0xff] }
 0x186   : > { %v2867_v49 = vadd.f32 %v2761_v4, %v8899_v2  ;;  %v3087_v33 = vadd.f32 %v2981_v41, %v8912_v15  ;;  %v2105_v16 = vmul.f32 %v8935_v47, %v1131_v55  ;;  %v3203_v20 = vmul.f32 %v8640_v39, %v1774_v14  ;;  %v1775_v2 = vld [vmem:[#allocation2 + $0x15a] sm:$0xff] }
 0x187   : > { %v2764_v58 = vmul.f32 %v8976_v36, %v1131_v55  ;;  %v1241_v13 = vmul.f32 %v8885_v50, %v1130_v37  ;;  %v1563_v38 = vmul.f32 %v8896_v3, %v1452_v45  ;;  %v8981_v62 = vadd.f32 %v2544_v63, %v2429_v21  ;;  %v8998_v55 = vld [vmem:[#allocation5 + $0x5] ss:$0 sm:$0xff]  ;;  %v1454_v21 = vld [vmem:[#allocation2 + $0x169] sm:$0xff] }
 0x188   : > { %v3088_v15 = vadd.f32 %v2982_v29, %v2867_v49  ;;  %v3308_v44 = vadd.f32 %v3202_v60, %v3087_v33  ;;  %v1348_v17 = vadd.f32 %v8901_v31, %v1242_v12  ;;  %v8984_v26 = vadd.f32 %v2105_v16, %v1990_v59  ;;  %v755_v29 = vpop.permute.xlu0 %754  ;;  %v1777_v33 = vld [vmem:[#allocation2 + $0x16a] sm:$0xff] }
 0x189   : > { %v1347_v1 = vadd.f32 %v8901_v31, %v1241_v13  ;;  %v1564_v8 = vmul.f32 %v8896_v3, %v1453_v9  ;;  %v1669_v22 = vadd.f32 %v1563_v38, %v1346_v10  ;;  %v1886_v14 = vmul.f32 %v8908_v18, %v1775_v2  ;;  %1037 = vst.msk [vmem:[#allocation2 + $0x250] sm:$0xff] %vm962_vm0, %v755_v29 }
 0x18a   : > { %v3309_v51 = vadd.f32 %v3203_v20, %v3088_v15  ;;  %v3414_v30 = vmax.f32 %v3308_v44, 0.0  ;;  %v2104_v11 = vmul.f32 %v8935_v47, %v1130_v37  ;;  %v8990_v57 = vadd.f32 %v2764_v58, %v2649_v54 }
 0x18b   : > { %v1670_v32 = vadd.f32 %v1564_v8, %v1347_v1  ;;  %v1887_v19 = vmul.f32 %v8908_v18, %v1776_v42  ;;  %v2324_v34 = vmul.f32 %v8950_v52, %v1452_v45  ;;  %v1992_v7 = vadd.f32 %v1886_v14, %v1669_v22 }
 0x18c   : > { %v3415_v43 = vmax.f32 %v3309_v51, 0.0  ;;  %3520 = vst.msk [vmem:[#allocation3 + $0x108] sm:$0xff] %vm962_vm0, %v3414_v30  ;;  %v2210_v5 = vadd.f32 %v2104_v11, %v8924_v56  ;;  %v2325_v10 = vmul.f32 %v8950_v52, %v1453_v9  ;;  %v2545_v28 = vmul.f32 %v8998_v55, %v1775_v2  ;;  %v765_v29 = vpop.permute.xlu0 %764 }
 0x18d   : > { %v2430_v59 = vadd.f32 %v2324_v34, %v8947_v27  ;;  %v2763_v53 = vmul.f32 %v8976_v36, %v1130_v37  ;;  %v2983_v35 = vmul.f32 %v8630_v61, %v1452_v45  ;;  %v9004_v63 = vadd.f32 %v1887_v19, %v1670_v32  ;;  %v760_v27 = vpop.permute.xlu1 %759  ;;  %v1135_v19 = vld [vmem:[#allocation2 + $0x188] sm:$0xff]  ;;  %1039 = vst.msk [vmem:[#allocation2 + $0x260] sm:$0xff] %vm962_vm0, %v765_v29 }
 0x18e   : > { %3521 = vst.msk [vmem:[#allocation3 + $0x110] sm:$0xff] %vm962_vm0, %v3415_v43  ;;  %v2431_v4 = vadd.f32 %v2325_v10, %v2210_v5  ;;  %v2546_v56 = vmul.f32 %v8998_v55, %v1776_v42  ;;  %v2984_v41 = vmul.f32 %v8630_v61, %v1453_v9  ;;  %v3204_v37 = vmul.f32 %v8640_v39, %v1775_v2 }
 0x18f   : > { %v2869_v60 = vadd.f32 %v2763_v53, %v8941_v24  ;;  %v3089_v12 = vadd.f32 %v2983_v35, %v8954_v6  ;;  %v1244_v45 = vmul.f32 %v8885_v50, %v1133_v23  ;;  %1038 = vst.msk [vmem:[#allocation2 + $0x258] sm:$0xff] %vm962_vm0, %v760_v27  ;;  %v2651_v48 = vadd.f32 %v2545_v28, %v2430_v59  ;;  %v9042_v59 = vld [vmem:[#allocation5 + $0x7] ss:$0 sm:$0xff]  ;;  %v1134_v53 = vld [vmem:[#allocation2 + $0x180] sm:$0xff] }
 0x190   : > { %v3205_v54 = vmul.f32 %v8640_v39, %v1776_v42  ;;  %v2107_v61 = vmul.f32 %v8935_v47, %v1133_v23  ;;  %v1243_v49 = vmul.f32 %v8885_v50, %v1132_v40  ;;  %v2766_v6 = vmul.f32 %v8976_v36, %v1133_v23  ;;  %v1778_v39 = vld [vmem:[#allocation2 + $0x172] sm:$0xff] }
 0x191   : > { %v3090_v24 = vadd.f32 %v2984_v41, %v2869_v60  ;;  %v3310_v16 = vadd.f32 %v3204_v37, %v3089_v12  ;;  %v1565_v9 = vmul.f32 %v8896_v3, %v1454_v21  ;;  %v9019_v20 = vadd.f32 %v2546_v56, %v2431_v4  ;;  %v770_v27 = vpop.permute.xlu1 %769  ;;  %v1457_v37 = vld [vmem:[#allocation2 + $0x181] sm:$0xff] }
 0x192   : > { %v1350_v58 = vadd.f32 %v8901_v31, %v1244_v45  ;;  %v1349_v13 = vadd.f32 %v8901_v31, %v1243_v49  ;;  %v1566_v38 = vmul.f32 %v8896_v3, %v1455_v25  ;;  %v1888_v42 = vmul.f32 %v8908_v18, %v1777_v33  ;;  %1040 = vst.msk [vmem:[#allocation2 + $0x268] sm:$0xff] %vm962_vm0, %v770_v27  ;;  %v1459_v27 = vld [vmem:[#allocation2 + $0x191] sm:$0xff] }
 0x193   : > { %v3311_v2 = vadd.f32 %v3205_v54, %v3090_v24  ;;  %v3416_v15 = vmax.f32 %v3310_v16, 0.0  ;;  %v1671_v44 = vadd.f32 %v1565_v9, %v1348_v17  ;;  %v9025_v1 = vadd.f32 %v2107_v61, %v1992_v7  ;;  %v1779_v61 = vld [vmem:[#allocation2 + $0x17a] sm:$0xff]  ;;  %v1780_v24 = vld [vmem:[#allocation2 + $0x182] sm:$0xff] }
 0x194   : > { %v1672_v8 = vadd.f32 %v1566_v38, %v1349_v13  ;;  %v2106_v22 = vmul.f32 %v8935_v47, %v1132_v40  ;;  %v2326_v51 = vmul.f32 %v8950_v52, %v1454_v21  ;;  %v9030_v14 = vadd.f32 %v2766_v6, %v2651_v48 }
 0x195   : > { %v3417_v30 = vmax.f32 %v3311_v2, 0.0  ;;  %3522 = vst.msk [vmem:[#allocation3 + $0x118] sm:$0xff] %vm962_vm0, %v3416_v15  ;;  %v1889_v11 = vmul.f32 %v8908_v18, %v1778_v39  ;;  %v1994_v32 = vadd.f32 %v1888_v42, %v1671_v44  ;;  %v2327_v34 = vmul.f32 %v8950_v52, %v1455_v25 }
 0x196   : > { %v2212_v17 = vadd.f32 %v2106_v22, %v8962_v46  ;;  %v2432_v43 = vadd.f32 %v2326_v51, %v8984_v26  ;;  %v2547_v7 = vmul.f32 %v8998_v55, %v1777_v33  ;;  %v2548_v10 = vmul.f32 %v8998_v55, %v1778_v39  ;;  %v1456_v46 = vld [vmem:[#allocation2 + $0x179] sm:$0xff]  ;;  %v9046_v26 = vld [vmem:[#allocation5 + $0x8] ss:$0 sm:$0xff] }
 0x197   : > { %3523 = vst.msk [vmem:[#allocation3 + $0x120] sm:$0xff] %vm962_vm0, %v3417_v30  ;;  %v9038_v5 = vadd.f32 %v1889_v11, %v1672_v8  ;;  %v2765_v23 = vmul.f32 %v8976_v36, %v1132_v40  ;;  %v2985_v28 = vmul.f32 %v9042_v59, %v1454_v21  ;;  %v2986_v4 = vmul.f32 %v9042_v59, %v1455_v25 }
 0x198   : > { %v2433_v35 = vadd.f32 %v2327_v34, %v2212_v17  ;;  %v3206_v56 = vmul.f32 %v9046_v26, %v1777_v33  ;;  %v1246_v41 = vmul.f32 %v8885_v50, %v1135_v19  ;;  %v2653_v60 = vadd.f32 %v2547_v7, %v2432_v43  ;;  %v1136_v7 = vld [vmem:[#allocation2 + $0x190] sm:$0xff] }
 0x199   : > { %v2871_v40 = vadd.f32 %v2765_v23, %v8981_v62  ;;  %v3091_v12 = vadd.f32 %v2985_v28, %v8990_v57  ;;  %v2109_v21 = vmul.f32 %v8935_v47, %v1135_v19  ;;  %v3207_v45 = vmul.f32 %v9046_v26, %v1778_v39 }
 0x19a   : > { %v2768_v25 = vmul.f32 %v8976_v36, %v1135_v19  ;;  %v1245_v48 = vmul.f32 %v8885_v50, %v1134_v53  ;;  %v1567_v54 = vmul.f32 %v8896_v3, %v1456_v46  ;;  %v9059_v49 = vadd.f32 %v2548_v10, %v2433_v35  ;;  %v1458_v35 = vld [vmem:[#allocation2 + $0x189] sm:$0xff] }
 0x19b   : > { %v3092_v62 = vadd.f32 %v2986_v4, %v2871_v40  ;;  %v3312_v57 = vadd.f32 %v3206_v56, %v3091_v12  ;;  %v1352_v33 = vadd.f32 %v8901_v31, %v1246_v41  ;;  %v9062_v16 = vadd.f32 %v2109_v21, %v1994_v32  ;;  %v1137_v32 = vld [vmem:[#allocation2 + $0x198] sm:$0xff]  ;;  %v780_v4 = vpop.permute.xlu1 %779  ;;  %v775_v56 = vpop.permute.xlu0 %774  ;;  %v1781_v21 = vld [vmem:[#allocation2 + $0x18a] sm:$0xff] }
 0x19c   : > { %v1351_v6 = vadd.f32 %v8901_v31, %v1245_v48  ;;  %v1568_v9 = vmul.f32 %v8896_v3, %v1457_v37  ;;  %v1673_v13 = vadd.f32 %v1567_v54, %v1350_v58  ;;  %v1890_v2 = vmul.f32 %v8908_v18, %v1779_v61  ;;  %1042 = vst.msk [vmem:[#allocation2 + $0x278] sm:$0xff] %vm962_vm0, %v780_v4 }
 0x19d   : > { %v3313_v38 = vadd.f32 %v3207_v45, %v3092_v62  ;;  %v3418_v39 = vmax.f32 %v3312_v57, 0.0  ;;  %v2108_v15 = vmul.f32 %v8935_v47, %v1134_v53  ;;  %v9068_v44 = vadd.f32 %v2768_v25, %v2653_v60  ;;  %1041 = vst.msk [vmem:[#allocation2 + $0x270] sm:$0xff] %vm962_vm0, %v775_v56  ;;  %v1782_v62 = vld [vmem:[#allocation2 + $0x192] sm:$0xff] }
 0x19e   : > { %v1674_v42 = vadd.f32 %v1568_v9, %v1351_v6  ;;  %v1891_v8 = vmul.f32 %v8908_v18, %v1780_v24  ;;  %v2328_v22 = vmul.f32 %v8950_v52, %v1456_v46  ;;  %v1996_v30 = vadd.f32 %v1890_v2, %v1673_v13 }
 0x19f   : > { %v3419_v51 = vmax.f32 %v3313_v38, 0.0  ;;  %3524 = vst.msk [vmem:[#allocation3 + $0x128] sm:$0xff] %vm962_vm0, %v3418_v39  ;;  %v2214_v11 = vadd.f32 %v2108_v15, %v9004_v63  ;;  %v2329_v58 = vmul.f32 %v8950_v52, %v1457_v37  ;;  %v2549_v17 = vmul.f32 %v8998_v55, %v1779_v61  ;;  %v790_v4 = vpop.permute.xlu1 %789  ;;  %v785_v56 = vpop.permute.xlu0 %784 }
 0x1a0   : > { %v2434_v19 = vadd.f32 %v2328_v22, %v9025_v1  ;;  %v2767_v34 = vmul.f32 %v8976_v36, %v1134_v53  ;;  %v2987_v43 = vmul.f32 %v9042_v59, %v1456_v46  ;;  %v9080_v10 = vadd.f32 %v1891_v8, %v1674_v42  ;;  %1044 = vst.msk [vmem:[#allocation2 + $0x288] sm:$0xff] %vm962_vm0, %v790_v4  ;;  %v1463_v4 = vld [vmem:[#allocation2 + $0x1b1] sm:$0xff] }
 0x1a1   : > { %3525 = vst.msk [vmem:[#allocation3 + $0x130] sm:$0xff] %vm962_vm0, %v3419_v51  ;;  %v2435_v23 = vadd.f32 %v2329_v58, %v2214_v11  ;;  %v2550_v28 = vmul.f32 %v8998_v55, %v1780_v24  ;;  %v2988_v63 = vmul.f32 %v9042_v59, %v1457_v37  ;;  %v3208_v53 = vmul.f32 %v9046_v26, %v1779_v61  ;;  %v1139_v51 = vld [vmem:[#allocation2 + $0x1a8] sm:$0xff] }
 0x1a2   : > { %v2873_v1 = vadd.f32 %v2767_v34, %v9019_v20  ;;  %v3093_v41 = vadd.f32 %v2987_v43, %v9030_v14  ;;  %v1248_v46 = vmul.f32 %v8885_v50, %v1137_v32  ;;  %v2655_v29 = vadd.f32 %v2549_v17, %v2434_v19  ;;  %v1138_v43 = vld [vmem:[#allocation2 + $0x1a0] sm:$0xff]  ;;  %1043 = vst.msk [vmem:[#allocation2 + $0x280] sm:$0xff] %vm962_vm0, %v785_v56 }
 0x1a3   : > { %v3209_v60 = vmul.f32 %v9046_v26, %v1780_v24  ;;  %v2111_v40 = vmul.f32 %v8935_v47, %v1137_v32  ;;  %v1247_v12 = vmul.f32 %v8885_v50, %v1136_v7  ;;  %v2770_v14 = vmul.f32 %v8976_v36, %v1137_v32 }
 0x1a4   : > { %v3094_v20 = vadd.f32 %v2988_v63, %v2873_v1  ;;  %v3314_v37 = vadd.f32 %v3208_v53, %v3093_v41  ;;  %v1569_v45 = vmul.f32 %v8896_v3, %v1458_v35  ;;  %v9095_v25 = vadd.f32 %v2550_v28, %v2435_v23  ;;  %v1460_v23 = vld [vmem:[#allocation2 + $0x199] sm:$0xff] }
 0x1a5   : > { %v1354_v48 = vadd.f32 %v8901_v31, %v1248_v46  ;;  %v1353_v54 = vadd.f32 %v8901_v31, %v1247_v12  ;;  %v1570_v61 = vmul.f32 %v8896_v3, %v1459_v27  ;;  %v1892_v9 = vmul.f32 %v8908_v18, %v1781_v21  ;;  %v1461_v46 = vld [vmem:[#allocation2 + $0x1a1] sm:$0xff] }
 0x1a6   : > { %v3315_v57 = vadd.f32 %v3209_v60, %v3094_v20  ;;  %v3420_v24 = vmax.f32 %v3314_v37, 0.0  ;;  %v1675_v6 = vadd.f32 %v1569_v45, %v1352_v33  ;;  %v2217_v13 = vadd.f32 %v2111_v40, %v1996_v30  ;;  %v1783_v40 = vld [vmem:[#allocation2 + $0x19a] sm:$0xff]  ;;  %v1784_v20 = vld [vmem:[#allocation2 + $0x1a2] sm:$0xff] }
 0x1a7   : > { %v1676_v38 = vadd.f32 %v1570_v61, %v1353_v54  ;;  %v2110_v39 = vmul.f32 %v8935_v47, %v1136_v7  ;;  %v2330_v2 = vmul.f32 %v8950_v52, %v1458_v35  ;;  %v9104_v42 = vadd.f32 %v2770_v14, %v2655_v29 }
 0x1a8   : > { %v3421_v15 = vmax.f32 %v3315_v57, 0.0  ;;  %3526 = vst.msk [vmem:[#allocation3 + $0x138] sm:$0xff] %vm962_vm0, %v3420_v24  ;;  %v1893_v8 = vmul.f32 %v8908_v18, %v1782_v62  ;;  %v1998_v22 = vadd.f32 %v1892_v9, %v1675_v6  ;;  %v2331_v33 = vmul.f32 %v8950_v52, %v1459_v27 }
 0x1a9   : > { %v2216_v11 = vadd.f32 %v2110_v39, %v9038_v5  ;;  %v2436_v30 = vadd.f32 %v2330_v2, %v9062_v16  ;;  %v2551_v58 = vmul.f32 %v8998_v55, %v1781_v21  ;;  %v2552_v19 = vmul.f32 %v8998_v55, %v1782_v62 }
 0x1aa   : > { %3527 = vst.msk [vmem:[#allocation3 + $0x140] sm:$0xff] %vm962_vm0, %v3421_v15  ;;  %v9112_v32 = vadd.f32 %v1893_v8, %v1676_v38  ;;  %v2769_v17 = vmul.f32 %v8976_v36, %v1136_v7  ;;  %v2989_v34 = vmul.f32 %v9042_v59, %v1458_v35  ;;  %v2990_v5 = vmul.f32 %v9042_v59, %v1459_v27 }
 0x1ab   : > { %v2437_v28 = vadd.f32 %v2331_v33, %v2216_v11  ;;  %v3210_v63 = vmul.f32 %v9046_v26, %v1781_v21  ;;  %v1250_v16 = vmul.f32 %v8885_v50, %v1139_v51  ;;  %v2657_v1 = vadd.f32 %v2551_v58, %v2436_v30  ;;  %v1140_v58 = vld [vmem:[#allocation2 + $0x1b0] sm:$0xff] }
 0x1ac   : > { %v2875_v41 = vadd.f32 %v2769_v17, %v9059_v49  ;;  %v3095_v53 = vadd.f32 %v2989_v34, %v9068_v44  ;;  %v2113_v7 = vmul.f32 %v8935_v47, %v1139_v51  ;;  %v3211_v35 = vmul.f32 %v9046_v26, %v1782_v62 }
 0x1ad   : > { %v2772_v27 = vmul.f32 %v8976_v36, %v1139_v51  ;;  %v1249_v29 = vmul.f32 %v8885_v50, %v1138_v43  ;;  %v1571_v60 = vmul.f32 %v8896_v3, %v1460_v23  ;;  %v9129_v12 = vadd.f32 %v2552_v19, %v2437_v28  ;;  %v1462_v28 = vld [vmem:[#allocation2 + $0x1a9] sm:$0xff] }
 0x1ae   : > { %v3096_v49 = vadd.f32 %v2990_v5, %v2875_v41  ;;  %v3316_v44 = vadd.f32 %v3210_v63, %v3095_v53  ;;  %v1356_v21 = vadd.f32 %v8901_v31, %v1250_v16  ;;  %v9132_v37 = vadd.f32 %v2113_v7, %v1998_v22  ;;  %v1141_v22 = vld [vmem:[#allocation2 + $0x1b8] sm:$0xff]  ;;  %v800_v5 = vpop.permute.xlu1 %799  ;;  %v795_v63 = vpop.permute.xlu0 %794  ;;  %v1785_v7 = vld [vmem:[#allocation2 + $0x1aa] sm:$0xff] }
 0x1af   : > { %v1355_v14 = vadd.f32 %v8901_v31, %v1249_v29  ;;  %v1572_v45 = vmul.f32 %v8896_v3, %v1461_v46  ;;  %v1677_v54 = vadd.f32 %v1571_v60, %v1354_v48  ;;  %v1894_v57 = vmul.f32 %v8908_v18, %v1783_v40  ;;  %1046 = vst.msk [vmem:[#allocation2 + $0x298] sm:$0xff] %vm962_vm0, %v800_v5 }
 0x1b0   : > { %v3317_v61 = vadd.f32 %v3211_v35, %v3096_v49  ;;  %v3422_v62 = vmax.f32 %v3316_v44, 0.0  ;;  %v2112_v24 = vmul.f32 %v8935_v47, %v1138_v43  ;;  %v9138_v6 = vadd.f32 %v2772_v27, %v2657_v1  ;;  %1045 = vst.msk [vmem:[#allocation2 + $0x290] sm:$0xff] %vm962_vm0, %v795_v63  ;;  %v1786_v49 = vld [vmem:[#allocation2 + $0x1b2] sm:$0xff] }
 0x1b1   : > { %v1678_v9 = vadd.f32 %v1572_v45, %v1355_v14  ;;  %v1895_v38 = vmul.f32 %v8908_v18, %v1784_v20  ;;  %v2332_v39 = vmul.f32 %v8950_v52, %v1460_v23  ;;  %v2000_v15 = vadd.f32 %v1894_v57, %v1677_v54 }
 0x1b2   : > { %v3423_v2 = vmax.f32 %v3317_v61, 0.0  ;;  %3528 = vst.msk [vmem:[#allocation3 + $0x148] sm:$0xff] %vm962_vm0, %v3422_v62  ;;  %v2218_v8 = vadd.f32 %v2112_v24, %v9080_v10  ;;  %v2333_v48 = vmul.f32 %v8950_v52, %v1461_v46  ;;  %v2553_v11 = vmul.f32 %v8998_v55, %v1783_v40  ;;  %v810_v5 = vpop.permute.xlu1 %809  ;;  %v805_v63 = vpop.permute.xlu0 %804 }
 0x1b3   : > { %v2438_v51 = vadd.f32 %v2332_v39, %v2217_v13  ;;  %v2771_v33 = vmul.f32 %v8976_v36, %v1138_v43  ;;  %v2991_v30 = vmul.f32 %v9042_v59, %v1460_v23  ;;  %v9149_v19 = vadd.f32 %v1895_v38, %v1678_v9  ;;  %1048 = vst.msk [vmem:[#allocation2 + $0x2a8] sm:$0xff] %vm962_vm0, %v810_v5  ;;  %v1467_v5 = vld [vmem:[#allocation2 + $0x1d1] sm:$0xff] }
 0x1b4   : > { %3529 = vst.msk [vmem:[#allocation3 + $0x150] sm:$0xff] %vm962_vm0, %v3423_v2  ;;  %v2439_v17 = vadd.f32 %v2333_v48, %v2218_v8  ;;  %v2554_v34 = vmul.f32 %v8998_v55, %v1784_v20  ;;  %v2992_v10 = vmul.f32 %v9042_v59, %v1461_v46  ;;  %v3212_v43 = vmul.f32 %v9046_v26, %v1783_v40  ;;  %v1143_v2 = vld [vmem:[#allocation2 + $0x1c8] sm:$0xff] }
 0x1b5   : > { %v2877_v13 = vadd.f32 %v2771_v33, %v9095_v25  ;;  %v3097_v16 = vadd.f32 %v2991_v30, %v9104_v42  ;;  %v1252_v23 = vmul.f32 %v8885_v50, %v1141_v22  ;;  %v2659_v56 = vadd.f32 %v2553_v11, %v2438_v51  ;;  %v1142_v30 = vld [vmem:[#allocation2 + $0x1c0] sm:$0xff]  ;;  %1047 = vst.msk [vmem:[#allocation2 + $0x2a0] sm:$0xff] %vm962_vm0, %v805_v63 }
 0x1b6   : > { %v3213_v1 = vmul.f32 %v9046_v26, %v1784_v20  ;;  %v2115_v41 = vmul.f32 %v8935_v47, %v1141_v22  ;;  %v1251_v53 = vmul.f32 %v8885_v50, %v1140_v58  ;;  %v2774_v42 = vmul.f32 %v8976_v36, %v1141_v22 }
 0x1b7   : > { %v3098_v25 = vadd.f32 %v2992_v10, %v2877_v13  ;;  %v3318_v46 = vadd.f32 %v3212_v43, %v3097_v16  ;;  %v1573_v35 = vmul.f32 %v8896_v3, %v1462_v28  ;;  %v9164_v27 = vadd.f32 %v2554_v34, %v2439_v17  ;;  %v1464_v17 = vld [vmem:[#allocation2 + $0x1b9] sm:$0xff] }
 0x1b8   : > { %v1358_v29 = vadd.f32 %v8901_v31, %v1252_v23  ;;  %v1357_v60 = vadd.f32 %v8901_v31, %v1251_v53  ;;  %v1574_v40 = vmul.f32 %v8896_v3, %v1463_v4  ;;  %v1896_v45 = vmul.f32 %v8908_v18, %v1785_v7  ;;  %v1465_v23 = vld [vmem:[#allocation2 + $0x1c1] sm:$0xff] }
 0x1b9   : > { %v3319_v44 = vadd.f32 %v3213_v1, %v3098_v25  ;;  %v3424_v20 = vmax.f32 %v3318_v46, 0.0  ;;  %v1679_v14 = vadd.f32 %v1573_v35, %v1356_v21  ;;  %v2221_v54 = vadd.f32 %v2115_v41, %v2000_v15  ;;  %v1787_v41 = vld [vmem:[#allocation2 + $0x1ba] sm:$0xff]  ;;  %v1788_v25 = vld [vmem:[#allocation2 + $0x1c2] sm:$0xff] }
 0x1ba   : > { %v1680_v61 = vadd.f32 %v1574_v40, %v1357_v60  ;;  %v2114_v62 = vmul.f32 %v8935_v47, %v1140_v58  ;;  %v2334_v57 = vmul.f32 %v8950_v52, %v1462_v28  ;;  %v9173_v9 = vadd.f32 %v2774_v42, %v2659_v56 }
 0x1bb   : > { %v3425_v24 = vmax.f32 %v3319_v44, 0.0  ;;  %3530 = vst.msk [vmem:[#allocation3 + $0x158] sm:$0xff] %vm962_vm0, %v3424_v20  ;;  %v1897_v38 = vmul.f32 %v8908_v18, %v1786_v49  ;;  %v2002_v39 = vadd.f32 %v1896_v45, %v1679_v14  ;;  %v2335_v21 = vmul.f32 %v8950_v52, %v1463_v4 }
 0x1bc   : > { %v2220_v8 = vadd.f32 %v2114_v62, %v9112_v32  ;;  %v2440_v15 = vadd.f32 %v2334_v57, %v9132_v37  ;;  %v2555_v48 = vmul.f32 %v8998_v55, %v1785_v7  ;;  %v2556_v51 = vmul.f32 %v8998_v55, %v1786_v49 }
 0x1bd   : > { %3531 = vst.msk [vmem:[#allocation3 + $0x160] sm:$0xff] %vm962_vm0, %v3425_v24  ;;  %v9181_v22 = vadd.f32 %v1897_v38, %v1680_v61  ;;  %v2773_v11 = vmul.f32 %v8976_v36, %v1140_v58  ;;  %v2993_v33 = vmul.f32 %v9042_v59, %v1462_v28  ;;  %v2994_v32 = vmul.f32 %v9042_v59, %v1463_v4 }
 0x1be   : > { %v2441_v34 = vadd.f32 %v2335_v21, %v2220_v8  ;;  %v3214_v10 = vmul.f32 %v9046_v26, %v1785_v7  ;;  %v1254_v37 = vmul.f32 %v8885_v50, %v1143_v2  ;;  %v2661_v13 = vadd.f32 %v2555_v48, %v2440_v15  ;;  %v1144_v48 = vld [vmem:[#allocation2 + $0x1d0] sm:$0xff] }
 0x1bf   : > { %v2879_v16 = vadd.f32 %v2773_v11, %v9129_v12  ;;  %v3099_v43 = vadd.f32 %v2993_v33, %v9138_v6  ;;  %v2117_v58 = vmul.f32 %v8935_v47, %v1143_v2  ;;  %v3215_v28 = vmul.f32 %v9046_v26, %v1786_v49 }
 0x1c0   : > { %v2776_v4 = vmul.f32 %v8976_v36, %v1143_v2  ;;  %v1253_v56 = vmul.f32 %v8885_v50, %v1142_v30  ;;  %v1575_v1 = vmul.f32 %v8896_v3, %v1464_v17  ;;  %v9198_v53 = vadd.f32 %v2556_v51, %v2441_v34  ;;  %v1466_v34 = vld [vmem:[#allocation2 + $0x1c9] sm:$0xff] }
 0x1c1   : > { %v3100_v12 = vadd.f32 %v2994_v32, %v2879_v16  ;;  %v3320_v6 = vadd.f32 %v3214_v10, %v3099_v43  ;;  %v1360_v7 = vadd.f32 %v8901_v31, %v1254_v37  ;;  %v9201_v46 = vadd.f32 %v2117_v58, %v2002_v39  ;;  %v1145_v39 = vld [vmem:[#allocation2 + $0x1d8] sm:$0xff]  ;;  %v820_v32 = vpop.permute.xlu1 %819  ;;  %v815_v10 = vpop.permute.xlu0 %814  ;;  %v1789_v58 = vld [vmem:[#allocation2 + $0x1ca] sm:$0xff] }
 0x1c2   : > { %v1359_v42 = vadd.f32 %v8901_v31, %v1253_v56  ;;  %v1576_v35 = vmul.f32 %v8896_v3, %v1465_v23  ;;  %v1681_v60 = vadd.f32 %v1575_v1, %v1358_v29  ;;  %v1898_v44 = vmul.f32 %v8908_v18, %v1787_v41  ;;  %1050 = vst.msk [vmem:[#allocation2 + $0x2b8] sm:$0xff] %vm962_vm0, %v820_v32 }
 0x1c3   : > { %v3321_v40 = vadd.f32 %v3215_v28, %v3100_v12  ;;  %v3426_v49 = vmax.f32 %v3320_v6, 0.0  ;;  %v2116_v20 = vmul.f32 %v8935_v47, %v1142_v30  ;;  %v9207_v14 = vadd.f32 %v2776_v4, %v2661_v13  ;;  %1049 = vst.msk [vmem:[#allocation2 + $0x2b0] sm:$0xff] %vm962_vm0, %v815_v10  ;;  %v1790_v12 = vld [vmem:[#allocation2 + $0x1d2] sm:$0xff] }
 0x1c4   : > { %v1682_v45 = vadd.f32 %v1576_v35, %v1359_v42  ;;  %v1899_v61 = vmul.f32 %v8908_v18, %v1788_v25  ;;  %v2336_v62 = vmul.f32 %v8950_v52, %v1464_v17  ;;  %v2004_v24 = vadd.f32 %v1898_v44, %v1681_v60 }
 0x1c5   : > { %v3427_v57 = vmax.f32 %v3321_v40, 0.0  ;;  %3532 = vst.msk [vmem:[#allocation3 + $0x168] sm:$0xff] %vm962_vm0, %v3426_v49  ;;  %v2222_v38 = vadd.f32 %v2116_v20, %v9149_v19  ;;  %v2337_v29 = vmul.f32 %v8950_v52, %v1465_v23  ;;  %v2557_v8 = vmul.f32 %v8998_v55, %v1787_v41  ;;  %v830_v32 = vpop.permute.xlu1 %829  ;;  %v825_v10 = vpop.permute.xlu0 %824 }
 0x1c6   : > { %v2442_v2 = vadd.f32 %v2336_v62, %v2221_v54  ;;  %v2775_v21 = vmul.f32 %v8976_v36, %v1142_v30  ;;  %v2995_v15 = vmul.f32 %v9042_v59, %v1464_v17  ;;  %v9218_v51 = vadd.f32 %v1899_v61, %v1682_v45  ;;  %1052 = vst.msk [vmem:[#allocation2 + $0x2c8] sm:$0xff] %vm962_vm0, %v830_v32 }
 0x1c7   : > { %3533 = vst.msk [vmem:[#allocation3 + $0x170] sm:$0xff] %vm962_vm0, %v3427_v57  ;;  %v2443_v11 = vadd.f32 %v2337_v29, %v2222_v38  ;;  %v2558_v33 = vmul.f32 %v8998_v55, %v1788_v25  ;;  %v2996_v19 = vmul.f32 %v9042_v59, %v1465_v23  ;;  %v3216_v30 = vmul.f32 %v9046_v26, %v1787_v41  ;;  %v1147_v57 = vld [vmem:[#allocation2 + $0x1e8] sm:$0xff] }
 0x1c8   : > { %v2881_v54 = vadd.f32 %v2775_v21, %v9164_v27  ;;  %v3101_v37 = vadd.f32 %v2995_v15, %v9173_v9  ;;  %v1256_v17 = vmul.f32 %v8885_v50, %v1145_v39  ;;  %v2663_v63 = vadd.f32 %v2557_v8, %v2442_v2  ;;  %v1146_v15 = vld [vmem:[#allocation2 + $0x1e0] sm:$0xff]  ;;  %1051 = vst.msk [vmem:[#allocation2 + $0x2c0] sm:$0xff] %vm962_vm0, %v825_v10 }
 0x1c9   : > { %v3217_v13 = vmul.f32 %v9046_v26, %v1788_v25  ;;  %v2119_v16 = vmul.f32 %v8935_v47, %v1145_v39  ;;  %v1255_v43 = vmul.f32 %v8885_v50, %v1144_v48  ;;  %v2778_v9 = vmul.f32 %v8976_v36, %v1145_v39 }
 0x1ca   : > { %v3102_v27 = vadd.f32 %v2996_v19, %v2881_v54  ;;  %v3322_v23 = vadd.f32 %v3216_v30, %v3101_v37  ;;  %v1577_v28 = vmul.f32 %v8896_v3, %v1466_v34  ;;  %v9233_v4 = vadd.f32 %v2558_v33, %v2443_v11  ;;  %v1468_v11 = vld [vmem:[#allocation2 + $0x1d9] sm:$0xff] }
 0x1cb   : > { %v1362_v56 = vadd.f32 %v8901_v31, %v1256_v17  ;;  %v1361_v1 = vadd.f32 %v8901_v31, %v1255_v43  ;;  %v1578_v41 = vmul.f32 %v8896_v3, %v1467_v5  ;;  %v1900_v35 = vmul.f32 %v8908_v18, %v1789_v58  ;;  %v1469_v17 = vld [vmem:[#allocation2 + $0x1e1] sm:$0xff] }
 0x1cc   : > { %v3323_v6 = vadd.f32 %v3217_v13, %v3102_v27  ;;  %v3428_v25 = vmax.f32 %v3322_v23, 0.0  ;;  %v1683_v42 = vadd.f32 %v1577_v28, %v1360_v7  ;;  %v9239_v60 = vadd.f32 %v2119_v16, %v2004_v24  ;;  %v1792_v27 = vld [vmem:[#allocation2 + $0x1e2] sm:$0xff] }
 0x1cd   : > { %v1684_v40 = vadd.f32 %v1578_v41, %v1361_v1  ;;  %v2118_v49 = vmul.f32 %v8935_v47, %v1144_v48  ;;  %v2338_v44 = vmul.f32 %v8950_v52, %v1466_v34  ;;  %v9244_v45 = vadd.f32 %v2778_v9, %v2663_v63  ;;  %v9267_v63 = vld [vmem:[#allocation5] ss:$0 sm:$0xff] }
 0x1ce   : > { %v3429_v20 = vmax.f32 %v3323_v6, 0.0  ;;  %3534 = vst.msk [vmem:[#allocation3 + $0x178] sm:$0xff] %vm962_vm0, %v3428_v25  ;;  %v1901_v61 = vmul.f32 %v8908_v18, %v1790_v12  ;;  %v2006_v62 = vadd.f32 %v1900_v35, %v1683_v42  ;;  %v2339_v38 = vmul.f32 %v8950_v52, %v1467_v5 }
 0x1cf   : > { %v2224_v7 = vadd.f32 %v2118_v49, %v9181_v22  ;;  %v2444_v24 = vadd.f32 %v2338_v44, %v9201_v46  ;;  %v2559_v29 = vmul.f32 %v8998_v55, %v1789_v58  ;;  %v2560_v2 = vmul.f32 %v8998_v55, %v1790_v12 }
 0x1d0   : > { %3535 = vst.msk [vmem:[#allocation3 + $0x180] sm:$0xff] %vm962_vm0, %v3429_v20  ;;  %v9252_v39 = vadd.f32 %v1901_v61, %v1684_v40  ;;  %v2777_v8 = vmul.f32 %v8976_v36, %v1144_v48  ;;  %v2997_v21 = vmul.f32 %v9042_v59, %v1466_v34  ;;  %v2998_v22 = vmul.f32 %v9042_v59, %v1467_v5  ;;  %v1149_v20 = vld [vmem:[#allocation2 + $0x1f8] sm:$0xff] }
 0x1d1   : > { %v2445_v33 = vadd.f32 %v2339_v38, %v2224_v7  ;;  %v3218_v19 = vmul.f32 %v9046_v26, %v1789_v58  ;;  %v1258_v46 = vmul.f32 %v8885_v50, %v1147_v57  ;;  %v2665_v54 = vadd.f32 %v2559_v29, %v2444_v24 }
 0x1d2   : > { %v2883_v37 = vadd.f32 %v2777_v8, %v9198_v53  ;;  %v3103_v30 = vadd.f32 %v2997_v21, %v9207_v14  ;;  %v2121_v48 = vmul.f32 %v8935_v47, %v1147_v57  ;;  %v3219_v34 = vmul.f32 %v9046_v26, %v1790_v12  ;;  %v1791_v53 = vld [vmem:[#allocation2 + $0x1da] sm:$0xff]  ;;  %v840_v8 = vpop.permute.xlu1 %839  ;;  %v835_v21 = vpop.permute.xlu0 %834 }
 0x1d3   : > { %v2780_v5 = vmul.f32 %v8976_v36, %v1147_v57  ;;  %v1257_v50 = vmul.f32 %v9267_v63, %v1146_v15  ;;  %v1579_v13 = vmul.f32 %v8896_v3, %v1468_v11  ;;  %v9271_v16 = vadd.f32 %v2560_v2, %v2445_v33  ;;  %v1470_v2 = vld [vmem:[#allocation2 + $0x1e9] sm:$0xff]  ;;  %1054 = vst.msk [vmem:[#allocation2 + $0x2d8] sm:$0xff] %vm962_vm0, %v840_v8 }
 0x1d4   : > { %v3104_v14 = vadd.f32 %v2998_v22, %v2883_v37  ;;  %v3324_v43 = vadd.f32 %v3218_v19, %v3103_v30  ;;  %v1364_v58 = vadd.f32 %v8901_v31, %v1258_v46  ;;  %v9274_v23 = vadd.f32 %v2121_v48, %v2006_v62  ;;  %v1471_v22 = vld [vmem:[#allocation2 + $0x1f1] sm:$0xff]  ;;  %1053 = vst.msk [vmem:[#allocation2 + $0x2d0] sm:$0xff] %vm962_vm0, %v835_v21 }
 0x1d5   : > { %v1363_v9 = vadd.f32 %v8901_v31, %v1257_v50  ;;  %v1580_v28 = vmul.f32 %v8896_v3, %v1469_v17  ;;  %v1685_v1 = vadd.f32 %v1579_v13, %v1362_v56  ;;  %v1902_v6 = vmul.f32 %v8908_v18, %v1791_v53  ;;  %v9306_v30 = vld [vmem:[#allocation5 + $0x1] ss:$0 sm:$0xff]  ;;  %v1794_v13 = vld [vmem:[#allocation2 + $0x1f2] sm:$0xff] }
 0x1d6   : > { %v3325_v41 = vadd.f32 %v3219_v34, %v3104_v14  ;;  %v3430_v12 = vmax.f32 %v3324_v43, 0.0  ;;  %v2120_v25 = vmul.f32 %v8935_v47, %v1146_v15  ;;  %v9280_v42 = vadd.f32 %v2780_v5, %v2665_v54  ;;  %v1793_v54 = vld [vmem:[#allocation2 + $0x1ea] sm:$0xff]  ;;  %v9311_v34 = vld [vmem:[#allocation7] ss:$0 sm:$0xff]  ;;  %v845_v8 = vpop.permute.xlu0 %844 }
 0x1d7   : > { %v1686_v35 = vadd.f32 %v1580_v28, %v1363_v9  ;;  %v1903_v40 = vmul.f32 %v8908_v18, %v1792_v27  ;;  %v2340_v49 = vmul.f32 %v8950_v52, %v1468_v11  ;;  %v2008_v31 = vadd.f32 %v1902_v6, %v1685_v1  ;;  %v1148_v18 = vld [vmem:[#allocation2 + $0x1f0] sm:$0xff]  ;;  %1055 = vst.msk [vmem:[#allocation2 + $0x2e0] sm:$0xff] %vm962_vm0, %v845_v8 }
 0x1d8   : > { %v3431_v44 = vmax.f32 %v3325_v41, 0.0  ;;  %3536 = vst.msk [vmem:[#allocation3 + $0x188] sm:$0xff] %vm962_vm0, %v3430_v12  ;;  %v2226_v3 = vadd.f32 %v2120_v25, %v9218_v51  ;;  %v2341_v56 = vmul.f32 %v8950_v52, %v1469_v17  ;;  %v2561_v62 = vmul.f32 %v8998_v55, %v1791_v53  ;;  %v9321_v41 = vld [vmem:[#allocation5 + $0x3] ss:$0 sm:$0xff] }
 0x1d9   : > { %v2446_v61 = vadd.f32 %v2340_v49, %v9239_v60  ;;  %v2779_v57 = vmul.f32 %v8976_v36, %v1146_v15  ;;  %v2999_v7 = vmul.f32 %v9042_v59, %v1468_v11  ;;  %v9292_v38 = vadd.f32 %v1903_v40, %v1686_v35  ;;  %v1151_v49 = vld [vmem:[#allocation2 + $0x208] sm:$0xff] }
 0x1da   : > { %3537 = vst.msk [vmem:[#allocation3 + $0x190] sm:$0xff] %vm962_vm0, %v3431_v44  ;;  %v2447_v24 = vadd.f32 %v2341_v56, %v2226_v3  ;;  %v2562_v29 = vmul.f32 %v8998_v55, %v1792_v27  ;;  %v3000_v51 = vmul.f32 %v9042_v59, %v1469_v17  ;;  %v3220_v15 = vmul.f32 %v9046_v26, %v1791_v53 }
 0x1db   : > { %v2885_v60 = vadd.f32 %v2779_v57, %v9233_v4  ;;  %v3105_v33 = vadd.f32 %v2999_v7, %v9244_v45  ;;  %v1260_v11 = vmul.f32 %v9267_v63, %v1149_v20  ;;  %v2667_v19 = vadd.f32 %v2561_v62, %v2446_v61  ;;  %v1150_v7 = vld [vmem:[#allocation2 + $0x200] sm:$0xff] }
 0x1dc   : > { %v3221_v46 = vmul.f32 %v9046_v26, %v1792_v27  ;;  %v2123_v32 = vmul.f32 %v8935_v47, %v1149_v20  ;;  %v1259_v10 = vmul.f32 %v9267_v63, %v1148_v18  ;;  %v2782_v45 = vmul.f32 %v8976_v36, %v1149_v20  ;;  %v9316_v27 = vld [vmem:[#allocation5 + $0x2] ss:$0 sm:$0xff] }
 0x1dd   : > { %v3106_v4 = vadd.f32 %v3000_v51, %v2885_v60  ;;  %v3326_v37 = vadd.f32 %v3220_v15, %v3105_v33  ;;  %v1581_v48 = vmul.f32 %v9306_v30, %v1470_v2  ;;  %v9309_v17 = vadd.f32 %v2562_v29, %v2447_v24  ;;  %v1472_v24 = vld [vmem:[#allocation2 + $0x1f9] sm:$0xff]  ;;  %v850_v51 = vpop.permute.xlu1 %849  ;;  %v1473_v15 = vld [vmem:[#allocation2 + $0x201] sm:$0xff] }
 0x1de   : > { %v1366_v5 = vadd.f32 %v9311_v34, %v1260_v11  ;;  %v1365_v50 = vadd.f32 %v9311_v34, %v1259_v10  ;;  %v1582_v47 = vmul.f32 %v9306_v30, %v1471_v22  ;;  %v1904_v9 = vmul.f32 %v9316_v27, %v1793_v54  ;;  %1056 = vst.msk [vmem:[#allocation2 + $0x2e8] sm:$0xff] %vm962_vm0, %v850_v51  ;;  %v1475_v51 = vld [vmem:[#allocation2 + $0x211] sm:$0xff] }
 0x1df   : > { %v3327_v53 = vadd.f32 %v3221_v46, %v3106_v4  ;;  %v3432_v14 = vmax.f32 %v3326_v37, 0.0  ;;  %v1687_v43 = vadd.f32 %v1581_v48, %v1364_v58  ;;  %v9319_v28 = vadd.f32 %v2123_v32, %v2008_v31  ;;  %v1795_v46 = vld [vmem:[#allocation2 + $0x1fa] sm:$0xff] }
 0x1e0   : > { %v1688_v1 = vadd.f32 %v1582_v47, %v1365_v50  ;;  %v2122_v12 = vmul.f32 %v9321_v41, %v1148_v18  ;;  %v2342_v6 = vmul.f32 %v8950_v52, %v1470_v2  ;;  %v9326_v35 = vadd.f32 %v2782_v45, %v2667_v19 }
 0x1e1   : > { %v3433_v25 = vmax.f32 %v3327_v53, 0.0  ;;  %3538 = vst.msk [vmem:[#allocation3 + $0x198] sm:$0xff] %vm962_vm0, %v3432_v14  ;;  %v1905_v58 = vmul.f32 %v9316_v27, %v1794_v13  ;;  %v2010_v40 = vadd.f32 %v1904_v9, %v1687_v43  ;;  %v2343_v31 = vmul.f32 %v8950_v52, %v1471_v22  ;;  %v9363_v9 = vld [vmem:[#allocation5 + $0x4] ss:$0 sm:$0xff] }
 0x1e2   : > { %v2228_v44 = vadd.f32 %v2122_v12, %v9252_v39  ;;  %v2448_v3 = vadd.f32 %v2342_v6, %v9274_v23  ;;  %v2563_v56 = vmul.f32 %v8998_v55, %v1793_v54  ;;  %v2564_v61 = vmul.f32 %v8998_v55, %v1794_v13 }
 0x1e3   : > { %3539 = vst.msk [vmem:[#allocation3 + $0x1a0] sm:$0xff] %vm962_vm0, %v3433_v25  ;;  %v9334_v20 = vadd.f32 %v1905_v58, %v1688_v1  ;;  %v2781_v62 = vmul.f32 %v8976_v36, %v1148_v18  ;;  %v3001_v57 = vmul.f32 %v9042_v59, %v1470_v2  ;;  %v3002_v39 = vmul.f32 %v9042_v59, %v1471_v22  ;;  %v1153_v58 = vld [vmem:[#allocation2 + $0x218] sm:$0xff] }
 0x1e4   : > { %v2449_v29 = vadd.f32 %v2343_v31, %v2228_v44  ;;  %v3222_v52 = vmul.f32 %v9046_v26, %v1793_v54  ;;  %v1262_v23 = vmul.f32 %v9267_v63, %v1151_v49  ;;  %v2669_v21 = vadd.f32 %v2563_v56, %v2448_v3  ;;  %v1796_v54 = vld [vmem:[#allocation2 + $0x202] sm:$0xff]  ;;  %v9371_v44 = vld [vmem:[#allocation5 + $0x6] ss:$0 sm:$0xff] }
 0x1e5   : > { %v2887_v60 = vadd.f32 %v2781_v62, %v9271_v16  ;;  %v3107_v33 = vadd.f32 %v3001_v57, %v9280_v42  ;;  %v2125_v18 = vmul.f32 %v9321_v41, %v1151_v49  ;;  %v3223_v2 = vmul.f32 %v9046_v26, %v1794_v13  ;;  %v1152_v56 = vld [vmem:[#allocation2 + $0x210] sm:$0xff] }
 0x1e6   : > { %v2784_v11 = vmul.f32 %v8976_v36, %v1151_v49  ;;  %v1261_v22 = vmul.f32 %v9267_v63, %v1150_v7  ;;  %v1583_v19 = vmul.f32 %v9306_v30, %v1472_v24  ;;  %v9351_v32 = vadd.f32 %v2564_v61, %v2449_v29  ;;  %v1474_v29 = vld [vmem:[#allocation2 + $0x209] sm:$0xff] }
 0x1e7   : > { %v3108_v16 = vadd.f32 %v3002_v39, %v2887_v60  ;;  %v3328_v42 = vadd.f32 %v3222_v52, %v3107_v33  ;;  %v1368_v10 = vadd.f32 %v9311_v34, %v1262_v23  ;;  %v9354_v4 = vadd.f32 %v2125_v18, %v2010_v40  ;;  %v855_v39 = vpop.permute.xlu0 %854  ;;  %v1797_v33 = vld [vmem:[#allocation2 + $0x20a] sm:$0xff] }
 0x1e8   : > { %v1367_v37 = vadd.f32 %v9311_v34, %v1261_v22  ;;  %v1584_v45 = vmul.f32 %v9306_v30, %v1473_v15  ;;  %v1689_v48 = vadd.f32 %v1583_v19, %v1366_v5  ;;  %v1906_v47 = vmul.f32 %v9316_v27, %v1795_v46  ;;  %1057 = vst.msk [vmem:[#allocation2 + $0x2f0] sm:$0xff] %vm962_vm0, %v855_v39 }
 0x1e9   : > { %v3329_v36 = vadd.f32 %v3223_v2, %v3108_v16  ;;  %v3434_v50 = vmax.f32 %v3328_v42, 0.0  ;;  %v2124_v13 = vmul.f32 %v9321_v41, %v1150_v7  ;;  %v9360_v53 = vadd.f32 %v2784_v11, %v2669_v21 }
 0x1ea   : > { %v1690_v14 = vadd.f32 %v1584_v45, %v1367_v37  ;;  %v1907_v43 = vmul.f32 %v9316_v27, %v1796_v54  ;;  %v2344_v1 = vmul.f32 %v9363_v9, %v1472_v24  ;;  %v2012_v6 = vadd.f32 %v1906_v47, %v1689_v48 }
 0x1eb   : > { %v3435_v12 = vmax.f32 %v3329_v36, 0.0  ;;  %3540 = vst.msk [vmem:[#allocation3 + $0x1a8] sm:$0xff] %vm962_vm0, %v3434_v50  ;;  %v2230_v5 = vadd.f32 %v2124_v13, %v9292_v38  ;;  %v2345_v25 = vmul.f32 %v9363_v9, %v1473_v15  ;;  %v2565_v49 = vmul.f32 %v8998_v55, %v1795_v46  ;;  %v865_v39 = vpop.permute.xlu0 %864 }
 0x1ec   : > { %v2450_v40 = vadd.f32 %v2344_v1, %v9319_v28  ;;  %v2783_v31 = vmul.f32 %v9371_v44, %v1150_v7  ;;  %v3003_v3 = vmul.f32 %v9042_v59, %v1472_v24  ;;  %v9376_v61 = vadd.f32 %v1907_v43, %v1690_v14  ;;  %v860_v28 = vpop.permute.xlu1 %859  ;;  %v1155_v1 = vld [vmem:[#allocation2 + $0x228] sm:$0xff]  ;;  %1059 = vst.msk [vmem:[#allocation2 + $0x300] sm:$0xff] %vm962_vm0, %v865_v39 }
 0x1ed   : > { %3541 = vst.msk [vmem:[#allocation3 + $0x1b0] sm:$0xff] %vm962_vm0, %v3435_v12  ;;  %v2451_v62 = vadd.f32 %v2345_v25, %v2230_v5  ;;  %v2566_v38 = vmul.f32 %v8998_v55, %v1796_v54  ;;  %v3004_v57 = vmul.f32 %v9042_v59, %v1473_v15  ;;  %v3224_v7 = vmul.f32 %v9046_v26, %v1795_v46  ;;  %v1798_v46 = vld [vmem:[#allocation2 + $0x212] sm:$0xff] }
 0x1ee   : > { %v2889_v52 = vadd.f32 %v2783_v31, %v9309_v17  ;;  %v3109_v23 = vadd.f32 %v3003_v3, %v9326_v35  ;;  %v1264_v24 = vmul.f32 %v9267_v63, %v1153_v58  ;;  %1058 = vst.msk [vmem:[#allocation2 + $0x2f8] sm:$0xff] %vm962_vm0, %v860_v28  ;;  %v2671_v8 = vadd.f32 %v2565_v49, %v2450_v40  ;;  %v9408_v5 = vld [vmem:[#allocation5 + $0x5] ss:$0 sm:$0xff]  ;;  %v1154_v3 = vld [vmem:[#allocation2 + $0x220] sm:$0xff] }
 0x1ef   : > { %v3225_v55 = vmul.f32 %v9046_v26, %v1796_v54  ;;  %v2127_v21 = vmul.f32 %v9321_v41, %v1153_v58  ;;  %v1263_v60 = vmul.f32 %v9267_v63, %v1152_v56  ;;  %v2786_v35 = vmul.f32 %v9371_v44, %v1153_v58 }
 0x1f0   : > { %v3110_v17 = vadd.f32 %v3004_v57, %v2889_v52  ;;  %v3330_v18 = vadd.f32 %v3224_v7, %v3109_v23  ;;  %v1585_v15 = vmul.f32 %v9306_v30, %v1474_v29  ;;  %v9391_v2 = vadd.f32 %v2566_v38, %v2451_v62  ;;  %v870_v28 = vpop.permute.xlu1 %869 }
 0x1f1   : > { %v1370_v11 = vadd.f32 %v9311_v34, %v1264_v24  ;;  %v1369_v22 = vadd.f32 %v9311_v34, %v1263_v60  ;;  %v1586_v19 = vmul.f32 %v9306_v30, %v1475_v51  ;;  %v1908_v37 = vmul.f32 %v9316_v27, %v1797_v33  ;;  %v1477_v24 = vld [vmem:[#allocation2 + $0x221] sm:$0xff]  ;;  %1060 = vst.msk [vmem:[#allocation2 + $0x308] sm:$0xff] %vm962_vm0, %v870_v28  ;;  %v1479_v28 = vld [vmem:[#allocation2 + $0x231] sm:$0xff] }
 0x1f2   : > { %v3331_v16 = vadd.f32 %v3225_v55, %v3110_v17  ;;  %v3436_v42 = vmax.f32 %v3330_v18, 0.0  ;;  %v1691_v54 = vadd.f32 %v1585_v15, %v1368_v10  ;;  %v9397_v45 = vadd.f32 %v2127_v21, %v2012_v6  ;;  %v1799_v55 = vld [vmem:[#allocation2 + $0x21a] sm:$0xff] }
 0x1f3   : > { %v1692_v48 = vadd.f32 %v1586_v19, %v1369_v22  ;;  %v2126_v36 = vmul.f32 %v9321_v41, %v1152_v56  ;;  %v2346_v50 = vmul.f32 %v9363_v9, %v1474_v29  ;;  %v9402_v13 = vadd.f32 %v2786_v35, %v2671_v8 }
 0x1f4   : > { %v3437_v47 = vmax.f32 %v3331_v16, 0.0  ;;  %3542 = vst.msk [vmem:[#allocation3 + $0x1b8] sm:$0xff] %vm962_vm0, %v3436_v42  ;;  %v1909_v14 = vmul.f32 %v9316_v27, %v1798_v46  ;;  %v2014_v43 = vadd.f32 %v1908_v37, %v1691_v54  ;;  %v2347_v12 = vmul.f32 %v9363_v9, %v1475_v51 }
 0x1f5   : > { %v2232_v10 = vadd.f32 %v2126_v36, %v9334_v20  ;;  %v2452_v6 = vadd.f32 %v2346_v50, %v9354_v4  ;;  %v2567_v25 = vmul.f32 %v9408_v5, %v1797_v33  ;;  %v2568_v40 = vmul.f32 %v9408_v5, %v1798_v46  ;;  %v1476_v20 = vld [vmem:[#allocation2 + $0x219] sm:$0xff] }
 0x1f6   : > { %3543 = vst.msk [vmem:[#allocation3 + $0x1c0] sm:$0xff] %vm962_vm0, %v3437_v47  ;;  %v9412_v58 = vadd.f32 %v1909_v14, %v1692_v48  ;;  %v2785_v49 = vmul.f32 %v9371_v44, %v1152_v56  ;;  %v3005_v31 = vmul.f32 %v9042_v59, %v1474_v29  ;;  %v3006_v38 = vmul.f32 %v9042_v59, %v1475_v51  ;;  %v1157_v47 = vld [vmem:[#allocation2 + $0x238] sm:$0xff] }
 0x1f7   : > { %v2453_v62 = vadd.f32 %v2347_v12, %v2232_v10  ;;  %v3226_v4 = vmul.f32 %v9046_v26, %v1797_v33  ;;  %v1266_v57 = vmul.f32 %v9267_v63, %v1155_v1  ;;  %v2673_v52 = vadd.f32 %v2567_v25, %v2452_v6  ;;  %v1800_v33 = vld [vmem:[#allocation2 + $0x222] sm:$0xff]  ;;  %v9448_v10 = vld [vmem:[#allocation5 + $0x7] ss:$0 sm:$0xff] }
 0x1f8   : > { %v2891_v23 = vadd.f32 %v2785_v49, %v9351_v32  ;;  %v3111_v7 = vadd.f32 %v3005_v31, %v9360_v53  ;;  %v2129_v56 = vmul.f32 %v9321_v41, %v1155_v1  ;;  %v3227_v59 = vmul.f32 %v9046_v26, %v1798_v46  ;;  %v1156_v6 = vld [vmem:[#allocation2 + $0x230] sm:$0xff] }
 0x1f9   : > { %v2788_v29 = vmul.f32 %v9371_v44, %v1155_v1  ;;  %v1265_v51 = vmul.f32 %v9267_v63, %v1154_v3  ;;  %v1587_v8 = vmul.f32 %v9306_v30, %v1476_v20  ;;  %v9429_v21 = vadd.f32 %v2568_v40, %v2453_v62  ;;  %v1478_v31 = vld [vmem:[#allocation2 + $0x229] sm:$0xff]  ;;  %v875_v62 = vpop.permute.xlu0 %874 }
 0x1fa   : > { %v3112_v32 = vadd.f32 %v3006_v38, %v2891_v23  ;;  %v3332_v53 = vadd.f32 %v3226_v4, %v3111_v7  ;;  %v1372_v60 = vadd.f32 %v9311_v34, %v1266_v57  ;;  %v9432_v17 = vadd.f32 %v2129_v56, %v2014_v43  ;;  %v9458_v4 = vld [vmem:[#allocation5 + $0x8] ss:$0 sm:$0xff]  ;;  %1061 = vst.msk [vmem:[#allocation2 + $0x310] sm:$0xff] %vm962_vm0, %v875_v62  ;;  %v1801_v7 = vld [vmem:[#allocation2 + $0x22a] sm:$0xff] }
 0x1fb   : > { %v1371_v18 = vadd.f32 %v9311_v34, %v1265_v51  ;;  %v1588_v26 = vmul.f32 %v9306_v30, %v1477_v24  ;;  %v1693_v35 = vadd.f32 %v1587_v8, %v1370_v11  ;;  %v1910_v19 = vmul.f32 %v9316_v27, %v1799_v55 }
 0x1fc   : > { %v3333_v15 = vadd.f32 %v3227_v59, %v3112_v32  ;;  %v3438_v22 = vmax.f32 %v3332_v53, 0.0  ;;  %v2128_v46 = vmul.f32 %v9321_v41, %v1154_v3  ;;  %v9438_v16 = vadd.f32 %v2788_v29, %v2673_v52  ;;  %v1802_v32 = vld [vmem:[#allocation2 + $0x232] sm:$0xff] }
 0x1fd   : > { %v1694_v42 = vadd.f32 %v1588_v26, %v1371_v18  ;;  %v1911_v54 = vmul.f32 %v9316_v27, %v1800_v33  ;;  %v2348_v37 = vmul.f32 %v9363_v9, %v1476_v20  ;;  %v2016_v36 = vadd.f32 %v1910_v19, %v1693_v35  ;;  %v885_v62 = vpop.permute.xlu0 %884 }
 0x1fe   : > { %v3439_v48 = vmax.f32 %v3333_v15, 0.0  ;;  %3544 = vst.msk [vmem:[#allocation3 + $0x1c8] sm:$0xff] %vm962_vm0, %v3438_v22  ;;  %v2234_v50 = vadd.f32 %v2128_v46, %v9376_v61  ;;  %v2349_v11 = vmul.f32 %v9363_v9, %v1477_v24  ;;  %v2569_v43 = vmul.f32 %v9408_v5, %v1799_v55  ;;  %1063 = vst.msk [vmem:[#allocation2 + $0x320] sm:$0xff] %vm962_vm0, %v885_v62 }
 0x1ff   : > { %v2454_v14 = vadd.f32 %v2348_v37, %v9397_v45  ;;  %v2787_v1 = vmul.f32 %v9371_v44, %v1154_v3  ;;  %v3007_v12 = vmul.f32 %v9448_v10, %v1476_v20  ;;  %v9452_v25 = vadd.f32 %v1911_v54, %v1694_v42  ;;  %v880_v45 = vpop.permute.xlu1 %879 }
 0x200   : > { %3545 = vst.msk [vmem:[#allocation3 + $0x1d0] sm:$0xff] %vm962_vm0, %v3439_v48  ;;  %v2455_v40 = vadd.f32 %v2349_v11, %v2234_v50  ;;  %v2570_v61 = vmul.f32 %v9408_v5, %v1800_v33  ;;  %v3008_v49 = vmul.f32 %v9448_v10, %v1477_v24  ;;  %v3228_v20 = vmul.f32 %v9458_v4, %v1799_v55  ;;  %v1159_v48 = vld [vmem:[#allocation2 + $0x248] sm:$0xff] }
 0x201   : > { %v2893_v38 = vadd.f32 %v2787_v1, %v9391_v2  ;;  %v3113_v3 = vadd.f32 %v3007_v12, %v9402_v13  ;;  %v1268_v57 = vmul.f32 %v9267_v63, %v1157_v47  ;;  %1062 = vst.msk [vmem:[#allocation2 + $0x318] sm:$0xff] %vm962_vm0, %v880_v45  ;;  %v2675_v39 = vadd.f32 %v2569_v43, %v2454_v14  ;;  %v1158_v12 = vld [vmem:[#allocation2 + $0x240] sm:$0xff] }
 0x202   : > { %v3229_v52 = vmul.f32 %v9458_v4, %v1800_v33  ;;  %v2131_v23 = vmul.f32 %v9321_v41, %v1157_v47  ;;  %v1267_v2 = vmul.f32 %v9267_v63, %v1156_v6  ;;  %v2790_v24 = vmul.f32 %v9371_v44, %v1157_v47 }
 0x203   : > { %v3114_v13 = vadd.f32 %v3008_v49, %v2893_v38  ;;  %v3334_v56 = vadd.f32 %v3228_v20, %v3113_v3  ;;  %v1589_v59 = vmul.f32 %v9306_v30, %v1478_v31  ;;  %v9469_v29 = vadd.f32 %v2570_v61, %v2455_v40  ;;  %v1480_v40 = vld [vmem:[#allocation2 + $0x239] sm:$0xff]  ;;  %v890_v45 = vpop.permute.xlu1 %889 }
 0x204   : > { %v1374_v51 = vadd.f32 %v9311_v34, %v1268_v57  ;;  %v1373_v8 = vadd.f32 %v9311_v34, %v1267_v2  ;;  %v1590_v55 = vmul.f32 %v9306_v30, %v1479_v28  ;;  %v1912_v26 = vmul.f32 %v9316_v27, %v1801_v7  ;;  %v1481_v57 = vld [vmem:[#allocation2 + $0x241] sm:$0xff]  ;;  %1064 = vst.msk [vmem:[#allocation2 + $0x328] sm:$0xff] %vm962_vm0, %v890_v45 }
 0x205   : > { %v3335_v53 = vadd.f32 %v3229_v52, %v3114_v13  ;;  %v3440_v33 = vmax.f32 %v3334_v56, 0.0  ;;  %v1695_v18 = vadd.f32 %v1589_v59, %v1372_v60  ;;  %v2237_v35 = vadd.f32 %v2131_v23, %v2016_v36  ;;  %v1803_v23 = vld [vmem:[#allocation2 + $0x23a] sm:$0xff]  ;;  %v1804_v13 = vld [vmem:[#allocation2 + $0x242] sm:$0xff] }
 0x206   : > { %v1696_v15 = vadd.f32 %v1590_v55, %v1373_v8  ;;  %v2130_v22 = vmul.f32 %v9321_v41, %v1156_v6  ;;  %v2350_v19 = vmul.f32 %v9363_v9, %v1478_v31  ;;  %v9478_v42 = vadd.f32 %v2790_v24, %v2675_v39 }
 0x207   : > { %v3441_v46 = vmax.f32 %v3335_v53, 0.0  ;;  %3546 = vst.msk [vmem:[#allocation3 + $0x1d8] sm:$0xff] %vm962_vm0, %v3440_v33  ;;  %v1913_v54 = vmul.f32 %v9316_v27, %v1802_v32  ;;  %v2018_v37 = vadd.f32 %v1912_v26, %v1695_v18  ;;  %v2351_v60 = vmul.f32 %v9363_v9, %v1479_v28 }
 0x208   : > { %v2236_v50 = vadd.f32 %v2130_v22, %v9412_v58  ;;  %v2456_v36 = vadd.f32 %v2350_v19, %v9432_v17  ;;  %v2571_v11 = vmul.f32 %v9408_v5, %v1801_v7  ;;  %v2572_v14 = vmul.f32 %v9408_v5, %v1802_v32 }
 0x209   : > { %3547 = vst.msk [vmem:[#allocation3 + $0x1e0] sm:$0xff] %vm962_vm0, %v3441_v46  ;;  %v9486_v47 = vadd.f32 %v1913_v54, %v1696_v15  ;;  %v2789_v43 = vmul.f32 %v9371_v44, %v1156_v6  ;;  %v3009_v1 = vmul.f32 %v9448_v10, %v1478_v31  ;;  %v3010_v58 = vmul.f32 %v9448_v10, %v1479_v28 }
 0x20a   : > { %v2457_v61 = vadd.f32 %v2351_v60, %v2236_v50  ;;  %v3230_v49 = vmul.f32 %v9458_v4, %v1801_v7  ;;  %v1270_v17 = vmul.f32 %v9267_v63, %v1159_v48  ;;  %v2677_v38 = vadd.f32 %v2571_v11, %v2456_v36  ;;  %v1160_v11 = vld [vmem:[#allocation2 + $0x250] sm:$0xff] }
 0x20b   : > { %v2895_v3 = vadd.f32 %v2789_v43, %v9429_v21  ;;  %v3115_v20 = vadd.f32 %v3009_v1, %v9438_v16  ;;  %v2133_v6 = vmul.f32 %v9321_v41, %v1159_v48  ;;  %v3231_v31 = vmul.f32 %v9458_v4, %v1802_v32 }
 0x20c   : > { %v2792_v28 = vmul.f32 %v9371_v44, %v1159_v48  ;;  %v1269_v39 = vmul.f32 %v9267_v63, %v1158_v12  ;;  %v1591_v52 = vmul.f32 %v9306_v30, %v1480_v40  ;;  %v9503_v2 = vadd.f32 %v2572_v14, %v2457_v61  ;;  %v1482_v61 = vld [vmem:[#allocation2 + $0x249] sm:$0xff] }
 0x20d   : > { %v3116_v21 = vadd.f32 %v3010_v58, %v2895_v3  ;;  %v3336_v16 = vadd.f32 %v3230_v49, %v3115_v20  ;;  %v1376_v7 = vadd.f32 %v9311_v34, %v1270_v17  ;;  %v9506_v56 = vadd.f32 %v2133_v6, %v2018_v37  ;;  %v1161_v37 = vld [vmem:[#allocation2 + $0x258] sm:$0xff]  ;;  %v1805_v3 = vld [vmem:[#allocation2 + $0x24a] sm:$0xff] }
 0x20e   : > { %v1375_v24 = vadd.f32 %v9311_v34, %v1269_v39  ;;  %v1592_v59 = vmul.f32 %v9306_v30, %v1481_v57  ;;  %v1697_v8 = vadd.f32 %v1591_v52, %v1374_v51  ;;  %v1914_v53 = vmul.f32 %v9316_v27, %v1803_v23  ;;  %v1806_v52 = vld [vmem:[#allocation2 + $0x252] sm:$0xff] }
 0x20f   : > { %v3337_v55 = vadd.f32 %v3231_v31, %v3116_v21  ;;  %v3442_v32 = vmax.f32 %v3336_v16, 0.0  ;;  %v2132_v33 = vmul.f32 %v9321_v41, %v1158_v12  ;;  %v9512_v18 = vadd.f32 %v2792_v28, %v2677_v38 }
 0x210   : > { %v1698_v26 = vadd.f32 %v1592_v59, %v1375_v24  ;;  %v1915_v15 = vmul.f32 %v9316_v27, %v1804_v13  ;;  %v2352_v22 = vmul.f32 %v9363_v9, %v1480_v40  ;;  %v2020_v46 = vadd.f32 %v1914_v53, %v1697_v8 }
 0x211   : > { %v3443_v19 = vmax.f32 %v3337_v55, 0.0  ;;  %3548 = vst.msk [vmem:[#allocation3 + $0x1e8] sm:$0xff] %vm962_vm0, %v3442_v32  ;;  %v2238_v54 = vadd.f32 %v2132_v33, %v9452_v25  ;;  %v2353_v51 = vmul.f32 %v9363_v9, %v1481_v57  ;;  %v2573_v50 = vmul.f32 %v9408_v5, %v1803_v23 }
 0x212   : > { %v2458_v48 = vadd.f32 %v2352_v22, %v2237_v35  ;;  %v2791_v60 = vmul.f32 %v9371_v44, %v1158_v12  ;;  %v3011_v36 = vmul.f32 %v9448_v10, %v1480_v40  ;;  %v9523_v14 = vadd.f32 %v1915_v15, %v1698_v26  ;;  %v1483_v40 = vld [vmem:[#allocation2 + $0x251] sm:$0xff]  ;;  %v1163_v15 = vld [vmem:[#allocation2 + $0x268] sm:$0xff] }
 0x213   : > { %3549 = vst.msk [vmem:[#allocation3 + $0x1f0] sm:$0xff] %vm962_vm0, %v3443_v19  ;;  %v2459_v43 = vadd.f32 %v2353_v51, %v2238_v54  ;;  %v2574_v1 = vmul.f32 %v9408_v5, %v1804_v13  ;;  %v3012_v25 = vmul.f32 %v9448_v10, %v1481_v57  ;;  %v3232_v49 = vmul.f32 %v9458_v4, %v1803_v23 }
 0x214   : > { %v2897_v58 = vadd.f32 %v2791_v60, %v9469_v29  ;;  %v3117_v35 = vadd.f32 %v3011_v36, %v9478_v42  ;;  %v1272_v12 = vmul.f32 %v9267_v63, %v1161_v37  ;;  %v2679_v17 = vadd.f32 %v2573_v50, %v2458_v48  ;;  %v1162_v50 = vld [vmem:[#allocation2 + $0x260] sm:$0xff] }
 0x215   : > { %v3233_v45 = vmul.f32 %v9458_v4, %v1804_v13  ;;  %v2135_v62 = vmul.f32 %v9321_v41, %v1161_v37  ;;  %v1271_v38 = vmul.f32 %v9267_v63, %v1160_v11  ;;  %v2794_v57 = vmul.f32 %v9371_v44, %v1161_v37  ;;  %v1484_v60 = vld [vmem:[#allocation2 + $0x259] sm:$0xff] }
 0x216   : > { %v3118_v20 = vadd.f32 %v3012_v25, %v2897_v58  ;;  %v3338_v6 = vadd.f32 %v3232_v49, %v3117_v35  ;;  %v1593_v29 = vmul.f32 %v9306_v30, %v1482_v61  ;;  %v9536_v42 = vadd.f32 %v2574_v1, %v2459_v43  ;;  %v1485_v49 = vld [vmem:[#allocation2 + $0x261] sm:$0xff] }
 0x217   : > { %v1378_v31 = vadd.f32 %v9311_v34, %v1272_v12  ;;  %v1377_v28 = vadd.f32 %v9311_v34, %v1271_v38  ;;  %v1594_v39 = vmul.f32 %v9306_v30, %v1483_v40  ;;  %v1916_v13 = vmul.f32 %v9316_v27, %v1805_v3  ;;  %v895_v12 = vpop.permute.xlu0 %894 }
 0x218   : > { %v3339_v23 = vadd.f32 %v3233_v45, %v3118_v20  ;;  %v3444_v21 = vmax.f32 %v3338_v6, 0.0  ;;  %v1699_v16 = vadd.f32 %v1593_v29, %v1376_v7  ;;  %v2241_v24 = vadd.f32 %v2135_v62, %v2020_v46  ;;  %v1807_v62 = vld [vmem:[#allocation2 + $0x25a] sm:$0xff]  ;;  %1065 = vst.msk [vmem:[#allocation2 + $0x330] sm:$0xff] %vm962_vm0, %v895_v12  ;;  %v1808_v20 = vld [vmem:[#allocation2 + $0x262] sm:$0xff] }
 0x219   : > { %v1700_v59 = vadd.f32 %v1594_v39, %v1377_v28  ;;  %v2134_v8 = vmul.f32 %v9321_v41, %v1160_v11  ;;  %v2354_v55 = vmul.f32 %v9363_v9, %v1482_v61  ;;  %v9545_v53 = vadd.f32 %v2794_v57, %v2679_v17 }
 0x21a   : > { %v3445_v32 = vmax.f32 %v3339_v23, 0.0  ;;  %3550 = vst.msk [vmem:[#allocation3 + $0x1f8] sm:$0xff] %vm962_vm0, %v3444_v21  ;;  %v1917_v33 = vmul.f32 %v9316_v27, %v1806_v52  ;;  %v2022_v26 = vadd.f32 %v1916_v13, %v1699_v16  ;;  %v2355_v7 = vmul.f32 %v9363_v9, %v1483_v40 }
 0x21b   : > { %v2240_v22 = vadd.f32 %v2134_v8, %v9486_v47  ;;  %v2460_v19 = vadd.f32 %v2354_v55, %v9506_v56  ;;  %v2575_v46 = vmul.f32 %v9408_v5, %v1805_v3  ;;  %v2576_v51 = vmul.f32 %v9408_v5, %v1806_v52 }
 0x21c   : > { %3551 = vst.msk [vmem:[#allocation3 + $0x200] sm:$0xff] %vm962_vm0, %v3445_v32  ;;  %v9553_v54 = vadd.f32 %v1917_v33, %v1700_v59  ;;  %v2793_v37 = vmul.f32 %v9371_v44, %v1160_v11  ;;  %v3013_v48 = vmul.f32 %v9448_v10, %v1482_v61  ;;  %v3014_v47 = vmul.f32 %v9448_v10, %v1483_v40  ;;  %v900_v11 = vpop.permute.xlu1 %899 }
 0x21d   : > { %v2461_v36 = vadd.f32 %v2355_v7, %v2240_v22  ;;  %v3234_v43 = vmul.f32 %v9458_v4, %v1805_v3  ;;  %v1274_v56 = vmul.f32 %v9267_v63, %v1163_v15  ;;  %v2681_v1 = vadd.f32 %v2575_v46, %v2460_v19  ;;  %1066 = vst.msk [vmem:[#allocation2 + $0x338] sm:$0xff] %vm962_vm0, %v900_v11  ;;  %v1164_v46 = vld [vmem:[#allocation2 + $0x270] sm:$0xff] }
 0x21e   : > { %v2899_v25 = vadd.f32 %v2793_v37, %v9503_v2  ;;  %v3119_v58 = vadd.f32 %v3013_v48, %v9512_v18  ;;  %v2137_v35 = vmul.f32 %v9321_v41, %v1163_v15  ;;  %v3235_v61 = vmul.f32 %v9458_v4, %v1806_v52 }
 0x21f   : > { %v2796_v17 = vmul.f32 %v9371_v44, %v1163_v15  ;;  %v1273_v40 = vmul.f32 %v9267_v63, %v1162_v50  ;;  %v1595_v45 = vmul.f32 %v9306_v30, %v1484_v60  ;;  %v9570_v2 = vadd.f32 %v2576_v51, %v2461_v36  ;;  %v1486_v36 = vld [vmem:[#allocation2 + $0x269] sm:$0xff] }
 0x220   : > { %v3120_v18 = vadd.f32 %v3014_v47, %v2899_v25  ;;  %v3340_v38 = vadd.f32 %v3234_v43, %v3119_v58  ;;  %v1380_v3 = vadd.f32 %v9311_v34, %v1274_v56  ;;  %v9573_v6 = vadd.f32 %v2137_v35, %v2022_v26  ;;  %v1165_v26 = vld [vmem:[#allocation2 + $0x278] sm:$0xff]  ;;  %v1809_v35 = vld [vmem:[#allocation2 + $0x26a] sm:$0xff] }
 0x221   : > { %v1379_v57 = vadd.f32 %v9311_v34, %v1273_v40  ;;  %v1596_v29 = vmul.f32 %v9306_v30, %v1485_v49  ;;  %v1701_v28 = vadd.f32 %v1595_v45, %v1378_v31  ;;  %v1918_v23 = vmul.f32 %v9316_v27, %v1807_v62  ;;  %v1810_v45 = vld [vmem:[#allocation2 + $0x272] sm:$0xff] }
 0x222   : > { %v3341_v39 = vadd.f32 %v3235_v61, %v3120_v18  ;;  %v3446_v52 = vmax.f32 %v3340_v38, 0.0  ;;  %v2136_v21 = vmul.f32 %v9321_v41, %v1162_v50  ;;  %v9579_v16 = vadd.f32 %v2796_v17, %v2681_v1 }
 0x223   : > { %v1702_v13 = vadd.f32 %v1596_v29, %v1379_v57  ;;  %v1919_v59 = vmul.f32 %v9316_v27, %v1808_v20  ;;  %v2356_v8 = vmul.f32 %v9363_v9, %v1484_v60  ;;  %v2024_v32 = vadd.f32 %v1918_v23, %v1701_v28  ;;  %v910_v57 = vpop.permute.xlu1 %909  ;;  %v905_v29 = vpop.permute.xlu0 %904 }
 0x224   : > { %v3447_v55 = vmax.f32 %v3341_v39, 0.0  ;;  %3552 = vst.msk [vmem:[#allocation3 + $0x208] sm:$0xff] %vm962_vm0, %v3446_v52  ;;  %v2242_v33 = vadd.f32 %v2136_v21, %v9523_v14  ;;  %v2357_v31 = vmul.f32 %v9363_v9, %v1485_v49  ;;  %v2577_v22 = vmul.f32 %v9408_v5, %v1807_v62  ;;  %1068 = vst.msk [vmem:[#allocation2 + $0x348] sm:$0xff] %vm962_vm0, %v910_v57 }
 0x225   : > { %v2462_v15 = vadd.f32 %v2356_v8, %v2241_v24  ;;  %v2795_v7 = vmul.f32 %v9371_v44, %v1162_v50  ;;  %v3015_v19 = vmul.f32 %v9448_v10, %v1484_v60  ;;  %v9590_v51 = vadd.f32 %v1919_v59, %v1702_v13  ;;  %v1487_v60 = vld [vmem:[#allocation2 + $0x271] sm:$0xff]  ;;  %1067 = vst.msk [vmem:[#allocation2 + $0x340] sm:$0xff] %vm962_vm0, %v905_v29  ;;  %v1167_v8 = vld [vmem:[#allocation2 + $0x288] sm:$0xff] }
 0x226   : > { %3553 = vst.msk [vmem:[#allocation3 + $0x210] sm:$0xff] %vm962_vm0, %v3447_v55  ;;  %v2463_v37 = vadd.f32 %v2357_v31, %v2242_v33  ;;  %v2578_v48 = vmul.f32 %v9408_v5, %v1808_v20  ;;  %v3016_v14 = vmul.f32 %v9448_v10, %v1485_v49  ;;  %v3236_v43 = vmul.f32 %v9458_v4, %v1807_v62 }
 0x227   : > { %v2901_v47 = vadd.f32 %v2795_v7, %v9536_v42  ;;  %v3121_v24 = vadd.f32 %v3015_v19, %v9545_v53  ;;  %v1276_v50 = vmul.f32 %v9267_v63, %v1165_v26  ;;  %v2683_v56 = vadd.f32 %v2577_v22, %v2462_v15  ;;  %v1166_v19 = vld [vmem:[#allocation2 + $0x280] sm:$0xff] }
 0x228   : > { %v3237_v1 = vmul.f32 %v9458_v4, %v1808_v20  ;;  %v2139_v25 = vmul.f32 %v9321_v41, %v1165_v26  ;;  %v1275_v58 = vmul.f32 %v9267_v63, %v1164_v46  ;;  %v2798_v12 = vmul.f32 %v9371_v44, %v1165_v26 }
 0x229   : > { %v3122_v11 = vadd.f32 %v3016_v14, %v2901_v47  ;;  %v3342_v49 = vadd.f32 %v3236_v43, %v3121_v24  ;;  %v1597_v42 = vmul.f32 %v9306_v30, %v1486_v36  ;;  %v9603_v53 = vadd.f32 %v2578_v48, %v2463_v37  ;;  %v1488_v37 = vld [vmem:[#allocation2 + $0x279] sm:$0xff] }
 0x22a   : > { %v1382_v61 = vadd.f32 %v9311_v34, %v1276_v50  ;;  %v1381_v17 = vadd.f32 %v9311_v34, %v1275_v58  ;;  %v1598_v40 = vmul.f32 %v9306_v30, %v1487_v60  ;;  %v1920_v20 = vmul.f32 %v9316_v27, %v1809_v35 }
 0x22b   : > { %v3343_v62 = vadd.f32 %v3237_v1, %v3122_v11  ;;  %v3448_v18 = vmax.f32 %v3342_v49, 0.0  ;;  %v1703_v38 = vadd.f32 %v1597_v42, %v1380_v3  ;;  %v9609_v28 = vadd.f32 %v2139_v25, %v2024_v32  ;;  %v1811_v25 = vld [vmem:[#allocation2 + $0x27a] sm:$0xff]  ;;  %v1812_v49 = vld [vmem:[#allocation2 + $0x282] sm:$0xff] }
 0x22c   : > { %v1704_v39 = vadd.f32 %v1598_v40, %v1381_v17  ;;  %v2138_v52 = vmul.f32 %v9321_v41, %v1164_v46  ;;  %v2358_v23 = vmul.f32 %v9363_v9, %v1486_v36  ;;  %v9616_v13 = vadd.f32 %v2798_v12, %v2683_v56  ;;  %v1489_v56 = vld [vmem:[#allocation2 + $0x281] sm:$0xff] }
 0x22d   : > { %v3449_v21 = vmax.f32 %v3343_v62, 0.0  ;;  %3554 = vst.msk [vmem:[#allocation3 + $0x218] sm:$0xff] %vm962_vm0, %v3448_v18  ;;  %v1921_v3 = vmul.f32 %v9316_v27, %v1810_v45  ;;  %v2026_v59 = vadd.f32 %v1920_v20, %v1703_v38  ;;  %v2359_v32 = vmul.f32 %v9363_v9, %v1487_v60  ;;  %v920_v18 = vpop.permute.xlu1 %919  ;;  %v915_v38 = vpop.permute.xlu0 %914 }
 0x22e   : > { %v2244_v55 = vadd.f32 %v2138_v52, %v9553_v54  ;;  %v2464_v33 = vadd.f32 %v2358_v23, %v9573_v6  ;;  %v2579_v31 = vmul.f32 %v9408_v5, %v1809_v35  ;;  %v2580_v15 = vmul.f32 %v9408_v5, %v1810_v45  ;;  %1070 = vst.msk [vmem:[#allocation2 + $0x358] sm:$0xff] %vm962_vm0, %v920_v18 }
 0x22f   : > { %3555 = vst.msk [vmem:[#allocation3 + $0x220] sm:$0xff] %vm962_vm0, %v3449_v21  ;;  %v9624_v26 = vadd.f32 %v1921_v3, %v1704_v39  ;;  %v2797_v22 = vmul.f32 %v9371_v44, %v1164_v46  ;;  %v3017_v7 = vmul.f32 %v9448_v10, %v1486_v36  ;;  %v3018_v54 = vmul.f32 %v9448_v10, %v1487_v60  ;;  %v1169_v3 = vld [vmem:[#allocation2 + $0x298] sm:$0xff] }
 0x230   : > { %v2465_v48 = vadd.f32 %v2359_v32, %v2244_v55  ;;  %v3238_v14 = vmul.f32 %v9458_v4, %v1809_v35  ;;  %v1278_v6 = vmul.f32 %v9267_v63, %v1167_v8  ;;  %v2685_v47 = vadd.f32 %v2579_v31, %v2464_v33  ;;  %1069 = vst.msk [vmem:[#allocation2 + $0x350] sm:$0xff] %vm962_vm0, %v915_v38  ;;  %v1168_v33 = vld [vmem:[#allocation2 + $0x290] sm:$0xff] }
 0x231   : > { %v2903_v24 = vadd.f32 %v2797_v22, %v9570_v2  ;;  %v3123_v43 = vadd.f32 %v3017_v7, %v9579_v16  ;;  %v2141_v50 = vmul.f32 %v9321_v41, %v1167_v8  ;;  %v3239_v46 = vmul.f32 %v9458_v4, %v1810_v45  ;;  %v1490_v7 = vld [vmem:[#allocation2 + $0x289] sm:$0xff] }
 0x232   : > { %v2800_v36 = vmul.f32 %v9371_v44, %v1167_v8  ;;  %v1277_v1 = vmul.f32 %v9267_v63, %v1166_v19  ;;  %v1599_v60 = vmul.f32 %v9306_v30, %v1488_v37  ;;  %v9639_v58 = vadd.f32 %v2580_v15, %v2465_v48 }
 0x233   : > { %v3124_v35 = vadd.f32 %v3018_v54, %v2903_v24  ;;  %v3344_v11 = vadd.f32 %v3238_v14, %v3123_v43  ;;  %v1384_v2 = vadd.f32 %v9311_v34, %v1278_v6  ;;  %v9642_v16 = vadd.f32 %v2141_v50, %v2026_v59  ;;  %v1491_v14 = vld [vmem:[#allocation2 + $0x291] sm:$0xff] }
 0x234   : > { %v1383_v12 = vadd.f32 %v9311_v34, %v1277_v1  ;;  %v1600_v42 = vmul.f32 %v9306_v30, %v1489_v56  ;;  %v1705_v17 = vadd.f32 %v1599_v60, %v1382_v61  ;;  %v1922_v63 = vmul.f32 %v9316_v27, %v1811_v25  ;;  %v1813_v50 = vld [vmem:[#allocation2 + $0x28a] sm:$0xff] }
 0x235   : > { %v3345_v40 = vadd.f32 %v3239_v46, %v3124_v35  ;;  %v3450_v45 = vmax.f32 %v3344_v11, 0.0  ;;  %v2140_v62 = vmul.f32 %v9321_v41, %v1166_v19  ;;  %v9648_v20 = vadd.f32 %v2800_v36, %v2685_v47  ;;  %v1814_v35 = vld [vmem:[#allocation2 + $0x292] sm:$0xff]  ;;  %v930_v11 = vpop.permute.xlu1 %929 }
 0x236   : > { %v1706_v57 = vadd.f32 %v1600_v42, %v1383_v12  ;;  %v1923_v29 = vmul.f32 %v9316_v27, %v1812_v49  ;;  %v2360_v39 = vmul.f32 %v9363_v9, %v1488_v37  ;;  %v2028_v52 = vadd.f32 %v1922_v63, %v1705_v17  ;;  %1072 = vst.msk [vmem:[#allocation2 + $0x368] sm:$0xff] %vm962_vm0, %v930_v11 }
 0x237   : > { %v3451_v61 = vmax.f32 %v3345_v40, 0.0  ;;  %3556 = vst.msk [vmem:[#allocation3 + $0x228] sm:$0xff] %vm962_vm0, %v3450_v45  ;;  %v2246_v23 = vadd.f32 %v2140_v62, %v9590_v51  ;;  %v2361_v21 = vmul.f32 %v9363_v9, %v1489_v56  ;;  %v2581_v8 = vmul.f32 %v9408_v5, %v1811_v25 }
 0x238   : > { %v2466_v59 = vadd.f32 %v2360_v39, %v9609_v28  ;;  %v2799_v55 = vmul.f32 %v9371_v44, %v1166_v19  ;;  %v3019_v32 = vmul.f32 %v9448_v10, %v1488_v37  ;;  %v9662_v31 = vadd.f32 %v1923_v29, %v1706_v57  ;;  %v9669_v19 = vld [vmem:[#allocation5] ss:$0 sm:$0xff]  ;;  %v1171_v57 = vld [vmem:[#allocation2 + $0x2a8] sm:$0xff] }
 0x239   : > { %3557 = vst.msk [vmem:[#allocation3 + $0x230] sm:$0xff] %vm962_vm0, %v3451_v61  ;;  %v2467_v15 = vadd.f32 %v2361_v21, %v2246_v23  ;;  %v2582_v22 = vmul.f32 %v9408_v5, %v1812_v49  ;;  %v3020_v51 = vmul.f32 %v9448_v10, %v1489_v56  ;;  %v3240_v54 = vmul.f32 %v9458_v4, %v1811_v25 }
 0x23a   : > { %v2905_v48 = vadd.f32 %v2799_v55, %v9603_v53  ;;  %v3125_v28 = vadd.f32 %v3019_v32, %v9616_v13  ;;  %v1280_v37 = vmul.f32 %v9669_v19, %v1169_v3  ;;  %v2687_v6 = vadd.f32 %v2581_v8, %v2466_v59  ;;  %v1492_v59 = vld [vmem:[#allocation2 + $0x299] sm:$0xff] }
 0x23b   : > { %v3241_v47 = vmul.f32 %v9458_v4, %v1812_v49  ;;  %v2143_v24 = vmul.f32 %v9321_v41, %v1169_v3  ;;  %v1279_v43 = vmul.f32 %v9669_v19, %v1168_v33  ;;  %v2802_v53 = vmul.f32 %v9371_v44, %v1169_v3  ;;  %v925_v49 = vpop.permute.xlu0 %924  ;;  %v1170_v3 = vld [vmem:[#allocation2 + $0x2a0] sm:$0xff] }
 0x23c   : > { %v3126_v56 = vadd.f32 %v3020_v51, %v2905_v48  ;;  %v3346_v46 = vadd.f32 %v3240_v54, %v3125_v28  ;;  %v1601_v13 = vmul.f32 %v9306_v30, %v1490_v7  ;;  %v9677_v36 = vadd.f32 %v2582_v22, %v2467_v15  ;;  %1071 = vst.msk [vmem:[#allocation2 + $0x360] sm:$0xff] %vm962_vm0, %v925_v49  ;;  %v9708_v51 = vld [vmem:[#allocation5 + $0x3] ss:$0 sm:$0xff]  ;;  %v1493_v48 = vld [vmem:[#allocation2 + $0x2a1] sm:$0xff]  ;;  %v9728_v49 = vld [vmem:[#allocation5 + $0x2] ss:$0 sm:$0xff] }
 0x23d   : > { %v1386_v1 = vadd.f32 %v9311_v34, %v1280_v37  ;;  %v1385_v60 = vadd.f32 %v9311_v34, %v1279_v43  ;;  %v1602_v25 = vmul.f32 %v9306_v30, %v1491_v14  ;;  %v1924_v40 = vmul.f32 %v9316_v27, %v1813_v50 }
 0x23e   : > { %v3347_v12 = vadd.f32 %v3241_v47, %v3126_v56  ;;  %v3452_v42 = vmax.f32 %v3346_v46, 0.0  ;;  %v1707_v17 = vadd.f32 %v1601_v13, %v1384_v2  ;;  %v9685_v45 = vadd.f32 %v2143_v24, %v2028_v52  ;;  %v1816_v46 = vld [vmem:[#allocation2 + $0x2a2] sm:$0xff] }
 0x23f   : > { %v1708_v63 = vadd.f32 %v1602_v25, %v1385_v60  ;;  %v2142_v62 = vmul.f32 %v9321_v41, %v1168_v33  ;;  %v2362_v34 = vmul.f32 %v9363_v9, %v1490_v7  ;;  %v9690_v18 = vadd.f32 %v2802_v53, %v2687_v6  ;;  %v935_v28 = vpop.permute.xlu0 %934  ;;  %v9714_v6 = vld [vmem:[#allocation5 + $0x1] ss:$0 sm:$0xff] }
 0x240   : > { %v3453_v30 = vmax.f32 %v3347_v12, 0.0  ;;  %3558 = vst.msk [vmem:[#allocation3 + $0x238] sm:$0xff] %vm962_vm0, %v3452_v42  ;;  %v1925_v2 = vmul.f32 %v9316_v27, %v1814_v35  ;;  %v2030_v38 = vadd.f32 %v1924_v40, %v1707_v17  ;;  %v2363_v39 = vmul.f32 %v9363_v9, %v1491_v14  ;;  %1073 = vst.msk [vmem:[#allocation2 + $0x370] sm:$0xff] %vm962_vm0, %v935_v28 }
 0x241   : > { %v2248_v29 = vadd.f32 %v2142_v62, %v9624_v26  ;;  %v2468_v61 = vadd.f32 %v2362_v34, %v9642_v16  ;;  %v2583_v52 = vmul.f32 %v9408_v5, %v1813_v50  ;;  %v2584_v23 = vmul.f32 %v9408_v5, %v1814_v35 }
 0x242   : > { %3559 = vst.msk [vmem:[#allocation3 + $0x240] sm:$0xff] %vm962_vm0, %v3453_v30  ;;  %v9698_v41 = vadd.f32 %v1925_v2, %v1708_v63  ;;  %v2801_v21 = vmul.f32 %v9371_v44, %v1168_v33  ;;  %v3021_v27 = vmul.f32 %v9448_v10, %v1490_v7  ;;  %v3022_v26 = vmul.f32 %v9448_v10, %v1491_v14  ;;  %v940_v7 = vpop.permute.xlu1 %939 }
 0x243   : > { %v2469_v8 = vadd.f32 %v2363_v39, %v2248_v29  ;;  %v3242_v55 = vmul.f32 %v9458_v4, %v1813_v50  ;;  %v1282_v16 = vmul.f32 %v9669_v19, %v1171_v57  ;;  %v2689_v32 = vadd.f32 %v2583_v52, %v2468_v61  ;;  %1074 = vst.msk [vmem:[#allocation2 + $0x378] sm:$0xff] %vm962_vm0, %v940_v7  ;;  %v9721_v50 = vld [vmem:[#allocation7] ss:$0 sm:$0xff]  ;;  %v945_v17 = vpop.permute.xlu0 %944 }
 0x244   : > { %v2907_v15 = vadd.f32 %v2801_v21, %v9639_v58  ;;  %v3127_v22 = vadd.f32 %v3021_v27, %v9648_v20  ;;  %v2145_v33 = vmul.f32 %v9708_v51, %v1171_v57  ;;  %v3243_v54 = vmul.f32 %v9458_v4, %v1814_v35  ;;  %v1815_v58 = vld [vmem:[#allocation2 + $0x29a] sm:$0xff]  ;;  %1075 = vst.msk [vmem:[#allocation2 + $0x380] sm:$0xff] %vm962_vm0, %v945_v17 }
 0x245   : > { %v2804_v37 = vmul.f32 %v9371_v44, %v1171_v57  ;;  %v1281_v14 = vmul.f32 %v9669_v19, %v1170_v3  ;;  %v1603_v47 = vmul.f32 %v9714_v6, %v1492_v59  ;;  %v9719_v20 = vadd.f32 %v2584_v23, %v2469_v8  ;;  %v1173_v57 = vld [vmem:[#allocation2 + $0x2b8] sm:$0xff]  ;;  %v1172_v23 = vld [vmem:[#allocation2 + $0x2b0] sm:$0xff] }
 0x246   : > { %v3128_v24 = vadd.f32 %v3022_v26, %v2907_v15  ;;  %v3348_v43 = vadd.f32 %v3242_v55, %v3127_v22  ;;  %v1388_v56 = vadd.f32 %v9721_v50, %v1282_v16  ;;  %v9724_v53 = vadd.f32 %v2145_v33, %v2030_v38  ;;  %v1817_v33 = vld [vmem:[#allocation2 + $0x2aa] sm:$0xff] }
 0x247   : > { %v1387_v13 = vadd.f32 %v9721_v50, %v1281_v14  ;;  %v1604_v60 = vmul.f32 %v9714_v6, %v1493_v48  ;;  %v1709_v25 = vadd.f32 %v1603_v47, %v1386_v1  ;;  %v1926_v12 = vmul.f32 %v9728_v49, %v1815_v58  ;;  %v950_v26 = vpop.permute.xlu0 %949 }
 0x248   : > { %v3349_v35 = vadd.f32 %v3243_v54, %v3128_v24  ;;  %v3454_v11 = vmax.f32 %v3348_v43, 0.0  ;;  %v2144_v42 = vmul.f32 %v9708_v51, %v1170_v3  ;;  %v9732_v40 = vadd.f32 %v2804_v37, %v2689_v32  ;;  %1076 = vst.msk [vmem:[#allocation2 + $0x388] sm:$0xff] %vm962_vm0, %v950_v26 }
 0x249   : > { %v1710_v63 = vadd.f32 %v1604_v60, %v1387_v13  ;;  %v1927_v62 = vmul.f32 %v9728_v49, %v1816_v46  ;;  %v2364_v34 = vmul.f32 %v9363_v9, %v1492_v59  ;;  %v2032_v1 = vadd.f32 %v1926_v12, %v1709_v25 }
 0x24a   : > { %v3455_v30 = vmax.f32 %v3349_v35, 0.0  ;;  %3560 = vst.msk [vmem:[#allocation3 + $0x248] sm:$0xff] %vm962_vm0, %v3454_v11  ;;  %v2250_v2 = vadd.f32 %v2144_v42, %v9662_v31  ;;  %v2365_v38 = vmul.f32 %v9363_v9, %v1493_v48  ;;  %v2585_v39 = vmul.f32 %v9408_v5, %v1815_v58  ;;  %v1494_v9 = vld [vmem:[#allocation2 + $0x2a9] sm:$0xff]  ;;  %v9768_v11 = vld [vmem:[#allocation5 + $0x4] ss:$0 sm:$0xff] }
 0x24b   : > { %v2470_v29 = vadd.f32 %v2364_v34, %v9685_v45  ;;  %v2803_v61 = vmul.f32 %v9371_v44, %v1170_v3  ;;  %v3023_v52 = vmul.f32 %v9448_v10, %v1492_v59  ;;  %v9745_v21 = vadd.f32 %v1927_v62, %v1710_v63  ;;  %v1495_v59 = vld [vmem:[#allocation2 + $0x2b1] sm:$0xff]  ;;  %v1175_v34 = vld [vmem:[#allocation2 + $0x2c8] sm:$0xff] }
 0x24c   : > { %3561 = vst.msk [vmem:[#allocation3 + $0x250] sm:$0xff] %vm962_vm0, %v3455_v30  ;;  %v2471_v27 = vadd.f32 %v2365_v38, %v2250_v2  ;;  %v2586_v8 = vmul.f32 %v9408_v5, %v1816_v46  ;;  %v3024_v31 = vmul.f32 %v9448_v10, %v1493_v48  ;;  %v3244_v44 = vmul.f32 %v9458_v4, %v1815_v58  ;;  %v1818_v58 = vld [vmem:[#allocation2 + $0x2b2] sm:$0xff] }
 0x24d   : > { %v2909_v45 = vadd.f32 %v2803_v61, %v9677_v36  ;;  %v3129_v55 = vadd.f32 %v3023_v52, %v9690_v18  ;;  %v1284_v3 = vmul.f32 %v9669_v19, %v1173_v57  ;;  %v2691_v16 = vadd.f32 %v2585_v39, %v2470_v29  ;;  %v9757_v36 = vld [vmem:[#allocation5 + $0x6] ss:$0 sm:$0xff]  ;;  %v1174_v61 = vld [vmem:[#allocation2 + $0x2c0] sm:$0xff] }
 0x24e   : > { %v3245_v32 = vmul.f32 %v9458_v4, %v1816_v46  ;;  %v2147_v15 = vmul.f32 %v9708_v51, %v1173_v57  ;;  %v1283_v22 = vmul.f32 %v9669_v19, %v1172_v23  ;;  %v2806_v18 = vmul.f32 %v9757_v36, %v1173_v57  ;;  %v1496_v52 = vld [vmem:[#allocation2 + $0x2b9] sm:$0xff] }
 0x24f   : > { %v3130_v48 = vadd.f32 %v3024_v31, %v2909_v45  ;;  %v3350_v7 = vadd.f32 %v3244_v44, %v3129_v55  ;;  %v1605_v28 = vmul.f32 %v9714_v6, %v1494_v9  ;;  %v9761_v54 = vadd.f32 %v2586_v8, %v2471_v27  ;;  %v1497_v55 = vld [vmem:[#allocation2 + $0x2c1] sm:$0xff] }
 0x250   : > { %v1390_v37 = vadd.f32 %v9721_v50, %v1284_v3  ;;  %v1389_v14 = vadd.f32 %v9721_v50, %v1283_v22  ;;  %v1606_v47 = vmul.f32 %v9714_v6, %v1495_v59  ;;  %v1928_v13 = vmul.f32 %v9728_v49, %v1817_v33  ;;  %v1820_v22 = vld [vmem:[#allocation2 + $0x2c2] sm:$0xff] }
 0x251   : > { %v3351_v24 = vadd.f32 %v3245_v32, %v3130_v48  ;;  %v3456_v43 = vmax.f32 %v3350_v7, 0.0  ;;  %v1711_v46 = vadd.f32 %v1605_v28, %v1388_v56  ;;  %v2253_v60 = vadd.f32 %v2147_v15, %v2032_v1 }
 0x252   : > { %v1712_v25 = vadd.f32 %v1606_v47, %v1389_v14  ;;  %v2146_v35 = vmul.f32 %v9708_v51, %v1172_v23  ;;  %v2366_v12 = vmul.f32 %v9768_v11, %v1494_v9  ;;  %v9772_v17 = vadd.f32 %v2806_v18, %v2691_v16 }
 0x253   : > { %v3457_v42 = vmax.f32 %v3351_v24, 0.0  ;;  %3562 = vst.msk [vmem:[#allocation3 + $0x258] sm:$0xff] %vm962_vm0, %v3456_v43  ;;  %v1929_v63 = vmul.f32 %v9728_v49, %v1818_v58  ;;  %v2034_v62 = vadd.f32 %v1928_v13, %v1711_v46  ;;  %v2367_v30 = vmul.f32 %v9768_v11, %v1495_v59 }
 0x254   : > { %v2252_v56 = vadd.f32 %v2146_v35, %v9698_v41  ;;  %v2472_v1 = vadd.f32 %v2366_v12, %v9724_v53  ;;  %v2587_v2 = vmul.f32 %v9408_v5, %v1817_v33  ;;  %v2588_v57 = vmul.f32 %v9408_v5, %v1818_v58  ;;  %v1177_v12 = vld [vmem:[#allocation2 + $0x2d8] sm:$0xff] }
 0x255   : > { %3563 = vst.msk [vmem:[#allocation3 + $0x260] sm:$0xff] %vm962_vm0, %v3457_v42  ;;  %v9780_v38 = vadd.f32 %v1929_v63, %v1712_v25  ;;  %v2805_v29 = vmul.f32 %v9757_v36, %v1172_v23  ;;  %v3025_v39 = vmul.f32 %v9448_v10, %v1494_v9  ;;  %v3026_v41 = vmul.f32 %v9448_v10, %v1495_v59  ;;  %v1819_v59 = vld [vmem:[#allocation2 + $0x2ba] sm:$0xff]  ;;  %v9811_v63 = vld [vmem:[#allocation5 + $0x5] ss:$0 sm:$0xff] }
 0x256   : > { %v2473_v27 = vadd.f32 %v2367_v30, %v2252_v56  ;;  %v3246_v8 = vmul.f32 %v9458_v4, %v1817_v33  ;;  %v1286_v53 = vmul.f32 %v9669_v19, %v1175_v34  ;;  %v2693_v31 = vadd.f32 %v2587_v2, %v2472_v1  ;;  %v1176_v30 = vld [vmem:[#allocation2 + $0x2d0] sm:$0xff] }
 0x257   : > { %v2911_v26 = vadd.f32 %v2805_v29, %v9719_v20  ;;  %v3131_v45 = vadd.f32 %v3025_v39, %v9732_v40  ;;  %v2149_v5 = vmul.f32 %v9708_v51, %v1175_v34  ;;  %v3247_v23 = vmul.f32 %v9458_v4, %v1818_v58  ;;  %v1498_v29 = vld [vmem:[#allocation2 + $0x2c9] sm:$0xff] }
 0x258   : > { %v2808_v9 = vmul.f32 %v9757_v36, %v1175_v34  ;;  %v1285_v44 = vmul.f32 %v9669_v19, %v1174_v61  ;;  %v1607_v3 = vmul.f32 %v9714_v6, %v1496_v52  ;;  %v9795_v16 = vadd.f32 %v2588_v57, %v2473_v27 }
 0x259   : > { %v3132_v32 = vadd.f32 %v3026_v41, %v2911_v26  ;;  %v3352_v15 = vadd.f32 %v3246_v8, %v3131_v45  ;;  %v1392_v20 = vadd.f32 %v9721_v50, %v1286_v53  ;;  %v9798_v40 = vadd.f32 %v2149_v5, %v2034_v62  ;;  %v1821_v26 = vld [vmem:[#allocation2 + $0x2ca] sm:$0xff] }
 0x25a   : > { %v1391_v33 = vadd.f32 %v9721_v50, %v1285_v44  ;;  %v1608_v48 = vmul.f32 %v9714_v6, %v1497_v55  ;;  %v1713_v7 = vadd.f32 %v1607_v3, %v1390_v37  ;;  %v1930_v14 = vmul.f32 %v9728_v49, %v1819_v59 }
 0x25b   : > { %v3353_v18 = vadd.f32 %v3247_v23, %v3132_v32  ;;  %v3458_v28 = vmax.f32 %v3352_v15, 0.0  ;;  %v2148_v47 = vmul.f32 %v9708_v51, %v1174_v61  ;;  %v9804_v58 = vadd.f32 %v2808_v9, %v2693_v31 }
 0x25c   : > { %v1714_v24 = vadd.f32 %v1608_v48, %v1391_v33  ;;  %v1931_v43 = vmul.f32 %v9728_v49, %v1820_v22  ;;  %v2368_v46 = vmul.f32 %v9768_v11, %v1496_v52  ;;  %v2036_v25 = vadd.f32 %v1930_v14, %v1713_v7 }
 0x25d   : > { %v3459_v13 = vmax.f32 %v3353_v18, 0.0  ;;  %3564 = vst.msk [vmem:[#allocation3 + $0x268] sm:$0xff] %vm962_vm0, %v3458_v28  ;;  %v2254_v35 = vadd.f32 %v2148_v47, %v9745_v21  ;;  %v2369_v37 = vmul.f32 %v9768_v11, %v1497_v55  ;;  %v2589_v62 = vmul.f32 %v9811_v63, %v1819_v59  ;;  %v1179_v47 = vld [vmem:[#allocation2 + $0x2e8] sm:$0xff] }
 0x25e   : > { %v2474_v42 = vadd.f32 %v2368_v46, %v2253_v60  ;;  %v2807_v34 = vmul.f32 %v9757_v36, %v1174_v61  ;;  %v3027_v56 = vmul.f32 %v9448_v10, %v1496_v52  ;;  %v9817_v1 = vadd.f32 %v1931_v43, %v1714_v24  ;;  %v1499_v52 = vld [vmem:[#allocation2 + $0x2d1] sm:$0xff] }
 0x25f   : > { %3565 = vst.msk [vmem:[#allocation3 + $0x270] sm:$0xff] %vm962_vm0, %v3459_v13  ;;  %v2475_v2 = vadd.f32 %v2369_v37, %v2254_v35  ;;  %v2590_v21 = vmul.f32 %v9811_v63, %v1820_v22  ;;  %v3028_v57 = vmul.f32 %v9448_v10, %v1497_v55  ;;  %v3248_v27 = vmul.f32 %v9458_v4, %v1819_v59  ;;  %v9851_v37 = vld [vmem:[#allocation5 + $0x7] ss:$0 sm:$0xff] }
 0x260   : > { %v2913_v60 = vadd.f32 %v2807_v34, %v9761_v54  ;;  %v3133_v39 = vadd.f32 %v3027_v56, %v9772_v17  ;;  %v1288_v61 = vmul.f32 %v9669_v19, %v1177_v12  ;;  %v2695_v41 = vadd.f32 %v2589_v62, %v2474_v42  ;;  %v1178_v42 = vld [vmem:[#allocation2 + $0x2e0] sm:$0xff] }
 0x261   : > { %v3249_v8 = vmul.f32 %v9458_v4, %v1820_v22  ;;  %v2151_v53 = vmul.f32 %v9708_v51, %v1177_v12  ;;  %v1287_v31 = vmul.f32 %v9669_v19, %v1176_v30  ;;  %v2810_v5 = vmul.f32 %v9757_v36, %v1177_v12  ;;  %v1822_v4 = vld [vmem:[#allocation2 + $0x2d2] sm:$0xff] }
 0x262   : > { %v3134_v45 = vadd.f32 %v3028_v57, %v2913_v60  ;;  %v3354_v10 = vadd.f32 %v3248_v27, %v3133_v39  ;;  %v1609_v54 = vmul.f32 %v9714_v6, %v1498_v29  ;;  %v9830_v17 = vadd.f32 %v2590_v21, %v2475_v2  ;;  %v1501_v39 = vld [vmem:[#allocation2 + $0x2e1] sm:$0xff] }
 0x263   : > { %v1394_v55 = vadd.f32 %v9721_v50, %v1288_v61  ;;  %v1393_v23 = vadd.f32 %v9721_v50, %v1287_v31  ;;  %v1610_v9 = vmul.f32 %v9714_v6, %v1499_v52  ;;  %v1932_v32 = vmul.f32 %v9728_v49, %v1821_v26 }
 0x264   : > { %v3355_v44 = vadd.f32 %v3249_v8, %v3134_v45  ;;  %v3460_v3 = vmax.f32 %v3354_v10, 0.0  ;;  %v1715_v59 = vadd.f32 %v1609_v54, %v1392_v20  ;;  %v2257_v15 = vadd.f32 %v2151_v53, %v2036_v25 }
 0x265   : > { %v1716_v22 = vadd.f32 %v1610_v9, %v1393_v23  ;;  %v2150_v33 = vmul.f32 %v9708_v51, %v1176_v30  ;;  %v2370_v48 = vmul.f32 %v9768_v11, %v1498_v29  ;;  %v9839_v18 = vadd.f32 %v2810_v5, %v2695_v41  ;;  %v1823_v41 = vld [vmem:[#allocation2 + $0x2da] sm:$0xff] }
 0x266   : > { %v3461_v7 = vmax.f32 %v3355_v44, 0.0  ;;  %3566 = vst.msk [vmem:[#allocation3 + $0x278] sm:$0xff] %vm962_vm0, %v3460_v3  ;;  %v1933_v28 = vmul.f32 %v9728_v49, %v1822_v4  ;;  %v2038_v14 = vadd.f32 %v1932_v32, %v1715_v59  ;;  %v2371_v20 = vmul.f32 %v9768_v11, %v1499_v52 }
 0x267   : > { %v2256_v24 = vadd.f32 %v2150_v33, %v9780_v38  ;;  %v2476_v43 = vadd.f32 %v2370_v48, %v9798_v40  ;;  %v2591_v46 = vmul.f32 %v9811_v63, %v1821_v26  ;;  %v2592_v25 = vmul.f32 %v9811_v63, %v1822_v4  ;;  %v1500_v38 = vld [vmem:[#allocation2 + $0x2d9] sm:$0xff]  ;;  %v9855_v40 = vld [vmem:[#allocation5 + $0x8] ss:$0 sm:$0xff] }
 0x268   : > { %3567 = vst.msk [vmem:[#allocation3 + $0x280] sm:$0xff] %vm962_vm0, %v3461_v7  ;;  %v9847_v13 = vadd.f32 %v1933_v28, %v1716_v22  ;;  %v2809_v35 = vmul.f32 %v9757_v36, %v1176_v30  ;;  %v3029_v12 = vmul.f32 %v9851_v37, %v1498_v29  ;;  %v3030_v34 = vmul.f32 %v9851_v37, %v1499_v52  ;;  %v1181_v7 = vld [vmem:[#allocation2 + $0x2f8] sm:$0xff] }
 0x269   : > { %v2477_v62 = vadd.f32 %v2371_v20, %v2256_v24  ;;  %v3250_v56 = vmul.f32 %v9855_v40, %v1821_v26  ;;  %v1290_v2 = vmul.f32 %v9669_v19, %v1179_v47  ;;  %v2697_v21 = vadd.f32 %v2591_v46, %v2476_v43  ;;  %v1824_v26 = vld [vmem:[#allocation2 + $0x2e2] sm:$0xff]  ;;  %v7754_v28 = vld [vmem:[%s11984_s3 + $0x38] sm:$0xff]   ;;  %v1180_v43 = vld [vmem:[#allocation2 + $0x2f0] sm:$0xff] }
 0x26a   : > { %v2915_v57 = vadd.f32 %v2809_v35, %v9795_v16  ;;  %v3135_v30 = vadd.f32 %v3029_v12, %v9804_v58  ;;  %v2153_v60 = vmul.f32 %v9708_v51, %v1179_v47  ;;  %v3251_v29 = vmul.f32 %v9855_v40, %v1822_v4  ;;  %v1502_v12 = vld [vmem:[#allocation2 + $0x2e9] sm:$0xff]  ;;  %7659 = vmatpush1.bf16.msra.mxu1 %v7754_v28 }
 0x26b   : > { %v2812_v27 = vmul.f32 %v9757_v36, %v1179_v47  ;;  %v1289_v61 = vmul.f32 %v9669_v19, %v1178_v42  ;;  %v1611_v52 = vmul.f32 %v9714_v6, %v1500_v38  ;;  %v9866_v8 = vadd.f32 %v2592_v25, %v2477_v62  ;;  %7644 = vmatprep.subr.bf16.mxu1 %v7925_v0 }
 0x26c   : > { %v3136_v53 = vadd.f32 %v3030_v34, %v2915_v57  ;;  %v3356_v31 = vadd.f32 %v3250_v56, %v3135_v30  ;;  %v1396_v16 = vadd.f32 %v9721_v50, %v1290_v2  ;;  %v9869_v58 = vadd.f32 %v2153_v60, %v2038_v14  ;;  %v1503_v34 = vld [vmem:[#allocation2 + $0x2f1] sm:$0xff]  ;;  %5855 = vmatpush1.bf16.msra.mxu0 %v7754_v28 }
 0x26d   : > { %v1395_v45 = vadd.f32 %v9721_v50, %v1289_v61  ;;  %v1612_v10 = vmul.f32 %v9714_v6, %v1501_v39  ;;  %v1717_v5 = vadd.f32 %v1611_v52, %v1394_v55  ;;  %v1934_v9 = vmul.f32 %v9728_v49, %v1823_v41  ;;  %v7755_v56 = vld [vmem:[%s11984_s3 + $0x30] sm:$0xff]   ;;  %5856 = vmatprep.subr.bf16.mxu0 %v7925_v0 }
 0x26e   : > { %v3357_v54 = vadd.f32 %v3251_v29, %v3136_v53  ;;  %v3462_v23 = vmax.f32 %v3356_v31, 0.0  ;;  %v2152_v4 = vmul.f32 %v9708_v51, %v1178_v42  ;;  %v9875_v44 = vadd.f32 %v2812_v27, %v2697_v21  ;;  %v1825_v30 = vld [vmem:[#allocation2 + $0x2ea] sm:$0xff]  ;;  %v1826_v53 = vld [vmem:[#allocation2 + $0x2f2] sm:$0xff]  ;;  %7660 = vmatpush1.bf16.msra.mxu1 %v7755_v56 }
 0x26f   : > { %v1718_v3 = vadd.f32 %v1612_v10, %v1395_v45  ;;  %v1935_v59 = vmul.f32 %v9728_v49, %v1824_v26  ;;  %v2372_v32 = vmul.f32 %v9768_v11, %v1500_v38  ;;  %v2040_v33 = vadd.f32 %v1934_v9, %v1717_v5  ;;  %7645 = vmatprep.subr.bf16.mxu1 %v7925_v0 }
 0x270   : > { %v3463_v22 = vmax.f32 %v3357_v54, 0.0  ;;  %3568 = vst.msk [vmem:[#allocation3 + $0x288] sm:$0xff] %vm962_vm0, %v3462_v23  ;;  %v2258_v48 = vadd.f32 %v2152_v4, %v9817_v1  ;;  %v2373_v55 = vmul.f32 %v9768_v11, %v1501_v39  ;;  %v2593_v47 = vmul.f32 %v9811_v63, %v1823_v41  ;;  %v7756_v4 = vld [vmem:[%s11984_s3 + $0x28] sm:$0xff]   ;;  %5857 = vmatpush1.bf16.msra.mxu0 %v7755_v56 }
 0x271   : > { %v2478_v14 = vadd.f32 %v2372_v32, %v2257_v15  ;;  %v2811_v24 = vmul.f32 %v9757_v36, %v1178_v42  ;;  %v3031_v20 = vmul.f32 %v9851_v37, %v1500_v38  ;;  %v9889_v46 = vadd.f32 %v1935_v59, %v1718_v3  ;;  %5858 = vmatprep.subr.bf16.mxu0 %v7925_v0 }
 0x272   : > { %3569 = vst.msk [vmem:[#allocation3 + $0x290] sm:$0xff] %vm962_vm0, %v3463_v22  ;;  %v2479_v1 = vadd.f32 %v2373_v55, %v2258_v48  ;;  %v2594_v25 = vmul.f32 %v9811_v63, %v1824_v26  ;;  %v3032_v35 = vmul.f32 %v9851_v37, %v1501_v39  ;;  %v3252_v42 = vmul.f32 %v9855_v40, %v1823_v41  ;;  %v1183_v22 = vld [vmem:[#allocation2 + $0x308] sm:$0xff] }
 0x273   : > { %v2917_v15 = vadd.f32 %v2811_v24, %v9830_v17  ;;  %v3137_v62 = vadd.f32 %v3031_v20, %v9839_v18  ;;  %v1292_v38 = vmul.f32 %v9669_v19, %v1181_v7  ;;  %v2699_v2 = vadd.f32 %v2593_v47, %v2478_v14  ;;  %7661 = vmatpush1.bf16.msra.mxu1 %v7756_v4  ;;  %v1182_v20 = vld [vmem:[#allocation2 + $0x300] sm:$0xff] }
 0x274   : > { %v3253_v21 = vmul.f32 %v9855_v40, %v1824_v26  ;;  %v2155_v57 = vmul.f32 %v9708_v51, %v1181_v7  ;;  %v1291_v17 = vmul.f32 %v9669_v19, %v1180_v43  ;;  %v2814_v39 = vmul.f32 %v9757_v36, %v1181_v7  ;;  %7646 = vmatprep.subr.bf16.mxu1 %v7925_v0 }
 0x275   : > { %v3138_v18 = vadd.f32 %v3032_v35, %v2917_v15  ;;  %v3358_v60 = vadd.f32 %v3252_v42, %v3137_v62  ;;  %v1613_v29 = vmul.f32 %v9714_v6, %v1502_v12  ;;  %v9907_v27 = vadd.f32 %v2594_v25, %v2479_v1  ;;  %v1504_v1 = vld [vmem:[#allocation2 + $0x2f9] sm:$0xff]  ;;  %5859 = vmatpush1.bf16.msra.mxu0 %v7756_v4 }
 0x276   : > { %v9910_v61 = vadd.f32 %v9721_v50, %v1292_v38  ;;  %v1397_v52 = vadd.f32 %v9721_v50, %v1291_v17  ;;  %v1614_v41 = vmul.f32 %v9714_v6, %v1503_v34  ;;  %v1936_v10 = vmul.f32 %v9728_v49, %v1825_v30  ;;  %v1505_v38 = vld [vmem:[#allocation2 + $0x301] sm:$0xff]  ;;  %5860 = vmatprep.subr.bf16.mxu0 %v7925_v0 }
 0x277   : > { %v3359_v31 = vadd.f32 %v3253_v21, %v3138_v18  ;;  %v3464_v26 = vmax.f32 %v3358_v60, 0.0  ;;  %v1719_v45 = vadd.f32 %v1613_v29, %v1396_v16  ;;  %v9916_v5 = vadd.f32 %v2155_v57, %v2040_v33  ;;  %v1827_v57 = vld [vmem:[#allocation2 + $0x2fa] sm:$0xff]  ;;  %v1828_v18 = vld [vmem:[#allocation2 + $0x302] sm:$0xff] }
 0x278   : > { %v1720_v54 = vadd.f32 %v1614_v41, %v1397_v52  ;;  %v2154_v23 = vmul.f32 %v9708_v51, %v1180_v43  ;;  %v2374_v9 = vmul.f32 %v9768_v11, %v1502_v12  ;;  %v9924_v16 = vadd.f32 %v2814_v39, %v2699_v2  ;;  %v7758_v60 = vld [vmem:[%s11984_s3 + $0x18] sm:$0xff]  }
 0x279   : > { %v3465_v3 = vmax.f32 %v3359_v31, 0.0  ;;  %3570 = vst.msk [vmem:[#allocation3 + $0x298] sm:$0xff] %vm962_vm0, %v3464_v26  ;;  %v1937_v59 = vmul.f32 %v9728_v49, %v1826_v53  ;;  %v2042_v32 = vadd.f32 %v1936_v10, %v1719_v45  ;;  %v2375_v48 = vmul.f32 %v9768_v11, %v1503_v34 }
 0x27a   : > { %v2260_v33 = vadd.f32 %v2154_v23, %v9847_v13  ;;  %v2480_v55 = vadd.f32 %v2374_v9, %v9869_v58  ;;  %v2595_v7 = vmul.f32 %v9811_v63, %v1825_v30  ;;  %v2596_v14 = vmul.f32 %v9811_v63, %v1826_v53  ;;  %v7757_v13 = vld [vmem:[%s11984_s3 + $0x20] sm:$0xff]  }
 0x27b   : > { %3571 = vst.msk [vmem:[#allocation3 + $0x2a0] sm:$0xff] %vm962_vm0, %v3465_v3  ;;  %v9933_v28 = vadd.f32 %v1937_v59, %v1720_v54  ;;  %v2813_v47 = vmul.f32 %v9757_v36, %v1180_v43  ;;  %v3033_v24 = vmul.f32 %v9851_v37, %v1502_v12  ;;  %v3034_v25 = vmul.f32 %v9851_v37, %v1503_v34 }
 0x27c   : > { %v2481_v58 = vadd.f32 %v2375_v48, %v2260_v33  ;;  %v3254_v35 = vmul.f32 %v9855_v40, %v1825_v30  ;;  %v1294_v15 = vmul.f32 %v9669_v19, %v1183_v22  ;;  %v2701_v62 = vadd.f32 %v2595_v7, %v2480_v55  ;;  %7662 = vmatpush1.bf16.msra.mxu1 %v7757_v13 }
 0x27d   : > { %v2919_v43 = vadd.f32 %v2813_v47, %v9866_v8  ;;  %v3139_v12 = vadd.f32 %v3033_v24, %v9875_v44  ;;  %v2157_v42 = vmul.f32 %v9708_v51, %v1183_v22  ;;  %v3255_v56 = vmul.f32 %v9855_v40, %v1826_v53  ;;  %7647 = vmatprep.subr.bf16.mxu1 %v7925_v0 }
 0x27e   : > { %v2816_v2 = vmul.f32 %v9757_v36, %v1183_v22  ;;  %v1293_v34 = vmul.f32 %v9669_v19, %v1182_v20  ;;  %v1615_v21 = vmul.f32 %v9714_v6, %v1504_v1  ;;  %v9953_v17 = vadd.f32 %v2596_v14, %v2481_v58  ;;  %5861 = vmatpush1.bf16.msra.mxu0 %v7757_v13  ;;  %v7759_v22 = vld [vmem:[%s11984_s3 + $0x10] sm:$0xff]  }
 0x27f   : > { %v3140_v8 = vadd.f32 %v3034_v25, %v2919_v43  ;;  %v3360_v30 = vadd.f32 %v3254_v35, %v3139_v12  ;;  %v9956_v44 = vadd.f32 %v9721_v50, %v1294_v15  ;;  %v9962_v39 = vadd.f32 %v2157_v42, %v2042_v32  ;;  %5862 = vmatprep.subr.bf16.mxu0 %v7925_v0  ;;  %v1185_v32 = vld [vmem:[#allocation2 + $0x318] sm:$0xff]  ;;  %v1184_v14 = vld [vmem:[#allocation2 + $0x310] sm:$0xff] }
 0x280   : > { %v1399_v29 = vadd.f32 %v9721_v50, %v1293_v34  ;;  %v1616_v52 = vmul.f32 %v9714_v6, %v1505_v38  ;;  %v1721_v41 = vadd.f32 %v1615_v21, %v9910_v61  ;;  %v1938_v26 = vmul.f32 %v9728_v49, %v1827_v57  ;;  %7663 = vmatpush1.bf16.msra.mxu1 %v7758_v60  ;;  %v1506_v58 = vld [vmem:[#allocation2 + $0x309] sm:$0xff]  ;;  %v1507_v35 = vld [vmem:[#allocation2 + $0x311] sm:$0xff] }
 0x281   : > { %v3361_v53 = vadd.f32 %v3255_v56, %v3140_v8  ;;  %v3466_v31 = vmax.f32 %v3360_v30, 0.0  ;;  %v2156_v45 = vmul.f32 %v9708_v51, %v1182_v20  ;;  %v9970_v10 = vadd.f32 %v2816_v2, %v2701_v62  ;;  %7648 = vmatprep.subr.bf16.mxu1 %v7925_v0  ;;  %v1829_v42 = vld [vmem:[#allocation2 + $0x30a] sm:$0xff]  ;;  %v1830_v30 = vld [vmem:[#allocation2 + $0x312] sm:$0xff] }
 0x282   : > { %v1722_v54 = vadd.f32 %v1616_v52, %v1399_v29  ;;  %v1939_v23 = vmul.f32 %v9728_v49, %v1828_v18  ;;  %v2376_v9 = vmul.f32 %v9768_v11, %v1504_v1  ;;  %v2044_v61 = vadd.f32 %v1938_v26, %v1721_v41  ;;  %5863 = vmatpush1.bf16.msra.mxu0 %v7758_v60 }
 0x283   : > { %v3467_v4 = vmax.f32 %v3361_v53, 0.0  ;;  %3572 = vst.msk [vmem:[#allocation3 + $0x2a8] sm:$0xff] %vm962_vm0, %v3466_v31  ;;  %v2262_v3 = vadd.f32 %v2156_v45, %v9889_v46  ;;  %v2377_v59 = vmul.f32 %v9768_v11, %v1505_v38  ;;  %v2597_v48 = vmul.f32 %v9811_v63, %v1827_v57  ;;  %5864 = vmatprep.subr.bf16.mxu0 %v7925_v0  ;;  %v7761_v45 = vld [vmem:[%s11984_s3] sm:$0xff]  }
 0x284   : > { %v2482_v33 = vadd.f32 %v2376_v9, %v9916_v5  ;;  %v2815_v55 = vmul.f32 %v9757_v36, %v1182_v20  ;;  %v3035_v7 = vmul.f32 %v9851_v37, %v1504_v1  ;;  %v9986_v46 = vadd.f32 %v1939_v23, %v1722_v54  ;;  %7664 = vmatpush1.bf16.msra.mxu1 %v7759_v22 }
 0x285   : > { %3573 = vst.msk [vmem:[#allocation3 + $0x2b0] sm:$0xff] %vm962_vm0, %v3467_v4  ;;  %v2483_v47 = vadd.f32 %v2377_v59, %v2262_v3  ;;  %v2598_v24 = vmul.f32 %v9811_v63, %v1828_v18  ;;  %v3036_v13 = vmul.f32 %v9851_v37, %v1505_v38  ;;  %v3256_v1 = vmul.f32 %v9855_v40, %v1827_v57  ;;  %v1187_v4 = vld [vmem:[#allocation2 + $0x328] sm:$0xff] }
 0x286   : > { %v2921_v5 = vadd.f32 %v2815_v55, %v9907_v27  ;;  %v3141_v20 = vadd.f32 %v3035_v7, %v9924_v16  ;;  %v1296_v25 = vmul.f32 %v9669_v19, %v1185_v32  ;;  %v2703_v15 = vadd.f32 %v2597_v48, %v2482_v33  ;;  %7649 = vmatprep.subr.bf16.mxu1 %v7925_v0  ;;  %v7760_v27 = vld [vmem:[%s11984_s3 + $0x8] sm:$0xff]   ;;  %v1186_v7 = vld [vmem:[#allocation2 + $0x320] sm:$0xff] }
 0x287   : > { %v3257_v62 = vmul.f32 %v9855_v40, %v1828_v18  ;;  %v2159_v43 = vmul.f32 %v9708_v51, %v1185_v32  ;;  %v1295_v12 = vmul.f32 %v9669_v19, %v1184_v14  ;;  %v2818_v56 = vmul.f32 %v9757_v36, %v1185_v32  ;;  %5865 = vmatpush1.bf16.msra.mxu0 %v7759_v22 }
 0x288   : > { %v3142_v16 = vadd.f32 %v3036_v13, %v2921_v5  ;;  %v3362_v38 = vadd.f32 %v3256_v1, %v3141_v20  ;;  %v1617_v2 = vmul.f32 %v9714_v6, %v1506_v58  ;;  %v10004_v34 = vadd.f32 %v2598_v24, %v2483_v47  ;;  %5866 = vmatprep.subr.bf16.mxu0 %v7925_v0  ;;  %v7762_v5 = vld [vmem:[%s11984_s3 + $0x78] sm:$0xff]  }
 0x289   : > { %v10007_v21 = vadd.f32 %v9721_v50, %v1296_v25  ;;  %v1401_v57 = vadd.f32 %v9721_v50, %v1295_v12  ;;  %v1618_v8 = vmul.f32 %v9714_v6, %v1507_v35  ;;  %v1940_v52 = vmul.f32 %v9728_v49, %v1829_v42  ;;  %7665 = vmatpush1.bf16.msra.mxu1 %v7760_v27  ;;  %v1509_v25 = vld [vmem:[#allocation2 + $0x321] sm:$0xff] }
 0x28a   : > { %v3363_v18 = vadd.f32 %v3257_v62, %v3142_v16  ;;  %v3468_v60 = vmax.f32 %v3362_v38, 0.0  ;;  %v1723_v29 = vadd.f32 %v1617_v2, %v9956_v44  ;;  %v10014_v41 = vadd.f32 %v2159_v43, %v2044_v61  ;;  %7650 = vmatprep.subr.bf16.mxu1 %v7925_v0  ;;  %v1831_v12 = vld [vmem:[#allocation2 + $0x31a] sm:$0xff]  ;;  %v1832_v16 = vld [vmem:[#allocation2 + $0x322] sm:$0xff] }
 0x28b   : > { %v1724_v53 = vadd.f32 %v1618_v8, %v1401_v57  ;;  %v2158_v31 = vmul.f32 %v9708_v51, %v1184_v14  ;;  %v2378_v26 = vmul.f32 %v9768_v11, %v1506_v58  ;;  %v10023_v44 = vadd.f32 %v2818_v56, %v2703_v15  ;;  %5867 = vmatpush1.bf16.msra.mxu0 %v7760_v27 }
 0x28c   : > { %v3469_v54 = vmax.f32 %v3363_v18, 0.0  ;;  %3574 = vst.msk [vmem:[#allocation3 + $0x2b8] sm:$0xff] %vm962_vm0, %v3468_v60  ;;  %v1941_v23 = vmul.f32 %v9728_v49, %v1830_v30  ;;  %v2046_v9 = vadd.f32 %v1940_v52, %v1723_v29  ;;  %v2379_v3 = vmul.f32 %v9768_v11, %v1507_v35  ;;  %5868 = vmatprep.subr.bf16.mxu0 %v7925_v0  ;;  %v7763_v60 = vld [vmem:[%s11984_s3 + $0x70] sm:$0xff]  }
 0x28d   : > { %v2264_v61 = vadd.f32 %v2158_v31, %v9933_v28  ;;  %v2484_v59 = vadd.f32 %v2378_v26, %v9962_v39  ;;  %v2599_v32 = vmul.f32 %v9811_v63, %v1829_v42  ;;  %v2600_v33 = vmul.f32 %v9811_v63, %v1830_v30  ;;  %v1508_v28 = vld [vmem:[#allocation2 + $0x319] sm:$0xff]  ;;  %7666 = vmatpush1.bf16.msra.mxu1 %v7761_v45 }
 0x28e   : > { %3575 = vst.msk [vmem:[#allocation3 + $0x2c0] sm:$0xff] %vm962_vm0, %v3469_v54  ;;  %v10032_v22 = vadd.f32 %v1941_v23, %v1724_v53  ;;  %v2817_v48 = vmul.f32 %v9757_v36, %v1184_v14  ;;  %v3037_v55 = vmul.f32 %v9851_v37, %v1506_v58  ;;  %v3038_v39 = vmul.f32 %v9851_v37, %v1507_v35  ;;  %v3958_v23 = vld [vmem:[#allocation3 + $0x26a] sm:$0xff] }
 0x28f   : > { %v2485_v47 = vadd.f32 %v2379_v3, %v2264_v61  ;;  %v3258_v24 = vmul.f32 %v9855_v40, %v1829_v42  ;;  %v1298_v13 = vmul.f32 %v9669_v19, %v1187_v4  ;;  %7651 = vmatprep.subr.bf16.mxu1 %v7925_v0  ;;  %v2705_v20 = vadd.f32 %v2599_v32, %v2484_v59  ;;  %v1189_v59 = vld [vmem:[#allocation2 + $0x338] sm:$0xff]  ;;  %v7764_v32 = vld [vmem:[%s11984_s3 + $0x68] sm:$0xff]  }
 0x290   : > { %v2923_v14 = vadd.f32 %v2817_v48, %v9953_v17  ;;  %v3143_v58 = vadd.f32 %v3037_v55, %v9970_v10  ;;  %v2161_v1 = vmul.f32 %v9708_v51, %v1187_v4  ;;  %5869 = vmatpush1.bf16.msra.mxu0 %v7761_v45  ;;  %v3259_v35 = vmul.f32 %v9855_v40, %v1830_v30  ;;  %v3957_v55 = vld [vmem:[#allocation3 + $0x262] sm:$0xff] }
 0x291   : > { %v2820_v15 = vmul.f32 %v9757_v36, %v1187_v4  ;;  %v1297_v62 = vmul.f32 %v9669_v19, %v1186_v7  ;;  %v1619_v43 = vmul.f32 %v9714_v6, %v1508_v28  ;;  %5870 = vmatprep.subr.bf16.mxu0 %v7925_v0  ;;  %v10052_v42 = vadd.f32 %v2600_v33, %v2485_v47  ;;  %v1510_v47 = vld [vmem:[#allocation2 + $0x329] sm:$0xff] }
 0x292   : > { %v3144_v17 = vadd.f32 %v3038_v39, %v2923_v14  ;;  %v3364_v27 = vadd.f32 %v3258_v24, %v3143_v58  ;;  %v10055_v10 = vadd.f32 %v9721_v50, %v1298_v13  ;;  %7667 = vmatpush2.bf16.msra.mxu1 %v7762_v5  ;;  %v10057_v38 = vadd.f32 %v2161_v1, %v2046_v9  ;;  %v10094_v14 = vld [vmem:[#allocation5] ss:$0 sm:$0xff] }
 0x293   : > { %v1403_v56 = vadd.f32 %v9721_v50, %v1297_v62  ;;  %v1620_v19 = vmul.f32 %v9714_v6, %v1509_v25  ;;  %v1725_v2 = vadd.f32 %v1619_v43, %v10007_v21  ;;  %7652 = vmatprep.subr.bf16.mxu1 %v7925_v0  ;;  %v1942_v30 = vmul.f32 %v9728_v49, %v1831_v12  ;;  %v7765_v62 = vld [vmem:[%s11984_s3 + $0x60] sm:$0xff]  }
 0x294   : > { %v3365_v57 = vadd.f32 %v3259_v35, %v3144_v17  ;;  %v3470_v8 = vmax.f32 %v3364_v27, 0.0  ;;  %v2160_v18 = vmul.f32 %v9708_v51, %v1186_v7  ;;  %5871 = vmatpush2.bf16.msra.mxu0 %v7762_v5  ;;  %v10068_v29 = vadd.f32 %v2820_v15, %v2705_v20  ;;  %v1511_v5 = vld [vmem:[#allocation2 + $0x331] sm:$0xff] }
 0x295   : > { %v1726_v52 = vadd.f32 %v1620_v19, %v1403_v56  ;;  %v1943_v53 = vmul.f32 %v9728_v49, %v1832_v16  ;;  %v2380_v21 = vmul.f32 %v9768_v11, %v1508_v28  ;;  %5872 = vmatprep.subr.bf16.mxu0 %v7925_v0  ;;  %v2048_v26 = vadd.f32 %v1942_v30, %v1725_v2  ;;  %v1834_v56 = vld [vmem:[#allocation2 + $0x332] sm:$0xff] }
 0x296   : > { %v3471_v31 = vmax.f32 %v3365_v57, 0.0  ;;  %3576 = vst.msk [vmem:[#allocation3 + $0x2c8] sm:$0xff] %vm962_vm0, %v3470_v8  ;;  %v2266_v45 = vadd.f32 %v2160_v18, %v9986_v46  ;;  %v2381_v54 = vmul.f32 %v9768_v11, %v1509_v25  ;;  %7668 = vmatpush2.bf16.msra.mxu1 %v7763_v60  ;;  %v2601_v4 = vmul.f32 %v9811_v63, %v1831_v12 }
 0x297   : > { %v2486_v9 = vadd.f32 %v2380_v21, %v10014_v41  ;;  %v2819_v61 = vmul.f32 %v9757_v36, %v1186_v7  ;;  %v3039_v3 = vmul.f32 %v9851_v37, %v1508_v28  ;;  %7653 = vmatprep.subr.bf16.mxu1 %v7925_v0  ;;  %v2602_v33 = vmul.f32 %v9811_v63, %v1832_v16  ;;  %v1188_v7 = vld [vmem:[#allocation2 + $0x330] sm:$0xff] }
 0x298   : > { %3577 = vst.msk [vmem:[#allocation3 + $0x2d0] sm:$0xff] %vm962_vm0, %v3471_v31  ;;  %v2487_v46 = vadd.f32 %v2381_v54, %v2266_v45  ;;  %v3040_v41 = vmul.f32 %v9851_v37, %v1509_v25  ;;  %v3260_v48 = vmul.f32 %v9855_v40, %v1831_v12  ;;  %5873 = vmatpush2.bf16.msra.mxu0 %v7763_v60  ;;  %v3810_v45 = vld [vmem:[#allocation3 + $0x249] sm:$0xff] }
 0x299   : > { %v2925_v28 = vadd.f32 %v2819_v61, %v10004_v34  ;;  %v3145_v39 = vadd.f32 %v3039_v3, %v10023_v44  ;;  %v3261_v24 = vmul.f32 %v9855_v40, %v1832_v16  ;;  %v10091_v13 = vpack.c.bf16 %v3958_v23, %v3957_v55  ;;  %5874 = vmatprep.subr.bf16.mxu0 %v7925_v0  ;;  %v1833_v16 = vld [vmem:[#allocation2 + $0x32a] sm:$0xff]  ;;  %v7766_v23 = vld [vmem:[%s11984_s3 + $0x58] sm:$0xff]  }
 0x29a   : > { %v2707_v20 = vadd.f32 %v2601_v4, %v2486_v9  ;;  %v1300_v58 = vmul.f32 %v10094_v14, %v1189_v59  ;;  %v2163_v1 = vmul.f32 %v9708_v51, %v1189_v59  ;;  %v2822_v25 = vmul.f32 %v9757_v36, %v1189_v59  ;;  %7669 = vmatpush2.bf16.msra.mxu1 %v7764_v32  ;;  %v3674_v54 = vld [vmem:[#allocation3 + $0x288] sm:$0xff] }
 0x29b   : > { %v3146_v34 = vadd.f32 %v3040_v41, %v2925_v28  ;;  %v3366_v35 = vadd.f32 %v3260_v48, %v3145_v39  ;;  %4567 = vrot.lane.b32.xlu1 %v10091_v13, %s7926_s22  ;;  %v1299_v44 = vmul.f32 %v10094_v14, %v1188_v7  ;;  %v1621_v15 = vmul.f32 %v9714_v6, %v1510_v47  ;;  %v1191_v61 = vld [vmem:[#allocation2 + $0x348] sm:$0xff]  ;;  %v1190_v41 = vld [vmem:[#allocation2 + $0x340] sm:$0xff]  ;;  %v7767_v39 = vld [vmem:[%s11984_s3 + $0x50] sm:$0xff]  }
 0x29c   : > { %v10106_v43 = vadd.f32 %v1943_v53, %v1726_v52  ;;  %v10108_v12 = vadd.f32 %v2602_v33, %v2487_v46  ;;  %v10111_v17 = vadd.f32 %v9721_v50, %v1300_v58  ;;  %v1622_v27 = vmul.f32 %v9714_v6, %v1511_v5  ;;  %7654 = vmatprep.subr.bf16.mxu1 %v7925_v0  ;;  %v3809_v46 = vld [vmem:[#allocation3 + $0x241] sm:$0xff] }
 0x29d   : > { %v3367_v19 = vadd.f32 %v3261_v24, %v3146_v34  ;;  %v3472_v2 = vmax.f32 %v3366_v35, 0.0  ;;  %v1405_v57 = vadd.f32 %v9721_v50, %v1299_v44  ;;  %v1727_v8 = vadd.f32 %v1621_v15, %v10055_v10  ;;  %5875 = vmatpush2.bf16.msra.mxu0 %v7764_v32  ;;  %v3673_v33 = vld [vmem:[#allocation3 + $0x280] sm:$0xff]  ;;  %v7815_v15 = vld [vmem:[#allocation5 + $0x1] ss:$0 sm:$0xff] }
 0x29e   : > { %v10117_v30 = vadd.f32 %v2163_v1, %v2048_v26  ;;  %v10119_v18 = vadd.f32 %v2822_v25, %v2707_v20  ;;  %v2162_v60 = vmul.f32 %v9708_v51, %v1188_v7  ;;  %v2382_v52 = vmul.f32 %v9768_v11, %v1510_v47  ;;  %7670 = vmatpush2.bf16.msra.mxu1 %v7765_v62  ;;  %v1835_v34 = vld [vmem:[#allocation2 + $0x33a] sm:$0xff] }
 0x29f   : > { %v3473_v6 = vmax.f32 %v3367_v19, 0.0  ;;  %3578 = vst.msk [vmem:[#allocation3 + $0x2d8] sm:$0xff] %vm962_vm0, %v3472_v2  ;;  %v1728_v53 = vadd.f32 %v1622_v27, %v1405_v57  ;;  %v1944_v21 = vmul.f32 %v9728_v49, %v1833_v16  ;;  %v1945_v50 = vmul.f32 %v9728_v49, %v1834_v56  ;;  %7655 = vmatprep.subr.bf16.mxu1 %v7925_v0  ;;  %v1836_v2 = vld [vmem:[#allocation2 + $0x342] sm:$0xff] }
 0x2a0   : > { %5876 = vmatprep.subr.bf16.mxu0 %v7925_v0  ;;  %v2268_v10 = vadd.f32 %v2162_v60, %v10032_v22  ;;  %v2383_v31 = vmul.f32 %v9768_v11, %v1511_v5  ;;  %v2488_v51 = vadd.f32 %v2382_v52, %v10057_v38  ;;  %v2603_v26 = vmul.f32 %v9811_v63, %v1833_v16  ;;  %v7816_v60 = vld [vmem:[#allocation5 + $0x2] ss:$0 sm:$0xff] }
 0x2a1   : > { %3579 = vst.msk [vmem:[#allocation3 + $0x2e0] sm:$0xff] %vm962_vm0, %v3473_v6  ;;  %v2050_v49 = vadd.f32 %v1944_v21, %v1727_v8  ;;  %v2604_v9 = vmul.f32 %v9811_v63, %v1834_v56  ;;  %v2821_v4 = vmul.f32 %v9757_v36, %v1188_v7  ;;  %v3041_v22 = vmul.f32 %v9851_v37, %v1510_v47  ;;  %v1512_v47 = vld [vmem:[#allocation2 + $0x339] sm:$0xff] }
 0x2a2   : > { %5877 = vmatpush2.bf16.msra.mxu0 %v7765_v62  ;;  %v2489_v38 = vadd.f32 %v2383_v31, %v2268_v10  ;;  %v2709_v3 = vadd.f32 %v2603_v26, %v2488_v51  ;;  %v3042_v59 = vmul.f32 %v9851_v37, %v1511_v5  ;;  %v3262_v32 = vmul.f32 %v9855_v40, %v1833_v16  ;;  %v10152_v5 = vld [vmem:[#allocation5 + $0x3] ss:$0 sm:$0xff] }
 0x2a3   : > { %7671 = vmatpush2.bf16.msra.mxu1 %v7766_v23  ;;  %v2927_v48 = vadd.f32 %v2821_v4, %v10052_v42  ;;  %v3147_v55 = vadd.f32 %v3041_v22, %v10068_v29  ;;  %v10143_v28 = vpack.c.bf16 %v3810_v45, %v3809_v46  ;;  %v10145_v7 = vpack.c.bf16 %v3674_v54, %v3673_v33  ;;  %v1513_v29 = vld [vmem:[#allocation2 + $0x341] sm:$0xff]  ;;  %v3954_v45 = vld [vmem:[#allocation3 + $0x24a] sm:$0xff] }
 0x2a4   : > { %7656 = vmatprep.subr.bf16.mxu1 %v7925_v0  ;;  %v3263_v24 = vmul.f32 %v9855_v40, %v1834_v56  ;;  %v2165_v20 = vmul.f32 %v10152_v5, %v1191_v61  ;;  %v2824_v42 = vmul.f32 %v9757_v36, %v1191_v61  ;;  %5878 = vmatprep.subr.bf16.mxu0 %v7925_v0  ;;  %v7814_v36 = vld [vmem:[#allocation7] ss:$0 sm:$0xff]  ;;  %v3818_v22 = vld [vmem:[#allocation3 + $0x289] sm:$0xff]  ;;  %v2056_v61 = vld [vmem:[#allocation2 + $0x358] sm:$0xff] }
 0x2a5   : > { %12014 = vst [vmem:[#allocation12_spill] sm:$0xff] %v10143_v28  ;;  %v3148_v58 = vadd.f32 %v3042_v59, %v2927_v48  ;;  %v3368_v1 = vadd.f32 %v3262_v32, %v3147_v55  ;;  %4181 = vrot.lane.b32.xlu1 %v10143_v28, %s7926_s22  ;;  %4665 = vrot.lane.b32.xlu0 %v10145_v7, %s7927_s29  ;;  %v3953_v59 = vld [vmem:[#allocation3 + $0x242] sm:$0xff] }
 0x2a6   : > { %v1301_v25 = vmul.f32 %v10094_v14, %v1190_v41  ;;  %v10162_v35 = vadd.f32 %v1945_v50, %v1728_v53  ;;  %v10164_v44 = vadd.f32 %v2604_v9, %v2489_v38  ;;  %v1623_v62 = vmul.f32 %v7815_v15, %v1512_v47  ;;  %v10170_v14 = vld [vmem:[%s11984_s3 + $0x48] sm:$0xff]   ;;  %5879 = vmatpush2.bf16.msra.mxu0 %v7766_v23 }
 0x2a7   : > { %7672 = vmatpush2.bf16.msra.mxu1 %v7767_v39  ;;  %v3369_v27 = vadd.f32 %v3263_v24, %v3148_v58  ;;  %v3474_v16 = vmax.f32 %v3368_v1, 0.0  ;;  %v1624_v19 = vmul.f32 %v7815_v15, %v1513_v29  ;;  %v10172_v57 = vadd.f32 %v2165_v20, %v2050_v49  ;;  %5880 = vmatprep.subr.bf16.mxu0 %v7925_v0  ;;  %v10187_v49 = vld [vmem:[#allocation5 + $0x6] ss:$0 sm:$0xff]  ;;  %v1514_v32 = vld [vmem:[#allocation2 + $0x349] sm:$0xff]  ;;  %v3817_v55 = vld [vmem:[#allocation3 + $0x281] sm:$0xff] }
 0x2a8   : > { %v1407_v56 = vadd.f32 %v7814_v36, %v1301_v25  ;;  %7657 = vmatprep.subr.bf16.mxu1 %v7925_v0  ;;  %v1729_v8 = vadd.f32 %v1623_v62, %v10111_v17  ;;  %v1946_v52 = vmul.f32 %v7816_v60, %v1835_v34  ;;  %v2164_v6 = vmul.f32 %v10152_v5, %v1190_v41  ;;  %v2055_v24 = vld [vmem:[#allocation2 + $0x350] sm:$0xff] }
 0x2a9   : > { %v3475_v53 = vmax.f32 %v3369_v27, 0.0  ;;  %3580 = vst.msk [vmem:[#allocation3 + $0x2e8] sm:$0xff] %vm962_vm0, %v3474_v16  ;;  %v10178_v21 = vadd.f32 %v2824_v42, %v2709_v3  ;;  %v2384_v10 = vmul.f32 %v9768_v11, %v1512_v47  ;;  %v1947_v31 = vmul.f32 %v7816_v60, %v1836_v2  ;;  %v2276_v1 = vld [vmem:[#allocation2 + $0x351] sm:$0xff] }
 0x2aa   : > { %v1730_v50 = vadd.f32 %v1624_v19, %v1407_v56  ;;  %v2052_v51 = vadd.f32 %v1946_v52, %v1729_v8  ;;  %v2270_v26 = vadd.f32 %v2164_v6, %v10106_v43  ;;  %v2385_v17 = vmul.f32 %v9768_v11, %v1513_v29  ;;  %v10195_v11 = vld [vmem:[%s11984_s3 + $0x40] sm:$0xff]   ;;  %5881 = vmatpush2.bf16.msra.mxu0 %v7767_v39  ;;  %v7818_v36 = vld [vmem:[#allocation5 + $0x4] ss:$0 sm:$0xff]  ;;  %v3670_v52 = vld [vmem:[#allocation3 + $0x268] sm:$0xff] }
 0x2ab   : > { %7673 = vmatpush2.bf16.msra.mxu1 %v10170_v14  ;;  %3581 = vst.msk [vmem:[#allocation3 + $0x2f0] sm:$0xff] %vm962_vm0, %v3475_v53  ;;  %v2490_v54 = vadd.f32 %v2384_v10, %v10117_v30  ;;  %v2605_v23 = vmul.f32 %v9811_v63, %v1835_v34  ;;  %v2823_v9 = vmul.f32 %v10187_v49, %v1190_v41  ;;  %v2497_v56 = vld [vmem:[#allocation2 + $0x352] sm:$0xff]  ;;  %v3960_v10 = vld [vmem:[#allocation3 + $0x27a] sm:$0xff] }
 0x2ac   : > { %v3043_v4 = vmul.f32 %v9851_v37, %v1512_v47  ;;  %7658 = vmatprep.subr.bf16.mxu1 %v7925_v0  ;;  %v10197_v43 = vadd.f32 %v1947_v31, %v1730_v50  ;;  %v2491_v30 = vadd.f32 %v2385_v17, %v2270_v26  ;;  %v2606_v38 = vmul.f32 %v9811_v63, %v1836_v2  ;;  %v1837_v47 = vld [vmem:[#allocation2 + $0x34a] sm:$0xff]  ;;  %v3669_v17 = vld [vmem:[#allocation3 + $0x260] sm:$0xff] }
 0x2ad   : > { %v3044_v3 = vmul.f32 %v9851_v37, %v1513_v29  ;;  %v2929_v46 = vadd.f32 %v2823_v9, %v10108_v12  ;;  %v3264_v41 = vmul.f32 %v9855_v40, %v1835_v34  ;;  %v10204_v48 = vpack.c.bf16 %v3954_v45, %v3953_v59  ;;  %5882 = vmatprep.subr.bf16.mxu0 %v7925_v0  ;;  %v2058_v31 = vld [vmem:[#allocation2 + $0x368] sm:$0xff]  ;;  %v2277_v45 = vld [vmem:[#allocation2 + $0x359] sm:$0xff] }
 0x2ae   : > { %v3149_v33 = vadd.f32 %v3043_v4, %v10119_v18  ;;  %v2711_v20 = vadd.f32 %v2605_v23, %v2490_v54  ;;  %v3265_v42 = vmul.f32 %v9855_v40, %v1836_v2  ;;  %v10208_v29 = vpack.c.bf16 %v3818_v22, %v3817_v55  ;;  %5883 = vmatpush2.bf16.msra.mxu0 %v10170_v14  ;;  %v3959_v4 = vld [vmem:[#allocation3 + $0x272] sm:$0xff]  ;;  %v2278_v22 = vld [vmem:[#allocation2 + $0x361] sm:$0xff] }
 0x2af   : > { %v2167_v39 = vmul.f32 %v10152_v5, %v2056_v61  ;;  %7674 = vmatpush2.bf16.msra.mxu1 %v10195_v11  ;;  %v10212_v12 = vadd.f32 %v2606_v38, %v2491_v30  ;;  %v3150_v18 = vadd.f32 %v3044_v3, %v2929_v46  ;;  %4325 = vrot.lane.b32.xlu1 %v10204_v48, %s7927_s29 }
 0x2b0   : > { %v3370_v58 = vadd.f32 %v3264_v41, %v3149_v33  ;;  %4765 = vrot.lane.b32.xlu0 %v10208_v29, %s7928_s9  ;;  %v2826_v25 = vmul.f32 %v10187_v49, %v2056_v61  ;;  %v2166_v34 = vmul.f32 %v10152_v5, %v2055_v24  ;;  %v2386_v15 = vmul.f32 %v7818_v36, %v1514_v32  ;;  %v2499_v41 = vld [vmem:[#allocation2 + $0x362] sm:$0xff] }
 0x2b1   : > { %v3371_v62 = vadd.f32 %v3265_v42, %v3150_v18  ;;  %v2273_v16 = vadd.f32 %v2167_v39, %v2052_v51  ;;  %v2387_v2 = vmul.f32 %v7818_v36, %v2276_v1  ;;  %v2607_v60 = vmul.f32 %v9811_v63, %v1837_v47  ;;  %5884 = vmatprep.subr.bf16.mxu0 %v7925_v0  ;;  %v7819_v51 = vld [vmem:[#allocation5 + $0x5] ss:$0 sm:$0xff]  ;;  %v2057_v63 = vld [vmem:[#allocation2 + $0x360] sm:$0xff] }
 0x2b2   : > { %v3476_v27 = vmax.f32 %v3370_v58, 0.0  ;;  %v2272_v19 = vadd.f32 %v2166_v34, %v10162_v35  ;;  %v2492_v8 = vadd.f32 %v2386_v15, %v10172_v57  ;;  %v2825_v53 = vmul.f32 %v10187_v49, %v2055_v24  ;;  %5885 = vmatpush2.bf16.msra.mxu0 %v10195_v11  ;;  %v3812_v39 = vld [vmem:[#allocation3 + $0x259] sm:$0xff] }
 0x2b3   : > { %v3477_v6 = vmax.f32 %v3371_v62, 0.0  ;;  %v3045_v50 = vmul.f32 %v9851_v37, %v1514_v32  ;;  %v2608_v35 = vmul.f32 %v7819_v51, %v2497_v56  ;;  %v3046_v57 = vmul.f32 %v9851_v37, %v2276_v1  ;;  %v2498_v32 = vld [vmem:[#allocation2 + $0x35a] sm:$0xff] }
 0x2b4   : > { %3582 = vst.msk [vmem:[#allocation3 + $0x2f8] sm:$0xff] %vm962_vm0, %v3476_v27  ;;  %v2493_v14 = vadd.f32 %v2387_v2, %v2272_v19  ;;  %v2713_v26 = vadd.f32 %v2607_v60, %v2492_v8  ;;  %v2931_v0 = vadd.f32 %v2825_v53, %v10164_v44  ;;  %v3266_v23 = vmul.f32 %v9855_v40, %v1837_v47  ;;  %v3676_v34 = vld [vmem:[#allocation3 + $0x298] sm:$0xff]  ;;  %v3675_v60 = vld [vmem:[#allocation3 + $0x290] sm:$0xff] }
 0x2b5   : > { %3583 = vst.msk [vmem:[#allocation3 + $0x300] sm:$0xff] %vm962_vm0, %v3477_v6  ;;  %v3151_v54 = vadd.f32 %v3045_v50, %v10178_v21  ;;  %v10233_v9 = vpack.c.bf16 %v3670_v52, %v3669_v17  ;;  %v3267_v61 = vmul.f32 %v9855_v40, %v2497_v56  ;;  %v10237_v30 = vpack.c.bf16 %v3960_v10, %v3959_v4  ;;  %v3811_v27 = vld [vmem:[#allocation3 + $0x251] sm:$0xff] }
 0x2b6   : > { %v2828_v38 = vmul.f32 %v10187_v49, %v2058_v31  ;;  %v3152_v3 = vadd.f32 %v3046_v57, %v2931_v0  ;;  %v2168_v44 = vmul.f32 %v10152_v5, %v2057_v63  ;;  %v2388_v21 = vmul.f32 %v7818_v36, %v2277_v45  ;;  %v2719_v56 = vld [vmem:[#allocation2 + $0x378] sm:$0xff]  ;;  %v2500_v52 = vld [vmem:[#allocation2 + $0x36a] sm:$0xff] }
 0x2b7   : > { %12015 = vst [vmem:[#allocation13_spill] sm:$0xff] %v10233_v9  ;;  %v3372_v59 = vadd.f32 %v3266_v23, %v3151_v54  ;;  %4469 = vrot.lane.b32.xlu1 %v10233_v9, %s7928_s9  ;;  %v2932_v46 = vadd.f32 %v2826_v25, %v2711_v20  ;;  %v2714_v33 = vadd.f32 %v2608_v35, %v2493_v14  ;;  %v2279_v20 = vld [vmem:[#allocation2 + $0x369] sm:$0xff]  ;;  %v2939_v6 = vld [vmem:[#allocation2 + $0x371] sm:$0xff]  ;;  %v3956_v35 = vld [vmem:[#allocation3 + $0x25a] sm:$0xff] }
 0x2b8   : > { %4569 = vrot.lane.b32.xlu0 %v10237_v30, %s7926_s22  ;;  %v2389_v11 = vmul.f32 %v7818_v36, %v2278_v22  ;;  %v3373_v55 = vadd.f32 %v3267_v61, %v3152_v3  ;;  %v2274_v24 = vadd.f32 %v2168_v44, %v10197_v43  ;;  %v2494_v42 = vadd.f32 %v2388_v21, %v2273_v16  ;;  %v2718_v43 = vld [vmem:[#allocation2 + $0x370] sm:$0xff]  ;;  %v7820_v50 = vld [vmem:[#allocation5 + $0x8] ss:$0 sm:$0xff]  ;;  %v2940_v61 = vld [vmem:[#allocation2 + $0x379] sm:$0xff] }
 0x2b9   : > { %v3478_v47 = vmax.f32 %v3372_v59, 0.0  ;;  %v2934_v18 = vadd.f32 %v2828_v38, %v2713_v26  ;;  %v2609_v58 = vmul.f32 %v7819_v51, %v2498_v32  ;;  %v2827_v1 = vmul.f32 %v10187_v49, %v2057_v63  ;;  %v7821_v26 = vld [vmem:[#allocation5 + $0x7] ss:$0 sm:$0xff]  ;;  %v3820_v63 = vld [vmem:[#allocation3 + $0x299] sm:$0xff] }
 0x2ba   : > { %v3047_v5 = vmul.f32 %v9851_v37, %v2277_v45  ;;  %v3479_v25 = vmax.f32 %v3373_v55, 0.0  ;;  %v2495_v15 = vadd.f32 %v2389_v11, %v2274_v24  ;;  %v2610_v36 = vmul.f32 %v7819_v51, %v2499_v41  ;;  %v3160_v51 = vld [vmem:[#allocation2 + $0x372] sm:$0xff]  ;;  %v2720_v45 = vld [vmem:[#allocation2 + $0x380] sm:$0xff] }
 0x2bb   : > { %3584 = vst.msk [vmem:[#allocation3 + $0x308] sm:$0xff] %vm962_vm0, %v3478_v47  ;;  %v3048_v62 = vmul.f32 %v9851_v37, %v2278_v22  ;;  %v2933_v16 = vadd.f32 %v2827_v1, %v10212_v12  ;;  %v3268_v2 = vmul.f32 %v9855_v40, %v2498_v32  ;;  %v10252_v8 = vpack.c.bf16 %v3812_v39, %v3811_v27  ;;  %v3955_v22 = vld [vmem:[#allocation3 + $0x252] sm:$0xff]  ;;  %v3161_v21 = vld [vmem:[#allocation2 + $0x37a] sm:$0xff] }
 0x2bc   : > { %v3153_v19 = vadd.f32 %v3047_v5, %v2932_v46  ;;  %3585 = vst.msk [vmem:[#allocation3 + $0x310] sm:$0xff] %vm962_vm0, %v3479_v25  ;;  %v2715_v53 = vadd.f32 %v2609_v58, %v2494_v42  ;;  %v3269_v10 = vmul.f32 %v7820_v50, %v2499_v41  ;;  %v10255_v31 = vpack.c.bf16 %v3676_v34, %v3675_v60  ;;  %v3819_v44 = vld [vmem:[#allocation3 + $0x291] sm:$0xff]  ;;  %v2941_v47 = vld [vmem:[#allocation2 + $0x381] sm:$0xff] }
 0x2bd   : > { %12016 = vst [vmem:[#allocation14_spill] sm:$0xff] %v10252_v8  ;;  %v3154_v37 = vadd.f32 %v3048_v62, %v2933_v16  ;;  %4183 = vrot.lane.b32.xlu1 %v10252_v8, %s7926_s22  ;;  %v2830_v12 = vmul.f32 %v10187_v49, %v2719_v56  ;;  %v2829_v40 = vmul.f32 %v10187_v49, %v2718_v43  ;;  %v3672_v32 = vld [vmem:[#allocation3 + $0x278] sm:$0xff]  ;;  %v3962_v58 = vld [vmem:[#allocation3 + $0x28a] sm:$0xff] }
 0x2be   : > { %v3374_v14 = vadd.f32 %v3268_v2, %v3153_v19  ;;  %4667 = vrot.lane.b32.xlu0 %v10255_v31, %s7927_s29  ;;  %v3049_v57 = vmul.f32 %v7821_v26, %v2279_v20  ;;  %v3050_v17 = vmul.f32 %v7821_v26, %v2939_v6  ;;  %v3270_v4 = vmul.f32 %v7820_v50, %v2500_v52  ;;  %v3814_v43 = vld [vmem:[#allocation3 + $0x269] sm:$0xff]  ;;  %v3813_v52 = vld [vmem:[#allocation3 + $0x261] sm:$0xff]  ;;  %v3756_v8 = vld [vmem:[#allocation3 + $0x99] sm:$0xff] }
 0x2bf   : > { %v3375_v0 = vadd.f32 %v3269_v10, %v3154_v37  ;;  %v2935_v23 = vadd.f32 %v2829_v40, %v2714_v33  ;;  %v3271_v3 = vmul.f32 %v7820_v50, %v3160_v51  ;;  %v10263_v59 = vpack.c.bf16 %v3956_v35, %v3955_v22  ;;  %v3678_v60 = vld [vmem:[#allocation3 + $0x2a8] sm:$0xff]  ;;  %v3677_v37 = vld [vmem:[#allocation3 + $0x2a0] sm:$0xff]  ;;  %v3823_v22 = vld [vmem:[#allocation3 + $0x2b1] sm:$0xff] }
 0x2c0   : > { %v3480_v54 = vmax.f32 %v3374_v14, 0.0  ;;  %v3155_v38 = vadd.f32 %v3049_v57, %v2934_v18  ;;  %v10266_v41 = vpack.c.bf16 %v3820_v63, %v3819_v44  ;;  %v2831_v55 = vmul.f32 %v10187_v49, %v2720_v45  ;;  %v3671_v18 = vld [vmem:[#allocation3 + $0x270] sm:$0xff]  ;;  %v3162_v49 = vld [vmem:[#allocation2 + $0x382] sm:$0xff]  ;;  %v3964_v35 = vld [vmem:[#allocation3 + $0x29a] sm:$0xff] }
 0x2c1   : > { %v3481_v46 = vmax.f32 %v3375_v0, 0.0  ;;  %v3156_v11 = vadd.f32 %v3050_v17, %v2935_v23  ;;  %v2716_v33 = vadd.f32 %v2610_v36, %v2495_v15  ;;  %v2936_v24 = vadd.f32 %v2830_v12, %v2715_v53  ;;  %4327 = vrot.lane.b32.xlu1 %v10263_v59, %s7927_s29  ;;  %v3961_v36 = vld [vmem:[#allocation3 + $0x282] sm:$0xff]  ;;  %v3816_v17 = vld [vmem:[#allocation3 + $0x279] sm:$0xff]  ;;  %v3815_v45 = vld [vmem:[#allocation3 + $0x271] sm:$0xff] }
 0x2c2   : > { %3586 = vst.msk [vmem:[#allocation3 + $0x318] sm:$0xff] %vm962_vm0, %v3480_v54  ;;  %v3376_v42 = vadd.f32 %v3270_v4, %v3155_v38  ;;  %v3051_v39 = vmul.f32 %v7821_v26, %v2940_v61  ;;  %4767 = vrot.lane.b32.xlu0 %v10266_v41, %s7928_s9  ;;  %v3272_v5 = vmul.f32 %v7820_v50, %v3161_v21  ;;  %v3821_v40 = vld [vmem:[#allocation3 + $0x2a1] sm:$0xff]  ;;  %v3680_v63 = vld [vmem:[#allocation3 + $0x2b8] sm:$0xff]  ;;  %v3679_v54 = vld [vmem:[#allocation3 + $0x2b0] sm:$0xff] }
 0x2c3   : > { %3587 = vst.msk [vmem:[#allocation3 + $0x320] sm:$0xff] %vm962_vm0, %v3481_v46  ;;  %v3377_v1 = vadd.f32 %v3271_v3, %v3156_v11  ;;  %v10274_v34 = vpack.c.bf16 %v3672_v32, %v3671_v18  ;;  %v2937_v25 = vadd.f32 %v2831_v55, %v2716_v33  ;;  %v3052_v62 = vmul.f32 %v7821_v26, %v2941_v47  ;;  %v3963_v26 = vld [vmem:[#allocation3 + $0x292] sm:$0xff]  ;;  %v3966_v38 = vld [vmem:[#allocation3 + $0x2aa] sm:$0xff]  ;;  %v3965_v3 = vld [vmem:[#allocation3 + $0x2a2] sm:$0xff] }
 0x2c4   : > { %v3482_v20 = vmax.f32 %v3376_v42, 0.0  ;;  %v3157_v15 = vadd.f32 %v3051_v39, %v2936_v24  ;;  %v10276_v56 = vpack.c.bf16 %v3962_v58, %v3961_v36  ;;  %v3273_v2 = vmul.f32 %v7820_v50, %v3162_v49  ;;  %v3822_v50 = vld [vmem:[#allocation3 + $0x2a9] sm:$0xff]  ;;  %v3824_v4 = vld [vmem:[#allocation3 + $0x2b9] sm:$0xff]  ;;  %v3825_v55 = vld [vmem:[#allocation3 + $0x2c1] sm:$0xff] }
 0x2c5   : > { %12017 = vst [vmem:[#allocation15_spill] sm:$0xff] %v10274_v34  ;;  %v3483_v27 = vmax.f32 %v3377_v1, 0.0  ;;  %4471 = vrot.lane.b32.xlu1 %v10274_v34, %s7928_s9  ;;  %v3158_v19 = vadd.f32 %v3052_v62, %v2937_v25  ;;  %v10284_v10 = vpack.c.bf16 %v3814_v43, %v3813_v52  ;;  %v10286_v14 = vpack.c.bf16 %v3678_v60, %v3677_v37  ;;  %v3682_v21 = vld [vmem:[#allocation3 + $0x2c8] sm:$0xff]  ;;  %v3681_v32 = vld [vmem:[#allocation3 + $0x2c0] sm:$0xff]  ;;  %v3967_v60 = vld [vmem:[#allocation3 + $0x2b2] sm:$0xff] }
 0x2c6   : > { %3588 = vst.msk [vmem:[#allocation3 + $0x328] sm:$0xff] %vm962_vm0, %v3482_v20  ;;  %v3378_v16 = vadd.f32 %v3272_v5, %v3157_v15  ;;  %4571 = vrot.lane.b32.xlu0 %v10276_v56, %s7926_s22  ;;  %v10294_v51 = vpack.c.bf16 %v3822_v50, %v3821_v40  ;;  %v10300_v57 = vpack.c.bf16 %v3964_v35, %v3963_v26  ;;  %v3826_v11 = vld [vmem:[#allocation3 + $0x2c9] sm:$0xff]  ;;  %v3737_v58 = vld [vmem:[#allocation3 + $0x1] sm:$0xff]  ;;  %v3827_v50 = vld [vmem:[#allocation3 + $0x2d1] sm:$0xff] }
 0x2c7   : > { %3589 = vst.msk [vmem:[#allocation3 + $0x330] sm:$0xff] %vm962_vm0, %v3483_v27  ;;  %v3379_v53 = vadd.f32 %v3273_v2, %v3158_v19  ;;  %12018 = vst [vmem:[#allocation16_spill] sm:$0xff] %v10284_v10  ;;  %v10306_v0 = vpack.c.bf16 %v3816_v17, %v3815_v45  ;;  %v10308_v23 = vpack.c.bf16 %v3680_v63, %v3679_v54  ;;  %v3886_v33 = vld [vmem:[#allocation3 + $0x2a] sm:$0xff]  ;;  %v3885_v24 = vld [vmem:[#allocation3 + $0x22] sm:$0xff] }
 0x2c8   : > { %v3484_v6 = vmax.f32 %v3378_v16, 0.0  ;;  %v10314_v61 = vpack.c.bf16 %v3824_v4, %v3823_v22  ;;  %v10320_v44 = vpack.c.bf16 %v3966_v38, %v3965_v3  ;;  %v10326_v46 = vpack.c.bf16 %v3682_v21, %v3681_v32  ;;  %v3738_v39 = vld [vmem:[#allocation3 + $0x9] sm:$0xff]  ;;  %v3601_v5 = vld [vmem:[#allocation3 + $0x40] sm:$0xff]  ;;  %v3887_v26 = vld [vmem:[#allocation3 + $0x32] sm:$0xff] }
 0x2c9   : > { %v3485_v12 = vmax.f32 %v3379_v53, 0.0  ;;  %4185 = vrot.lane.b32.xlu1 %v10284_v10, %s7926_s22  ;;  %12019 = vst [vmem:[#allocation17_spill] sm:$0xff] %v10306_v0  ;;  %v10332_v47 = vpack.c.bf16 %v3826_v11, %v3825_v55  ;;  %v10338_v42 = vpack.c.bf16 %v3886_v33, %v3885_v24  ;;  %v3602_v18 = vld [vmem:[#allocation3 + $0x48] sm:$0xff]  ;;  %v3833_v1 = vpack.c.bf16 %v3738_v39, %v3737_v58  ;;  %v3968_v16 = vld [vmem:[#allocation3 + $0x2ba] sm:$0xff]  ;;  %v3683_v53 = vld [vmem:[#allocation3 + $0x2d0] sm:$0xff] }
 0x2ca   : > { %3590 = vst.msk [vmem:[#allocation3 + $0x338] sm:$0xff] %vm962_vm0, %v3484_v6  ;;  %4669 = vrot.lane.b32.xlu0 %v10286_v14, %s7927_s29  ;;  %v10344_v49 = vpack.c.bf16 %v3602_v18, %v3601_v5  ;;  %v3882_v20 = vld [vmem:[#allocation3 + $0xa] sm:$0xff]  ;;  %v3881_v15 = vld [vmem:[#allocation3 + $0x2] sm:$0xff]  ;;  %v10356_v52 = vpack.c.bf16 %v3968_v16, %v3967_v60  ;;  %v3684_v6 = vld [vmem:[#allocation3 + $0x2d8] sm:$0xff] }
 0x2cb   : > { %3591 = vst.msk [vmem:[#allocation3 + $0x340] sm:$0xff] %vm962_vm0, %v3485_v12  ;;  %v3746_v25 = vld [vmem:[#allocation3 + $0x49] sm:$0xff]  ;;  %v3977_v36 = vpack.c.bf16 %v3882_v20, %v3881_v15  ;;  %v3745_v62 = vld [vmem:[#allocation3 + $0x41] sm:$0xff]  ;;  %v10362_v37 = vpack.c.bf16 %v3684_v6, %v3683_v53  ;;  %v3828_v12 = vld [vmem:[#allocation3 + $0x2d9] sm:$0xff] }
 0x2cc   : > { %v10349_v27 = vpack.c.bf16 %v3746_v25, %v3745_v62  ;;  %v3598_v43 = vld [vmem:[#allocation3 + $0x28] sm:$0xff]  ;;  %v3597_v19 = vld [vmem:[#allocation3 + $0x20] sm:$0xff]  ;;  %v10368_v40 = vpack.c.bf16 %v3828_v12, %v3827_v50  ;;  %v3604_v45 = vld [vmem:[#allocation3 + $0x58] sm:$0xff] }
 0x2cd   : > { %4329 = vrot.lane.b32.xlu1 %v10091_v13, %s7927_s29  ;;  %v10354_v2 = vpack.c.bf16 %v3598_v43, %v3597_v19  ;;  %v3888_v35 = vld [vmem:[#allocation3 + $0x3a] sm:$0xff]  ;;  %v3739_v54 = vld [vmem:[#allocation3 + $0x11] sm:$0xff]  ;;  %v3686_v20 = vld [vmem:[#allocation3 + $0x2e8] sm:$0xff] }
 0x2ce   : > { %4769 = vrot.lane.b32.xlu0 %v10294_v51, %s7928_s9  ;;  %v10374_v17 = vpack.c.bf16 %v3888_v35, %v3887_v26  ;;  %v3740_v63 = vld [vmem:[#allocation3 + $0x19] sm:$0xff]  ;;  %v3603_v22 = vld [vmem:[#allocation3 + $0x50] sm:$0xff]  ;;  %v3829_v62 = vld [vmem:[#allocation3 + $0x2e1] sm:$0xff] }
 0x2cf   : > { %v3834_v4 = vpack.c.bf16 %v3740_v63, %v3739_v54  ;;  %v10380_v38 = vpack.c.bf16 %v3604_v45, %v3603_v22  ;;  %v3884_v3 = vld [vmem:[#allocation3 + $0x1a] sm:$0xff]  ;;  %v3883_v32 = vld [vmem:[#allocation3 + $0x12] sm:$0xff]  ;;  %v3970_v39 = vld [vmem:[#allocation3 + $0x2ca] sm:$0xff] }
 0x2d0   : > { %v3748_v21 = vld [vmem:[#allocation3 + $0x59] sm:$0xff]  ;;  %v3978_v11 = vpack.c.bf16 %v3884_v3, %v3883_v32  ;;  %v3747_v55 = vld [vmem:[#allocation3 + $0x51] sm:$0xff]  ;;  %v3889_v60 = vld [vmem:[#allocation3 + $0x42] sm:$0xff] }
 0x2d1   : > { %4473 = vrot.lane.b32.xlu1 %v10145_v7, %s7928_s9  ;;  %v10385_v33 = vpack.c.bf16 %v3748_v21, %v3747_v55  ;;  %v3600_v24 = vld [vmem:[#allocation3 + $0x38] sm:$0xff]  ;;  %v3599_v18 = vld [vmem:[#allocation3 + $0x30] sm:$0xff]  ;;  %v3685_v25 = vld [vmem:[#allocation3 + $0x2e0] sm:$0xff] }
 0x2d2   : > { %4573 = vrot.lane.b32.xlu0 %v10300_v57, %s7926_s22  ;;  %v10390_v58 = vpack.c.bf16 %v3600_v24, %v3599_v18  ;;  %v10398_v15 = vpack.c.bf16 %v3686_v20, %v3685_v25  ;;  %v3890_v16 = vld [vmem:[#allocation3 + $0x4a] sm:$0xff]  ;;  %v3741_v50 = vld [vmem:[#allocation3 + $0x21] sm:$0xff]  ;;  %v3971_v20 = vld [vmem:[#allocation3 + $0x2d2] sm:$0xff] }
 0x2d3   : > { %v10410_v6 = vpack.c.bf16 %v3890_v16, %v3889_v60  ;;  %v3742_v53 = vld [vmem:[#allocation3 + $0x29] sm:$0xff]  ;;  %v3605_v63 = vld [vmem:[#allocation3 + $0x60] sm:$0xff] }
 0x2d4   : > { %v3606_v12 = vld [vmem:[#allocation3 + $0x68] sm:$0xff]  ;;  %v10416_v26 = vpack.c.bf16 %v3742_v53, %v3741_v50  ;;  %v3687_v60 = vld [vmem:[#allocation3 + $0x2f0] sm:$0xff] }
 0x2d5   : > { %4187 = vrot.lane.b32.xlu1 %v10306_v0, %s7926_s22  ;;  %v10418_v54 = vpack.c.bf16 %v3606_v12, %v3605_v63  ;;  %v3749_v3 = vld [vmem:[#allocation3 + $0x61] sm:$0xff]  ;;  %v3831_v63 = vld [vmem:[#allocation3 + $0x2f1] sm:$0xff] }
 0x2d6   : > { %4671 = vrot.lane.b32.xlu0 %v10308_v23, %s7927_s29  ;;  %v3666_v55 = vld [vmem:[#allocation3 + $0x248] sm:$0xff] }
 0x2d9   : > { %4331 = vrot.lane.b32.xlu1 %v10237_v30, %s7927_s29 }
 0x2da   : > { %4771 = vrot.lane.b32.xlu0 %v10314_v61, %s7928_s9 }
 0x2dd   : > { %4475 = vrot.lane.b32.xlu1 %v10255_v31, %s7928_s9 }
 0x2de   : > { %4575 = vrot.lane.b32.xlu0 %v10320_v44, %s7926_s22 }
 0x2e1   : > { %4189 = vrot.lane.b32.xlu1 %v10208_v29, %s7926_s22 }
 0x2e2   : > { %4673 = vrot.lane.b32.xlu0 %v10326_v46, %s7927_s29 }
 0x2e5   : > { %4333 = vrot.lane.b32.xlu1 %v10276_v56, %s7927_s29 }
 0x2e6   : > { %4773 = vrot.lane.b32.xlu0 %v10332_v47, %s7928_s9 }
 0x2e9   : > { %4477 = vrot.lane.b32.xlu1 %v10286_v14, %s7928_s9 }
 0x2ea   : > { %4495 = vrot.lane.b32.xlu0 %v10338_v42, %s7926_s22 }
 0x2ed   : > { %4109 = vrot.lane.b32.xlu1 %v3833_v1, %s7926_s22  ;;  %v3969_v1 = vld [vmem:[#allocation3 + $0x2c2] sm:$0xff] }
 0x2ee   : > { %4593 = vrot.lane.b32.xlu0 %v10344_v49, %s7927_s29  ;;  %v10392_v5 = vpack.c.bf16 %v3970_v39, %v3969_v1  ;;  %v3972_v39 = vld [vmem:[#allocation3 + $0x2da] sm:$0xff] }
 0x2ef   : > { %v3665_v1 = vld [vmem:[#allocation3 + $0x240] sm:$0xff] }
 0x2f0   : > { %v10434_v25 = vpack.c.bf16 %v3666_v55, %v3665_v1  ;;  %v3744_v55 = vld [vmem:[#allocation3 + $0x39] sm:$0xff] }
 0x2f1   : > { %4253 = vrot.lane.b32.xlu1 %v3977_v36, %s7927_s29  ;;  %v3830_v36 = vld [vmem:[#allocation3 + $0x2e9] sm:$0xff] }
 0x2f2   : > { %4693 = vrot.lane.b32.xlu0 %v10349_v27, %s7928_s9  ;;  %v10404_v43 = vpack.c.bf16 %v3830_v36, %v3829_v62  ;;  %12020 = vst [vmem:[#allocation18_spill] sm:$0xff] %v10434_v25  ;;  %v10436_v36 = vpack.c.bf16 %v3972_v39, %v3971_v20  ;;  %v3688_v62 = vld [vmem:[#allocation3 + $0x2f8] sm:$0xff]  ;;  %v3667_v20 = vld [vmem:[#allocation3 + $0x250] sm:$0xff] }
 0x2f3   : > { %v10445_v53 = vpack.c.bf16 %v3688_v62, %v3687_v60  ;;  %v3608_v39 = vld [vmem:[#allocation3 + $0x78] sm:$0xff] }
 0x2f4   : > { %12021 = vst [vmem:[#allocation19_spill] sm:$0xff] %v10436_v36 }
 0x2f5   : > { %4397 = vrot.lane.b32.xlu1 %v10354_v2, %s7928_s9 }
 0x2f6   : > { %4577 = vrot.lane.b32.xlu0 %v10356_v52, %s7926_s22 }
 0x2f9   : > { %4191 = vrot.lane.b32.xlu1 %v10266_v41, %s7926_s22 }
 0x2fa   : > { %4675 = vrot.lane.b32.xlu0 %v10362_v37, %s7927_s29 }
 0x2fd   : > { %4335 = vrot.lane.b32.xlu1 %v10300_v57, %s7927_s29 }
 0x2fe   : > { %4775 = vrot.lane.b32.xlu0 %v10368_v40, %s7928_s9 }
 0x301   : > { %4479 = vrot.lane.b32.xlu1 %v10308_v23, %s7928_s9 }
 0x302   : > { %4497 = vrot.lane.b32.xlu0 %v10374_v17, %s7926_s22 }
 0x305   : > { %4111 = vrot.lane.b32.xlu1 %v3834_v4, %s7926_s22  ;;  %v3750_v4 = vld [vmem:[#allocation3 + $0x69] sm:$0xff] }
 0x306   : > { %4595 = vrot.lane.b32.xlu0 %v10380_v38, %s7927_s29  ;;  %v10426_v21 = vpack.c.bf16 %v3750_v4, %v3749_v3  ;;  %v3892_v4 = vld [vmem:[#allocation3 + $0x5a] sm:$0xff] }
 0x309   : > { %4255 = vrot.lane.b32.xlu1 %v3978_v11, %s7927_s29 }
 0x30a   : > { %4695 = vrot.lane.b32.xlu0 %v10385_v33, %s7928_s9 }
 0x30d   : > { %4399 = vrot.lane.b32.xlu1 %v10390_v58, %s7928_s9  ;;  %v4568_v19 = vpop.permute.xlu1 %4567 }
 0x30e   : > { %4579 = vrot.lane.b32.xlu0 %v10392_v5, %s7926_s22  ;;  %v5285_v22 = vsel %vm962_vm0, %v10284_v10, %v4568_v19 }
 0x311   : > { %4193 = vrot.lane.b32.xlu1 %v10294_v51, %s7926_s22 }
 0x312   : > { %4677 = vrot.lane.b32.xlu0 %v10398_v15, %s7927_s29 }
 0x315   : > { %4337 = vrot.lane.b32.xlu1 %v10320_v44, %s7927_s29 }
 0x316   : > { %4777 = vrot.lane.b32.xlu0 %v10404_v43, %s7928_s9 }
 0x317   : > { %v4666_v35 = vpop.permute.xlu0 %4665  ;;  %v4182_v45 = vpop.permute.xlu1 %4181 }
 0x318   : > { %v5392_v32 = vsel %vm4933_vm1, %v5285_v22, %v4666_v35  ;;  %v3832_v35 = vld [vmem:[#allocation3 + $0x2f9] sm:$0xff] }
 0x319   : > { %4481 = vrot.lane.b32.xlu1 %v10326_v46, %s7928_s9 }
 0x31a   : > { %4499 = vrot.lane.b32.xlu0 %v10410_v6, %s7926_s22 }
 0x31d   : > { %4113 = vrot.lane.b32.xlu1 %v10416_v26, %s7926_s22 }
 0x31e   : > { %4597 = vrot.lane.b32.xlu0 %v10418_v54, %s7927_s29 }
 0x321   : > { %4257 = vrot.lane.b32.xlu1 %v10338_v42, %s7927_s29  ;;  %v4326_v24 = vpop.permute.xlu1 %4325  ;;  %v4899_v42 = vsel %vm962_vm0, %v10434_v25, %v4182_v45  ;;  %v10452_v45 = vpack.c.bf16 %v3832_v35, %v3831_v63 }
 0x322   : > { %v4766_v11 = vpop.permute.xlu0 %4765  ;;  %4697 = vrot.lane.b32.xlu0 %v10426_v21, %s7928_s9  ;;  %v5007_v16 = vsel %vm4933_vm1, %v4899_v42, %v4326_v24  ;;  %v3668_v24 = vld [vmem:[#allocation3 + $0x258] sm:$0xff] }
 0x323   : > { %v5524_v18 = vsel %vm5030_vm2, %v5392_v32, %v4766_v11  ;;  %v3891_v32 = vld [vmem:[#allocation3 + $0x52] sm:$0xff] }
 0x324   : > { %6174 = vmatprep.mubr.bf16.mxu1 %v5524_v18  ;;  %v10458_v11 = vpack.c.bf16 %v3892_v4, %v3891_v32  ;;  %v3743_v18 = vld [vmem:[#allocation3 + $0x31] sm:$0xff]  ;;  %v3752_v4 = vld [vmem:[#allocation3 + $0x79] sm:$0xff] }
 0x325   : > { %4401 = vrot.lane.b32.xlu1 %v10344_v49, %s7928_s9  ;;  %v10466_v42 = vpack.c.bf16 %v3744_v55, %v3743_v18 }
 0x326   : > { %4581 = vrot.lane.b32.xlu0 %v10436_v36, %s7926_s22 }
 0x329   : > { %v4470_v19 = vpop.permute.xlu1 %4469  ;;  %4195 = vrot.lane.b32.xlu1 %v10314_v61, %s7926_s22 }
 0x32a   : > { %v5140_v12 = vsel %vm5030_vm2, %v5007_v16, %v4470_v19  ;;  %v4570_v50 = vpop.permute.xlu0 %4569  ;;  %4679 = vrot.lane.b32.xlu0 %v10445_v53, %s7927_s29  ;;  %v3607_v16 = vld [vmem:[#allocation3 + $0x70] sm:$0xff]  ;;  %v10468_v19 = vpack.c.bf16 %v3668_v24, %v3667_v20  ;;  %v3973_v20 = vld [vmem:[#allocation3 + $0x2e2] sm:$0xff] }
 0x32b   : > { %6175 = vmatmul.mubr.bf16.vlgmr.msra.gmra.mxu1 %v5140_v12  ;;  %v5288_v1 = vsel %vm962_vm0, %v10306_v0, %v4570_v50  ;;  %v10471_v35 = vpack.c.bf16 %v3608_v39, %v3607_v16 }
 0x32c   : > { %12022 = vst [vmem:[#allocation20_spill] sm:$0xff] %v10468_v19 }
 0x32d   : > { %4339 = vrot.lane.b32.xlu1 %v10356_v52, %s7927_s29 }
 0x32e   : > { %4779 = vrot.lane.b32.xlu0 %v10452_v45, %s7928_s9 }
 0x32f   : > { %v4184_v22 = vpop.permute.xlu1 %4183 }
 0x330   : > { %v4668_v3 = vpop.permute.xlu0 %4667  ;;  %v4902_v50 = vsel %vm962_vm0, %v10468_v19, %v4184_v22 }
 0x331   : > { %4483 = vrot.lane.b32.xlu1 %v10362_v37, %s7928_s9  ;;  %v5394_v60 = vsel %vm4933_vm1, %v5288_v1, %v4668_v3  ;;  %v3751_v3 = vld [vmem:[#allocation3 + $0x71] sm:$0xff] }
 0x332   : > { %4501 = vrot.lane.b32.xlu0 %v10458_v11, %s7926_s22  ;;  %v10482_v18 = vpack.c.bf16 %v3752_v4, %v3751_v3  ;;  %v3974_v1 = vld [vmem:[#allocation3 + $0x2ea] sm:$0xff] }
 0x333   : > { %v4328_v62 = vpop.permute.xlu1 %4327  ;;  %v4032_v3 = vld [vmem:[#allocation3 + $0x309] sm:$0xff] }
 0x334   : > { %v4768_v12 = vpop.permute.xlu0 %4767  ;;  %v5009_v32 = vsel %vm4933_vm1, %v4902_v50, %v4328_v62  ;;  %v4026_v62 = vld [vmem:[#allocation3 + $0x308] sm:$0xff] }
 0x335   : > { %4115 = vrot.lane.b32.xlu1 %v10466_v42, %s7926_s22  ;;  %v5527_v63 = vsel %vm5030_vm2, %v5394_v60, %v4768_v12  ;;  %v10488_v60 = vpack.c.bf16 %v3974_v1, %v3973_v20  ;;  %v4031_v1 = vld [vmem:[#allocation3 + $0x301] sm:$0xff] }
 0x336   : > { %4599 = vrot.lane.b32.xlu0 %v10471_v35, %s7927_s29  ;;  %6182 = vmatprep.mubr.bf16.mxu1 %v5527_v63  ;;  %v4025_v63 = vld [vmem:[#allocation3 + $0x300] sm:$0xff] }
 0x337   : > { %v4472_v55 = vpop.permute.xlu1 %4471  ;;  %12023 = vst [vmem:[#allocation21_spill] sm:$0xff] %v10488_v60 }
 0x338   : > { %v5143_v24 = vsel %vm5030_vm2, %v5009_v32, %v4472_v55  ;;  %v4572_v39 = vpop.permute.xlu0 %4571  ;;  %v10497_v32 = vpack.c.bf16 %v4026_v62, %v4025_v63  ;;  %v10508_v62 = vpack.c.bf16 %v4032_v3, %v4031_v1  ;;  %v3893_v63 = vld [vmem:[#allocation3 + $0x62] sm:$0xff] }
 0x339   : > { %4259 = vrot.lane.b32.xlu1 %v10374_v17, %s7927_s29  ;;  %6183 = vmatmul.mubr.bf16.gmra.mxu1 %v5143_v24  ;;  %v5291_v17 = vsel %vm962_vm0, %v10208_v29, %v4572_v39 }
 0x33a   : > { %4699 = vrot.lane.b32.xlu0 %v10482_v18, %s7928_s9 }
 0x33b   : > { %v4186_v22 = vpop.permute.xlu1 %4185 }
 0x33c   : > { %v4670_v16 = vpop.permute.xlu0 %4669  ;;  %v4905_v24 = vsel %vm962_vm0, %v10233_v9, %v4186_v22 }
 0x33d   : > { %4403 = vrot.lane.b32.xlu1 %v10380_v38, %s7928_s9  ;;  %v5396_v4 = vsel %vm4933_vm1, %v5291_v17, %v4670_v16  ;;  %v3894_v17 = vld [vmem:[#allocation3 + $0x6a] sm:$0xff] }
 0x33e   : > { %4583 = vrot.lane.b32.xlu0 %v10488_v60, %s7926_s22 }
 0x33f   : > { %v4330_v12 = vpop.permute.xlu1 %4329 }
 0x340   : > { %v4770_v50 = vpop.permute.xlu0 %4769  ;;  %v5011_v29 = vsel %vm4933_vm1, %v4905_v24, %v4330_v12  ;;  %v3610_v12 = vld [vmem:[#allocation3 + $0x88] sm:$0xff]  ;;  %v3609_v24 = vld [vmem:[#allocation3 + $0x80] sm:$0xff] }
 0x341   : > { %4197 = vrot.lane.b32.xlu1 %v10332_v47, %s7926_s22  ;;  %v5530_v55 = vsel %vm5030_vm2, %v5396_v4, %v4770_v50  ;;  %v10514_v50 = vpack.c.bf16 %v3894_v17, %v3893_v63  ;;  %v10523_v1 = vpack.c.bf16 %v3610_v12, %v3609_v24  ;;  %v3754_v17 = vld [vmem:[#allocation3 + $0x89] sm:$0xff] }
 0x342   : > { %4681 = vrot.lane.b32.xlu0 %v10497_v32, %s7927_s29  ;;  %6190 = vmatprep.mubr.bf16.mxu1 %v5530_v55 }
 0x343   : > { %v4474_v39 = vpop.permute.xlu1 %4473 }
 0x344   : > { %v5146_v20 = vsel %vm5030_vm2, %v5011_v29, %v4474_v39  ;;  %v4574_v16 = vpop.permute.xlu0 %4573 }
 0x345   : > { %4341 = vrot.lane.b32.xlu1 %v10392_v5, %s7927_s29  ;;  %6191 = vmatmul.mubr.bf16.gmra.mxu1 %v5146_v20  ;;  %v5294_v55 = vsel %vm962_vm0, %v10266_v41, %v4574_v16 }
 0x346   : > { %4781 = vrot.lane.b32.xlu0 %v10508_v62, %s7928_s9 }
 0x347   : > { %v4188_v22 = vpop.permute.xlu1 %4187 }
 0x348   : > { %v4672_v4 = vpop.permute.xlu0 %4671  ;;  %v4908_v63 = vsel %vm962_vm0, %v10274_v34, %v4188_v22 }
 0x349   : > { %4485 = vrot.lane.b32.xlu1 %v10398_v15, %s7928_s9  ;;  %v5398_v29 = vsel %vm4933_vm1, %v5294_v55, %v4672_v4  ;;  %v3753_v4 = vld [vmem:[#allocation3 + $0x81] sm:$0xff] }
 0x34a   : > { %4503 = vrot.lane.b32.xlu0 %v10514_v50, %s7926_s22  ;;  %v10534_v24 = vpack.c.bf16 %v3754_v17, %v3753_v4 }
 0x34b   : > { %v4332_v3 = vpop.permute.xlu1 %4331 }
 0x34c   : > { %v4772_v39 = vpop.permute.xlu0 %4771  ;;  %v5013_v41 = vsel %vm4933_vm1, %v4908_v63, %v4332_v3  ;;  %v4028_v3 = vld [vmem:[#allocation3 + $0x318] sm:$0xff] }
 0x34d   : > { %4117 = vrot.lane.b32.xlu1 %v10349_v27, %s7926_s22  ;;  %v5533_v20 = vsel %vm5030_vm2, %v5398_v29, %v4772_v39  ;;  %v3976_v29 = vld [vmem:[#allocation3 + $0x2fa] sm:$0xff]  ;;  %v3975_v39 = vld [vmem:[#allocation3 + $0x2f2] sm:$0xff] }
 0x34e   : > { %4601 = vrot.lane.b32.xlu0 %v10523_v1, %s7927_s29  ;;  %6198 = vmatprep.mubr.bf16.mxu1 %v5533_v20  ;;  %v10540_v0 = vpack.c.bf16 %v3976_v29, %v3975_v39  ;;  %v4034_v39 = vld [vmem:[#allocation3 + $0x319] sm:$0xff] }
 0x34f   : > { %v4476_v16 = vpop.permute.xlu1 %4475 }
 0x350   : > { %v5149_v12 = vsel %vm5030_vm2, %v5013_v41, %v4476_v16  ;;  %v4576_v55 = vpop.permute.xlu0 %4575  ;;  %12024 = vst [vmem:[#allocation22_spill] sm:$0xff] %v10540_v0  ;;  %v4027_v41 = vld [vmem:[#allocation3 + $0x310] sm:$0xff] }
 0x351   : > { %4261 = vrot.lane.b32.xlu1 %v10410_v6, %s7927_s29  ;;  %6199 = vmatmul.mubr.bf16.gmra.mxu1 %v5149_v12  ;;  %v5297_v17 = vsel %vm962_vm0, %v10294_v51, %v4576_v55  ;;  %v10549_v12 = vpack.c.bf16 %v4028_v3, %v4027_v41 }
 0x352   : > { %4701 = vrot.lane.b32.xlu0 %v10534_v24, %s7928_s9 }
 0x353   : > { %v4190_v22 = vpop.permute.xlu1 %4189 }
 0x354   : > { %v4674_v20 = vpop.permute.xlu0 %4673  ;;  %v4911_v34 = vsel %vm962_vm0, %v10145_v7, %v4190_v22  ;;  %v3895_v22 = vld [vmem:[#allocation3 + $0x72] sm:$0xff] }
 0x355   : > { %4405 = vrot.lane.b32.xlu1 %v10418_v54, %s7928_s9  ;;  %v5400_v16 = vsel %vm4933_vm1, %v5297_v17, %v4674_v20  ;;  %v4033_v20 = vld [vmem:[#allocation3 + $0x311] sm:$0xff] }
 0x356   : > { %4585 = vrot.lane.b32.xlu0 %v10540_v0, %s7926_s22  ;;  %v10560_v41 = vpack.c.bf16 %v4034_v39, %v4033_v20  ;;  %v3611_v20 = vld [vmem:[#allocation3 + $0x90] sm:$0xff] }
 0x357   : > { %v4334_v63 = vpop.permute.xlu1 %4333 }
 0x358   : > { %v4774_v4 = vpop.permute.xlu0 %4773  ;;  %v5015_v51 = vsel %vm4933_vm1, %v4911_v34, %v4334_v63  ;;  %v3594_v34 = vld [vmem:[#allocation3 + $0x8] sm:$0xff]  ;;  %v3612_v63 = vld [vmem:[#allocation3 + $0x98] sm:$0xff] }
 0x359   : > { %4199 = vrot.lane.b32.xlu1 %v10368_v40, %s7926_s22  ;;  %v5536_v29 = vsel %vm5030_vm2, %v5400_v16, %v4774_v4  ;;  %v3896_v16 = vld [vmem:[#allocation3 + $0x7a] sm:$0xff] }
 0x35a   : > { %4683 = vrot.lane.b32.xlu0 %v10549_v12, %s7927_s29  ;;  %6206 = vmatprep.mubr.bf16.mxu1 %v5536_v29  ;;  %v10566_v29 = vpack.c.bf16 %v3896_v16, %v3895_v22  ;;  %v10575_v16 = vpack.c.bf16 %v3612_v63, %v3611_v20 }
 0x35b   : > { %v4478_v55 = vpop.permute.xlu1 %4477 }
 0x35c   : > { %v5152_v3 = vsel %vm5030_vm2, %v5015_v51, %v4478_v55  ;;  %v4496_v17 = vpop.permute.xlu0 %4495  ;;  %v3593_v51 = vld [vmem:[#allocation3] sm:$0xff] }
 0x35d   : > { %4343 = vrot.lane.b32.xlu1 %v10436_v36, %s7927_s29  ;;  %6207 = vmatmul.mubr.bf16.gmra.mxu1 %v5152_v3  ;;  %v5177_v39 = vsel %vm962_vm0, %v10416_v26, %v4496_v17  ;;  %v3689_v3 = vpack.c.bf16 %v3594_v34, %v3593_v51  ;;  %v3755_v34 = vld [vmem:[#allocation3 + $0x91] sm:$0xff] }
 0x35e   : > { %4783 = vrot.lane.b32.xlu0 %v10560_v41, %s7928_s9 }
 0x35f   : > { %v4110_v7 = vpop.permute.xlu1 %4109 }
 0x360   : > { %v4594_v4 = vpop.permute.xlu0 %4593  ;;  %v4791_v19 = vsel %vm962_vm0, %v3689_v3, %v4110_v7  ;;  %v4037_v7 = vld [vmem:[#allocation3 + $0x302] sm:$0xff] }
 0x361   : > { %4487 = vrot.lane.b32.xlu1 %v10445_v53, %s7928_s9  ;;  %v5320_v10 = vsel %vm4933_vm1, %v5177_v39, %v4594_v4  ;;  %v10585_v39 = vpack.c.bf16 %v3756_v8, %v3755_v34  ;;  %v4043_v3 = vld [vmem:[#allocation3 + $0x320] sm:$0xff] }
 0x362   : > { %4505 = vrot.lane.b32.xlu0 %v10566_v29, %s7926_s22 }
 0x363   : > { %v4254_v55 = vpop.permute.xlu1 %4253 }
 0x364   : > { %v4694_v9 = vpop.permute.xlu0 %4693  ;;  %v4935_v26 = vsel %vm4933_vm1, %v4791_v19, %v4254_v55  ;;  %v4044_v19 = vld [vmem:[#allocation3 + $0x328] sm:$0xff] }
 0x365   : > { %4119 = vrot.lane.b32.xlu1 %v10385_v33, %s7926_s22  ;;  %v5416_v22 = vsel %vm5030_vm2, %v5320_v10, %v4694_v9  ;;  %v4038_v9 = vld [vmem:[#allocation3 + $0x30a] sm:$0xff] }
 0x366   : > { %4603 = vrot.lane.b32.xlu0 %v10575_v16, %s7927_s29  ;;  %5886 = vmatprep.mubr.bf16.mxu0 %v5416_v22  ;;  %v10591_v20 = vpack.c.bf16 %v4038_v9, %v4037_v7  ;;  %v4049_v7 = vld [vmem:[#allocation3 + $0x321] sm:$0xff] }
 0x367   : > { %v4398_v17 = vpop.permute.xlu1 %4397 }
 0x368   : > { %v5032_v4 = vsel %vm5030_vm2, %v4935_v26, %v4398_v17  ;;  %v4578_v63 = vpop.permute.xlu0 %4577  ;;  %12025 = vst [vmem:[#allocation23_spill] sm:$0xff] %v10591_v20  ;;  %v4047_v17 = vpack.c.bf16 %v4044_v19, %v4043_v3  ;;  %v3898_v3 = vld [vmem:[#allocation3 + $0x8a] sm:$0xff] }
 0x369   : > { %4263 = vrot.lane.b32.xlu1 %v10458_v11, %s7927_s29  ;;  %5887 = vmatmul.mubr.bf16.vlgmr.msra.gmra.mxu0 %v5032_v4  ;;  %v5300_v8 = vsel %vm962_vm0, %v10314_v61, %v4578_v63  ;;  %v4050_v4 = vld [vmem:[#allocation3 + $0x329] sm:$0xff] }
 0x36a   : > { %4703 = vrot.lane.b32.xlu0 %v10585_v39, %s7928_s9  ;;  %v4053_v19 = vpack.c.bf16 %v4050_v4, %v4049_v7  ;;  %v3595_v4 = vld [vmem:[#allocation3 + $0x10] sm:$0xff] }
 0x36b   : > { %v4192_v10 = vpop.permute.xlu1 %4191 }
 0x36c   : > { %v4676_v51 = vpop.permute.xlu0 %4675  ;;  %v4914_v9 = vsel %vm962_vm0, %v10255_v31, %v4192_v10  ;;  %v3897_v31 = vld [vmem:[#allocation3 + $0x82] sm:$0xff] }
 0x36d   : > { %4407 = vrot.lane.b32.xlu1 %v10471_v35, %s7928_s9  ;;  %v5402_v22 = vsel %vm4933_vm1, %v5300_v8, %v4676_v51 }
 0x36e   : > { %4587 = vrot.lane.b32.xlu0 %v10591_v20, %s7926_s22  ;;  %v3774_v20 = vld [vmem:[#allocation3 + $0x129] sm:$0xff] }
 0x36f   : > { %v4336_v55 = vpop.permute.xlu1 %4335 }
 0x370   : > { %v4776_v26 = vpop.permute.xlu0 %4775  ;;  %v5017_v61 = vsel %vm4933_vm1, %v4914_v9, %v4336_v55  ;;  %v3614_v55 = vld [vmem:[#allocation3 + $0xa8] sm:$0xff] }
 0x371   : > { %4201 = vrot.lane.b32.xlu1 %v10404_v43, %s7926_s22  ;;  %v5539_v34 = vsel %vm5030_vm2, %v5402_v22, %v4776_v26  ;;  %v10611_v26 = vpack.c.bf16 %v3898_v3, %v3897_v31  ;;  %v3758_v3 = vld [vmem:[#allocation3 + $0xa9] sm:$0xff] }
 0x372   : > { %4685 = vrot.lane.b32.xlu0 %v4047_v17, %s7927_s29  ;;  %6214 = vmatprep.mubr.bf16.mxu1 %v5539_v34  ;;  %v3596_v17 = vld [vmem:[#allocation3 + $0x18] sm:$0xff] }
 0x373   : > { %v4480_v63 = vpop.permute.xlu1 %4479 }
 0x374   : > { %v5155_v51 = vsel %vm5030_vm2, %v5017_v61, %v4480_v63  ;;  %v4498_v8 = vpop.permute.xlu0 %4497  ;;  %v3613_v61 = vld [vmem:[#allocation3 + $0xa0] sm:$0xff]  ;;  %v3690_v63 = vpack.c.bf16 %v3596_v17, %v3595_v4 }
 0x375   : > { %4345 = vrot.lane.b32.xlu1 %v10488_v60, %s7927_s29  ;;  %6215 = vmatmul.mubr.bf16.gmra.mxu1 %v5155_v51  ;;  %v5180_v34 = vsel %vm962_vm0, %v10466_v42, %v4498_v8  ;;  %v3757_v17 = vld [vmem:[#allocation3 + $0xa1] sm:$0xff] }
 0x376   : > { %4785 = vrot.lane.b32.xlu0 %v4053_v19, %s7928_s9  ;;  %v10620_v19 = vpack.c.bf16 %v3614_v55, %v3613_v61  ;;  %v4040_v4 = vld [vmem:[#allocation3 + $0x31a] sm:$0xff]  ;;  %v4039_v61 = vld [vmem:[#allocation3 + $0x312] sm:$0xff] }
 0x377   : > { %v4112_v22 = vpop.permute.xlu1 %4111 }
 0x378   : > { %v4596_v10 = vpop.permute.xlu0 %4595  ;;  %v4794_v31 = vsel %vm962_vm0, %v3690_v63, %v4112_v22 }
 0x379   : > { %4489 = vrot.lane.b32.xlu1 %v10497_v32, %s7928_s9  ;;  %v5322_v7 = vsel %vm4933_vm1, %v5180_v34, %v4596_v10  ;;  %v10630_v34 = vpack.c.bf16 %v3758_v3, %v3757_v17 }
 0x37a   : > { %4507 = vrot.lane.b32.xlu0 %v10611_v26, %s7926_s22 }
 0x37b   : > { %v4256_v9 = vpop.permute.xlu1 %4255 }
 0x37c   : > { %v4696_v51 = vpop.permute.xlu0 %4695  ;;  %v4937_v42 = vsel %vm4933_vm1, %v4794_v31, %v4256_v9  ;;  %v7770_v9 = vld [vmem:[%s11984_s3 + $0x88] sm:$0xff]   ;;  %v4045_v31 = vld [vmem:[#allocation3 + $0x330] sm:$0xff] }
 0x37d   : > { %4121 = vrot.lane.b32.xlu1 %v10426_v21, %s7926_s22  ;;  %v5419_v32 = vsel %vm5030_vm2, %v5322_v7, %v4696_v51  ;;  %v10639_v7 = vpack.c.bf16 %v4040_v4, %v4039_v61  ;;  %v4046_v51 = vld [vmem:[#allocation3 + $0x338] sm:$0xff]  ;;  %7543 = vmatprep.subr.bf16.mxu1 %v7770_v9 }
 0x37e   : > { %4605 = vrot.lane.b32.xlu0 %v10620_v19, %s7927_s29  ;;  %5894 = vmatprep.mubr.bf16.mxu0 %v5419_v32  ;;  %v4048_v17 = vpack.c.bf16 %v4046_v51, %v4045_v31  ;;  %v4052_v4 = vld [vmem:[#allocation3 + $0x339] sm:$0xff] }
 0x37f   : > { %v4400_v8 = vpop.permute.xlu1 %4399  ;;  %12026 = vst [vmem:[#allocation24_spill] sm:$0xff] %v10639_v7  ;;  %7544 = vmatpush3.bf16.msra.mxu1 %v7770_v9 }
 0x380   : > { %v5035_v10 = vsel %vm5030_vm2, %v4937_v42, %v4400_v8  ;;  %v4580_v55 = vpop.permute.xlu0 %4579 }
 0x381   : > { %4265 = vrot.lane.b32.xlu1 %v10514_v50, %s7927_s29  ;;  %5895 = vmatmul.mubr.bf16.gmra.mxu0 %v5035_v10  ;;  %v5303_v32 = vsel %vm962_vm0, %v10332_v47, %v4580_v55  ;;  %v7771_v47 = vld [vmem:[%s11984_s3 + $0x80] sm:$0xff]  }
 0x382   : > { %4705 = vrot.lane.b32.xlu0 %v10630_v34, %s7928_s9  ;;  %7545 = vmatprep.subr.bf16.mxu1 %v7771_v47 }
 0x383   : > { %v4194_v22 = vpop.permute.xlu1 %4193  ;;  %7546 = vmatpush3.bf16.msra.mxu1 %v7771_v47 }
 0x384   : > { %v4678_v63 = vpop.permute.xlu0 %4677  ;;  %v4917_v61 = vsel %vm962_vm0, %v10286_v14, %v4194_v22  ;;  %v3900_v14 = vld [vmem:[#allocation3 + $0x9a] sm:$0xff] }
 0x385   : > { %4409 = vrot.lane.b32.xlu1 %v10523_v1, %s7928_s9  ;;  %v5404_v42 = vsel %vm4933_vm1, %v5303_v32, %v4678_v63  ;;  %v4051_v63 = vld [vmem:[#allocation3 + $0x331] sm:$0xff] }
 0x386   : > { %4589 = vrot.lane.b32.xlu0 %v10639_v7, %s7926_s22  ;;  %v4054_v31 = vpack.c.bf16 %v4052_v4, %v4051_v63 }
 0x387   : > { %v4338_v3 = vpop.permute.xlu1 %4337 }
 0x388   : > { %v4778_v8 = vpop.permute.xlu0 %4777  ;;  %v5019_v55 = vsel %vm4933_vm1, %v4917_v61, %v4338_v3  ;;  %v3616_v3 = vld [vmem:[#allocation3 + $0xb8] sm:$0xff]  ;;  %v3615_v61 = vld [vmem:[#allocation3 + $0xb0] sm:$0xff] }
 0x389   : > { %4203 = vrot.lane.b32.xlu1 %v10452_v45, %s7926_s22  ;;  %v5542_v10 = vsel %vm5030_vm2, %v5404_v42, %v4778_v8  ;;  %v3899_v42 = vld [vmem:[#allocation3 + $0x92] sm:$0xff] }
 0x38a   : > { %4687 = vrot.lane.b32.xlu0 %v4048_v17, %s7927_s29  ;;  %6222 = vmatprep.mubr.bf16.mxu1 %v5542_v10  ;;  %v10662_v17 = vpack.c.bf16 %v3900_v14, %v3899_v42 }
 0x38b   : > { %v4482_v9 = vpop.permute.xlu1 %4481 }
 0x38c   : > { %v5158_v51 = vsel %vm5030_vm2, %v5019_v55, %v4482_v9  ;;  %v4500_v32 = vpop.permute.xlu0 %4499  ;;  %v10671_v9 = vpack.c.bf16 %v3616_v3, %v3615_v61  ;;  %v3902_v3 = vld [vmem:[#allocation3 + $0xaa] sm:$0xff] }
 0x38d   : > { %4347 = vrot.lane.b32.xlu1 %v10540_v0, %s7927_s29  ;;  %6223 = vmatmul.mubr.bf16.gmra.mxu1 %v5158_v51  ;;  %v5183_v10 = vsel %vm962_vm0, %v10349_v27, %v4500_v32 }
 0x38e   : > { %4787 = vrot.lane.b32.xlu0 %v4054_v31, %s7928_s9  ;;  %v3759_v31 = vld [vmem:[#allocation3 + $0xb1] sm:$0xff] }
 0x38f   : > { %v4114_v22 = vpop.permute.xlu1 %4113 }
 0x390   : > { %v4598_v8 = vpop.permute.xlu0 %4597  ;;  %v4797_v51 = vsel %vm962_vm0, %v10354_v2, %v4114_v22  ;;  %v3901_v22 = vld [vmem:[#allocation3 + $0xa2] sm:$0xff] }
 0x391   : > { %4491 = vrot.lane.b32.xlu1 %v10549_v12, %s7928_s9  ;;  %v5324_v55 = vsel %vm4933_vm1, %v5183_v10, %v4598_v8  ;;  %v3760_v12 = vld [vmem:[#allocation3 + $0xb9] sm:$0xff]  ;;  %v10688_v61 = vpack.c.bf16 %v3902_v3, %v3901_v22  ;;  %v3761_v3 = vld [vmem:[#allocation3 + $0xc1] sm:$0xff] }
 0x392   : > { %4509 = vrot.lane.b32.xlu0 %v10662_v17, %s7926_s22  ;;  %v10682_v8 = vpack.c.bf16 %v3760_v12, %v3759_v31  ;;  %v3762_v31 = vld [vmem:[#allocation3 + $0xc9] sm:$0xff] }
 0x393   : > { %v4258_v4 = vpop.permute.xlu1 %4257 }
 0x394   : > { %v4698_v47 = vpop.permute.xlu0 %4697  ;;  %v4939_v27 = vsel %vm4933_vm1, %v4797_v51, %v4258_v4  ;;  %v3618_v4 = vld [vmem:[#allocation3 + $0xc8] sm:$0xff] }
 0x395   : > { %4123 = vrot.lane.b32.xlu1 %v10482_v18, %s7926_s22  ;;  %v5422_v63 = vsel %vm5030_vm2, %v5324_v55, %v4698_v47 }
 0x396   : > { %4607 = vrot.lane.b32.xlu0 %v10671_v9, %s7927_s29  ;;  %5902 = vmatprep.mubr.bf16.mxu0 %v5422_v63  ;;  %v3617_v63 = vld [vmem:[#allocation3 + $0xc0] sm:$0xff] }
 0x397   : > { %v4402_v32 = vpop.permute.xlu1 %4401 }
 0x398   : > { %v5038_v14 = vsel %vm5030_vm2, %v4939_v27, %v4402_v32  ;;  %v4582_v42 = vpop.permute.xlu0 %4581  ;;  %v10697_v27 = vpack.c.bf16 %v3618_v4, %v3617_v63  ;;  %v10708_v4 = vpack.c.bf16 %v3762_v31, %v3761_v3  ;;  %v3619_v31 = vld [vmem:[#allocation3 + $0xd0] sm:$0xff] }
 0x399   : > { %4267 = vrot.lane.b32.xlu1 %v10566_v29, %s7927_s29  ;;  %5903 = vmatmul.mubr.bf16.gmra.mxu0 %v5038_v14  ;;  %v5306_v55 = vsel %vm962_vm0, %v10368_v40, %v4582_v42 }
 0x39a   : > { %4707 = vrot.lane.b32.xlu0 %v10682_v8, %s7928_s9 }
 0x39b   : > { %v4196_v2 = vpop.permute.xlu1 %4195 }
 0x39c   : > { %v4680_v10 = vpop.permute.xlu0 %4679  ;;  %v4920_v14 = vsel %vm962_vm0, %v10308_v23, %v4196_v2  ;;  %v3903_v2 = vld [vmem:[#allocation3 + $0xb2] sm:$0xff] }
 0x39d   : > { %4411 = vrot.lane.b32.xlu1 %v10575_v16, %s7928_s9  ;;  %v5406_v12 = vsel %vm4933_vm1, %v5306_v55, %v4680_v10  ;;  %v3904_v55 = vld [vmem:[#allocation3 + $0xba] sm:$0xff] }
 0x39e   : > { %4511 = vrot.lane.b32.xlu0 %v10688_v61, %s7926_s22 }
 0x39f   : > { %v4340_v47 = vpop.permute.xlu1 %4339 }
 0x3a0   : > { %v4780_v51 = vpop.permute.xlu0 %4779  ;;  %v5021_v40 = vsel %vm4933_vm1, %v4920_v14, %v4340_v47  ;;  %v3620_v47 = vld [vmem:[#allocation3 + $0xd8] sm:$0xff] }
 0x3a1   : > { %4125 = vrot.lane.b32.xlu1 %v10534_v24, %s7926_s22  ;;  %v5545_v32 = vsel %vm5030_vm2, %v5406_v12, %v4780_v51  ;;  %v10714_v12 = vpack.c.bf16 %v3904_v55, %v3903_v2  ;;  %v3763_v2 = vld [vmem:[#allocation3 + $0xd1] sm:$0xff] }
 0x3a2   : > { %4609 = vrot.lane.b32.xlu0 %v10697_v27, %s7927_s29  ;;  %6230 = vmatprep.mubr.bf16.mxu1 %v5545_v32 }
 0x3a3   : > { %v4484_v42 = vpop.permute.xlu1 %4483 }
 0x3a4   : > { %v5161_v22 = vsel %vm5030_vm2, %v5021_v40, %v4484_v42  ;;  %v4502_v10 = vpop.permute.xlu0 %4501  ;;  %v10723_v42 = vpack.c.bf16 %v3620_v47, %v3619_v31  ;;  %v3906_v31 = vld [vmem:[#allocation3 + $0xca] sm:$0xff] }
 0x3a5   : > { %4269 = vrot.lane.b32.xlu1 %v10611_v26, %s7927_s29  ;;  %6231 = vmatmul.mubr.bf16.gmra.mxu1 %v5161_v22  ;;  %v5186_v51 = vsel %vm962_vm0, %v10385_v33, %v4502_v10  ;;  %v3764_v22 = vld [vmem:[#allocation3 + $0xd9] sm:$0xff] }
 0x3a6   : > { %4709 = vrot.lane.b32.xlu0 %v10708_v4, %s7928_s9 }
 0x3a7   : > { %v4116_v23 = vpop.permute.xlu1 %4115 }
 0x3a8   : > { %v4600_v63 = vpop.permute.xlu0 %4599  ;;  %v4800_v55 = vsel %vm962_vm0, %v10390_v58, %v4116_v23  ;;  %v3905_v23 = vld [vmem:[#allocation3 + $0xc2] sm:$0xff] }
 0x3a9   : > { %4413 = vrot.lane.b32.xlu1 %v10620_v19, %s7928_s9  ;;  %v5326_v14 = vsel %vm4933_vm1, %v5186_v51, %v4600_v63  ;;  %v10734_v51 = vpack.c.bf16 %v3764_v22, %v3763_v2 }
 0x3aa   : > { %4513 = vrot.lane.b32.xlu0 %v10714_v12, %s7926_s22 }
 0x3ab   : > { %v4260_v32 = vpop.permute.xlu1 %4259 }
 0x3ac   : > { %v4700_v40 = vpop.permute.xlu0 %4699  ;;  %v4941_v33 = vsel %vm4933_vm1, %v4800_v55, %v4260_v32  ;;  %v3622_v32 = vld [vmem:[#allocation3 + $0xe8] sm:$0xff]  ;;  %v3621_v55 = vld [vmem:[#allocation3 + $0xe0] sm:$0xff] }
 0x3ad   : > { %4127 = vrot.lane.b32.xlu1 %v10585_v39, %s7926_s22  ;;  %v5425_v3 = vsel %vm5030_vm2, %v5326_v14, %v4700_v40  ;;  %v10740_v40 = vpack.c.bf16 %v3906_v31, %v3905_v23  ;;  %v10749_v2 = vpack.c.bf16 %v3622_v32, %v3621_v55  ;;  %v3766_v31 = vld [vmem:[#allocation3 + $0xe9] sm:$0xff] }
 0x3ae   : > { %4611 = vrot.lane.b32.xlu0 %v10723_v42, %s7927_s29  ;;  %5910 = vmatprep.mubr.bf16.mxu0 %v5425_v3 }
 0x3af   : > { %v4404_v10 = vpop.permute.xlu1 %4403 }
 0x3b0   : > { %v5041_v63 = vsel %vm5030_vm2, %v4941_v33, %v4404_v10  ;;  %v4584_v47 = vpop.permute.xlu0 %4583 }
 0x3b1   : > { %4271 = vrot.lane.b32.xlu1 %v10662_v17, %s7927_s29  ;;  %5911 = vmatmul.mubr.bf16.gmra.mxu0 %v5041_v63  ;;  %v5309_v3 = vsel %vm962_vm0, %v10404_v43, %v4584_v47 }
 0x3b2   : > { %4711 = vrot.lane.b32.xlu0 %v10734_v51, %s7928_s9 }
 0x3b3   : > { %v4198_v58 = vpop.permute.xlu1 %4197 }
 0x3b4   : > { %v4682_v14 = vpop.permute.xlu0 %4681  ;;  %v4923_v23 = vsel %vm962_vm0, %v10326_v46, %v4198_v58  ;;  %v3907_v58 = vld [vmem:[#allocation3 + $0xd2] sm:$0xff] }
 0x3b5   : > { %4415 = vrot.lane.b32.xlu1 %v10671_v9, %s7928_s9  ;;  %v5408_v33 = vsel %vm4933_vm1, %v5309_v3, %v4682_v14  ;;  %v3765_v14 = vld [vmem:[#allocation3 + $0xe1] sm:$0xff] }
 0x3b6   : > { %4515 = vrot.lane.b32.xlu0 %v10740_v40, %s7926_s22  ;;  %v10760_v55 = vpack.c.bf16 %v3766_v31, %v3765_v14 }
 0x3b7   : > { %v4342_v22 = vpop.permute.xlu1 %4341 }
 0x3b8   : > { %v4782_v10 = vpop.permute.xlu0 %4781  ;;  %v5023_v43 = vsel %vm4933_vm1, %v4923_v23, %v4342_v22  ;;  %v3624_v22 = vld [vmem:[#allocation3 + $0xf8] sm:$0xff] }
 0x3b9   : > { %4129 = vrot.lane.b32.xlu1 %v10630_v34, %s7926_s22  ;;  %v5548_v63 = vsel %vm5030_vm2, %v5408_v33, %v4782_v10  ;;  %v3908_v33 = vld [vmem:[#allocation3 + $0xda] sm:$0xff] }
 0x3ba   : > { %4613 = vrot.lane.b32.xlu0 %v10749_v2, %s7927_s29  ;;  %6238 = vmatprep.mubr.bf16.mxu1 %v5548_v63  ;;  %v10766_v63 = vpack.c.bf16 %v3908_v33, %v3907_v58  ;;  %v3768_v58 = vld [vmem:[#allocation3 + $0xf9] sm:$0xff] }
 0x3bb   : > { %v4486_v47 = vpop.permute.xlu1 %4485 }
 0x3bc   : > { %v5164_v32 = vsel %vm5030_vm2, %v5023_v43, %v4486_v47  ;;  %v4504_v3 = vpop.permute.xlu0 %4503  ;;  %v3623_v43 = vld [vmem:[#allocation3 + $0xf0] sm:$0xff] }
 0x3bd   : > { %4273 = vrot.lane.b32.xlu1 %v10688_v61, %s7927_s29  ;;  %6239 = vmatmul.mubr.bf16.gmra.mxu1 %v5164_v32  ;;  %v5189_v31 = vsel %vm962_vm0, %v10426_v21, %v4504_v3  ;;  %v10775_v32 = vpack.c.bf16 %v3624_v22, %v3623_v43 }
 0x3be   : > { %4713 = vrot.lane.b32.xlu0 %v10760_v55, %s7928_s9 }
 0x3bf   : > { %v4118_v46 = vpop.permute.xlu1 %4117 }
 0x3c0   : > { %v4602_v10 = vpop.permute.xlu0 %4601  ;;  %v4803_v28 = vsel %vm962_vm0, %v10344_v49, %v4118_v46  ;;  %v3909_v46 = vld [vmem:[#allocation3 + $0xe2] sm:$0xff] }
 0x3c1   : > { %4417 = vrot.lane.b32.xlu1 %v10697_v27, %s7928_s9  ;;  %v5328_v47 = vsel %vm4933_vm1, %v5189_v31, %v4602_v10  ;;  %v3767_v10 = vld [vmem:[#allocation3 + $0xf1] sm:$0xff] }
 0x3c2   : > { %4517 = vrot.lane.b32.xlu0 %v10766_v63, %s7926_s22  ;;  %v10786_v43 = vpack.c.bf16 %v3768_v58, %v3767_v10 }
 0x3c3   : > { %v4262_v23 = vpop.permute.xlu1 %4261 }
 0x3c4   : > { %v4702_v14 = vpop.permute.xlu0 %4701  ;;  %v4943_v21 = vsel %vm4933_vm1, %v4803_v28, %v4262_v23  ;;  %v3626_v28 = vld [vmem:[#allocation3 + $0x108] sm:$0xff] }
 0x3c5   : > { %4131 = vrot.lane.b32.xlu1 %v10682_v8, %s7926_s22  ;;  %v5428_v33 = vsel %vm5030_vm2, %v5328_v47, %v4702_v14  ;;  %v3910_v47 = vld [vmem:[#allocation3 + $0xea] sm:$0xff] }
 0x3c6   : > { %4615 = vrot.lane.b32.xlu0 %v10775_v32, %s7927_s29  ;;  %5918 = vmatprep.mubr.bf16.mxu0 %v5428_v33  ;;  %v10792_v33 = vpack.c.bf16 %v3910_v47, %v3909_v46  ;;  %v3770_v46 = vld [vmem:[#allocation3 + $0x109] sm:$0xff] }
 0x3c7   : > { %v4406_v3 = vpop.permute.xlu1 %4405 }
 0x3c8   : > { %v5044_v22 = vsel %vm5030_vm2, %v4943_v21, %v4406_v3  ;;  %v4586_v31 = vpop.permute.xlu0 %4585  ;;  %v3625_v21 = vld [vmem:[#allocation3 + $0x100] sm:$0xff] }
 0x3c9   : > { %4275 = vrot.lane.b32.xlu1 %v10714_v12, %s7927_s29  ;;  %5919 = vmatmul.mubr.bf16.gmra.mxu0 %v5044_v22  ;;  %v5312_v23 = vsel %vm962_vm0, %v10452_v45, %v4586_v31  ;;  %v10801_v22 = vpack.c.bf16 %v3626_v28, %v3625_v21 }
 0x3ca   : > { %4715 = vrot.lane.b32.xlu0 %v10786_v43, %s7928_s9 }
 0x3cb   : > { %v4200_v49 = vpop.permute.xlu1 %4199 }
 0x3cc   : > { %v4684_v14 = vpop.permute.xlu0 %4683  ;;  %v4926_v25 = vsel %vm962_vm0, %v10362_v37, %v4200_v49  ;;  %v3911_v49 = vld [vmem:[#allocation3 + $0xf2] sm:$0xff] }
 0x3cd   : > { %4419 = vrot.lane.b32.xlu1 %v10723_v42, %s7928_s9  ;;  %v5410_v3 = vsel %vm4933_vm1, %v5312_v23, %v4684_v14  ;;  %v3769_v14 = vld [vmem:[#allocation3 + $0x101] sm:$0xff] }
 0x3ce   : > { %4519 = vrot.lane.b32.xlu0 %v10792_v33, %s7926_s22  ;;  %v10812_v21 = vpack.c.bf16 %v3770_v46, %v3769_v14 }
 0x3cf   : > { %v4344_v58 = vpop.permute.xlu1 %4343 }
 0x3d0   : > { %v4784_v10 = vpop.permute.xlu0 %4783  ;;  %v5025_v45 = vsel %vm4933_vm1, %v4926_v25, %v4344_v58  ;;  %v3628_v25 = vld [vmem:[#allocation3 + $0x118] sm:$0xff] }
 0x3d1   : > { %4133 = vrot.lane.b32.xlu1 %v10708_v4, %s7926_s22  ;;  %v5551_v47 = vsel %vm5030_vm2, %v5410_v3, %v4784_v10  ;;  %v3912_v3 = vld [vmem:[#allocation3 + $0xfa] sm:$0xff] }
 0x3d2   : > { %4617 = vrot.lane.b32.xlu0 %v10801_v22, %s7927_s29  ;;  %6246 = vmatprep.mubr.bf16.mxu1 %v5551_v47  ;;  %v10818_v47 = vpack.c.bf16 %v3912_v3, %v3911_v49  ;;  %v3772_v49 = vld [vmem:[#allocation3 + $0x119] sm:$0xff] }
 0x3d3   : > { %v4488_v31 = vpop.permute.xlu1 %4487 }
 0x3d4   : > { %v5167_v28 = vsel %vm5030_vm2, %v5025_v45, %v4488_v31  ;;  %v4506_v23 = vpop.permute.xlu0 %4505  ;;  %v3627_v45 = vld [vmem:[#allocation3 + $0x110] sm:$0xff] }
 0x3d5   : > { %4277 = vrot.lane.b32.xlu1 %v10740_v40, %s7927_s29  ;;  %6247 = vmatmul.mubr.bf16.gmra.mxu1 %v5167_v28  ;;  %v5192_v58 = vsel %vm962_vm0, %v10482_v18, %v4506_v23  ;;  %v10827_v28 = vpack.c.bf16 %v3628_v25, %v3627_v45 }
 0x3d6   : > { %4717 = vrot.lane.b32.xlu0 %v10812_v21, %s7928_s9 }
 0x3d7   : > { %v4120_v37 = vpop.permute.xlu1 %4119 }
 0x3d8   : > { %v4604_v10 = vpop.permute.xlu0 %4603  ;;  %v4806_v7 = vsel %vm962_vm0, %v10380_v38, %v4120_v37  ;;  %v3913_v37 = vld [vmem:[#allocation3 + $0x102] sm:$0xff] }
 0x3d9   : > { %4421 = vrot.lane.b32.xlu1 %v10749_v2, %s7928_s9  ;;  %v5330_v31 = vsel %vm4933_vm1, %v5192_v58, %v4604_v10  ;;  %v3771_v10 = vld [vmem:[#allocation3 + $0x111] sm:$0xff] }
 0x3da   : > { %4521 = vrot.lane.b32.xlu0 %v10818_v47, %s7926_s22  ;;  %v10838_v45 = vpack.c.bf16 %v3772_v49, %v3771_v10 }
 0x3db   : > { %v4264_v46 = vpop.permute.xlu1 %4263 }
 0x3dc   : > { %v4704_v14 = vpop.permute.xlu0 %4703  ;;  %v4945_v18 = vsel %vm4933_vm1, %v4806_v7, %v4264_v46  ;;  %v3630_v7 = vld [vmem:[#allocation3 + $0x128] sm:$0xff] }
 0x3dd   : > { %4135 = vrot.lane.b32.xlu1 %v10734_v51, %s7926_s22  ;;  %v5431_v3 = vsel %vm5030_vm2, %v5330_v31, %v4704_v14  ;;  %v3914_v31 = vld [vmem:[#allocation3 + $0x10a] sm:$0xff] }
 0x3de   : > { %4619 = vrot.lane.b32.xlu0 %v10827_v28, %s7927_s29  ;;  %5926 = vmatprep.mubr.bf16.mxu0 %v5431_v3  ;;  %v10844_v3 = vpack.c.bf16 %v3914_v31, %v3913_v37 }
 0x3df   : > { %v4408_v23 = vpop.permute.xlu1 %4407 }
 0x3e0   : > { %v5047_v25 = vsel %vm5030_vm2, %v4945_v18, %v4408_v23  ;;  %v4588_v58 = vpop.permute.xlu0 %4587  ;;  %v3629_v18 = vld [vmem:[#allocation3 + $0x120] sm:$0xff] }
 0x3e1   : > { %4279 = vrot.lane.b32.xlu1 %v10766_v63, %s7927_s29  ;;  %5927 = vmatmul.mubr.bf16.gmra.mxu0 %v5047_v25  ;;  %v5315_v46 = vsel %vm962_vm0, %v10508_v62, %v4588_v58  ;;  %v10853_v25 = vpack.c.bf16 %v3630_v7, %v3629_v18  ;;  %v3773_v7 = vld [vmem:[#allocation3 + $0x121] sm:$0xff] }
 0x3e2   : > { %4719 = vrot.lane.b32.xlu0 %v10838_v45, %s7928_s9  ;;  %v10866_v60 = vpack.c.bf16 %v3774_v20, %v3773_v7  ;;  %v3632_v20 = vld [vmem:[#allocation3 + $0x138] sm:$0xff] }
 0x3e3   : > { %v4202_v38 = vpop.permute.xlu1 %4201 }
 0x3e4   : > { %v4686_v14 = vpop.permute.xlu0 %4685  ;;  %v4929_v0 = vsel %vm962_vm0, %v10398_v15, %v4202_v38  ;;  %v3916_v15 = vld [vmem:[#allocation3 + $0x11a] sm:$0xff] }
 0x3e5   : > { %4423 = vrot.lane.b32.xlu1 %v10775_v32, %s7928_s9  ;;  %v5412_v23 = vsel %vm4933_vm1, %v5315_v46, %v4686_v14 }
 0x3e6   : > { %4523 = vrot.lane.b32.xlu0 %v10844_v3, %s7926_s22 }
 0x3e7   : > { %v4346_v49 = vpop.permute.xlu1 %4345 }
 0x3e8   : > { %v4786_v10 = vpop.permute.xlu0 %4785  ;;  %v5027_v62 = vsel %vm4933_vm1, %v4929_v0, %v4346_v49  ;;  %v3915_v49 = vld [vmem:[#allocation3 + $0x112] sm:$0xff] }
 0x3e9   : > { %4137 = vrot.lane.b32.xlu1 %v10760_v55, %s7926_s22  ;;  %v5554_v31 = vsel %vm5030_vm2, %v5412_v23, %v4786_v10 }
 0x3ea   : > { %4621 = vrot.lane.b32.xlu0 %v10853_v25, %s7927_s29  ;;  %6254 = vmatprep.mubr.bf16.mxu1 %v5554_v31  ;;  %v10874_v31 = vpack.c.bf16 %v3916_v15, %v3915_v49  ;;  %v3776_v49 = vld [vmem:[#allocation3 + $0x139] sm:$0xff] }
 0x3eb   : > { %v10858_v37 = vpop.f32.mrf.mxu1  ;;  %v4490_v58 = vpop.permute.xlu1 %4489 }
 0x3ec   : > { %12027 = vst [vmem:[#allocation25_spill] sm:$0xff] %v10858_v37  ;;  %v5170_v46 = vsel %vm5030_vm2, %v5027_v62, %v4490_v58  ;;  %v4508_v18 = vpop.permute.xlu0 %4507  ;;  %v3633_v37 = vld [vmem:[#allocation3 + $0x140] sm:$0xff] }
 0x3ed   : > { %v6178_v14 = vpop.f32.mrf.mxu1  ;;  %4281 = vrot.lane.b32.xlu1 %v10792_v33, %s7927_s29  ;;  %6255 = vmatmul.mubr.bf16.gmra.mxu1 %v5170_v46  ;;  %v5195_v62 = vsel %vm962_vm0, %v10534_v24, %v4508_v18 }
 0x3ee   : > { %4721 = vrot.lane.b32.xlu0 %v10866_v60, %s7928_s9  ;;  %v3631_v14 = vld [vmem:[#allocation3 + $0x130] sm:$0xff] }
 0x3ef   : > { %v10870_v23 = vpop.f32.mrf.mxu1  ;;  %v4122_v38 = vpop.permute.xlu1 %4121 }
 0x3f0   : > { %12028 = vst [vmem:[#allocation26_spill] sm:$0xff] %v10870_v23  ;;  %v4606_v10 = vpop.permute.xlu0 %4605  ;;  %v4809_v23 = vsel %vm962_vm0, %v10418_v54, %v4122_v38  ;;  %v3918_v54 = vld [vmem:[#allocation3 + $0x12a] sm:$0xff] }
 0x3f1   : > { %v6181_v0 = vpop.f32.mrf.mxu1  ;;  %4425 = vrot.lane.b32.xlu1 %v10801_v22, %s7928_s9  ;;  %v5332_v7 = vsel %vm4933_vm1, %v5195_v62, %v4606_v10  ;;  %v3775_v10 = vld [vmem:[#allocation3 + $0x131] sm:$0xff] }
 0x3f2   : > { %4525 = vrot.lane.b32.xlu0 %v10874_v31, %s7926_s22  ;;  %v10883_v0 = vpack.c.bf16 %v3632_v20, %v3631_v14  ;;  %v10894_v14 = vpack.c.bf16 %v3776_v49, %v3775_v10 }
 0x3f3   : > { %v4266_v58 = vpop.permute.xlu1 %4265 }
 0x3f4   : > { %v4706_v46 = vpop.permute.xlu0 %4705  ;;  %v4947_v24 = vsel %vm4933_vm1, %v4809_v23, %v4266_v58  ;;  %v3917_v23 = vld [vmem:[#allocation3 + $0x122] sm:$0xff] }
 0x3f5   : > { %4139 = vrot.lane.b32.xlu1 %v10786_v43, %s7926_s22  ;;  %v5434_v15 = vsel %vm5030_vm2, %v5332_v7, %v4706_v46 }
 0x3f6   : > { %4623 = vrot.lane.b32.xlu0 %v10883_v0, %s7927_s29  ;;  %5934 = vmatprep.mubr.bf16.mxu0 %v5434_v15  ;;  %v10902_v15 = vpack.c.bf16 %v3918_v54, %v3917_v23  ;;  %v3778_v23 = vld [vmem:[#allocation3 + $0x149] sm:$0xff] }
 0x3f7   : > { %v4410_v18 = vpop.permute.xlu1 %4409 }
 0x3f8   : > { %v5050_v20 = vsel %vm5030_vm2, %v4947_v24, %v4410_v18  ;;  %v4590_v62 = vpop.permute.xlu0 %4589  ;;  %v3634_v24 = vld [vmem:[#allocation3 + $0x148] sm:$0xff] }
 0x3f9   : > { %4283 = vrot.lane.b32.xlu1 %v10818_v47, %s7927_s29  ;;  %5935 = vmatmul.mubr.bf16.gmra.mxu0 %v5050_v20  ;;  %v10898_v7 = vpop.f32.mrf.mxu1  ;;  %v5318_v18 = vsel %vm962_vm0, %v10560_v41, %v4590_v62  ;;  %v10911_v36 = vpack.c.bf16 %v3634_v24, %v3633_v37 }
 0x3fa   : > { %12029 = vst [vmem:[#allocation27_spill] sm:$0xff] %v10898_v7  ;;  %4723 = vrot.lane.b32.xlu0 %v10894_v14, %s7928_s9 }
 0x3fb   : > { %v4204_v38 = vpop.permute.xlu1 %4203  ;;  %v6186_v46 = vpop.f32.mrf.mxu1 }
 0x3fc   : > { %v4688_v58 = vpop.permute.xlu0 %4687 }
 0x3fd   : > { %4427 = vrot.lane.b32.xlu1 %v10827_v28, %s7928_s9  ;;  %v6187_v49 = vpop.f32.mrf.mxu1  ;;  %v5414_v46 = vsel %vm4933_vm1, %v5318_v18, %v4688_v58  ;;  %v3777_v58 = vld [vmem:[#allocation3 + $0x141] sm:$0xff] }
 0x3fe   : > { %4527 = vrot.lane.b32.xlu0 %v10902_v15, %s7926_s22  ;;  %v4932_v49 = vsel %vm962_vm0, %v10445_v53, %v4204_v38  ;;  %v10922_v18 = vpack.c.bf16 %v3778_v23, %v3777_v58  ;;  %v3920_v53 = vld [vmem:[#allocation3 + $0x13a] sm:$0xff]  ;;  %v3635_v58 = vld [vmem:[#allocation3 + $0x150] sm:$0xff] }
 0x3ff   : > { %v4348_v10 = vpop.permute.xlu1 %4347  ;;  %v6189_v20 = vpop.f32.mrf.mxu1 }
 0x400   : > { %v4788_v7 = vpop.permute.xlu0 %4787  ;;  %v5029_v41 = vsel %vm4933_vm1, %v4932_v49, %v4348_v10  ;;  %v3919_v20 = vld [vmem:[#allocation3 + $0x132] sm:$0xff] }
 0x401   : > { %4141 = vrot.lane.b32.xlu1 %v10812_v21, %s7926_s22  ;;  %v5557_v54 = vsel %vm5030_vm2, %v5414_v46, %v4788_v7  ;;  %v3636_v49 = vld [vmem:[#allocation3 + $0x158] sm:$0xff] }
 0x402   : > { %4625 = vrot.lane.b32.xlu0 %v10911_v36, %s7927_s29  ;;  %6262 = vmatprep.mubr.bf16.mxu1 %v5557_v54  ;;  %v10932_v54 = vpack.c.bf16 %v3920_v53, %v3919_v20  ;;  %v10943_v53 = vpack.c.bf16 %v3636_v49, %v3635_v58  ;;  %v3779_v49 = vld [vmem:[#allocation3 + $0x151] sm:$0xff]  ;;  %v3921_v58 = vld [vmem:[#allocation3 + $0x142] sm:$0xff] }
 0x403   : > { %v4492_v62 = vpop.permute.xlu1 %4491 }
 0x404   : > { %v5173_v37 = vsel %vm5030_vm2, %v5029_v41, %v4492_v62  ;;  %v4510_v24 = vpop.permute.xlu0 %4509 }
 0x405   : > { %4285 = vrot.lane.b32.xlu1 %v10844_v3, %s7927_s29  ;;  %v10926_v7 = vpop.f32.mrf.mxu1  ;;  %6263 = vmatmul.mubr.bf16.gmra.mxu1 %v5173_v37 }
 0x406   : > { %12030 = vst [vmem:[#allocation28_spill] sm:$0xff] %v10926_v7  ;;  %7547 = vmatprep.mubr.msk.bf16.mxu1 %vm962_vm0, %v10410_v6  ;;  %4725 = vrot.lane.b32.xlu0 %v10922_v18, %s7928_s9  ;;  %v5198_v6 = vsel %vm962_vm0, %v10585_v39, %v4510_v24 }
 0x407   : > { %v4124_v38 = vpop.permute.xlu1 %4123  ;;  %v6194_v10 = vpop.f32.mrf.mxu1 }
 0x408   : > { %v4608_v46 = vpop.permute.xlu0 %4607  ;;  %v4812_v39 = vsel %vm962_vm0, %v10471_v35, %v4124_v38 }
 0x409   : > { %4429 = vrot.lane.b32.xlu1 %v10853_v25, %s7928_s9  ;;  %v10936_v23 = vpop.f32.mrf.mxu1  ;;  %v5334_v37 = vsel %vm4933_vm1, %v5198_v6, %v4608_v46 }
 0x40a   : > { %12031 = vst [vmem:[#allocation29_spill] sm:$0xff] %v10936_v23  ;;  %4529 = vrot.lane.b32.xlu0 %v10932_v54, %s7926_s22  ;;  %v3780_v23 = vld [vmem:[#allocation3 + $0x159] sm:$0xff] }
 0x40b   : > { %v4268_v41 = vpop.permute.xlu1 %4267  ;;  %v6197_v62 = vpop.f32.mrf.mxu1 }
 0x40c   : > { %v4708_v10 = vpop.permute.xlu0 %4707  ;;  %v4949_v24 = vsel %vm4933_vm1, %v4812_v39, %v4268_v41  ;;  %v10958_v62 = vpack.c.bf16 %v3780_v23, %v3779_v49  ;;  %v3637_v49 = vld [vmem:[#allocation3 + $0x160] sm:$0xff] }
 0x40d   : > { %4143 = vrot.lane.b32.xlu1 %v10838_v45, %s7926_s22  ;;  %7548 = vmatmul.mubr.msk.bf16.vlgmr.msra.gmra.mxu1 %vm962_vm0, %v10458_v11  ;;  %v5437_v20 = vsel %vm5030_vm2, %v5334_v37, %v4708_v10 }
 0x40e   : > { %7551 = vmatprep.mubr.msk.bf16.mxu1 %vm962_vm0, %v10514_v50  ;;  %4627 = vrot.lane.b32.xlu0 %v10943_v53, %s7927_s29  ;;  %v3922_v50 = vld [vmem:[#allocation3 + $0x14a] sm:$0xff] }
 0x40f   : > { %v4412_v46 = vpop.permute.xlu1 %4411  ;;  %5942 = vmatprep.mubr.bf16.mxu0 %v5437_v20  ;;  %v10966_v10 = vpack.c.bf16 %v3922_v50, %v3921_v58  ;;  %v3638_v20 = vld [vmem:[#allocation3 + $0x168] sm:$0xff] }
 0x410   : > { %v5053_v6 = vsel %vm5030_vm2, %v4949_v24, %v4412_v46  ;;  %v4512_v11 = vpop.permute.xlu0 %4511 }
 0x411   : > { %4287 = vrot.lane.b32.xlu1 %v10874_v31, %s7927_s29  ;;  %5943 = vmatmul.mubr.bf16.gmra.mxu0 %v5053_v6  ;;  %v10962_v35 = vpop.f32.mrf.mxu1  ;;  %v5201_v39 = vsel %vm962_vm0, %v10630_v34, %v4512_v11 }
 0x412   : > { %12032 = vst [vmem:[#allocation30_spill] sm:$0xff] %v10962_v35  ;;  %4727 = vrot.lane.b32.xlu0 %v10958_v62, %s7928_s9 }
 0x413   : > { %v4126_v38 = vpop.permute.xlu1 %4125  ;;  %v6202_v41 = vpop.f32.mrf.mxu1 }
 0x414   : > { %v4610_v37 = vpop.permute.xlu0 %4609  ;;  %v10979_v41 = vpack.c.bf16 %v3638_v20, %v3637_v49  ;;  %v4815_v58 = vsel %vm962_vm0, %v10523_v1, %v4126_v38  ;;  %v3924_v1 = vld [vmem:[#allocation3 + $0x15a] sm:$0xff]  ;;  %v3923_v49 = vld [vmem:[#allocation3 + $0x152] sm:$0xff] }
 0x415   : > { %4431 = vrot.lane.b32.xlu1 %v10883_v0, %s7928_s9  ;;  %v6203_v23 = vpop.f32.mrf.mxu1  ;;  %7552 = vmatmul.mubr.msk.bf16.gmra.mxu1 %vm962_vm0, %v10566_v29  ;;  %v5336_v6 = vsel %vm4933_vm1, %v5201_v39, %v4610_v37  ;;  %v3781_v37 = vld [vmem:[#allocation3 + $0x161] sm:$0xff] }
 0x416   : > { %7555 = vmatprep.mubr.msk.bf16.mxu1 %vm962_vm0, %v10611_v26  ;;  %4531 = vrot.lane.b32.xlu0 %v10966_v10, %s7926_s22  ;;  %v3782_v26 = vld [vmem:[#allocation3 + $0x169] sm:$0xff] }
 0x417   : > { %v4270_v24 = vpop.permute.xlu1 %4269  ;;  %v6205_v46 = vpop.f32.mrf.mxu1  ;;  %v10990_v39 = vpack.c.bf16 %v3782_v26, %v3781_v37  ;;  %v3640_v26 = vld [vmem:[#allocation3 + $0x178] sm:$0xff] }
 0x418   : > { %v4710_v50 = vpop.permute.xlu0 %4709  ;;  %v4951_v34 = vsel %vm4933_vm1, %v4815_v58, %v4270_v24 }
 0x419   : > { %4145 = vrot.lane.b32.xlu1 %v10866_v60, %s7926_s22  ;;  %v5440_v29 = vsel %vm5030_vm2, %v5336_v6, %v4710_v50  ;;  %v11002_v50 = vpack.c.bf16 %v3924_v1, %v3923_v49 }
 0x41a   : > { %4629 = vrot.lane.b32.xlu0 %v10979_v41, %s7927_s29  ;;  %5950 = vmatprep.mubr.bf16.mxu0 %v5440_v29 }
 0x41b   : > { %v4414_v11 = vpop.permute.xlu1 %4413 }
 0x41c   : > { %v5056_v23 = vsel %vm5030_vm2, %v4951_v34, %v4414_v11  ;;  %v4514_v20 = vpop.permute.xlu0 %4513  ;;  %v3639_v34 = vld [vmem:[#allocation3 + $0x170] sm:$0xff] }
 0x41d   : > { %4289 = vrot.lane.b32.xlu1 %v10902_v15, %s7927_s29  ;;  %5951 = vmatmul.mubr.bf16.gmra.mxu0 %v5056_v23  ;;  %v10994_v46 = vpop.f32.mrf.mxu1  ;;  %v11013_v23 = vpack.c.bf16 %v3640_v26, %v3639_v34 }
 0x41e   : > { %12033 = vst [vmem:[#allocation31_spill] sm:$0xff] %v10994_v46  ;;  %7556 = vmatmul.mubr.msk.bf16.gmra.mxu1 %vm962_vm0, %v10662_v17  ;;  %4729 = vrot.lane.b32.xlu0 %v10990_v39, %s7928_s9  ;;  %v5204_v17 = vsel %vm962_vm0, %v10682_v8, %v4514_v20 }
 0x41f   : > { %7559 = vmatprep.mubr.msk.bf16.mxu1 %vm962_vm0, %v10688_v61  ;;  %v4128_v38 = vpop.permute.xlu1 %4127  ;;  %v6210_v24 = vpop.f32.mrf.mxu1 }
 0x420   : > { %v4612_v6 = vpop.permute.xlu0 %4611  ;;  %v3784_v24 = vld [vmem:[#allocation3 + $0x179] sm:$0xff]  ;;  %v4818_v49 = vsel %vm962_vm0, %v10575_v16, %v4128_v38 }
 0x421   : > { %4433 = vrot.lane.b32.xlu1 %v10911_v36, %s7928_s9  ;;  %v11006_v29 = vpop.f32.mrf.mxu1  ;;  %v5338_v11 = vsel %vm4933_vm1, %v5204_v17, %v4612_v6  ;;  %v3783_v6 = vld [vmem:[#allocation3 + $0x171] sm:$0xff] }
 0x422   : > { %12034 = vst [vmem:[#allocation32_spill] sm:$0xff] %v11006_v29  ;;  %4533 = vrot.lane.b32.xlu0 %v11002_v50, %s7926_s22  ;;  %v3941_v29 = vld [vmem:[#allocation3 + $0x1e2] sm:$0xff] }
 0x423   : > { %v4272_v58 = vpop.permute.xlu1 %4271  ;;  %v6213_v61 = vpop.f32.mrf.mxu1 }
 0x424   : > { %v4712_v37 = vpop.permute.xlu0 %4711  ;;  %v4953_v8 = vsel %vm4933_vm1, %v4818_v49, %v4272_v58  ;;  %v11028_v61 = vpack.c.bf16 %v3784_v24, %v3783_v6  ;;  %v3925_v58 = vld [vmem:[#allocation3 + $0x162] sm:$0xff] }
 0x425   : > { %4147 = vrot.lane.b32.xlu1 %v10894_v14, %s7926_s22  ;;  %v5443_v1 = vsel %vm5030_vm2, %v5338_v11, %v4712_v37 }
 0x426   : > { %7560 = vmatmul.mubr.msk.bf16.gmra.mxu1 %vm962_vm0, %v10714_v12  ;;  %4631 = vrot.lane.b32.xlu0 %v11013_v23, %s7927_s29  ;;  %v3926_v12 = vld [vmem:[#allocation3 + $0x16a] sm:$0xff] }
 0x427   : > { %7563 = vmatprep.mubr.msk.bf16.mxu1 %vm962_vm0, %v10740_v40  ;;  %v4416_v20 = vpop.permute.xlu1 %4415  ;;  %5958 = vmatprep.mubr.bf16.mxu0 %v5443_v1  ;;  %v11036_v11 = vpack.c.bf16 %v3926_v12, %v3925_v58  ;;  %v3642_v1 = vld [vmem:[#allocation3 + $0x188] sm:$0xff] }
 0x428   : > { %v5059_v26 = vsel %vm5030_vm2, %v4953_v8, %v4416_v20  ;;  %v4516_v17 = vpop.permute.xlu0 %4515  ;;  %v3641_v20 = vld [vmem:[#allocation3 + $0x180] sm:$0xff] }
 0x429   : > { %4291 = vrot.lane.b32.xlu1 %v10932_v54, %s7927_s29  ;;  %v11032_v16 = vpop.f32.mrf.mxu0  ;;  %5959 = vmatmul.mubr.bf16.gmra.mxu0 %v5059_v26  ;;  %v5207_v24 = vsel %vm962_vm0, %v10708_v4, %v4516_v17  ;;  %v11051_v12 = vpack.c.bf16 %v3642_v1, %v3641_v20  ;;  %v3785_v58 = vld [vmem:[#allocation3 + $0x181] sm:$0xff]  ;;  %v3927_v20 = vld [vmem:[#allocation3 + $0x172] sm:$0xff] }
 0x42a   : > { %4731 = vrot.lane.b32.xlu0 %v11028_v61, %s7928_s9 }
 0x42b   : > { %v4130_v38 = vpop.permute.xlu1 %4129  ;;  %v5890_v40 = vpop.f32.mrf.mxu0 }
 0x42c   : > { %v4614_v34 = vpop.permute.xlu0 %4613  ;;  %v3786_v40 = vld [vmem:[#allocation3 + $0x189] sm:$0xff]  ;;  %v4821_v4 = vsel %vm962_vm0, %v10620_v19, %v4130_v38  ;;  %v3928_v19 = vld [vmem:[#allocation3 + $0x17a] sm:$0xff] }
 0x42d   : > { %4435 = vrot.lane.b32.xlu1 %v10943_v53, %s7928_s9  ;;  %v11040_v37 = vpop.f32.mrf.mxu0  ;;  %v5340_v6 = vsel %vm4933_vm1, %v5207_v24, %v4614_v34  ;;  %v11062_v24 = vpack.c.bf16 %v3786_v40, %v3785_v58  ;;  %v3644_v40 = vld [vmem:[#allocation3 + $0x198] sm:$0xff] }
 0x42e   : > { %7564 = vmatmul.mubr.msk.bf16.gmra.mxu1 %vm962_vm0, %v10766_v63  ;;  %4535 = vrot.lane.b32.xlu0 %v11036_v11, %s7926_s22 }
 0x42f   : > { %7567 = vmatprep.mubr.msk.bf16.mxu1 %vm962_vm0, %v10792_v33  ;;  %v4274_v49 = vpop.permute.xlu1 %4273  ;;  %v5893_v8 = vpop.f32.mrf.mxu0 }
 0x430   : > { %v4714_v26 = vpop.permute.xlu0 %4713  ;;  %v4955_v33 = vsel %vm4933_vm1, %v4821_v4, %v4274_v49 }
 0x431   : > { %4149 = vrot.lane.b32.xlu1 %v10922_v18, %s7926_s22  ;;  %v5446_v63 = vsel %vm5030_vm2, %v5340_v6, %v4714_v26  ;;  %v11074_v26 = vpack.c.bf16 %v3928_v19, %v3927_v20 }
 0x432   : > { %4633 = vrot.lane.b32.xlu0 %v11051_v12, %s7927_s29  ;;  %5966 = vmatprep.mubr.bf16.mxu0 %v5446_v63 }
 0x433   : > { %v4418_v17 = vpop.permute.xlu1 %4417 }
 0x434   : > { %v5062_v34 = vsel %vm5030_vm2, %v4955_v33, %v4418_v17  ;;  %v4518_v1 = vpop.permute.xlu0 %4517 }
 0x435   : > { %4293 = vrot.lane.b32.xlu1 %v10966_v10, %s7927_s29  ;;  %5967 = vmatmul.mubr.bf16.gmra.mxu0 %v5062_v34  ;;  %v11066_v8 = vpop.f32.mrf.mxu1 }
 0x436   : > { %12035 = vst [vmem:[#allocation33_spill] sm:$0xff] %v11066_v8  ;;  %7568 = vmatmul.mubr.msk.bf16.gmra.mxu1 %vm962_vm0, %v10818_v47  ;;  %4733 = vrot.lane.b32.xlu0 %v11062_v24, %s7928_s9  ;;  %v5210_v47 = vsel %vm962_vm0, %v10734_v51, %v4518_v1 }
 0x437   : > { %7571 = vmatprep.mubr.msk.bf16.mxu1 %vm962_vm0, %v10844_v3  ;;  %v4132_v38 = vpop.permute.xlu1 %4131  ;;  %v6218_v49 = vpop.f32.mrf.mxu1  ;;  %v3643_v3 = vld [vmem:[#allocation3 + $0x190] sm:$0xff] }
 0x438   : > { %v4616_v6 = vpop.permute.xlu0 %4615  ;;  %v11083_v34 = vpack.c.bf16 %v3644_v40, %v3643_v3  ;;  %v3788_v49 = vld [vmem:[#allocation3 + $0x199] sm:$0xff]  ;;  %v4824_v20 = vsel %vm962_vm0, %v10671_v9, %v4132_v38 }
 0x439   : > { %4437 = vrot.lane.b32.xlu1 %v10979_v41, %s7928_s9  ;;  %v6219_v63 = vpop.f32.mrf.mxu1  ;;  %v5342_v17 = vsel %vm4933_vm1, %v5210_v47, %v4616_v6  ;;  %v3787_v6 = vld [vmem:[#allocation3 + $0x191] sm:$0xff] }
 0x43a   : > { %4537 = vrot.lane.b32.xlu0 %v11074_v26, %s7926_s22  ;;  %v11098_v47 = vpack.c.bf16 %v3788_v49, %v3787_v6 }
 0x43b   : > { %v4276_v4 = vpop.permute.xlu1 %4275  ;;  %v6221_v33 = vpop.f32.mrf.mxu1 }
 0x43c   : > { %v4716_v58 = vpop.permute.xlu0 %4715  ;;  %v4957_v51 = vsel %vm4933_vm1, %v4824_v20, %v4276_v4  ;;  %v3929_v4 = vld [vmem:[#allocation3 + $0x182] sm:$0xff] }
 0x43d   : > { %4151 = vrot.lane.b32.xlu1 %v10958_v62, %s7926_s22  ;;  %v5449_v19 = vsel %vm5030_vm2, %v5342_v17, %v4716_v58  ;;  %v3646_v58 = vld [vmem:[#allocation3 + $0x1a8] sm:$0xff] }
 0x43e   : > { %7572 = vmatmul.mubr.msk.bf16.gmra.mxu1 %vm962_vm0, %v10874_v31  ;;  %4635 = vrot.lane.b32.xlu0 %v11083_v34, %s7927_s29  ;;  %v3930_v31 = vld [vmem:[#allocation3 + $0x18a] sm:$0xff] }
 0x43f   : > { %7575 = vmatprep.mubr.msk.bf16.mxu1 %vm962_vm0, %v10902_v15  ;;  %v4420_v1 = vpop.permute.xlu1 %4419  ;;  %5974 = vmatprep.mubr.bf16.mxu0 %v5449_v19  ;;  %v11106_v3 = vpack.c.bf16 %v3930_v31, %v3929_v4  ;;  %v3790_v31 = vld [vmem:[#allocation3 + $0x1a9] sm:$0xff] }
 0x440   : > { %v5065_v63 = vsel %vm5030_vm2, %v4957_v51, %v4420_v1  ;;  %v4520_v40 = vpop.permute.xlu0 %4519  ;;  %v3645_v51 = vld [vmem:[#allocation3 + $0x1a0] sm:$0xff] }
 0x441   : > { %4295 = vrot.lane.b32.xlu1 %v11002_v50, %s7927_s29  ;;  %v11102_v9 = vpop.f32.mrf.mxu0  ;;  %5975 = vmatmul.mubr.bf16.gmra.mxu0 %v5065_v63  ;;  %v5213_v19 = vsel %vm962_vm0, %v10760_v55, %v4520_v40  ;;  %v11119_v63 = vpack.c.bf16 %v3646_v58, %v3645_v51 }
 0x442   : > { %4735 = vrot.lane.b32.xlu0 %v11098_v47, %s7928_s9 }
 0x443   : > { %v4134_v38 = vpop.permute.xlu1 %4133  ;;  %v5898_v15 = vpop.f32.mrf.mxu0 }
 0x444   : > { %v4618_v33 = vpop.permute.xlu0 %4617  ;;  %v4827_v55 = vsel %vm962_vm0, %v10697_v27, %v4134_v38  ;;  %v3789_v15 = vld [vmem:[#allocation3 + $0x1a1] sm:$0xff] }
 0x445   : > { %4439 = vrot.lane.b32.xlu1 %v11013_v23, %s7928_s9  ;;  %v5899_v17 = vpop.f32.mrf.mxu0  ;;  %v5344_v1 = vsel %vm4933_vm1, %v5213_v19, %v4618_v33  ;;  %v3932_v27 = vld [vmem:[#allocation3 + $0x19a] sm:$0xff] }
 0x446   : > { %7576 = vmatmul.mubr.msk.bf16.gmra.mxu1 %vm962_vm0, %v10932_v54  ;;  %4539 = vrot.lane.b32.xlu0 %v11106_v3, %s7926_s22  ;;  %v11130_v17 = vpack.c.bf16 %v3790_v31, %v3789_v15  ;;  %v3647_v31 = vld [vmem:[#allocation3 + $0x1b0] sm:$0xff] }
 0x447   : > { %7579 = vmatprep.mubr.msk.bf16.mxu1 %vm962_vm0, %v10966_v10  ;;  %v4278_v49 = vpop.permute.xlu1 %4277  ;;  %v5901_v20 = vpop.f32.mrf.mxu0 }
 0x448   : > { %v4718_v6 = vpop.permute.xlu0 %4717  ;;  %v4959_v10 = vsel %vm4933_vm1, %v4827_v55, %v4278_v49  ;;  %v3931_v49 = vld [vmem:[#allocation3 + $0x192] sm:$0xff] }
 0x449   : > { %4153 = vrot.lane.b32.xlu1 %v10990_v39, %s7926_s22  ;;  %v5452_v54 = vsel %vm5030_vm2, %v5344_v1, %v4718_v6  ;;  %v11142_v51 = vpack.c.bf16 %v3932_v27, %v3931_v49  ;;  %v3648_v6 = vld [vmem:[#allocation3 + $0x1b8] sm:$0xff] }
 0x44a   : > { %4637 = vrot.lane.b32.xlu0 %v11119_v63, %s7927_s29  ;;  %5982 = vmatprep.mubr.bf16.mxu0 %v5452_v54 }
 0x44b   : > { %v4422_v40 = vpop.permute.xlu1 %4421 }
 0x44c   : > { %v5068_v4 = vsel %vm5030_vm2, %v4959_v10, %v4422_v40  ;;  %v4522_v33 = vpop.permute.xlu0 %4521  ;;  %v11153_v40 = vpack.c.bf16 %v3648_v6, %v3647_v31 }
 0x44d   : > { %4297 = vrot.lane.b32.xlu1 %v11036_v11, %s7927_s29  ;;  %5983 = vmatmul.mubr.bf16.gmra.mxu0 %v5068_v4  ;;  %v11134_v58 = vpop.f32.mrf.mxu1  ;;  %v3792_v4 = vld [vmem:[#allocation3 + $0x1b9] sm:$0xff] }
 0x44e   : > { %12036 = vst [vmem:[#allocation34_spill] sm:$0xff] %v11134_v58  ;;  %7580 = vmatmul.mubr.msk.bf16.gmra.mxu1 %vm962_vm0, %v11002_v50  ;;  %4737 = vrot.lane.b32.xlu0 %v11130_v17, %s7928_s9  ;;  %v5216_v50 = vsel %vm962_vm0, %v10786_v43, %v4522_v33 }
 0x44f   : > { %7583 = vmatprep.mubr.msk.bf16.mxu1 %vm962_vm0, %v11036_v11  ;;  %v4136_v38 = vpop.permute.xlu1 %4135  ;;  %v6226_v19 = vpop.f32.mrf.mxu1 }
 0x450   : > { %v4620_v20 = vpop.permute.xlu0 %4619  ;;  %v4830_v27 = vsel %vm962_vm0, %v10723_v42, %v4136_v38  ;;  %v3791_v19 = vld [vmem:[#allocation3 + $0x1b1] sm:$0xff] }
 0x451   : > { %4441 = vrot.lane.b32.xlu1 %v11051_v12, %s7928_s9  ;;  %v11146_v1 = vpop.f32.mrf.mxu1  ;;  %v5346_v55 = vsel %vm4933_vm1, %v5216_v50, %v4620_v20  ;;  %v11168_v6 = vpack.c.bf16 %v3792_v4, %v3791_v19  ;;  %v3934_v38 = vld [vmem:[#allocation3 + $0x1aa] sm:$0xff] }
 0x452   : > { %12037 = vst [vmem:[#allocation35_spill] sm:$0xff] %v11146_v1  ;;  %4541 = vrot.lane.b32.xlu0 %v11142_v51, %s7926_s22 }
 0x453   : > { %v4280_v54 = vpop.permute.xlu1 %4279  ;;  %v6229_v11 = vpop.f32.mrf.mxu1 }
 0x454   : > { %v4720_v10 = vpop.permute.xlu0 %4719  ;;  %v4961_v43 = vsel %vm4933_vm1, %v4830_v27, %v4280_v54  ;;  %v3933_v11 = vld [vmem:[#allocation3 + $0x1a2] sm:$0xff] }
 0x455   : > { %4155 = vrot.lane.b32.xlu1 %v11028_v61, %s7926_s22  ;;  %v5455_v15 = vsel %vm5030_vm2, %v5346_v55, %v4720_v10  ;;  %v11176_v55 = vpack.c.bf16 %v3934_v38, %v3933_v11  ;;  %v3794_v11 = vld [vmem:[#allocation3 + $0x1c9] sm:$0xff] }
 0x456   : > { %7584 = vmatmul.mubr.msk.bf16.gmra.mxu1 %vm962_vm0, %v11074_v26  ;;  %4639 = vrot.lane.b32.xlu0 %v11153_v40, %s7927_s29 }
 0x457   : > { %7587 = vmatprep.mubr.msk.bf16.mxu1 %vm962_vm0, %v11106_v3  ;;  %v4424_v33 = vpop.permute.xlu1 %4423  ;;  %5990 = vmatprep.mubr.bf16.mxu0 %v5455_v15  ;;  %v3650_v15 = vld [vmem:[#allocation3 + $0x1c8] sm:$0xff] }
 0x458   : > { %v5071_v49 = vsel %vm5030_vm2, %v4961_v43, %v4424_v33  ;;  %v4524_v20 = vpop.permute.xlu0 %4523  ;;  %v3649_v43 = vld [vmem:[#allocation3 + $0x1c0] sm:$0xff] }
 0x459   : > { %4299 = vrot.lane.b32.xlu1 %v11074_v26, %s7927_s29  ;;  %v11172_v42 = vpop.f32.mrf.mxu0  ;;  %5991 = vmatmul.mubr.bf16.gmra.mxu0 %v5071_v49  ;;  %v5219_v26 = vsel %vm962_vm0, %v10812_v21, %v4524_v20  ;;  %v11191_v49 = vpack.c.bf16 %v3650_v15, %v3649_v43  ;;  %v3938_v20 = vld [vmem:[#allocation3 + $0x1ca] sm:$0xff]  ;;  %v3935_v15 = vld [vmem:[#allocation3 + $0x1b2] sm:$0xff] }
 0x45a   : > { %4739 = vrot.lane.b32.xlu0 %v11168_v6, %s7928_s9 }
 0x45b   : > { %v4138_v50 = vpop.permute.xlu1 %4137  ;;  %v5906_v54 = vpop.f32.mrf.mxu0  ;;  %12038 = vst [vmem:[#allocation36_spill] sm:$0xff] %v11191_v49 }
 0x45c   : > { %v4622_v31 = vpop.permute.xlu0 %4621  ;;  %v3936_v54 = vld [vmem:[#allocation3 + $0x1ba] sm:$0xff]  ;;  %v4833_v21 = vsel %vm962_vm0, %v10749_v2, %v4138_v50 }
 0x45d   : > { %4443 = vrot.lane.b32.xlu1 %v11083_v34, %s7928_s9  ;;  %v11180_v10 = vpop.f32.mrf.mxu0  ;;  %v5348_v33 = vsel %vm4933_vm1, %v5219_v26, %v4622_v31  ;;  %v11202_v1 = vpack.c.bf16 %v3936_v54, %v3935_v15 }
 0x45e   : > { %7588 = vmatmul.mubr.msk.bf16.gmra.mxu1 %vm962_vm0, %v11142_v51  ;;  %4543 = vrot.lane.b32.xlu0 %v11176_v55, %s7926_s22 }
 0x45f   : > { %7591 = vmatprep.mubr.msk.bf16.mxu1 %vm962_vm0, %v11176_v55  ;;  %v4282_v4 = vpop.permute.xlu1 %4281  ;;  %v5909_v27 = vpop.f32.mrf.mxu0 }
 0x460   : > { %v4722_v19 = vpop.permute.xlu0 %4721  ;;  %v4963_v31 = vsel %vm4933_vm1, %v4833_v21, %v4282_v4  ;;  %v3793_v27 = vld [vmem:[#allocation3 + $0x1c1] sm:$0xff]  ;;  %v3652_v21 = vld [vmem:[#allocation3 + $0x1d8] sm:$0xff] }
 0x461   : > { %4157 = vrot.lane.b32.xlu1 %v11062_v24, %s7926_s22  ;;  %v5458_v38 = vsel %vm5030_vm2, %v5348_v33, %v4722_v19  ;;  %v3937_v19 = vld [vmem:[#allocation3 + $0x1c2] sm:$0xff]  ;;  %v11204_v58 = vpack.c.bf16 %v3794_v11, %v3793_v27  ;;  %v3940_v11 = vld [vmem:[#allocation3 + $0x1da] sm:$0xff]  ;;  %v3939_v27 = vld [vmem:[#allocation3 + $0x1d2] sm:$0xff] }
 0x462   : > { %4641 = vrot.lane.b32.xlu0 %v11191_v49, %s7927_s29  ;;  %5998 = vmatprep.mubr.bf16.mxu0 %v5458_v38  ;;  %v11210_v50 = vpack.c.bf16 %v3938_v20, %v3937_v19  ;;  %v3942_v20 = vld [vmem:[#allocation3 + $0x1ea] sm:$0xff] }
 0x463   : > { %v4426_v26 = vpop.permute.xlu1 %4425  ;;  %v11231_v46 = vpack.c.bf16 %v3942_v20, %v3941_v29  ;;  %v3795_v29 = vld [vmem:[#allocation3 + $0x1d1] sm:$0xff] }
 0x464   : > { %v5074_v43 = vsel %vm5030_vm2, %v4963_v31, %v4426_v26  ;;  %v4526_v33 = vpop.permute.xlu0 %4525 }
 0x465   : > { %4301 = vrot.lane.b32.xlu1 %v11106_v3, %s7927_s29  ;;  %5999 = vmatmul.mubr.bf16.gmra.mxu0 %v5074_v43  ;;  %v11208_v2 = vpop.f32.mrf.mxu1  ;;  %v5222_v31 = vsel %vm962_vm0, %v10838_v45, %v4526_v33  ;;  %v3651_v43 = vld [vmem:[#allocation3 + $0x1d0] sm:$0xff]  ;;  %v3796_v45 = vld [vmem:[#allocation3 + $0x1d9] sm:$0xff] }
 0x466   : > { %12039 = vst [vmem:[#allocation37_spill] sm:$0xff] %v11208_v2  ;;  %7592 = vmatmul.mubr.msk.bf16.gmra.mxu1 %vm962_vm0, %v11202_v1  ;;  %4741 = vrot.lane.b32.xlu0 %v11204_v58, %s7928_s9  ;;  %v11244_v20 = vpack.c.bf16 %v3796_v45, %v3795_v29 }
 0x467   : > { %7595 = vmatprep.mubr.msk.bf16.mxu1 %vm962_vm0, %v11210_v50  ;;  %v4140_v4 = vpop.permute.xlu1 %4139  ;;  %v6234_v38 = vpop.f32.mrf.mxu1 }
 0x468   : > { %v4624_v54 = vpop.permute.xlu0 %4623  ;;  %v11225_v38 = vpack.c.bf16 %v3940_v11, %v3939_v27  ;;  %v4836_v33 = vsel %vm962_vm0, %v10775_v32, %v4140_v4  ;;  %v3944_v4 = vld [vmem:[#allocation3 + $0x1fa] sm:$0xff] }
 0x469   : > { %4445 = vrot.lane.b32.xlu1 %v11119_v63, %s7928_s9  ;;  %v6235_v3 = vpop.f32.mrf.mxu1  ;;  %v5350_v19 = vsel %vm4933_vm1, %v5222_v31, %v4624_v54  ;;  %v3946_v31 = vld [vmem:[#allocation3 + $0x20a] sm:$0xff] }
 0x46a   : > { %4545 = vrot.lane.b32.xlu0 %v11202_v1, %s7926_s22  ;;  %v11227_v3 = vpack.c.bf16 %v3652_v21, %v3651_v43 }
 0x46b   : > { %v4284_v26 = vpop.permute.xlu1 %4283  ;;  %v6237_v15 = vpop.f32.mrf.mxu1 }
 0x46c   : > { %v4724_v2 = vpop.permute.xlu0 %4723  ;;  %v4965_v54 = vsel %vm4933_vm1, %v4836_v33, %v4284_v26  ;;  %v3654_v33 = vld [vmem:[#allocation3 + $0x1e8] sm:$0xff] }
 0x46d   : > { %4159 = vrot.lane.b32.xlu1 %v11098_v47, %s7926_s22  ;;  %v5461_v8 = vsel %vm5030_vm2, %v5350_v19, %v4724_v2  ;;  %v3945_v19 = vld [vmem:[#allocation3 + $0x202] sm:$0xff] }
 0x46e   : > { %7596 = vmatmul.mubr.msk.bf16.gmra.mxu1 %vm962_vm0, %v11225_v38  ;;  %4643 = vrot.lane.b32.xlu0 %v11227_v3, %s7927_s29 }
 0x46f   : > { %7599 = vmatprep.mubr.msk.bf16.mxu1 %vm962_vm0, %v11231_v46  ;;  %v4428_v11 = vpop.permute.xlu1 %4427  ;;  %6006 = vmatprep.mubr.bf16.mxu0 %v5461_v8  ;;  %v3943_v8 = vld [vmem:[#allocation3 + $0x1f2] sm:$0xff] }
 0x470   : > { %v5077_v2 = vsel %vm5030_vm2, %v4965_v54, %v4428_v11  ;;  %v4528_v21 = vpop.permute.xlu0 %4527  ;;  %v11252_v27 = vpack.c.bf16 %v3944_v4, %v3943_v8 }
 0x471   : > { %4303 = vrot.lane.b32.xlu1 %v11142_v51, %s7927_s29  ;;  %v11248_v32 = vpop.f32.mrf.mxu0  ;;  %6007 = vmatmul.mubr.bf16.gmra.mxu0 %v5077_v2  ;;  %v11256_v51 = vpack.c.bf16 %v3946_v31, %v3945_v19  ;;  %v5225_v54 = vsel %vm962_vm0, %v10866_v60, %v4528_v21  ;;  %v3653_v2 = vld [vmem:[#allocation3 + $0x1e0] sm:$0xff]  ;;  %v3950_v21 = vld [vmem:[#allocation3 + $0x22a] sm:$0xff] }
 0x472   : > { %4743 = vrot.lane.b32.xlu0 %v11244_v20, %s7928_s9  ;;  %v3948_v19 = vld [vmem:[#allocation3 + $0x21a] sm:$0xff] }
 0x473   : > { %v4142_v26 = vpop.permute.xlu1 %4141  ;;  %v5914_v15 = vpop.f32.mrf.mxu0 }
 0x474   : > { %v4626_v43 = vpop.permute.xlu0 %4625  ;;  %v11267_v15 = vpack.c.bf16 %v3654_v33, %v3653_v2  ;;  %v4839_v60 = vsel %vm962_vm0, %v10801_v22, %v4142_v26  ;;  %v3947_v33 = vld [vmem:[#allocation3 + $0x212] sm:$0xff] }
 0x475   : > { %4447 = vrot.lane.b32.xlu1 %v11153_v40, %s7928_s9  ;;  %v5915_v45 = vpop.f32.mrf.mxu0  ;;  %v5352_v4 = vsel %vm4933_vm1, %v5225_v54, %v4626_v43  ;;  %v11278_v7 = vpack.c.bf16 %v3948_v19, %v3947_v33  ;;  %v3951_v33 = vld [vmem:[#allocation3 + $0x232] sm:$0xff] }
 0x476   : > { %7600 = vmatmul.mubr.msk.bf16.gmra.mxu1 %vm962_vm0, %v11252_v27  ;;  %4547 = vrot.lane.b32.xlu0 %v11210_v50, %s7926_s22  ;;  %v3798_v45 = vld [vmem:[#allocation3 + $0x1e9] sm:$0xff] }
 0x477   : > { %7603 = vmatprep.mubr.msk.bf16.mxu1 %vm962_vm0, %v11256_v51  ;;  %v4286_v11 = vpop.permute.xlu1 %4285  ;;  %v5917_v29 = vpop.f32.mrf.mxu0 }
 0x478   : > { %v4726_v31 = vpop.permute.xlu0 %4725  ;;  %v4967_v43 = vsel %vm4933_vm1, %v4839_v60, %v4286_v11  ;;  %v3797_v29 = vld [vmem:[#allocation3 + $0x1e1] sm:$0xff]  ;;  %v3656_v60 = vld [vmem:[#allocation3 + $0x1f8] sm:$0xff] }
 0x479   : > { %4161 = vrot.lane.b32.xlu1 %v11130_v17, %s7926_s22  ;;  %v5464_v8 = vsel %vm5030_vm2, %v5352_v4, %v4726_v31  ;;  %v3949_v31 = vld [vmem:[#allocation3 + $0x222] sm:$0xff]  ;;  %v11280_v35 = vpack.c.bf16 %v3798_v45, %v3797_v29  ;;  %v3952_v45 = vld [vmem:[#allocation3 + $0x23a] sm:$0xff]  ;;  %v3655_v29 = vld [vmem:[#allocation3 + $0x1f0] sm:$0xff] }
 0x47a   : > { %4645 = vrot.lane.b32.xlu0 %v11267_v15, %s7927_s29  ;;  %6014 = vmatprep.mubr.bf16.mxu0 %v5464_v8  ;;  %v11286_v26 = vpack.c.bf16 %v3950_v21, %v3949_v31  ;;  %v11303_v31 = vpack.c.bf16 %v3952_v45, %v3951_v33  ;;  %v3799_v45 = vld [vmem:[#allocation3 + $0x1f1] sm:$0xff] }
 0x47b   : > { %v4430_v54 = vpop.permute.xlu1 %4429 }
 0x47c   : > { %v5080_v2 = vsel %vm5030_vm2, %v4967_v43, %v4430_v54  ;;  %v4530_v4 = vpop.permute.xlu0 %4529 }
 0x47d   : > { %4305 = vrot.lane.b32.xlu1 %v11176_v55, %s7927_s29  ;;  %6015 = vmatmul.mubr.bf16.gmra.mxu0 %v5080_v2  ;;  %v11284_v22 = vpop.f32.mrf.mxu1  ;;  %v5228_v21 = vsel %vm962_vm0, %v10894_v14, %v4530_v4 }
 0x47e   : > { %12040 = vst [vmem:[#allocation38_spill] sm:$0xff] %v11284_v22  ;;  %7604 = vmatmul.mubr.msk.bf16.gmra.mxu1 %vm962_vm0, %v11278_v7  ;;  %4745 = vrot.lane.b32.xlu0 %v11280_v35, %s7928_s9  ;;  %v11305_v22 = vpack.c.bf16 %v3656_v60, %v3655_v29  ;;  %v3658_v29 = vld [vmem:[#allocation3 + $0x208] sm:$0xff] }
 0x47f   : > { %7607 = vmatprep.mubr.msk.bf16.mxu1 %vm962_vm0, %v11286_v26  ;;  %v4144_v11 = vpop.permute.xlu1 %4143  ;;  %v6242_v8 = vpop.f32.mrf.mxu1 }
 0x480   : > { %v4628_v19 = vpop.permute.xlu0 %4627  ;;  %v4842_v14 = vsel %vm962_vm0, %v10827_v28, %v4144_v11 }
 0x481   : > { %4449 = vrot.lane.b32.xlu1 %v11191_v49, %s7928_s9  ;;  %v11296_v55 = vpop.f32.mrf.mxu1  ;;  %v5354_v2 = vsel %vm4933_vm1, %v5228_v21, %v4628_v19  ;;  %v3800_v49 = vld [vmem:[#allocation3 + $0x1f9] sm:$0xff] }
 0x482   : > { %12041 = vst [vmem:[#allocation39_spill] sm:$0xff] %v11296_v55  ;;  %4549 = vrot.lane.b32.xlu0 %v11225_v38, %s7926_s22 }
 0x483   : > { %v4288_v43 = vpop.permute.xlu1 %4287  ;;  %v6245_v54 = vpop.f32.mrf.mxu1 }
 0x484   : > { %v4728_v8 = vpop.permute.xlu0 %4727  ;;  %v4969_v4 = vsel %vm4933_vm1, %v4842_v14, %v4288_v43  ;;  %v11320_v54 = vpack.c.bf16 %v3800_v49, %v3799_v45 }
 0x485   : > { %4163 = vrot.lane.b32.xlu1 %v11168_v6, %s7926_s22  ;;  %v5467_v55 = vsel %vm5030_vm2, %v5354_v2, %v4728_v8  ;;  %v3657_v8 = vld [vmem:[#allocation3 + $0x200] sm:$0xff] }
 0x486   : > { %7608 = vmatmul.mubr.msk.bf16.gmra.mxu1 %vm962_vm0, %v11303_v31  ;;  %4647 = vrot.lane.b32.xlu0 %v11305_v22, %s7927_s29 }
 0x487   : > { %7611 = vmatprep.mubr.msk.bf16.mxu1 %vm962_vm0, %v10204_v48  ;;  %v4432_v19 = vpop.permute.xlu1 %4431  ;;  %6022 = vmatprep.mubr.bf16.mxu0 %v5467_v55 }
 0x488   : > { %v5083_v60 = vsel %vm5030_vm2, %v4969_v4, %v4432_v19  ;;  %v4532_v21 = vpop.permute.xlu0 %4531  ;;  %v11341_v19 = vpack.c.bf16 %v3658_v29, %v3657_v8 }
 0x489   : > { %4307 = vrot.lane.b32.xlu1 %v11202_v1, %s7927_s29  ;;  %v11324_v28 = vpop.f32.mrf.mxu0  ;;  %6023 = vmatmul.mubr.bf16.gmra.mxu0 %v5083_v60  ;;  %v5231_v1 = vsel %vm962_vm0, %v10922_v18, %v4532_v21  ;;  %v3802_v60 = vld [vmem:[#allocation3 + $0x209] sm:$0xff] }
 0x48a   : > { %4747 = vrot.lane.b32.xlu0 %v11320_v54, %s7928_s9 }
 0x48b   : > { %v4146_v11 = vpop.permute.xlu1 %4145  ;;  %v5922_v43 = vpop.f32.mrf.mxu0 }
 0x48c   : > { %v4630_v33 = vpop.permute.xlu0 %4629  ;;  %v4845_v18 = vsel %vm962_vm0, %v10853_v25, %v4146_v11  ;;  %v3801_v43 = vld [vmem:[#allocation3 + $0x201] sm:$0xff] }
 0x48d   : > { %4451 = vrot.lane.b32.xlu1 %v11227_v3, %s7928_s9  ;;  %v11330_v55 = vpop.f32.mrf.mxu0  ;;  %v5356_v14 = vsel %vm4933_vm1, %v5231_v1, %v4630_v33  ;;  %v11352_v1 = vpack.c.bf16 %v3802_v60, %v3801_v43 }
 0x48e   : > { %7612 = vmatmul.mubr.msk.bf16.gmra.mxu1 %vm962_vm0, %v10263_v59  ;;  %4551 = vrot.lane.b32.xlu0 %v11231_v46, %s7926_s22 }
 0x48f   : > { %7615 = vmatprep.mubr.msk.bf16.mxu1 %vm962_vm0, %v10091_v13  ;;  %v4290_v49 = vpop.permute.xlu1 %4289  ;;  %v5925_v2 = vpop.f32.mrf.mxu0 }
 0x490   : > { %v4730_v4 = vpop.permute.xlu0 %4729  ;;  %v4971_v13 = vsel %vm4933_vm1, %v4845_v18, %v4290_v49 }
 0x491   : > { %4165 = vrot.lane.b32.xlu1 %v11204_v58, %s7926_s22  ;;  %v5470_v45 = vsel %vm5030_vm2, %v5356_v14, %v4730_v4 }
 0x492   : > { %4649 = vrot.lane.b32.xlu0 %v11341_v19, %s7927_s29  ;;  %6030 = vmatprep.mubr.bf16.mxu0 %v5470_v45  ;;  %v3659_v45 = vld [vmem:[#allocation3 + $0x210] sm:$0xff] }
 0x493   : > { %v4434_v21 = vpop.permute.xlu1 %4433 }
 0x494   : > { %v5086_v33 = vsel %vm5030_vm2, %v4971_v13, %v4434_v21  ;;  %v4534_v29 = vpop.permute.xlu0 %4533  ;;  %v3804_v21 = vld [vmem:[#allocation3 + $0x219] sm:$0xff] }
 0x495   : > { %4309 = vrot.lane.b32.xlu1 %v11210_v50, %s7927_s29  ;;  %6031 = vmatmul.mubr.bf16.gmra.mxu0 %v5086_v33  ;;  %v11356_v2 = vpop.f32.mrf.mxu1  ;;  %v3660_v50 = vld [vmem:[#allocation3 + $0x218] sm:$0xff] }
 0x496   : > { %7616 = vmatmul.mubr.msk.bf16.gmra.mxu1 %vm962_vm0, %v10237_v30  ;;  %4749 = vrot.lane.b32.xlu0 %v11352_v1, %s7928_s9  ;;  %v5234_v30 = vsel %vm962_vm0, %v10958_v62, %v4534_v29  ;;  %v11371_v18 = vpack.c.bf16 %v3660_v50, %v3659_v45  ;;  %v3803_v29 = vld [vmem:[#allocation3 + $0x211] sm:$0xff]  ;;  %v3661_v45 = vld [vmem:[#allocation3 + $0x220] sm:$0xff] }
 0x497   : > { %7619 = vmatprep.mubr.msk.bf16.mxu1 %vm962_vm0, %v10276_v56  ;;  %v4148_v25 = vpop.permute.xlu1 %4147  ;;  %v6250_v11 = vpop.f32.mrf.mxu1 }
 0x498   : > { %v4632_v49 = vpop.permute.xlu0 %4631  ;;  %v4848_v43 = vsel %vm962_vm0, %v10883_v0, %v4148_v25 }
 0x499   : > { %4453 = vrot.lane.b32.xlu1 %v11267_v15, %s7928_s9  ;;  %v6251_v8 = vpop.f32.mrf.mxu1  ;;  %v5358_v60 = vsel %vm4933_vm1, %v5234_v30, %v4632_v49  ;;  %v3662_v30 = vld [vmem:[#allocation3 + $0x228] sm:$0xff] }
 0x49a   : > { %4553 = vrot.lane.b32.xlu0 %v11252_v27, %s7926_s22  ;;  %v11386_v8 = vpack.c.bf16 %v3804_v21, %v3803_v29  ;;  %v3806_v21 = vld [vmem:[#allocation3 + $0x229] sm:$0xff] }
 0x49b   : > { %v4292_v14 = vpop.permute.xlu1 %4291  ;;  %v6253_v4 = vpop.f32.mrf.mxu1 }
 0x49c   : > { %v4732_v56 = vpop.permute.xlu0 %4731  ;;  %v4973_v62 = vsel %vm4933_vm1, %v4848_v43, %v4292_v14 }
 0x49d   : > { %4167 = vrot.lane.b32.xlu1 %v11244_v20, %s7926_s22  ;;  %v5473_v13 = vsel %vm5030_vm2, %v5358_v60, %v4732_v56 }
 0x49e   : > { %7620 = vmatmul.mubr.msk.bf16.gmra.mxu1 %vm962_vm0, %v10300_v57  ;;  %4651 = vrot.lane.b32.xlu0 %v11371_v18, %s7927_s29 }
 0x49f   : > { %7623 = vmatprep.mubr.msk.bf16.mxu1 %vm962_vm0, %v10320_v44  ;;  %v4436_v33 = vpop.permute.xlu1 %4435  ;;  %6038 = vmatprep.mubr.bf16.mxu0 %v5473_v13  ;;  %v11405_v13 = vpack.c.bf16 %v3662_v30, %v3661_v45  ;;  %v3663_v45 = vld [vmem:[#allocation3 + $0x230] sm:$0xff] }
 0x4a0   : > { %v5089_v11 = vsel %vm5030_vm2, %v4973_v62, %v4436_v33  ;;  %v4536_v49 = vpop.permute.xlu0 %4535  ;;  %v3805_v62 = vld [vmem:[#allocation3 + $0x221] sm:$0xff] }
 0x4a1   : > { %4311 = vrot.lane.b32.xlu1 %v11225_v38, %s7927_s29  ;;  %v11390_v57 = vpop.f32.mrf.mxu0  ;;  %6039 = vmatmul.mubr.bf16.gmra.mxu0 %v5089_v11  ;;  %v5237_v38 = vsel %vm962_vm0, %v10990_v39, %v4536_v49  ;;  %v11416_v11 = vpack.c.bf16 %v3806_v21, %v3805_v62  ;;  %v12045_v62 = vld [vmem:[#allocation23_spill] sm:$0xff] }
 0x4a2   : > { %4751 = vrot.lane.b32.xlu0 %v11386_v8, %s7928_s9 }
 0x4a3   : > { %v4150_v0 = vpop.permute.xlu1 %4149  ;;  %v5930_v25 = vpop.f32.mrf.mxu0 }
 0x4a4   : > { %v4634_v44 = vpop.permute.xlu0 %4633  ;;  %v4851_v39 = vsel %vm962_vm0, %v10911_v36, %v4150_v0  ;;  %v12042_v36 = vld [vmem:[#allocation19_spill] sm:$0xff]  ;;  %v12043_v0 = vld [vmem:[#allocation21_spill] sm:$0xff] }
 0x4a5   : > { %4455 = vrot.lane.b32.xlu1 %v11305_v22, %s7928_s9  ;;  %v5931_v50 = vpop.f32.mrf.mxu0  ;;  %v5360_v60 = vsel %vm4933_vm1, %v5237_v38, %v4634_v44 }
 0x4a6   : > { %7624 = vmatmul.mubr.msk.bf16.gmra.mxu1 %vm962_vm0, %v10356_v52  ;;  %4555 = vrot.lane.b32.xlu0 %v11256_v51, %s7926_s22 }
 0x4a7   : > { %7627 = vmatprep.mubr.msk.bf16.mxu1 %vm962_vm0, %v10392_v5  ;;  %v4294_v14 = vpop.permute.xlu1 %4293  ;;  %v5933_v4 = vpop.f32.mrf.mxu0 }
 0x4a8   : > { %v4734_v56 = vpop.permute.xlu0 %4733  ;;  %v4975_v5 = vsel %vm4933_vm1, %v4851_v39, %v4294_v14  ;;  %v3808_v39 = vld [vmem:[#allocation3 + $0x239] sm:$0xff] }
 0x4a9   : > { %4169 = vrot.lane.b32.xlu1 %v11280_v35, %s7926_s22  ;;  %v5476_v52 = vsel %vm5030_vm2, %v5360_v60, %v4734_v56 }
 0x4aa   : > { %4653 = vrot.lane.b32.xlu0 %v11405_v13, %s7927_s29  ;;  %6046 = vmatprep.mubr.bf16.mxu0 %v5476_v52 }
 0x4ab   : > { %v4438_v43 = vpop.permute.xlu1 %4437 }
 0x4ac   : > { %v5092_v33 = vsel %vm5030_vm2, %v4975_v5, %v4438_v43  ;;  %v4538_v29 = vpop.permute.xlu0 %4537  ;;  %v12044_v43 = vld [vmem:[#allocation22_spill] sm:$0xff] }
 0x4ad   : > { %4313 = vrot.lane.b32.xlu1 %v11231_v46, %s7927_s29  ;;  %6047 = vmatmul.mubr.bf16.gmra.mxu0 %v5092_v33  ;;  %v11420_v49 = vpop.f32.mrf.mxu1  ;;  %v3664_v46 = vld [vmem:[#allocation3 + $0x238] sm:$0xff]  ;;  %v5240_v38 = vsel %vm962_vm0, %v11028_v61, %v4538_v29 }
 0x4ae   : > { %7628 = vmatmul.mubr.msk.bf16.gmra.mxu1 %vm962_vm0, %v12042_v36  ;;  %4753 = vrot.lane.b32.xlu0 %v11416_v11, %s7928_s9  ;;  %v11437_v52 = vpack.c.bf16 %v3664_v46, %v3663_v45  ;;  %v3807_v29 = vld [vmem:[#allocation3 + $0x231] sm:$0xff] }
 0x4af   : > { %7631 = vmatprep.mubr.msk.bf16.mxu1 %vm962_vm0, %v12043_v0  ;;  %v4152_v25 = vpop.permute.xlu1 %4151  ;;  %v6258_v44 = vpop.f32.mrf.mxu1 }
 0x4b0   : > { %v4636_v50 = vpop.permute.xlu0 %4635  ;;  %v4854_v5 = vsel %vm962_vm0, %v10943_v53, %v4152_v25  ;;  %v11452_v44 = vpack.c.bf16 %v3808_v39, %v3807_v29  ;;  %v4056_v25 = vld [vmem:[#allocation3 + $0x32a] sm:$0xff] }
 0x4b1   : > { %4457 = vrot.lane.b32.xlu1 %v11341_v19, %s7928_s9  ;;  %v11430_v30 = vpop.f32.mrf.mxu1  ;;  %v5362_v60 = vsel %vm4933_vm1, %v5240_v38, %v4636_v50 }
 0x4b2   : > { %4557 = vrot.lane.b32.xlu0 %v11278_v7, %s7926_s22 }
 0x4b3   : > { %v4296_v14 = vpop.permute.xlu1 %4295  ;;  %v6261_v4 = vpop.f32.mrf.mxu1 }
 0x4b4   : > { %v4736_v56 = vpop.permute.xlu0 %4735  ;;  %v4977_v61 = vsel %vm4933_vm1, %v4854_v5, %v4296_v14  ;;  %v4055_v14 = vld [vmem:[#allocation3 + $0x322] sm:$0xff] }
 0x4b5   : > { %4171 = vrot.lane.b32.xlu1 %v11320_v54, %s7926_s22  ;;  %v5479_v21 = vsel %vm5030_vm2, %v5362_v60, %v4736_v56  ;;  %v4059_v45 = vpack.c.bf16 %v4056_v25, %v4055_v14  ;;  %v12046_v60 = vld [vmem:[#allocation24_spill] sm:$0xff] }
 0x4b6   : > { %7632 = vmatmul.mubr.msk.bf16.gmra.mxu1 %vm962_vm0, %v12044_v43  ;;  %4655 = vrot.lane.b32.xlu0 %v11437_v52, %s7927_s29 }
 0x4b7   : > { %7635 = vmatprep.mubr.msk.bf16.mxu1 %vm962_vm0, %v12045_v62  ;;  %v4440_v33 = vpop.permute.xlu1 %4439  ;;  %6054 = vmatprep.mubr.bf16.mxu0 %v5479_v21 }
 0x4b8   : > { %v5095_v36 = vsel %vm5030_vm2, %v4977_v61, %v4440_v33  ;;  %v4540_v0 = vpop.permute.xlu0 %4539  ;;  %v4058_v61 = vld [vmem:[#allocation3 + $0x33a] sm:$0xff] }
 0x4b9   : > { %4315 = vrot.lane.b32.xlu1 %v11252_v27, %s7927_s29  ;;  %v11456_v53 = vpop.f32.mrf.mxu0  ;;  %6055 = vmatmul.mubr.bf16.gmra.mxu0 %v5095_v36  ;;  %v5243_v27 = vsel %vm962_vm0, %v11062_v24, %v4540_v0  ;;  %v12047_v33 = vld [vmem:[#allocation18_spill] sm:$0xff] }
 0x4ba   : > { %4755 = vrot.lane.b32.xlu0 %v11452_v44, %s7928_s9  ;;  %v4057_v36 = vld [vmem:[#allocation3 + $0x332] sm:$0xff] }
 0x4bb   : > { %v4154_v50 = vpop.permute.xlu1 %4153  ;;  %v5938_v46 = vpop.f32.mrf.mxu0  ;;  %v4060_v25 = vpack.c.bf16 %v4058_v61, %v4057_v36  ;;  %v12049_v36 = vld [vmem:[#allocation20_spill] sm:$0xff] }
 0x4bc   : > { %v4638_v38 = vpop.permute.xlu0 %4637  ;;  %v4857_v62 = vsel %vm962_vm0, %v10979_v41, %v4154_v50  ;;  %v12048_v41 = vld [vmem:[#allocation12_spill] sm:$0xff] }
 0x4bd   : > { %4459 = vrot.lane.b32.xlu1 %v11371_v18, %s7928_s9  ;;  %v11462_v4 = vpop.f32.mrf.mxu0  ;;  %v5364_v39 = vsel %vm4933_vm1, %v5243_v27, %v4638_v38  ;;  %v11492_v27 = vld [vmem:[#allocation9] ss:$0 sm:$0xff] }
 0x4be   : > { %7636 = vmatmul.mubr.msk.bf16.gmra.mxu1 %vm962_vm0, %v12046_v60  ;;  %4559 = vrot.lane.b32.xlu0 %v11286_v26, %s7926_s22 }
 0x4bf   : > { %7639 = vmatprep.mubr.msk.bf16.mxu1 %vm962_vm0, %v4059_v45  ;;  %v4298_v56 = vpop.permute.xlu1 %4297  ;;  %v5941_v21 = vpop.f32.mrf.mxu0 }
 0x4c0   : > { %v4738_v5 = vpop.permute.xlu0 %4737  ;;  %v4979_v24 = vsel %vm4933_vm1, %v4857_v62, %v4298_v56 }
 0x4c1   : > { %4173 = vrot.lane.b32.xlu1 %v11352_v1, %s7926_s22  ;;  %v5482_v43 = vsel %vm5030_vm2, %v5364_v39, %v4738_v5  ;;  %v5897_v39 = vadd.f32 %v11492_v27, %v11102_v9 }
 0x4c2   : > { %4657 = vrot.lane.b32.xlu0 %v12047_v33, %s7927_s29  ;;  %6062 = vmatprep.mubr.bf16.mxu0 %v5482_v43 }
 0x4c3   : > { %v4442_v29 = vpop.permute.xlu1 %4441 }
 0x4c4   : > { %v5098_v0 = vsel %vm5030_vm2, %v4979_v24, %v4442_v29  ;;  %v4542_v46 = vpop.permute.xlu0 %4541  ;;  %v5889_v24 = vadd.f32 %v11492_v27, %v11032_v16 }
 0x4c5   : > { %4317 = vrot.lane.b32.xlu1 %v11256_v51, %s7927_s29  ;;  %6063 = vmatmul.mubr.bf16.gmra.mxu0 %v5098_v0  ;;  %v11483_v38 = vpop.f32.mrf.mxu1  ;;  %v5246_v51 = vsel %vm962_vm0, %v11098_v47, %v4542_v46 }
 0x4c6   : > { %7640 = vmatmul.mubr.msk.bf16.gmra.mxu1 %vm962_vm0, %v4060_v25  ;;  %4757 = vrot.lane.b32.xlu0 %v12048_v41, %s7928_s9 }
 0x4c7   : > { %v4156_v50 = vpop.permute.xlu1 %4155  ;;  %v6266_v14 = vpop.f32.mrf.mxu1 }
 0x4c8   : > { %v4640_v45 = vpop.permute.xlu0 %4639  ;;  %v4860_v47 = vsel %vm962_vm0, %v11013_v23, %v4156_v50 }
 0x4c9   : > { %4461 = vrot.lane.b32.xlu1 %v11405_v13, %s7928_s9  ;;  %v6267_v60 = vpop.f32.mrf.mxu1  ;;  %v5366_v5 = vsel %vm4933_vm1, %v5246_v51, %v4640_v45  ;;  %v12050_v51 = vld [vmem:[#allocation14_spill] sm:$0xff] }
 0x4ca   : > { %4561 = vrot.lane.b32.xlu0 %v11303_v31, %s7926_s22 }
 0x4cb   : > { %v4300_v56 = vpop.permute.xlu1 %4299  ;;  %v6269_v21 = vpop.f32.mrf.mxu1 }
 0x4cc   : > { %v4740_v43 = vpop.permute.xlu0 %4739  ;;  %v4981_v9 = vsel %vm4933_vm1, %v4860_v47, %v4300_v56  ;;  %v5892_v56 = vadd.f32 %v11492_v27, %v11040_v37  ;;  %v5905_v37 = vadd.f32 %v11492_v27, %v11172_v42 }
 0x4cd   : > { %4175 = vrot.lane.b32.xlu1 %v11386_v8, %s7926_s22  ;;  %v7549_v61 = vpop.f32.mrf.mxu1  ;;  %v5485_v62 = vsel %vm5030_vm2, %v5366_v5, %v4740_v43 }
 0x4ce   : > { %v6314_v29 = vadd.f32 %v7549_v61, %v5897_v39  ;;  %4659 = vrot.lane.b32.xlu0 %v12049_v36, %s7927_s29  ;;  %6070 = vmatprep.mubr.bf16.mxu0 %v5485_v62 }
 0x4cf   : > { %v4444_v0 = vpop.permute.xlu1 %4443  ;;  %v6305_v25 = vpop.f32.mrf.mxu1 }
 0x4d0   : > { %v6690_v46 = vmax.f32 %v6314_v29, 0.0  ;;  %v6306_v14 = vadd.f32 %v6305_v25, %v5889_v24  ;;  %v5101_v45 = vsel %vm5030_vm2, %v4981_v9, %v4444_v0  ;;  %v4544_v60 = vpop.permute.xlu0 %4543 }
 0x4d1   : > { %4319 = vrot.lane.b32.xlu1 %v11278_v7, %s7927_s29  ;;  %v11512_v16 = vpop.f32.mrf.mxu0  ;;  %6071 = vmatmul.mubr.bf16.gmra.mxu0 %v5101_v45  ;;  %v7550_v23 = vpop.f32.mrf.mxu1  ;;  %v5913_v7 = vadd.f32 %v11492_v27, %v11248_v32  ;;  %v5249_v47 = vsel %vm962_vm0, %v11130_v17, %v4544_v60  ;;  %v12051_v60 = vld [vmem:[#allocation13_spill] sm:$0xff] }
 0x4d2   : > { %6786 = vst.msk [vmem:[#allocation4 + $0x10] sm:$0xff] %vm4933_vm1, %v6690_v46  ;;  %v6688_v50 = vmax.f32 %v6306_v14, 0.0  ;;  %4759 = vrot.lane.b32.xlu0 %v12050_v51, %s7928_s9 }
 0x4d3   : > { %v4158_v21 = vpop.permute.xlu1 %4157  ;;  %v5946_v39 = vpop.f32.mrf.mxu0 }
 0x4d4   : > { %6784 = vst.msk [vmem:[#allocation4] sm:$0xff] %vm4933_vm1, %v6688_v50  ;;  %v6308_v5 = vpop.f32.mrf.mxu1  ;;  %v4642_v43 = vpop.permute.xlu0 %4641  ;;  %v4863_v17 = vsel %vm962_vm0, %v11051_v12, %v4158_v21  ;;  %v5908_v50 = vadd.f32 %v11492_v27, %v11180_v10  ;;  %v5929_v12 = vadd.f32 %v11492_v27, %v11390_v57 }
 0x4d5   : > { %v6309_v61 = vadd.f32 %v6308_v5, %v5892_v56  ;;  %4463 = vrot.lane.b32.xlu1 %v11437_v52, %s7928_s9  ;;  %v5947_v62 = vpop.f32.mrf.mxu0  ;;  %v5368_v32 = vsel %vm4933_vm1, %v5249_v47, %v4642_v43 }
 0x4d6   : > { %v7553_v24 = vpop.f32.mrf.mxu1  ;;  %4563 = vrot.lane.b32.xlu0 %v10204_v48, %s7926_s22 }
 0x4d7   : > { %v6689_v29 = vmax.f32 %v6309_v61, 0.0  ;;  %v6330_v9 = vadd.f32 %v7553_v24, %v5913_v7  ;;  %v4302_v0 = vpop.permute.xlu1 %4301  ;;  %v5949_v25 = vpop.f32.mrf.mxu0  ;;  %v12052_v24 = vld [vmem:[#allocation16_spill] sm:$0xff] }
 0x4d8   : > { %v6321_v46 = vpop.f32.mrf.mxu1  ;;  %v4742_v14 = vpop.permute.xlu0 %4741  ;;  %v4983_v56 = vsel %vm4933_vm1, %v4863_v17, %v4302_v0 }
 0x4d9   : > { %6785 = vst.msk [vmem:[#allocation4 + $0x8] sm:$0xff] %vm4933_vm1, %v6689_v29  ;;  %v6694_v45 = vmax.f32 %v6330_v9, 0.0  ;;  %v6322_v23 = vadd.f32 %v6321_v46, %v5905_v37  ;;  %4177 = vrot.lane.b32.xlu1 %v11416_v11, %s7926_s22  ;;  %v5488_v48 = vsel %vm5030_vm2, %v5368_v32, %v4742_v14  ;;  %v5921_v37 = vadd.f32 %v11492_v27, %v11324_v28 }
 0x4da   : > { %v7554_v42 = vpop.f32.mrf.mxu1  ;;  %4661 = vrot.lane.b32.xlu0 %v12051_v60, %s7927_s29  ;;  %6078 = vmatprep.mubr.bf16.mxu0 %v5488_v48  ;;  %v5924_v28 = vadd.f32 %v11492_v27, %v11330_v55 }
 0x4db   : > { %6790 = vst.msk [vmem:[#allocation4 + $0x30] sm:$0xff] %vm4933_vm1, %v6694_v45  ;;  %v6692_v39 = vmax.f32 %v6322_v23, 0.0  ;;  %v4446_v5 = vpop.permute.xlu1 %4445 }
 0x4dc   : > { %v6324_v43 = vpop.f32.mrf.mxu1  ;;  %v5104_v7 = vsel %vm5030_vm2, %v4983_v56, %v4446_v5  ;;  %v4546_v61 = vpop.permute.xlu0 %4545  ;;  %v5937_v5 = vadd.f32 %v11492_v27, %v11456_v53 }
 0x4dd   : > { %6788 = vst.msk [vmem:[#allocation4 + $0x20] sm:$0xff] %vm4933_vm1, %v6692_v39  ;;  %v6325_v21 = vadd.f32 %v6324_v43, %v5908_v50  ;;  %4321 = vrot.lane.b32.xlu1 %v11286_v26, %s7927_s29  ;;  %v11549_v10 = vpop.f32.mrf.mxu0  ;;  %6079 = vmatmul.mubr.bf16.gmra.mxu0 %v5104_v7  ;;  %v5252_v45 = vsel %vm962_vm0, %v11168_v6, %v4546_v61  ;;  %v12053_v39 = vld [vmem:[#allocation15_spill] sm:$0xff] }
 0x4de   : > { %v7557_v62 = vpop.f32.mrf.mxu1  ;;  %4761 = vrot.lane.b32.xlu0 %v12052_v24, %s7928_s9  ;;  %v5945_v50 = vadd.f32 %v11492_v27, %v11512_v16 }
 0x4df   : > { %v6693_v47 = vmax.f32 %v6325_v21, 0.0  ;;  %v6346_v29 = vadd.f32 %v7557_v62, %v5929_v12  ;;  %v4160_v9 = vpop.permute.xlu1 %4159  ;;  %v5954_v57 = vpop.f32.mrf.mxu0 }
 0x4e0   : > { %v6337_v0 = vpop.f32.mrf.mxu1  ;;  %v4644_v25 = vpop.permute.xlu0 %4643  ;;  %v4866_v6 = vsel %vm962_vm0, %v11083_v34, %v4160_v9 }
 0x4e1   : > { %6789 = vst.msk [vmem:[#allocation4 + $0x28] sm:$0xff] %vm4933_vm1, %v6693_v47  ;;  %v6698_v32 = vmax.f32 %v6346_v29, 0.0  ;;  %v6338_v26 = vadd.f32 %v6337_v0, %v5921_v37  ;;  %4465 = vrot.lane.b32.xlu1 %v12047_v33, %s7928_s9  ;;  %v11558_v46 = vpop.f32.mrf.mxu0  ;;  %v5370_v42 = vsel %vm4933_vm1, %v5252_v45, %v4644_v25  ;;  %v12054_v47 = vld [vmem:[#allocation17_spill] sm:$0xff]  ;;  %v5940_v29 = vadd.f32 %v11492_v27, %v11462_v4 }
 0x4e2   : > { %v7558_v14 = vpop.f32.mrf.mxu1  ;;  %4565 = vrot.lane.b32.xlu0 %v10263_v59, %s7926_s22  ;;  %v380_v25 = vld [vmem:[%s8038_s20 + $0x390] sm:$0xff]  ;;  %v5953_v4 = vadd.f32 %v11492_v27, %v11549_v10 }
 0x4e3   : > { %6794 = vst.msk [vmem:[#allocation4 + $0x50] sm:$0xff] %vm4933_vm1, %v6698_v32  ;;  %v6696_v23 = vmax.f32 %v6338_v26, 0.0  ;;  %v4304_v48 = vpop.permute.xlu1 %4303  ;;  %v5957_v17 = vpop.f32.mrf.mxu0 }
 0x4e4   : > { %v6340_v33 = vpop.f32.mrf.mxu1  ;;  %v4744_v60 = vpop.permute.xlu0 %4743  ;;  %v4985_v16 = vsel %vm4933_vm1, %v4866_v6, %v4304_v48 }
 0x4e5   : > { %6792 = vst.msk [vmem:[#allocation4 + $0x40] sm:$0xff] %vm4933_vm1, %v6696_v23  ;;  %v6341_v59 = vadd.f32 %v6340_v33, %v5924_v28  ;;  %4179 = vrot.lane.b32.xlu1 %v11452_v44, %s7926_s22  ;;  %v5491_v55 = vsel %vm5030_vm2, %v5370_v42, %v4744_v60 }
 0x4e6   : > { %v7561_v56 = vpop.f32.mrf.mxu1  ;;  %4663 = vrot.lane.b32.xlu0 %v12053_v39, %s7927_s29  ;;  %6086 = vmatprep.mubr.bf16.mxu0 %v5491_v55 }
 0x4e7   : > { %v6697_v43 = vmax.f32 %v6341_v59, 0.0  ;;  %v6362_v7 = vadd.f32 %v7561_v56, %v5945_v50  ;;  %v4448_v61 = vpop.permute.xlu1 %4447 }
 0x4e8   : > { %v6353_v12 = vpop.f32.mrf.mxu1  ;;  %v5107_v21 = vsel %vm5030_vm2, %v4985_v16, %v4448_v61  ;;  %v4548_v62 = vpop.permute.xlu0 %4547 }
 0x4e9   : > { %6793 = vst.msk [vmem:[#allocation4 + $0x48] sm:$0xff] %vm4933_vm1, %v6697_v43  ;;  %v6702_v34 = vmax.f32 %v6362_v7, 0.0  ;;  %v6354_v24 = vadd.f32 %v6353_v12, %v5937_v5  ;;  %4323 = vrot.lane.b32.xlu1 %v11303_v31, %s7927_s29  ;;  %v5960_v37 = vpop.f32.mrf.mxu0  ;;  %6087 = vmatmul.mubr.bf16.gmra.mxu0 %v5107_v21  ;;  %v5255_v23 = vsel %vm962_vm0, %v11204_v58, %v4548_v62 }
 0x4ea   : > { %v7562_v53 = vpop.f32.mrf.mxu1  ;;  %4763 = vrot.lane.b32.xlu0 %v12054_v47, %s7928_s9  ;;  %v5961_v31 = vadd.f32 %v11492_v27, %v5960_v37  ;;  %v5956_v58 = vadd.f32 %v11492_v27, %v11558_v46 }
 0x4eb   : > { %6798 = vst.msk [vmem:[#allocation4 + $0x70] sm:$0xff] %vm4933_vm1, %v6702_v34  ;;  %v6700_v9 = vmax.f32 %v6354_v24, 0.0  ;;  %v4162_v57 = vpop.permute.xlu1 %4161  ;;  %v5962_v0 = vpop.f32.mrf.mxu0 }
 0x4ec   : > { %v6356_v32 = vpop.f32.mrf.mxu1  ;;  %v4646_v26 = vpop.permute.xlu0 %4645  ;;  %v4869_v10 = vsel %vm962_vm0, %v11119_v63, %v4162_v57 }
 0x4ed   : > { %6796 = vst.msk [vmem:[#allocation4 + $0x60] sm:$0xff] %vm4933_vm1, %v6700_v9  ;;  %v6357_v14 = vadd.f32 %v6356_v32, %v5940_v29  ;;  %4467 = vrot.lane.b32.xlu1 %v12049_v36, %s7928_s9  ;;  %v5963_v28 = vpop.f32.mrf.mxu0  ;;  %v5372_v60 = vsel %vm4933_vm1, %v5255_v23, %v4646_v26 }
 0x4ee   : > { %v7565_v45 = vpop.f32.mrf.mxu1  ;;  %954 = vperm.xlu0 %7722, %v380_v25  }
 0x4ef   : > { %v6701_v48 = vmax.f32 %v6357_v14, 0.0  ;;  %v6378_v17 = vadd.f32 %v7565_v45, %v5961_v31  ;;  %v4306_v42 = vpop.permute.xlu1 %4305  ;;  %v5965_v33 = vpop.f32.mrf.mxu0 }
 0x4f0   : > { %v6369_v50 = vpop.f32.mrf.mxu1  ;;  %v4746_v59 = vpop.permute.xlu0 %4745  ;;  %v4987_v39 = vsel %vm4933_vm1, %v4869_v10, %v4306_v42 }
 0x4f1   : > { %6797 = vst.msk [vmem:[#allocation4 + $0x68] sm:$0xff] %vm4933_vm1, %v6701_v48  ;;  %v6706_v36 = vmax.f32 %v6378_v17, 0.0  ;;  %v6370_v55 = vadd.f32 %v6369_v50, %v5953_v4  ;;  %v5494_v6 = vsel %vm5030_vm2, %v5372_v60, %v4746_v59 }
 0x4f2   : > { %v7566_v56 = vpop.f32.mrf.mxu1  ;;  %6094 = vmatprep.mubr.bf16.mxu0 %v5494_v6 }
 0x4f3   : > { %6802 = vst.msk [vmem:[#allocation4 + $0x90] sm:$0xff] %vm4933_vm1, %v6706_v36  ;;  %v6704_v5 = vmax.f32 %v6370_v55, 0.0  ;;  %v4450_v16 = vpop.permute.xlu1 %4449 }
 0x4f4   : > { %v6372_v43 = vpop.f32.mrf.mxu1  ;;  %v5110_v7 = vsel %vm5030_vm2, %v4987_v39, %v4450_v16  ;;  %v4550_v61 = vpop.permute.xlu0 %4549 }
 0x4f5   : > { %6800 = vst.msk [vmem:[#allocation4 + $0x80] sm:$0xff] %vm4933_vm1, %v6704_v5  ;;  %v6373_v12 = vadd.f32 %v6372_v43, %v5956_v58  ;;  %v5968_v21 = vpop.f32.mrf.mxu0  ;;  %6095 = vmatmul.mubr.bf16.gmra.mxu0 %v5110_v7  ;;  %v5258_v0 = vsel %vm962_vm0, %v11244_v20, %v4550_v61 }
 0x4f6   : > { %v5969_v63 = vadd.f32 %v11492_v27, %v5968_v21  ;;  %v7569_v62 = vpop.f32.mrf.mxu1 }
 0x4f7   : > { %v6705_v34 = vmax.f32 %v6373_v12, 0.0  ;;  %v4164_v46 = vpop.permute.xlu1 %4163  ;;  %v5970_v24 = vpop.f32.mrf.mxu0 }
 0x4f8   : > { %v6385_v37 = vpop.f32.mrf.mxu1  ;;  %v4648_v53 = vpop.permute.xlu0 %4647  ;;  %v4872_v23 = vsel %vm962_vm0, %v11153_v40, %v4164_v46 }
 0x4f9   : > { %6801 = vst.msk [vmem:[#allocation4 + $0x88] sm:$0xff] %vm4933_vm1, %v6705_v34  ;;  %v6386_v47 = vadd.f32 %v6385_v37, %v5969_v63  ;;  %v5971_v29 = vpop.f32.mrf.mxu0  ;;  %v5374_v31 = vsel %vm4933_vm1, %v5258_v0, %v4648_v53  ;;  %v12055_v34 = vld [vmem:[#allocation36_spill] sm:$0xff] }
 0x4fa   : > { %v5972_v9 = vadd.f32 %v11492_v27, %v5971_v29  ;;  %v7570_v57 = vpop.f32.mrf.mxu1 }
 0x4fb   : > { %v6708_v25 = vmax.f32 %v6386_v47, 0.0  ;;  %v4308_v32 = vpop.permute.xlu1 %4307  ;;  %v5973_v26 = vpop.f32.mrf.mxu0 }
 0x4fc   : > { %v6388_v14 = vpop.f32.mrf.mxu1  ;;  %v4748_v28 = vpop.permute.xlu0 %4747  ;;  %v4989_v20 = vsel %vm4933_vm1, %v4872_v23, %v4308_v32 }
 0x4fd   : > { %6804 = vst.msk [vmem:[#allocation4 + $0xa0] sm:$0xff] %vm4933_vm1, %v6708_v25  ;;  %v6389_v45 = vadd.f32 %v6388_v14, %v5972_v9  ;;  %v5497_v4 = vsel %vm5030_vm2, %v5374_v31, %v4748_v28 }
 0x4fe   : > { %v11620_v48 = vpop.f32.mrf.mxu1  ;;  %6102 = vmatprep.mubr.bf16.mxu0 %v5497_v4 }
 0x4ff   : > { %v6709_v17 = vmax.f32 %v6389_v45, 0.0  ;;  %v4452_v42 = vpop.permute.xlu1 %4451 }
 0x500   : > { %v6401_v33 = vpop.f32.mrf.mxu1  ;;  %v5113_v60 = vsel %vm5030_vm2, %v4989_v20, %v4452_v42  ;;  %v4552_v50 = vpop.permute.xlu0 %4551 }
 0x501   : > { %6805 = vst.msk [vmem:[#allocation4 + $0xa8] sm:$0xff] %vm4933_vm1, %v6709_v17  ;;  %v5976_v59 = vpop.f32.mrf.mxu0  ;;  %6103 = vmatmul.mubr.bf16.gmra.mxu0 %v5113_v60  ;;  %v5261_v43 = vsel %vm962_vm0, %v11280_v35, %v4552_v50 }
 0x502   : > { %v5977_v36 = vadd.f32 %v11492_v27, %v5976_v59  ;;  %v7574_v55 = vpop.f32.mrf.mxu1 }
 0x503   : > { %v4166_v6 = vpop.permute.xlu1 %4165  ;;  %v5978_v40 = vpop.f32.mrf.mxu0 }
 0x504   : > { %v6394_v10 = vadd.f32 %v7569_v62, %v5977_v36  ;;  %v6404_v56 = vpop.f32.mrf.mxu1  ;;  %v4650_v58 = vpop.permute.xlu0 %4649  ;;  %v4875_v46 = vsel %vm962_vm0, %v12055_v34, %v4166_v6 }
 0x505   : > { %v5979_v39 = vpop.f32.mrf.mxu0  ;;  %v5376_v12 = vsel %vm4933_vm1, %v5261_v43, %v4650_v58 }
 0x506   : > { %v6710_v5 = vmax.f32 %v6394_v10, 0.0  ;;  %v11626_v16 = vpop.f32.mrf.mxu1 }
 0x507   : > { %v4310_v7 = vpop.permute.xlu1 %4309  ;;  %v5981_v61 = vpop.f32.mrf.mxu0 }
 0x508   : > { %6806 = vst.msk [vmem:[#allocation4 + $0xb0] sm:$0xff] %vm4933_vm1, %v6710_v5  ;;  %v11632_v21 = vpop.f32.mrf.mxu1  ;;  %v4750_v63 = vpop.permute.xlu0 %4749  ;;  %v4991_v37 = vsel %vm4933_vm1, %v4875_v46, %v4310_v7 }
 0x509   : > { %v5500_v62 = vsel %vm5030_vm2, %v5376_v12, %v4750_v63 }
 0x50a   : > { %v7578_v24 = vpop.f32.mrf.mxu1  ;;  %6110 = vmatprep.mubr.bf16.mxu0 %v5500_v62 }
 0x50b   : > { %v4454_v53 = vpop.permute.xlu1 %4453 }
 0x50c   : > { %v5116_v35 = vsel %vm5030_vm2, %v4991_v37, %v4454_v53  ;;  %v11639_v47 = vpop.f32.mrf.mxu1  ;;  %v4554_v29 = vpop.permute.xlu0 %4553 }
 0x50d   : > { %v5984_v9 = vpop.f32.mrf.mxu0  ;;  %6111 = vmatmul.mubr.bf16.gmra.mxu0 %v5116_v35  ;;  %v5264_v20 = vsel %vm962_vm0, %v11320_v54, %v4554_v29 }
 0x50e   : > { %v5985_v57 = vadd.f32 %v11492_v27, %v5984_v9  ;;  %v11642_v0 = vpop.f32.mrf.mxu1 }
 0x50f   : > { %v4168_v25 = vpop.permute.xlu1 %4167  ;;  %v5986_v32 = vpop.f32.mrf.mxu0 }
 0x510   : > { %v6402_v26 = vadd.f32 %v6401_v33, %v5985_v57  ;;  %v11644_v31 = vpop.f32.mrf.mxu1  ;;  %v4652_v14 = vpop.permute.xlu0 %4651  ;;  %v4878_v55 = vsel %vm962_vm0, %v11227_v3, %v4168_v25 }
 0x511   : > { %v5987_v28 = vpop.f32.mrf.mxu0  ;;  %v5378_v50 = vsel %vm4933_vm1, %v5264_v20, %v4652_v14 }
 0x512   : > { %v6712_v45 = vmax.f32 %v6402_v26, 0.0  ;;  %v5988_v4 = vadd.f32 %v11492_v27, %v5987_v28  ;;  %v7582_v23 = vpop.f32.mrf.mxu1 }
 0x513   : > { %v4312_v17 = vpop.permute.xlu1 %4311  ;;  %v5989_v42 = vpop.f32.mrf.mxu0 }
 0x514   : > { %6808 = vst.msk [vmem:[#allocation4 + $0xc0] sm:$0xff] %vm4933_vm1, %v6712_v45  ;;  %v6405_v60 = vadd.f32 %v6404_v56, %v5988_v4  ;;  %v11651_v59 = vpop.f32.mrf.mxu1  ;;  %v4752_v33 = vpop.permute.xlu0 %4751  ;;  %v4993_v54 = vsel %vm4933_vm1, %v4878_v55, %v4312_v17 }
 0x515   : > { %v5503_v36 = vsel %vm5030_vm2, %v5378_v50, %v4752_v33 }
 0x516   : > { %v6713_v6 = vmax.f32 %v6405_v60, 0.0  ;;  %v11656_v40 = vpop.f32.mrf.mxu1  ;;  %6118 = vmatprep.mubr.bf16.mxu0 %v5503_v36 }
 0x517   : > { %v4456_v10 = vpop.permute.xlu1 %4455 }
 0x518   : > { %6809 = vst.msk [vmem:[#allocation4 + $0xc8] sm:$0xff] %vm4933_vm1, %v6713_v6  ;;  %v5119_v56 = vsel %vm5030_vm2, %v4993_v54, %v4456_v10  ;;  %v11661_v58 = vpop.f32.mrf.mxu1  ;;  %v4556_v39 = vpop.permute.xlu0 %4555 }
 0x519   : > { %v5992_v5 = vpop.f32.mrf.mxu0  ;;  %6119 = vmatmul.mubr.bf16.gmra.mxu0 %v5119_v56  ;;  %v5267_v37 = vsel %vm962_vm0, %v11352_v1, %v4556_v39 }
 0x51a   : > { %v5993_v43 = vadd.f32 %v11492_v27, %v5992_v5  ;;  %v7586_v7 = vpop.f32.mrf.mxu1 }
 0x51b   : > { %v4170_v3 = vpop.permute.xlu1 %4169  ;;  %v5994_v61 = vpop.f32.mrf.mxu0 }
 0x51c   : > { %v6410_v12 = vadd.f32 %v11620_v48, %v5993_v43  ;;  %v11665_v63 = vpop.f32.mrf.mxu1  ;;  %v4654_v62 = vpop.permute.xlu0 %4653  ;;  %v4881_v25 = vsel %vm962_vm0, %v11267_v15, %v4170_v3 }
 0x51d   : > { %v5995_v34 = vpop.f32.mrf.mxu0  ;;  %v5380_v29 = vsel %vm4933_vm1, %v5267_v37, %v4654_v62 }
 0x51e   : > { %v6714_v46 = vmax.f32 %v6410_v12, 0.0  ;;  %v11667_v24 = vpop.f32.mrf.mxu1 }
 0x51f   : > { %v4314_v53 = vpop.permute.xlu1 %4313  ;;  %v5997_v35 = vpop.f32.mrf.mxu0 }
 0x520   : > { %6810 = vst.msk [vmem:[#allocation4 + $0xd0] sm:$0xff] %vm4933_vm1, %v6714_v46  ;;  %v11673_v9 = vpop.f32.mrf.mxu1  ;;  %v4754_v57 = vpop.permute.xlu0 %4753  ;;  %v4995_v26 = vsel %vm4933_vm1, %v4881_v25, %v4314_v53 }
 0x521   : > { %v5506_v48 = vsel %vm5030_vm2, %v5380_v29, %v4754_v57 }
 0x522   : > { %v7590_v32 = vpop.f32.mrf.mxu1  ;;  %6126 = vmatprep.mubr.bf16.mxu0 %v5506_v48 }
 0x523   : > { %v4458_v14 = vpop.permute.xlu1 %4457 }
 0x524   : > { %v5122_v1 = vsel %vm5030_vm2, %v4995_v26, %v4458_v14  ;;  %v11680_v28 = vpop.f32.mrf.mxu1  ;;  %v4558_v45 = vpop.permute.xlu0 %4557 }
 0x525   : > { %v6000_v4 = vpop.f32.mrf.mxu0  ;;  %6127 = vmatmul.mubr.bf16.gmra.mxu0 %v5122_v1  ;;  %v5270_v54 = vsel %vm962_vm0, %v11386_v8, %v4558_v45 }
 0x526   : > { %v6001_v23 = vadd.f32 %v11492_v27, %v6000_v4  ;;  %v11683_v20 = vpop.f32.mrf.mxu1 }
 0x527   : > { %v4172_v17 = vpop.permute.xlu1 %4171  ;;  %v6002_v42 = vpop.f32.mrf.mxu0 }
 0x528   : > { %v6418_v15 = vadd.f32 %v11632_v21, %v6001_v23  ;;  %v11686_v60 = vpop.f32.mrf.mxu1  ;;  %v4656_v50 = vpop.permute.xlu0 %4655  ;;  %v4884_v3 = vsel %vm962_vm0, %v11305_v22, %v4172_v17 }
 0x529   : > { %v6003_v33 = vpop.f32.mrf.mxu0  ;;  %v5382_v5 = vsel %vm4933_vm1, %v5270_v54, %v4656_v50 }
 0x52a   : > { %v6716_v36 = vmax.f32 %v6418_v15, 0.0  ;;  %v6004_v55 = vadd.f32 %v11492_v27, %v6003_v33  ;;  %v7594_v6 = vpop.f32.mrf.mxu1 }
 0x52b   : > { %v4316_v10 = vpop.permute.xlu1 %4315  ;;  %v6005_v56 = vpop.f32.mrf.mxu0 }
 0x52c   : > { %6812 = vst.msk [vmem:[#allocation4 + $0xe0] sm:$0xff] %vm4933_vm1, %v6716_v36  ;;  %v6421_v39 = vadd.f32 %v11639_v47, %v6004_v55  ;;  %v11694_v21 = vpop.f32.mrf.mxu1  ;;  %v4756_v43 = vpop.permute.xlu0 %4755  ;;  %v4997_v8 = vsel %vm4933_vm1, %v4884_v3, %v4316_v10  ;;  %v6956_v56 = vld [vmem:[#allocation4 + $0xc0] ss:$2 sm:$0xff] }
 0x52d   : > { %v5509_v7 = vsel %vm5030_vm2, %v5382_v5, %v4756_v43  ;;  %v6958_v43 = vld [vmem:[#allocation4 + $0xd0] ss:$2 sm:$0xf] }
 0x52e   : > { %v6717_v61 = vmax.f32 %v6421_v39, 0.0  ;;  %v11699_v12 = vpop.f32.mrf.mxu1  ;;  %6134 = vmatprep.mubr.bf16.mxu0 %v5509_v7  ;;  %v6960_v39 = vld [vmem:[#allocation4 + $0xc1] ss:$2 sm:$0xff]  ;;  %v6962_v7 = vld [vmem:[#allocation4 + $0xd1] ss:$2 sm:$0xf] }
 0x52f   : > { %v4460_v62 = vpop.permute.xlu1 %4459 }
 0x530   : > { %6813 = vst.msk [vmem:[#allocation4 + $0xe8] sm:$0xff] %vm4933_vm1, %v6717_v61  ;;  %v5125_v47 = vsel %vm5030_vm2, %v4997_v8, %v4460_v62  ;;  %v11704_v34 = vpop.f32.mrf.mxu1  ;;  %v4560_v46 = vpop.permute.xlu0 %4559 }
 0x531   : > { %v6008_v37 = vpop.f32.mrf.mxu0  ;;  %6135 = vmatmul.mubr.bf16.gmra.mxu0 %v5125_v47  ;;  %v5273_v1 = vsel %vm962_vm0, %v11416_v11, %v4560_v46 }
 0x532   : > { %v6009_v53 = vadd.f32 %v11492_v27, %v6008_v37  ;;  %v7598_v35 = vpop.f32.mrf.mxu1 }
 0x533   : > { %v4174_v22 = vpop.permute.xlu1 %4173  ;;  %v6010_v29 = vpop.f32.mrf.mxu0 }
 0x534   : > { %v6426_v57 = vadd.f32 %v11626_v16, %v6009_v53  ;;  %v11708_v48 = vpop.f32.mrf.mxu1  ;;  %v4658_v25 = vpop.permute.xlu0 %4657  ;;  %v4887_v15 = vsel %vm962_vm0, %v11341_v19, %v4174_v22  ;;  %v6963_v22 = vmax.f32 %v6956_v56, %v6960_v39  ;;  %v6964_v29 = vmax.f32 %v6958_v43, %v6962_v7 }
 0x535   : > { %v6011_v32 = vpop.f32.mrf.mxu0  ;;  %v5384_v23 = vsel %vm4933_vm1, %v5273_v1, %v4658_v25 }
 0x536   : > { %v6718_v26 = vmax.f32 %v6426_v57, 0.0  ;;  %v11710_v14 = vpop.f32.mrf.mxu1 }
 0x537   : > { %v4318_v45 = vpop.permute.xlu1 %4317  ;;  %v6013_v4 = vpop.f32.mrf.mxu0  ;;  %v6966_v11 = vld [vmem:[#allocation4 + $0xe0] ss:$2 sm:$0xff]  ;;  %v6970_v55 = vld [vmem:[#allocation4 + $0xe1] ss:$2 sm:$0xff] }
 0x538   : > { %6814 = vst.msk [vmem:[#allocation4 + $0xf0] sm:$0xff] %vm4933_vm1, %v6718_v26  ;;  %v11716_v17 = vpop.f32.mrf.mxu1  ;;  %v4758_v42 = vpop.permute.xlu0 %4757  ;;  %v4999_v33 = vsel %vm4933_vm1, %v4887_v15, %v4318_v45  ;;  %v6973_v61 = vmax.f32 %v6966_v11, %v6970_v55 }
 0x539   : > { %v5512_v16 = vsel %vm5030_vm2, %v5384_v23, %v4758_v42 }
 0x53a   : > { %v7602_v50 = vpop.f32.mrf.mxu1  ;;  %6142 = vmatprep.mubr.bf16.mxu0 %v5512_v16  ;;  %v6975_v45 = vmax.f32 %v6963_v22, %v6973_v61 }
 0x53b   : > { %v4462_v36 = vpop.permute.xlu1 %4461 }
 0x53c   : > { %v5128_v6 = vsel %vm5030_vm2, %v4999_v33, %v4462_v36  ;;  %v11723_v54 = vpop.f32.mrf.mxu1  ;;  %v4562_v10 = vpop.permute.xlu0 %4561 }
 0x53d   : > { %v6016_v5 = vpop.f32.mrf.mxu0  ;;  %6143 = vmatmul.mubr.bf16.gmra.mxu0 %v5128_v6  ;;  %v5276_v23 = vsel %vm962_vm0, %v11452_v44, %v4562_v10 }
 0x53e   : > { %v6017_v19 = vadd.f32 %v11492_v27, %v6016_v5  ;;  %v11726_v3 = vpop.f32.mrf.mxu1 }
 0x53f   : > { %v4176_v8 = vpop.permute.xlu1 %4175  ;;  %v6018_v62 = vpop.f32.mrf.mxu0  ;;  %v6968_v47 = vld [vmem:[#allocation4 + $0xf0] ss:$2 sm:$0xf]  ;;  %v6972_v46 = vld [vmem:[#allocation4 + $0xf1] ss:$2 sm:$0xf] }
 0x540   : > { %v6434_v37 = vadd.f32 %v11644_v31, %v6017_v19  ;;  %v11729_v53 = vpop.f32.mrf.mxu1  ;;  %v4660_v35 = vpop.permute.xlu0 %4659  ;;  %v6974_v57 = vmax.f32 %v6968_v47, %v6972_v46  ;;  %v4890_v55 = vsel %vm962_vm0, %v11371_v18, %v4176_v8 }
 0x541   : > { %v6019_v25 = vpop.f32.mrf.mxu0  ;;  %v5386_v15 = vsel %vm4933_vm1, %v5276_v23, %v4660_v35 }
 0x542   : > { %v6720_v32 = vmax.f32 %v6434_v37, 0.0  ;;  %v6020_v26 = vadd.f32 %v11492_v27, %v6019_v25  ;;  %v7606_v1 = vpop.f32.mrf.mxu1  ;;  %v6976_v4 = vmax.f32 %v6964_v29, %v6974_v57 }
 0x543   : > { %v4320_v42 = vpop.permute.xlu1 %4319  ;;  %v6021_v16 = vpop.f32.mrf.mxu0 }
 0x544   : > { %6816 = vst.msk [vmem:[#allocation4 + $0x100] sm:$0xff] %vm4933_vm1, %v6720_v32  ;;  %v6437_v31 = vadd.f32 %v11651_v59, %v6020_v26  ;;  %v11737_v50 = vpop.f32.mrf.mxu1  ;;  %v4760_v33 = vpop.permute.xlu0 %4759  ;;  %v7724_v36 = vpack.i.bf16 %v6976_v4, %v6975_v45  ;;  %v5001_v44 = vsel %vm4933_vm1, %v4890_v55, %v4320_v42 }
 0x545   : > { %v5515_v11 = vsel %vm5030_vm2, %v5386_v15, %v4760_v33 }
 0x546   : > { %v6721_v6 = vmax.f32 %v6437_v31, 0.0  ;;  %v11742_v56 = vpop.f32.mrf.mxu1  ;;  %7725 = vrot.lane.b32.xlu1 %v7724_v36, %s7927_s29  ;;  %6150 = vmatprep.mubr.bf16.mxu0 %v5515_v11 }
 0x547   : > { %v4464_v59 = vpop.permute.xlu1 %4463 }
 0x548   : > { %6817 = vst.msk [vmem:[#allocation4 + $0x108] sm:$0xff] %vm4933_vm1, %v6721_v6  ;;  %v5131_v10 = vsel %vm5030_vm2, %v5001_v44, %v4464_v59  ;;  %v11748_v39 = vpop.f32.mrf.mxu1  ;;  %v4564_v5 = vpop.permute.xlu0 %4563 }
 0x549   : > { %v6024_v43 = vpop.f32.mrf.mxu0  ;;  %6151 = vmatmul.mubr.bf16.gmra.mxu0 %v5131_v10  ;;  %v5279_v22 = vsel %vm962_vm0, %v12048_v41, %v4564_v5 }
 0x54a   : > { %v6025_v18 = vadd.f32 %v11492_v27, %v6024_v43  ;;  %v7610_v7 = vpop.f32.mrf.mxu1 }
 0x54b   : > { %v4178_v19 = vpop.permute.xlu1 %4177  ;;  %v6026_v61 = vpop.f32.mrf.mxu0 }
 0x54c   : > { %v6442_v8 = vadd.f32 %v11642_v0, %v6025_v18  ;;  %v11752_v62 = vpop.f32.mrf.mxu1  ;;  %v4662_v47 = vpop.permute.xlu0 %4661  ;;  %v4893_v1 = vsel %vm962_vm0, %v11405_v13, %v4178_v19 }
 0x54d   : > { %v6027_v46 = vpop.f32.mrf.mxu0  ;;  %v5388_v25 = vsel %vm4933_vm1, %v5279_v22, %v4662_v47  ;;  %v12056_v47 = vld [vmem:[#allocation27_spill] sm:$0xff] }
 0x54e   : > { %v6722_v37 = vmax.f32 %v6442_v8, 0.0  ;;  %v11754_v35 = vpop.f32.mrf.mxu1  ;;  %v6185_v46 = vadd.f32 %v11492_v27, %v12056_v47 }
 0x54f   : > { %v4322_v29 = vpop.permute.xlu1 %4321  ;;  %v6029_v57 = vpop.f32.mrf.mxu0 }
 0x550   : > { %6818 = vst.msk [vmem:[#allocation4 + $0x110] sm:$0xff] %vm4933_vm1, %v6722_v37  ;;  %v11760_v32 = vpop.f32.mrf.mxu1  ;;  %v4762_v26 = vpop.permute.xlu0 %4761  ;;  %v5003_v4 = vsel %vm4933_vm1, %v4893_v1, %v4322_v29  ;;  %v12057_v57 = vld [vmem:[#allocation25_spill] sm:$0xff] }
 0x551   : > { %v5518_v0 = vsel %vm5030_vm2, %v5388_v25, %v4762_v26  ;;  %v6177_v25 = vadd.f32 %v11492_v27, %v12057_v57 }
 0x552   : > { %v7614_v45 = vpop.f32.mrf.mxu1  ;;  %6158 = vmatprep.mubr.bf16.mxu0 %v5518_v0 }
 0x553   : > { %v4466_v23 = vpop.permute.xlu1 %4465 }
 0x554   : > { %v5134_v41 = vsel %vm5030_vm2, %v5003_v4, %v4466_v23  ;;  %v11767_v42 = vpop.f32.mrf.mxu1  ;;  %v4566_v16 = vpop.permute.xlu0 %4565 }
 0x555   : > { %v6032_v31 = vpop.f32.mrf.mxu0  ;;  %6159 = vmatmul.mubr.bf16.gmra.mxu0 %v5134_v41  ;;  %v5282_v43 = vsel %vm962_vm0, %v12050_v51, %v4566_v16 }
 0x556   : > { %v6033_v15 = vadd.f32 %v11492_v27, %v6032_v31  ;;  %v11770_v33 = vpop.f32.mrf.mxu1  ;;  %v12058_v31 = vld [vmem:[#allocation26_spill] sm:$0xff] }
 0x557   : > { %v4180_v36 = vpop.permute.xlu1 %4179  ;;  %v6034_v11 = vpop.f32.mrf.mxu0 }
 0x558   : > { %v6450_v13 = vadd.f32 %v11661_v58, %v6033_v15  ;;  %v11773_v55 = vpop.f32.mrf.mxu1  ;;  %v4664_v6 = vpop.permute.xlu0 %4663  ;;  %v4896_v22 = vsel %vm962_vm0, %v11437_v52, %v4180_v36  ;;  %v6180_v15 = vadd.f32 %v11492_v27, %v12058_v31 }
 0x559   : > { %v6035_v44 = vpop.f32.mrf.mxu0  ;;  %v5390_v61 = vsel %vm4933_vm1, %v5282_v43, %v4664_v6 }
 0x55a   : > { %v6724_v59 = vmax.f32 %v6450_v13, 0.0  ;;  %v6036_v10 = vadd.f32 %v11492_v27, %v6035_v44  ;;  %v7618_v5 = vpop.f32.mrf.mxu1  ;;  %v12059_v44 = vld [vmem:[#allocation30_spill] sm:$0xff] }
 0x55b   : > { %v4324_v18 = vpop.permute.xlu1 %4323  ;;  %v6037_v7 = vpop.f32.mrf.mxu0 }
 0x55c   : > { %6820 = vst.msk [vmem:[#allocation4 + $0x120] sm:$0xff] %vm4933_vm1, %v6724_v59  ;;  %v6453_v19 = vadd.f32 %v11665_v63, %v6036_v10  ;;  %v11781_v58 = vpop.f32.mrf.mxu1  ;;  %v4764_v8 = vpop.permute.xlu0 %4763  ;;  %v5005_v63 = vsel %vm4933_vm1, %v4896_v22, %v4324_v18  ;;  %v6201_v59 = vadd.f32 %v11492_v27, %v12059_v44  ;;  %v11801_v18 = vld [vmem:[#allocation9] ss:$0 sm:$0xff] }
 0x55d   : > { %v5521_v37 = vsel %vm5030_vm2, %v5390_v61, %v4764_v8 }
 0x55e   : > { %v6725_v51 = vmax.f32 %v6453_v19, 0.0  ;;  %v7621_v29 = vpop.f32.mrf.mxu1  ;;  %6166 = vmatprep.mubr.bf16.mxu0 %v5521_v37  ;;  %v12060_v19 = vld [vmem:[#allocation28_spill] sm:$0xff] }
 0x55f   : > { %v6602_v26 = vadd.f32 %v7621_v29, %v6185_v46  ;;  %v4468_v0 = vpop.permute.xlu1 %4467  ;;  %v6193_v61 = vadd.f32 %v11801_v18, %v12060_v19  ;;  %v12061_v29 = vld [vmem:[#allocation29_spill] sm:$0xff] }
 0x560   : > { %6821 = vst.msk [vmem:[#allocation4 + $0x128] sm:$0xff] %vm4933_vm1, %v6725_v51  ;;  %v5137_v1 = vsel %vm5030_vm2, %v5005_v63, %v4468_v0  ;;  %v6593_v45 = vpop.f32.mrf.mxu1  ;;  %v6196_v57 = vadd.f32 %v11801_v18, %v12061_v29 }
 0x561   : > { %v6762_v4 = vmax.f32 %v6602_v26, 0.0  ;;  %v6594_v23 = vadd.f32 %v6593_v45, %v6177_v25  ;;  %v6040_v41 = vpop.f32.mrf.mxu0  ;;  %6167 = vmatmul.mubr.bf16.gmra.mxu0 %v5137_v1  ;;  %v12062_v26 = vld [vmem:[#allocation33_spill] sm:$0xff] }
 0x562   : > { %v6041_v52 = vadd.f32 %v11492_v27, %v6040_v41  ;;  %v7622_v16 = vpop.f32.mrf.mxu1  ;;  %v6217_v0 = vadd.f32 %v11801_v18, %v12062_v26  ;;  %v12063_v41 = vld [vmem:[#allocation31_spill] sm:$0xff] }
 0x563   : > { %6858 = vst.msk [vmem:[#allocation4 + $0x250] sm:$0xff] %vm4933_vm1, %v6762_v4  ;;  %v6760_v36 = vmax.f32 %v6594_v23, 0.0  ;;  %v6042_v11 = vpop.f32.mrf.mxu0 }
 0x564   : > { %v6458_v13 = vadd.f32 %v11656_v40, %v6041_v52  ;;  %v6596_v6 = vpop.f32.mrf.mxu1  ;;  %v6209_v52 = vadd.f32 %v11801_v18, %v12063_v41 }
 0x565   : > { %6856 = vst.msk [vmem:[#allocation4 + $0x240] sm:$0xff] %vm4933_vm1, %v6760_v36  ;;  %v6597_v10 = vadd.f32 %v6596_v6, %v6180_v15  ;;  %v6043_v5 = vpop.f32.mrf.mxu0 }
 0x566   : > { %v6726_v43 = vmax.f32 %v6458_v13, 0.0  ;;  %v7625_v7 = vpop.f32.mrf.mxu1 }
 0x567   : > { %v6761_v8 = vmax.f32 %v6597_v10, 0.0  ;;  %v6618_v47 = vadd.f32 %v7625_v7, %v6201_v59  ;;  %v6045_v46 = vpop.f32.mrf.mxu0 }
 0x568   : > { %6822 = vst.msk [vmem:[#allocation4 + $0x130] sm:$0xff] %vm4933_vm1, %v6726_v43  ;;  %v6609_v40 = vpop.f32.mrf.mxu1  ;;  %v12064_v43 = vld [vmem:[#allocation32_spill] sm:$0xff] }
 0x569   : > { %6857 = vst.msk [vmem:[#allocation4 + $0x248] sm:$0xff] %vm4933_vm1, %v6761_v8  ;;  %v6766_v27 = vmax.f32 %v6618_v47, 0.0  ;;  %v6610_v37 = vadd.f32 %v6609_v40, %v6193_v61  ;;  %v955_v22 = vpop.permute.xlu0 %954  ;;  %v6212_v7 = vadd.f32 %v11801_v18, %v12064_v43  ;;  %v12065_v47 = vld [vmem:[#allocation37_spill] sm:$0xff] }
 0x56a   : > { %v7626_v51 = vpop.f32.mrf.mxu1  ;;  %1077 = vst.msk [vmem:[#allocation2 + $0x390] sm:$0xff] %vm962_vm0, %v955_v22  ;;  %v6233_v46 = vadd.f32 %v11801_v18, %v12065_v47  ;;  %v12066_v22 = vld [vmem:[#allocation34_spill] sm:$0xff]  ;;  %v6265_v47 = vadd.f32 %v11801_v18, %v11483_v38 }
 0x56b   : > { %6862 = vst.msk [vmem:[#allocation4 + $0x270] sm:$0xff] %vm4933_vm1, %v6766_v27  ;;  %v6764_v25 = vmax.f32 %v6610_v37, 0.0  ;;  %v6225_v51 = vadd.f32 %v11801_v18, %v12066_v22  ;;  %v6257_v22 = vadd.f32 %v11801_v18, %v11420_v49 }
 0x56c   : > { %v6612_v63 = vpop.f32.mrf.mxu1 }
 0x56d   : > { %6860 = vst.msk [vmem:[#allocation4 + $0x260] sm:$0xff] %vm4933_vm1, %v6764_v25  ;;  %v6613_v1 = vadd.f32 %v6612_v63, %v6196_v57  ;;  %v6048_v45 = vpop.f32.mrf.mxu0 }
 0x56e   : > { %v6049_v4 = vadd.f32 %v11801_v18, %v6048_v45  ;;  %v7629_v23 = vpop.f32.mrf.mxu1  ;;  %v12067_v45 = vld [vmem:[#allocation35_spill] sm:$0xff] }
 0x56f   : > { %v6765_v16 = vmax.f32 %v6613_v1, 0.0  ;;  %v6634_v31 = vadd.f32 %v7629_v23, %v6217_v0  ;;  %v6050_v15 = vpop.f32.mrf.mxu0 }
 0x570   : > { %v6466_v36 = vadd.f32 %v11673_v9, %v6049_v4  ;;  %v6625_v11 = vpop.f32.mrf.mxu1  ;;  %v6228_v4 = vadd.f32 %v11801_v18, %v12067_v45 }
 0x571   : > { %6861 = vst.msk [vmem:[#allocation4 + $0x268] sm:$0xff] %vm4933_vm1, %v6765_v16  ;;  %v6770_v13 = vmax.f32 %v6634_v31, 0.0  ;;  %v6626_v6 = vadd.f32 %v6625_v11, %v6209_v52  ;;  %v6051_v44 = vpop.f32.mrf.mxu0  ;;  %v6249_v31 = vadd.f32 %v11801_v18, %v11356_v2 }
 0x572   : > { %v6728_v59 = vmax.f32 %v6466_v36, 0.0  ;;  %v6052_v10 = vadd.f32 %v11801_v18, %v6051_v44  ;;  %v7630_v5 = vpop.f32.mrf.mxu1 }
 0x573   : > { %6866 = vst.msk [vmem:[#allocation4 + $0x290] sm:$0xff] %vm4933_vm1, %v6770_v13  ;;  %v6768_v19 = vmax.f32 %v6626_v6, 0.0  ;;  %v6053_v61 = vpop.f32.mrf.mxu0  ;;  %v12068_v6 = vld [vmem:[#allocation38_spill] sm:$0xff] }
 0x574   : > { %6824 = vst.msk [vmem:[#allocation4 + $0x140] sm:$0xff] %vm4933_vm1, %v6728_v59  ;;  %v6469_v9 = vadd.f32 %v11680_v28, %v6052_v10  ;;  %v6628_v8 = vpop.f32.mrf.mxu1  ;;  %v6241_v44 = vadd.f32 %v11801_v18, %v12068_v6 }
 0x575   : > { %6864 = vst.msk [vmem:[#allocation4 + $0x280] sm:$0xff] %vm4933_vm1, %v6768_v19  ;;  %v6629_v40 = vadd.f32 %v6628_v8, %v6212_v7  ;;  %v12069_v19 = vld [vmem:[#allocation39_spill] sm:$0xff] }
 0x576   : > { %v6729_v27 = vmax.f32 %v6469_v9, 0.0  ;;  %v7633_v37 = vpop.f32.mrf.mxu1  ;;  %v6244_v61 = vadd.f32 %v11801_v18, %v12069_v19 }
 0x577   : > { %v6769_v29 = vmax.f32 %v6629_v40, 0.0  ;;  %v6650_v57 = vadd.f32 %v7633_v37, %v6233_v46 }
 0x578   : > { %6825 = vst.msk [vmem:[#allocation4 + $0x148] sm:$0xff] %vm4933_vm1, %v6729_v27  ;;  %v6641_v25 = vpop.f32.mrf.mxu1 }
 0x579   : > { %6865 = vst.msk [vmem:[#allocation4 + $0x288] sm:$0xff] %vm4933_vm1, %v6769_v29  ;;  %v6774_v28 = vmax.f32 %v6650_v57, 0.0  ;;  %v6642_v63 = vadd.f32 %v6641_v25, %v6225_v51  ;;  %v6056_v26 = vpop.f32.mrf.mxu0 }
 0x57a   : > { %v6057_v0 = vadd.f32 %v11801_v18, %v6056_v26  ;;  %v7634_v1 = vpop.f32.mrf.mxu1 }
 0x57b   : > { %6870 = vst.msk [vmem:[#allocation4 + $0x2b0] sm:$0xff] %vm4933_vm1, %v6774_v28  ;;  %v6772_v23 = vmax.f32 %v6642_v63, 0.0  ;;  %v6058_v41 = vpop.f32.mrf.mxu0 }
 0x57c   : > { %v6474_v52 = vadd.f32 %v11667_v24, %v6057_v0  ;;  %v6644_v16 = vpop.f32.mrf.mxu1 }
 0x57d   : > { %6868 = vst.msk [vmem:[#allocation4 + $0x2a0] sm:$0xff] %vm4933_vm1, %v6772_v23  ;;  %v6645_v15 = vadd.f32 %v6644_v16, %v6228_v4  ;;  %v6059_v36 = vpop.f32.mrf.mxu0  ;;  %v6260_v4 = vadd.f32 %v11801_v18, %v11430_v30 }
 0x57e   : > { %v6730_v11 = vmax.f32 %v6474_v52, 0.0  ;;  %v7637_v13 = vpop.f32.mrf.mxu1 }
 0x57f   : > { %v6773_v59 = vmax.f32 %v6645_v15, 0.0  ;;  %v6666_v10 = vadd.f32 %v7637_v13, %v6249_v31  ;;  %v6061_v5 = vpop.f32.mrf.mxu0 }
 0x580   : > { %6826 = vst.msk [vmem:[#allocation4 + $0x150] sm:$0xff] %vm4933_vm1, %v6730_v11  ;;  %v6657_v43 = vpop.f32.mrf.mxu1 }
 0x581   : > { %6869 = vst.msk [vmem:[#allocation4 + $0x2a8] sm:$0xff] %vm4933_vm1, %v6773_v59  ;;  %v6778_v24 = vmax.f32 %v6666_v10, 0.0  ;;  %v6658_v7 = vadd.f32 %v6657_v43, %v6241_v44 }
 0x582   : > { %v7638_v2 = vpop.f32.mrf.mxu1 }
 0x583   : > { %6874 = vst.msk [vmem:[#allocation4 + $0x2d0] sm:$0xff] %vm4933_vm1, %v6778_v24  ;;  %v6776_v9 = vmax.f32 %v6658_v7, 0.0 }
 0x584   : > { %v6660_v8 = vpop.f32.mrf.mxu1 }
 0x585   : > { %6872 = vst.msk [vmem:[#allocation4 + $0x2c0] sm:$0xff] %vm4933_vm1, %v6776_v9  ;;  %v6661_v46 = vadd.f32 %v6660_v8, %v6244_v61  ;;  %v6064_v40 = vpop.f32.mrf.mxu0 }
 0x586   : > { %v6065_v27 = vadd.f32 %v11801_v18, %v6064_v40  ;;  %v7641_v37 = vpop.f32.mrf.mxu1 }
 0x587   : > { %v6777_v51 = vmax.f32 %v6661_v46, 0.0  ;;  %v6682_v29 = vadd.f32 %v7641_v37, %v6265_v47  ;;  %v6066_v57 = vpop.f32.mrf.mxu0  ;;  %v6914_v47 = vld [vmem:[#allocation4 + $0x70] ss:$2 sm:$0xf] }
 0x588   : > { %v6482_v25 = vadd.f32 %v11686_v60, %v6065_v27  ;;  %v6673_v28 = vpop.f32.mrf.mxu1  ;;  %v6918_v46 = vld [vmem:[#allocation4 + $0x71] ss:$2 sm:$0xf]  ;;  %v6904_v27 = vld [vmem:[#allocation4 + $0x50] ss:$2 sm:$0xf] }
 0x589   : > { %6873 = vst.msk [vmem:[#allocation4 + $0x2c8] sm:$0xff] %vm4933_vm1, %v6777_v51  ;;  %v6782_v63 = vmax.f32 %v6682_v29, 0.0  ;;  %v6674_v38 = vadd.f32 %v6673_v28, %v6257_v22  ;;  %v6067_v26 = vpop.f32.mrf.mxu0  ;;  %v6908_v37 = vld [vmem:[#allocation4 + $0x51] ss:$2 sm:$0xf] }
 0x58a   : > { %v6732_v0 = vmax.f32 %v6482_v25, 0.0  ;;  %v6068_v1 = vadd.f32 %v11801_v18, %v6067_v26  ;;  %v7642_v45 = vpop.f32.mrf.mxu1  ;;  %v7178_v59 = vld [vmem:[#allocation4 + $0x2d1] ss:$2 sm:$0xf]  ;;  %v6920_v25 = vmax.f32 %v6914_v47, %v6918_v46 }
 0x58b   : > { %6878 = vst.msk [vmem:[#allocation4 + $0x2f0] sm:$0xff] %vm4933_vm1, %v6782_v63  ;;  %v6780_v49 = vmax.f32 %v6674_v38, 0.0  ;;  %v6069_v23 = vpop.f32.mrf.mxu0  ;;  %v7012_v22 = vld [vmem:[#allocation4 + $0x150] ss:$2 sm:$0xf] }
 0x58c   : > { %6828 = vst.msk [vmem:[#allocation4 + $0x160] sm:$0xff] %vm4933_vm1, %v6732_v0  ;;  %v6485_v60 = vadd.f32 %v11694_v21, %v6068_v1  ;;  %v6676_v41 = vpop.f32.mrf.mxu1  ;;  %v7174_v21 = vld [vmem:[#allocation4 + $0x2d0] ss:$2 sm:$0xf]  ;;  %v7128_v38 = vld [vmem:[#allocation4 + $0x260] ss:$2 sm:$0xff] }
 0x58d   : > { %6876 = vst.msk [vmem:[#allocation4 + $0x2e0] sm:$0xff] %vm4933_vm1, %v6780_v49  ;;  %v6677_v52 = vadd.f32 %v6676_v41, %v6260_v4  ;;  %v7180_v9 = vmax.f32 %v7174_v21, %v7178_v59  ;;  %v7016_v51 = vld [vmem:[#allocation4 + $0x151] ss:$2 sm:$0xf]  ;;  %v7010_v0 = vld [vmem:[#allocation4 + $0x140] ss:$2 sm:$0xff]  ;;  %v6910_v49 = vmax.f32 %v6904_v27, %v6908_v37 }
 0x58e   : > { %v6733_v16 = vmax.f32 %v6485_v60, 0.0  ;;  %v7014_v1 = vld [vmem:[#allocation4 + $0x141] ss:$2 sm:$0xff] }
 0x58f   : > { %v6781_v31 = vmax.f32 %v6677_v52, 0.0  ;;  %v7132_v45 = vld [vmem:[#allocation4 + $0x261] ss:$2 sm:$0xff]  ;;  %v7018_v52 = vmax.f32 %v7012_v22, %v7016_v51  ;;  %v7017_v59 = vmax.f32 %v7010_v0, %v7014_v1 }
 0x590   : > { %6829 = vst.msk [vmem:[#allocation4 + $0x168] sm:$0xff] %vm4933_vm1, %v6733_v16  ;;  %v7172_v5 = vld [vmem:[#allocation4 + $0x2c0] ss:$2 sm:$0xff]  ;;  %v7176_v43 = vld [vmem:[#allocation4 + $0x2c1] ss:$2 sm:$0xff] }
 0x591   : > { %6877 = vst.msk [vmem:[#allocation4 + $0x2e8] sm:$0xff] %vm4933_vm1, %v6781_v31  ;;  %v6072_v15 = vpop.f32.mrf.mxu0  ;;  %v7179_v61 = vmax.f32 %v7172_v5, %v7176_v43 }
 0x592   : > { %v6073_v30 = vadd.f32 %v11801_v18, %v6072_v15  ;;  %v7184_v13 = vld [vmem:[#allocation4 + $0x2f0] ss:$2 sm:$0xf]  ;;  %v7188_v6 = vld [vmem:[#allocation4 + $0x2f1] ss:$2 sm:$0xf] }
 0x593   : > { %v6074_v36 = vpop.f32.mrf.mxu0  ;;  %v7190_v7 = vmax.f32 %v7184_v13, %v7188_v6  ;;  %v7135_v13 = vmax.f32 %v7128_v38, %v7132_v45 }
 0x594   : > { %v6490_v11 = vadd.f32 %v11683_v20, %v6073_v30  ;;  %v6922_v30 = vmax.f32 %v6910_v49, %v6920_v25  ;;  %v7118_v36 = vld [vmem:[#allocation4 + $0x240] ss:$2 sm:$0xff] }
 0x595   : > { %v6075_v44 = vpop.f32.mrf.mxu0  ;;  %v7192_v40 = vmax.f32 %v7180_v9, %v7190_v7 }
 0x596   : > { %v6734_v10 = vmax.f32 %v6490_v11, 0.0  ;;  %v7122_v11 = vld [vmem:[#allocation4 + $0x241] ss:$2 sm:$0xff] }
 0x597   : > { %v6077_v24 = vpop.f32.mrf.mxu0  ;;  %v7020_v28 = vld [vmem:[#allocation4 + $0x160] ss:$2 sm:$0xff]  ;;  %v7024_v63 = vld [vmem:[#allocation4 + $0x161] ss:$2 sm:$0xff] }
 0x598   : > { %6830 = vst.msk [vmem:[#allocation4 + $0x170] sm:$0xff] %vm4933_vm1, %v6734_v10  ;;  %v7182_v2 = vld [vmem:[#allocation4 + $0x2e0] ss:$2 sm:$0xff]  ;;  %v7186_v19 = vld [vmem:[#allocation4 + $0x2e1] ss:$2 sm:$0xff]  ;;  %v7027_v31 = vmax.f32 %v7020_v28, %v7024_v63  ;;  %v7125_v24 = vmax.f32 %v7118_v36, %v7122_v11 }
 0x599   : > { %v7189_v8 = vmax.f32 %v7182_v2, %v7186_v19 }
 0x59a   : > { %v7137_v2 = vmax.f32 %v7125_v24, %v7135_v13 }
 0x59b   : > { %v7191_v20 = vmax.f32 %v7179_v61, %v7189_v8 }
 0x59d   : > { %v6080_v29 = vpop.f32.mrf.mxu0  ;;  %v7734_v57 = vpack.i.bf16 %v7192_v40, %v7191_v20 }
 0x59e   : > { %v6081_v26 = vadd.f32 %v11801_v18, %v6080_v29 }
 0x59f   : > { %7735 = vrot.lane.b32.xlu1 %v7734_v57, %s7927_s29  ;;  %v6082_v4 = vpop.f32.mrf.mxu0  ;;  %v7022_v23 = vld [vmem:[#allocation4 + $0x170] ss:$2 sm:$0xf]  ;;  %v7026_v60 = vld [vmem:[#allocation4 + $0x171] ss:$2 sm:$0xf] }
 0x5a0   : > { %v6498_v41 = vadd.f32 %v11704_v34, %v6081_v26  ;;  %v7028_v16 = vmax.f32 %v7022_v23, %v7026_v60  ;;  %v7029_v34 = vmax.f32 %v7017_v59, %v7027_v31 }
 0x5a1   : > { %v6083_v15 = vpop.f32.mrf.mxu0 }
 0x5a2   : > { %v6736_v6 = vmax.f32 %v6498_v41, 0.0  ;;  %v6084_v44 = vadd.f32 %v11801_v18, %v6083_v15  ;;  %v7030_v21 = vmax.f32 %v7018_v52, %v7028_v16  ;;  %v7749_v19 = vpack.i.bf16 %v7137_v2, %v7029_v34 }
 0x5a3   : > { %v6085_v10 = vpop.f32.mrf.mxu0 }
 0x5a4   : > { %6832 = vst.msk [vmem:[#allocation4 + $0x180] sm:$0xff] %vm4933_vm1, %v6736_v6  ;;  %v6501_v5 = vadd.f32 %v11708_v48, %v6084_v44  ;;  %v7739_v43 = vpack.i.bf16 %v7030_v21, %v6922_v30 }
 0x5a6   : > { %v6737_v7 = vmax.f32 %v6501_v5, 0.0  ;;  %7740 = vrot.lane.b32.xlu1 %v7739_v43, %s7927_s29 }
 0x5a8   : > { %6833 = vst.msk [vmem:[#allocation4 + $0x188] sm:$0xff] %vm4933_vm1, %v6737_v7 }
 0x5a9   : > { %v6088_v61 = vpop.f32.mrf.mxu0 }
 0x5aa   : > { %v6089_v9 = vadd.f32 %v11801_v18, %v6088_v61  ;;  %7750 = vrot.lane.b32.xlu1 %v7749_v19, %s7927_s29 }
 0x5ab   : > { %v6090_v8 = vpop.f32.mrf.mxu0 }
 0x5ac   : > { %v6506_v47 = vadd.f32 %v11699_v12, %v6089_v9 }
 0x5ad   : > { %v6091_v46 = vpop.f32.mrf.mxu0 }
 0x5ae   : > { %v6738_v48 = vmax.f32 %v6506_v47, 0.0 }
 0x5af   : > { %v6093_v20 = vpop.f32.mrf.mxu0 }
 0x5b0   : > { %6834 = vst.msk [vmem:[#allocation4 + $0x190] sm:$0xff] %vm4933_vm1, %v6738_v48 }
 0x5b5   : > { %v6096_v40 = vpop.f32.mrf.mxu0 }
 0x5b6   : > { %v6097_v27 = vadd.f32 %v11801_v18, %v6096_v40 }
 0x5b7   : > { %v6098_v37 = vpop.f32.mrf.mxu0 }
 0x5b8   : > { %v6514_v22 = vadd.f32 %v11716_v17, %v6097_v27 }
 0x5b9   : > { %v6099_v51 = vpop.f32.mrf.mxu0 }
 0x5ba   : > { %v6740_v29 = vmax.f32 %v6514_v22, 0.0  ;;  %v6100_v57 = vadd.f32 %v11801_v18, %v6099_v51 }
 0x5bb   : > { %v6101_v25 = vpop.f32.mrf.mxu0 }
 0x5bc   : > { %6836 = vst.msk [vmem:[#allocation4 + $0x1a0] sm:$0xff] %vm4933_vm1, %v6740_v29  ;;  %v6517_v12 = vadd.f32 %v11723_v54, %v6100_v57 }
 0x5be   : > { %v6741_v28 = vmax.f32 %v6517_v12, 0.0 }
 0x5c0   : > { %6837 = vst.msk [vmem:[#allocation4 + $0x1a8] sm:$0xff] %vm4933_vm1, %v6741_v28 }
 0x5c1   : > { %v6104_v63 = vpop.f32.mrf.mxu0 }
 0x5c2   : > { %v6105_v38 = vadd.f32 %v11801_v18, %v6104_v63 }
 0x5c3   : > { %v6106_v26 = vpop.f32.mrf.mxu0 }
 0x5c4   : > { %v6522_v0 = vadd.f32 %v11710_v14, %v6105_v38  ;;  %v7130_v38 = vld [vmem:[#allocation4 + $0x270] ss:$2 sm:$0xf]  ;;  %v7134_v26 = vld [vmem:[#allocation4 + $0x271] ss:$2 sm:$0xf] }
 0x5c5   : > { %v6107_v1 = vpop.f32.mrf.mxu0 }
 0x5c6   : > { %v6742_v17 = vmax.f32 %v6522_v0, 0.0 }
 0x5c7   : > { %v6109_v45 = vpop.f32.mrf.mxu0 }
 0x5c8   : > { %6838 = vst.msk [vmem:[#allocation4 + $0x1b0] sm:$0xff] %vm4933_vm1, %v6742_v17 }
 0x5cd   : > { %v6112_v4 = vpop.f32.mrf.mxu0 }
 0x5ce   : > { %v6113_v49 = vadd.f32 %v11801_v18, %v6112_v4  ;;  %v6912_v4 = vld [vmem:[#allocation4 + $0x60] ss:$2 sm:$0xff] }
 0x5cf   : > { %v6114_v23 = vpop.f32.mrf.mxu0 }
 0x5d0   : > { %v6530_v54 = vadd.f32 %v11729_v53, %v6113_v49  ;;  %v6916_v49 = vld [vmem:[#allocation4 + $0x61] ss:$2 sm:$0xff] }
 0x5d1   : > { %v6115_v60 = vpop.f32.mrf.mxu0 }
 0x5d2   : > { %v6744_v41 = vmax.f32 %v6530_v54, 0.0  ;;  %v6116_v52 = vadd.f32 %v11801_v18, %v6115_v60  ;;  %v7120_v54 = vld [vmem:[#allocation4 + $0x250] ss:$2 sm:$0xf] }
 0x5d3   : > { %v6117_v16 = vpop.f32.mrf.mxu0  ;;  %v7124_v60 = vld [vmem:[#allocation4 + $0x251] ss:$2 sm:$0xf] }
 0x5d4   : > { %6840 = vst.msk [vmem:[#allocation4 + $0x1c0] sm:$0xff] %vm4933_vm1, %v6744_v41  ;;  %v6533_v14 = vadd.f32 %v11737_v50, %v6116_v52  ;;  %v7136_v52 = vmax.f32 %v7130_v38, %v7134_v26  ;;  %v6902_v16 = vld [vmem:[#allocation4 + $0x40] ss:$2 sm:$0xff] }
 0x5d6   : > { %v6745_v31 = vmax.f32 %v6533_v14, 0.0  ;;  %v6906_v14 = vld [vmem:[#allocation4 + $0x41] ss:$2 sm:$0xff] }
 0x5d8   : > { %6841 = vst.msk [vmem:[#allocation4 + $0x1c8] sm:$0xff] %vm4933_vm1, %v6745_v31 }
 0x5d9   : > { %v6120_v15 = vpop.f32.mrf.mxu0 }
 0x5da   : > { %v6121_v30 = vadd.f32 %v11801_v18, %v6120_v15  ;;  %v6919_v15 = vmax.f32 %v6912_v4, %v6916_v49 }
 0x5db   : > { %v6122_v36 = vpop.f32.mrf.mxu0 }
 0x5dc   : > { %v6538_v11 = vadd.f32 %v11726_v3, %v6121_v30  ;;  %v7126_v30 = vmax.f32 %v7120_v54, %v7124_v60  ;;  %v381_v36 = vld [vmem:[%s8038_s20 + $0x398] sm:$0xff]  ;;  %s7676_s20 = smul.u32 36, %s12071_s21 }
 0x5dd   : > { %v6123_v13 = vpop.f32.mrf.mxu0 }
 0x5de   : > { %v6746_v53 = vmax.f32 %v6538_v11, 0.0  ;;  %v6909_v11 = vmax.f32 %v6902_v16, %v6906_v14  ;;  %v7138_v13 = vmax.f32 %v7126_v30, %v7136_v52  ;;  %s11928_s15 = scalar_lea.vmem %s11986_s5, %s7676_s20 }
 0x5df   : > { %v6125_v6 = vpop.f32.mrf.mxu0  ;;  %v7064_v48 = vld [vmem:[#allocation4 + $0x1c0] ss:$2 sm:$0xff]  ;;  %v7068_v20 = vld [vmem:[#allocation4 + $0x1c1] ss:$2 sm:$0xff] }
 0x5e0   : > { %6842 = vst.msk [vmem:[#allocation4 + $0x1d0] sm:$0xff] %vm4933_vm1, %v6746_v53  ;;  %v7071_v25 = vmax.f32 %v7064_v48, %v7068_v20  ;;  %v6936_v20 = vld [vmem:[#allocation4 + $0x90] ss:$2 sm:$0xf] }
 0x5e5   : > { %v6128_v44 = vpop.f32.mrf.mxu0 }
 0x5e6   : > { %v6129_v21 = vadd.f32 %v11801_v18, %v6128_v44  ;;  %v6921_v44 = vmax.f32 %v6909_v11, %v6919_v15  ;;  %v6988_v11 = vld [vmem:[#allocation4 + $0x100] ss:$2 sm:$0xff] }
 0x5e7   : > { %v6130_v59 = vpop.f32.mrf.mxu0  ;;  %v7070_v27 = vld [vmem:[#allocation4 + $0x1d1] ss:$2 sm:$0xf] }
 0x5e8   : > { %v6546_v50 = vadd.f32 %v11748_v39, %v6129_v21  ;;  %v7164_v21 = vld [vmem:[#allocation4 + $0x2a1] ss:$2 sm:$0xff] }
 0x5e9   : > { %v6131_v10 = vpop.f32.mrf.mxu0 }
 0x5ea   : > { %v6748_v5 = vmax.f32 %v6546_v50, 0.0  ;;  %v6132_v43 = vadd.f32 %v11801_v18, %v6131_v10  ;;  %v7162_v50 = vld [vmem:[#allocation4 + $0x2b0] ss:$2 sm:$0xf] }
 0x5eb   : > { %v6133_v34 = vpop.f32.mrf.mxu0  ;;  %v7166_v10 = vld [vmem:[#allocation4 + $0x2b1] ss:$2 sm:$0xf] }
 0x5ec   : > { %6844 = vst.msk [vmem:[#allocation4 + $0x1e0] sm:$0xff] %vm4933_vm1, %v6748_v5  ;;  %v6549_v3 = vadd.f32 %v11752_v62, %v6132_v43  ;;  %v7066_v62 = vld [vmem:[#allocation4 + $0x1d0] ss:$2 sm:$0xf]  ;;  %v6944_v5 = vld [vmem:[#allocation4 + $0xa0] ss:$2 sm:$0xff]  ;;  %v7168_v48 = vmax.f32 %v7162_v50, %v7166_v10 }
 0x5ed   : > { %v7072_v12 = vmax.f32 %v7066_v62, %v7070_v27  ;;  %v6946_v43 = vld [vmem:[#allocation4 + $0xb0] ss:$2 sm:$0xf] }
 0x5ee   : > { %v6749_v24 = vmax.f32 %v6549_v3, 0.0  ;;  %v7744_v3 = vpack.i.bf16 %v6921_v44, %v7138_v13  ;;  %v6992_v13 = vld [vmem:[#allocation4 + $0x101] ss:$2 sm:$0xff] }
 0x5ef   : > { %v6995_v10 = vmax.f32 %v6988_v11, %v6992_v13  ;;  %v6896_v11 = vld [vmem:[#allocation4 + $0x31] ss:$2 sm:$0xf] }
 0x5f0   : > { %6845 = vst.msk [vmem:[#allocation4 + $0x1e8] sm:$0xff] %vm4933_vm1, %v6749_v24  ;;  %v7150_v24 = vld [vmem:[#allocation4 + $0x280] ss:$2 sm:$0xff]  ;;  %v6886_v13 = vld [vmem:[#allocation4 + $0x11] ss:$2 sm:$0xf] }
 0x5f1   : > { %v6136_v7 = vpop.f32.mrf.mxu0 }
 0x5f2   : > { %v6137_v2 = vadd.f32 %v11801_v18, %v6136_v7  ;;  %v7154_v7 = vld [vmem:[#allocation4 + $0x281] ss:$2 sm:$0xff] }
 0x5f3   : > { %v6138_v19 = vpop.f32.mrf.mxu0  ;;  %v7157_v27 = vmax.f32 %v7150_v24, %v7154_v7 }
 0x5f4   : > { %v6554_v61 = vadd.f32 %v11742_v56, %v6137_v2  ;;  %v7726_v2 = vpop.permute.xlu1 %7725 }
 0x5f5   : > { %v6139_v9 = vpop.f32.mrf.mxu0  ;;  %v7728_v26 = vunpack.i.h.bf16 %v7726_v2 }
 0x5f6   : > { %v6750_v39 = vmax.f32 %v6554_v61, 0.0  ;;  %v7152_v61 = vld [vmem:[#allocation4 + $0x290] ss:$2 sm:$0xf] }
 0x5f7   : > { %v6141_v8 = vpop.f32.mrf.mxu0  ;;  %v7074_v47 = vld [vmem:[#allocation4 + $0x1e0] ss:$2 sm:$0xff]  ;;  %v7078_v46 = vld [vmem:[#allocation4 + $0x1e1] ss:$2 sm:$0xff] }
 0x5f8   : > { %6846 = vst.msk [vmem:[#allocation4 + $0x1f0] sm:$0xff] %vm4933_vm1, %v6750_v39  ;;  %v7081_v22 = vmax.f32 %v7074_v47, %v7078_v46  ;;  %v7156_v9 = vld [vmem:[#allocation4 + $0x291] ss:$2 sm:$0xf]  ;;  %v6948_v8 = vld [vmem:[#allocation4 + $0xa1] ss:$2 sm:$0xff] }
 0x5f9   : > { %v6950_v47 = vld [vmem:[#allocation4 + $0xb1] ss:$2 sm:$0xf] }
 0x5fa   : > { %v7083_v17 = vmax.f32 %v7071_v25, %v7081_v22  ;;  %v7158_v22 = vmax.f32 %v7152_v61, %v7156_v9 }
 0x5fc   : > { %v7170_v25 = vmax.f32 %v7158_v22, %v7168_v48  ;;  %v7056_v48 = vld [vmem:[#allocation4 + $0x1a1] ss:$2 sm:$0xff]  ;;  %v7044_v22 = vld [vmem:[#allocation4 + $0x190] ss:$2 sm:$0xf] }
 0x5fd   : > { %v6144_v40 = vpop.f32.mrf.mxu0 }
 0x5fe   : > { %v6145_v37 = vadd.f32 %v11801_v18, %v6144_v40  ;;  %v6940_v40 = vld [vmem:[#allocation4 + $0x91] ss:$2 sm:$0xf] }
 0x5ff   : > { %v6146_v51 = vpop.f32.mrf.mxu0  ;;  %v7076_v29 = vld [vmem:[#allocation4 + $0x1f0] ss:$2 sm:$0xf]  ;;  %v7080_v57 = vld [vmem:[#allocation4 + $0x1f1] ss:$2 sm:$0xf]  ;;  %v6942_v38 = vmax.f32 %v6936_v20, %v6940_v40 }
 0x600   : > { %v6562_v56 = vadd.f32 %v11760_v32, %v6145_v37  ;;  %v7082_v28 = vmax.f32 %v7076_v29, %v7080_v57  ;;  %v6938_v37 = vld [vmem:[#allocation4 + $0x81] ss:$2 sm:$0xff]  ;;  %v6951_v51 = vmax.f32 %v6944_v5, %v6948_v8  ;;  %v6952_v29 = vmax.f32 %v6946_v43, %v6950_v47  ;;  %v7000_v20 = vld [vmem:[#allocation4 + $0x130] ss:$2 sm:$0xf] }
 0x601   : > { %v6147_v63 = vpop.f32.mrf.mxu0  ;;  %v7004_v40 = vld [vmem:[#allocation4 + $0x131] ss:$2 sm:$0xf] }
 0x602   : > { %v6752_v0 = vmax.f32 %v6562_v56, 0.0  ;;  %v6148_v1 = vadd.f32 %v11801_v18, %v6147_v63  ;;  %v7084_v45 = vmax.f32 %v7072_v12, %v7082_v28  ;;  %v6954_v54 = vmax.f32 %v6942_v38, %v6952_v29 }
 0x603   : > { %v6149_v23 = vpop.f32.mrf.mxu0 }
 0x604   : > { %6848 = vst.msk [vmem:[#allocation4 + $0x200] sm:$0xff] %vm4933_vm1, %v6752_v0  ;;  %v6565_v32 = vadd.f32 %v11767_v42, %v6148_v1  ;;  %v7729_v41 = vpack.i.bf16 %v7084_v45, %v7083_v17  ;;  %v7160_v42 = vld [vmem:[#allocation4 + $0x2a0] ss:$2 sm:$0xff]  ;;  %v7727_v0 = vunpack.i.l.bf16 %v7726_v2  ;;  %v6986_v14 = vsel %vm4933_vm1, %v6954_v54, %v7728_v26 }
 0x605   : > { %v7167_v39 = vmax.f32 %v7160_v42, %v7164_v21  ;;  %v7207_v21 = vrot.slane %v6986_v14, 4 }
 0x606   : > { %v6753_v31 = vmax.f32 %v6565_v32, 0.0  ;;  %7730 = vrot.lane.b32.xlu0 %v7729_v41, %s7927_s29  ;;  %v6998_v32 = vld [vmem:[#allocation4 + $0x120] ss:$2 sm:$0xff]  ;;  %v7002_v41 = vld [vmem:[#allocation4 + $0x121] ss:$2 sm:$0xff] }
 0x607   : > { %v7169_v57 = vmax.f32 %v7157_v27, %v7167_v39  ;;  %v7058_v27 = vld [vmem:[#allocation4 + $0x1b1] ss:$2 sm:$0xf] }
 0x608   : > { %6849 = vst.msk [vmem:[#allocation4 + $0x208] sm:$0xff] %vm4933_vm1, %v6753_v31 }
 0x609   : > { %v6152_v53 = vpop.f32.mrf.mxu0 }
 0x60a   : > { %v6153_v6 = vadd.f32 %v11801_v18, %v6152_v53  ;;  %959 = vperm.xlu0 %7722, %v381_v36  }
 0x60b   : > { %v6154_v59 = vpop.f32.mrf.mxu0 }
 0x60c   : > { %v6570_v34 = vadd.f32 %v11754_v35, %v6153_v6  ;;  %v6934_v35 = vld [vmem:[#allocation4 + $0x80] ss:$2 sm:$0xff]  ;;  %v7005_v6 = vmax.f32 %v6998_v32, %v7002_v41 }
 0x60d   : > { %v6155_v19 = vpop.f32.mrf.mxu0  ;;  %v6941_v63 = vmax.f32 %v6934_v35, %v6938_v37  ;;  %v7042_v35 = vld [vmem:[#allocation4 + $0x180] ss:$2 sm:$0xff]  ;;  %v7046_v37 = vld [vmem:[#allocation4 + $0x181] ss:$2 sm:$0xff] }
 0x60e   : > { %v6754_v46 = vmax.f32 %v6570_v34, 0.0  ;;  %7745 = vrot.lane.b32.xlu0 %v7744_v3, %s7927_s29  ;;  %v7007_v43 = vmax.f32 %v6995_v10, %v7005_v6 }
 0x60f   : > { %v6157_v62 = vpop.f32.mrf.mxu0  ;;  %v6953_v23 = vmax.f32 %v6941_v63, %v6951_v51  ;;  %v7048_v51 = vld [vmem:[#allocation4 + $0x191] ss:$2 sm:$0xf] }
 0x610   : > { %6850 = vst.msk [vmem:[#allocation4 + $0x210] sm:$0xff] %vm4933_vm1, %v6754_v46  ;;  %v7052_v46 = vld [vmem:[#allocation4 + $0x1a0] ss:$2 sm:$0xff]  ;;  %v7054_v62 = vld [vmem:[#allocation4 + $0x1b0] ss:$2 sm:$0xf] }
 0x611   : > { %v7736_v56 = vpop.permute.xlu1 %7735  ;;  %v11935_v31 = vsel %vm4933_vm1, %v6953_v23, %v7727_v0  ;;  %v7059_v29 = vmax.f32 %v7052_v46, %v7056_v48 }
 0x612   : > { %v7738_v12 = vunpack.i.h.bf16 %v7736_v56  ;;  %v7737_v28 = vunpack.i.l.bf16 %v7736_v56  ;;  %v7206_v59 = vrot.slane %v11935_v31, 4  ;;  %v7060_v56 = vmax.f32 %v7054_v62, %v7058_v27 }
 0x614   : > { %v7202_v1 = vsel %vm4933_vm1, %v7170_v25, %v7738_v12  ;;  %v11921_v17 = vsel %vm4933_vm1, %v7169_v57, %v7737_v28  ;;  %v7208_v24 = vsel %vm7205_vm3, %v7206_v59, %v7207_v21  ;;  %v6994_v57 = vld [vmem:[#allocation4 + $0x111] ss:$2 sm:$0xf]  ;;  %v7006_v25 = vmax.f32 %v7000_v20, %v7004_v40 }
 0x615   : > { %v7221_v45 = vrot.slane %v7202_v1, 4  ;;  %v7220_v4 = vrot.slane %v11921_v17, 4  ;;  %v6160_v49 = vpop.f32.mrf.mxu0  ;;  %v7050_v12 = vmax.f32 %v7044_v22, %v7048_v51 }
 0x616   : > { %v6161_v60 = vadd.f32 %v11801_v18, %v6160_v49 }
 0x617   : > { %v7222_v52 = vsel %vm7205_vm3, %v7220_v4, %v7221_v45  ;;  %v6162_v16 = vpop.f32.mrf.mxu0  ;;  %v7062_v0 = vmax.f32 %v7050_v12, %v7060_v56 }
 0x618   : > { %v7469_v15 = vpack.c.bf16 %v7222_v52, %v7222_v52  ;;  %v6578_v30 = vadd.f32 %v11773_v55, %v6161_v60  ;;  %v11938_v36 = vpop.permute.xlu1 %7740 }
 0x619   : > { %v6163_v53 = vpop.f32.mrf.mxu0  ;;  %v7743_v26 = vunpack.i.h.bf16 %v11938_v36 }
 0x61a   : > { %7273 = vst [vmem:[%s11928_s15 + $0x20] sm:$0xf] %v7469_v15  ;;  %v6756_v44 = vmax.f32 %v6578_v30, 0.0  ;;  %v6164_v42 = vadd.f32 %v11801_v18, %v6163_v53  ;;  %v6882_v15 = vld [vmem:[#allocation4 + $0x10] ss:$2 sm:$0xf] }
 0x61b   : > { %v6165_v50 = vpop.f32.mrf.mxu0  ;;  %v6892_v30 = vld [vmem:[#allocation4 + $0x30] ss:$2 sm:$0xf]  ;;  %v6890_v53 = vld [vmem:[#allocation4 + $0x20] ss:$2 sm:$0xff] }
 0x61c   : > { %6852 = vst.msk [vmem:[#allocation4 + $0x220] sm:$0xff] %vm4933_vm1, %v6756_v44  ;;  %v6581_v55 = vadd.f32 %v11781_v58, %v6164_v42  ;;  %v11945_v5 = vpop.permute.xlu1 %7750  ;;  %v6894_v42 = vld [vmem:[#allocation4 + $0x21] ss:$2 sm:$0xff]  ;;  %v6898_v21 = vmax.f32 %v6892_v30, %v6896_v11  ;;  %v6880_v50 = vld [vmem:[#allocation4] ss:$2 sm:$0xff] }
 0x61d   : > { %v7752_v34 = vunpack.i.l.bf16 %v11945_v5  ;;  %v7753_v22 = vunpack.i.h.bf16 %v11945_v5 }
 0x61e   : > { %v6757_v3 = vmax.f32 %v6581_v55, 0.0 }
 0x61f   : > { %v7039_v7 = vsel %vm4933_vm1, %v7007_v43, %v7752_v34  ;;  %v7096_v43 = vld [vmem:[#allocation4 + $0x200] ss:$2 sm:$0xff]  ;;  %v7100_v34 = vld [vmem:[#allocation4 + $0x201] ss:$2 sm:$0xff] }
 0x620   : > { %6853 = vst.msk [vmem:[#allocation4 + $0x228] sm:$0xff] %vm4933_vm1, %v6757_v3  ;;  %v7478_v2 = vpack.c.bf16 %v7039_v7, %v7208_v24  ;;  %v6884_v3 = vld [vmem:[#allocation4 + $0x1] ss:$2 sm:$0xff]  ;;  %v6888_v24 = vmax.f32 %v6882_v15, %v6886_v13  ;;  %v7742_v7 = vunpack.i.l.bf16 %v11938_v36 }
 0x621   : > { %v6168_v19 = vpop.f32.mrf.mxu0  ;;  %v6887_v46 = vmax.f32 %v6880_v50, %v6884_v3 }
 0x622   : > { %7490 = vst [vmem:[%s11928_s15 + $0x8] sm:$0xff] %v7478_v2   ;;  %v6169_v61 = vadd.f32 %v11801_v18, %v6168_v19  ;;  %v6990_v18 = vld [vmem:[#allocation4 + $0x110] ss:$2 sm:$0xf] }
 0x623   : > { %v6170_v58 = vpop.f32.mrf.mxu0  ;;  %v6996_v28 = vmax.f32 %v6990_v18, %v6994_v57 }
 0x624   : > { %v6586_v9 = vadd.f32 %v11770_v33, %v6169_v61  ;;  %v7049_v33 = vmax.f32 %v7042_v35, %v7046_v37  ;;  %v7098_v61 = vld [vmem:[#allocation4 + $0x210] ss:$2 sm:$0xf]  ;;  %v7102_v58 = vld [vmem:[#allocation4 + $0x211] ss:$2 sm:$0xf] }
 0x625   : > { %v6171_v39 = vpop.f32.mrf.mxu0  ;;  %v7008_v49 = vmax.f32 %v6996_v28, %v7006_v25  ;;  %v7104_v48 = vmax.f32 %v7098_v61, %v7102_v58 }
 0x626   : > { %v6758_v8 = vmax.f32 %v6586_v9, 0.0  ;;  %v7061_v63 = vmax.f32 %v7049_v33, %v7059_v29  ;;  %v6897_v9 = vmax.f32 %v6890_v53, %v6894_v42 }
 0x627   : > { %v6173_v47 = vpop.f32.mrf.mxu0  ;;  %v7040_v41 = vsel %vm4933_vm1, %v7008_v49, %v7743_v26  ;;  %v7106_v6 = vld [vmem:[#allocation4 + $0x220] ss:$2 sm:$0xff]  ;;  %v7110_v44 = vld [vmem:[#allocation4 + $0x221] ss:$2 sm:$0xff] }
 0x628   : > { %6854 = vst.msk [vmem:[#allocation4 + $0x230] sm:$0xff] %vm4933_vm1, %v6758_v8  ;;  %v7113_v2 = vmax.f32 %v7106_v6, %v7110_v44  ;;  %v6900_v8 = vmax.f32 %v6888_v24, %v6898_v21  ;;  %v7103_v47 = vmax.f32 %v7096_v43, %v7100_v34  ;;  %v6899_v27 = vmax.f32 %v6887_v46, %v6897_v9 }
 0x62a   : > { %v6932_v20 = vsel %vm4933_vm1, %v6900_v8, %v7742_v7  ;;  %v7115_v40 = vmax.f32 %v7103_v47, %v7113_v2 }
 0x62b   : > { %v7225_v51 = vsel %vm7205_vm3, %v6932_v20, %v7206_v59 }
 0x62c   : > { %v7147_v57 = vsel %vm4933_vm1, %v7115_v40, %v7753_v22 }
 0x62f   : > { %v7108_v10 = vld [vmem:[#allocation4 + $0x230] ss:$2 sm:$0xf]  ;;  %v7112_v55 = vld [vmem:[#allocation4 + $0x231] ss:$2 sm:$0xf] }
 0x630   : > { %v7114_v39 = vmax.f32 %v7108_v10, %v7112_v55 }
 0x632   : > { %v7116_v35 = vmax.f32 %v7104_v48, %v7114_v39 }
 0x678   : > { %v7731_v38 = vpop.permute.xlu0 %7730 }
 0x679   : > { %v7733_v1 = vunpack.i.h.bf16 %v7731_v38  ;;  %v7732_v45 = vunpack.i.l.bf16 %v7731_v38 }
 0x67b   : > { %v7094_v23 = vsel %vm4933_vm1, %v7062_v0, %v7733_v1  ;;  %v7093_v54 = vsel %vm4933_vm1, %v7061_v63, %v7732_v45 }
 0x67c   : > { %v7214_v60 = vrot.slane %v7094_v23, 4  ;;  %v7213_v32 = vrot.slane %v7093_v54, 4 }
 0x67e   : > { %v7215_v52 = vsel %vm7205_vm3, %v7213_v32, %v7214_v60  ;;  %v7226_v16 = vsel %vm7205_vm3, %v7040_v41, %v7213_v32 }
 0x67f   : > { %v7483_v14 = vpack.c.bf16 %v7215_v52, %v7226_v16 }
 0x681   : > { %7491 = vst [vmem:[%s11928_s15 + $0x10] sm:$0xff] %v7483_v14  }
 0x685   : > { %v960_v19 = vpop.permute.xlu0 %959 }
 0x689   : > { %v7746_v62 = vpop.permute.xlu0 %7745 }
 0x68a   : > { %v7748_v37 = vunpack.i.h.bf16 %v7746_v62  ;;  %v7747_v36 = vunpack.i.l.bf16 %v7746_v62 }
 0x68c   : > { %v6931_v29 = vsel %vm4933_vm1, %v6899_v27, %v7748_v37  ;;  %v7148_v18 = vsel %vm4933_vm1, %v7116_v35, %v7747_v36 }
 0x68d   : > { %v7473_v56 = vpack.c.bf16 %v7225_v51, %v6931_v29  ;;  %v7227_v33 = vsel %vm7205_vm3, %v7148_v18, %v7220_v4 }
 0x68e   : > { %v7488_v25 = vpack.c.bf16 %v7227_v33, %v7147_v57 }
 0x68f   : > { %7474 = vst [vmem:[%s11928_s15] sm:$0xff] %v7473_v56  }
 0x690   : > { %7492 = vst [vmem:[%s11928_s15 + $0x18] sm:$0xff] %v7488_v25  }
 0x691 PF: > { %s17_s18 = sadd.s32 1, %s7918_s18  }
 0x692   : > { %p14_p5 = scmp.ge.s32.totalorder %s17_s18, 4  }
 0x694   :  { %16 = sbr.rel (!%p14_p5) target bundleno = 2 (0x2), region = 178 }
 0x699   :  { %7295 = vsyncpa [#allocation6], 1 }
 0x69a   :  { %7297 = vsyncpa [#allocation6 + $0x1], 1 }
 0x69b   :  { %7298 = vsyncpa [#allocation8], 1 }

// kernel: net_forward.3
= control target key start
LH: loop header
LB: loop body
LE: loop exit
PB: predicated region body
PF: predicated region fallthrough
CT: control target
= control target key end

     0   :  { %vm8625_vm0 = vmmov 0   ;;  %vm6458_vm1 = vcmask 80896   ;;  %s10585_s1 = inlined_call_operand.vmem [shape: bf16[9216,128], index: 1, kind: input, shape index: {}]   ;;  %s10586_s0 = inlined_call_operand.vmem [shape: bf16[8,9216], index: 0, kind: input, shape index: {}]   ;;  %s10587_s2 = inlined_call_operand.vmem [shape: f32[1,128], index: 2, kind: input, shape index: {}]   ;;  %s10588_s3 = inlined_call_operand.vmem [shape: f32[128,10], index: 3, kind: input, shape index: {}]   ;;  %s10589_s4 = inlined_call_operand.vmem [shape: f32[1,10], index: 4, kind: input, shape index: {}]   ;;  %s10590_s5 = inlined_call_operand.vmem [shape: f32[8,10], index: 5, kind: output, shape index: {}]  }
   0x1   :  { %v7972_v0 = vld [vmem:[%s10585_s1 + $0x78] sm:$0xff]   ;;  %v7976_v4 = vld [vmem:[%s10585_s1 + $0x70] sm:$0xff]   ;;  %v7980_v8 = vld [vmem:[%s10585_s1 + $0x68] sm:$0xff]  }
   0x2   :  { %v7973_v1 = vld [vmem:[%s10585_s1 + $0xf8] sm:$0xff]   ;;  %7126 = vmatprep.subr.bf16.mxu0 %v7972_v0  ;;  %v7977_v5 = vld [vmem:[%s10585_s1 + $0xf0] sm:$0xff]   ;;  %v7981_v9 = vld [vmem:[%s10585_s1 + $0xe8] sm:$0xff]  }
   0x3   :  { %v7974_v2 = vld [vmem:[%s10585_s1 + $0x38] sm:$0xff]   ;;  %7148 = vmatprep.subr.bf16.mxu1 %v7973_v1  ;;  %v7978_v6 = vld [vmem:[%s10585_s1 + $0x30] sm:$0xff]   ;;  %v7982_v10 = vld [vmem:[%s10585_s1 + $0x28] sm:$0xff]  }
   0x4   :  { %v7975_v3 = vld [vmem:[%s10585_s1 + $0xb8] sm:$0xff]   ;;  %7127 = vmatpush3.bf16.msra.mxu0 %v7974_v2  ;;  %v7979_v7 = vld [vmem:[%s10585_s1 + $0xb0] sm:$0xff]   ;;  %v7983_v11 = vld [vmem:[%s10585_s1 + $0xa8] sm:$0xff]  }
   0x5   :  { %7149 = vmatpush3.bf16.msra.mxu1 %v7975_v3  ;;  %7128 = vmatprep.subr.bf16.mxu0 %v7976_v4  ;;  %v7984_v12 = vld [vmem:[%s10585_s1 + $0x60] sm:$0xff]   ;;  %v7988_v16 = vld [vmem:[%s10585_s1 + $0x58] sm:$0xff]   ;;  %v7992_v20 = vld [vmem:[%s10585_s1 + $0x50] sm:$0xff]  }
   0x6   :  { %7150 = vmatprep.subr.bf16.mxu1 %v7977_v5  ;;  %v7985_v13 = vld [vmem:[%s10585_s1 + $0xe0] sm:$0xff]   ;;  %v7989_v17 = vld [vmem:[%s10585_s1 + $0xd8] sm:$0xff]   ;;  %v7993_v21 = vld [vmem:[%s10585_s1 + $0xd0] sm:$0xff]  }
   0x7   :  { %v7986_v14 = vld [vmem:[%s10585_s1 + $0x20] sm:$0xff]   ;;  %v7990_v18 = vld [vmem:[%s10585_s1 + $0x18] sm:$0xff]   ;;  %v7994_v22 = vld [vmem:[%s10585_s1 + $0x10] sm:$0xff]  }
   0x8   :  { %7129 = vmatpush3.bf16.msra.mxu0 %v7978_v6  ;;  %v7987_v15 = vld [vmem:[%s10585_s1 + $0xa0] sm:$0xff]   ;;  %v7991_v19 = vld [vmem:[%s10585_s1 + $0x98] sm:$0xff]   ;;  %v7995_v23 = vld [vmem:[%s10585_s1 + $0x90] sm:$0xff]  }
   0x9   :  { %7151 = vmatpush3.bf16.msra.mxu1 %v7979_v7  ;;  %7130 = vmatprep.subr.bf16.mxu0 %v7980_v8  ;;  %v7996_v24 = vld [vmem:[%s10585_s1 + $0x48] sm:$0xff]   ;;  %v8000_v28 = vld [vmem:[%s10585_s1 + $0x40] sm:$0xff]   ;;  %v8008_v38 = vld [vmem:[%s10585_s1 + $0x178] sm:$0xff]  }
   0xa   :  { %7152 = vmatprep.subr.bf16.mxu1 %v7981_v9  ;;  %v7997_v25 = vld [vmem:[%s10585_s1 + $0xc8] sm:$0xff]   ;;  %v8001_v29 = vld [vmem:[%s10585_s1 + $0xc0] sm:$0xff]   ;;  %v8009_v39 = vld [vmem:[%s10585_s1 + $0x1f8] sm:$0xff]  }
   0xb   :  { %v7998_v26 = vld [vmem:[%s10585_s1 + $0x8] sm:$0xff]   ;;  %v8002_v30 = vld [vmem:[%s10585_s1] sm:$0xff]   ;;  %v8010_v40 = vld [vmem:[%s10585_s1 + $0x138] sm:$0xff]  }
   0xc   :  { %7131 = vmatpush3.bf16.msra.mxu0 %v7982_v10  ;;  %v7999_v27 = vld [vmem:[%s10585_s1 + $0x88] sm:$0xff]   ;;  %v8003_v31 = vld [vmem:[%s10585_s1 + $0x80] sm:$0xff]   ;;  %v8011_v41 = vld [vmem:[%s10585_s1 + $0x1b8] sm:$0xff]  }
   0xd   :  { %7153 = vmatpush3.bf16.msra.mxu1 %v7983_v11  ;;  %7132 = vmatprep.subr.bf16.mxu0 %v7984_v12  ;;  %v21_v32 = vld [vmem:[%s10586_s0] sm:$0xff]  ;;  %v22_v33 = vld [vmem:[%s10586_s0 + $0x8] sm:$0xff]  ;;  %v8012_v42 = vld [vmem:[%s10585_s1 + $0x170] sm:$0xff]  }
   0xe   :  { %7154 = vmatprep.subr.bf16.mxu1 %v7985_v13  ;;  %v6477_v34 = vcombine.low %v21_v32, %v21_v32  ;;  %v6478_v35 = vcombine.high %v21_v32, %v21_v32  ;;  %v6479_v36 = vcombine.low %v22_v33, %v22_v33  ;;  %v6480_v37 = vcombine.high %v22_v33, %v22_v33  ;;  %v8013_v43 = vld [vmem:[%s10585_s1 + $0x1f0] sm:$0xff]   ;;  %v8016_v46 = vld [vmem:[%s10585_s1 + $0x168] sm:$0xff]   ;;  %v8020_v50 = vld [vmem:[%s10585_s1 + $0x160] sm:$0xff]  }
   0xf   :  { %v8014_v44 = vld [vmem:[%s10585_s1 + $0x130] sm:$0xff]   ;;  %v8017_v47 = vld [vmem:[%s10585_s1 + $0x1e8] sm:$0xff]   ;;  %v8021_v51 = vld [vmem:[%s10585_s1 + $0x1e0] sm:$0xff]  }
  0x10   :  { %7133 = vmatpush3.bf16.msra.mxu0 %v7986_v14  ;;  %4956 = vmatprep.mubr.bf16.mxu0 %v6478_v35  ;;  %v8015_v45 = vld [vmem:[%s10585_s1 + $0x1b0] sm:$0xff]   ;;  %v8018_v48 = vld [vmem:[%s10585_s1 + $0x128] sm:$0xff]   ;;  %v8022_v52 = vld [vmem:[%s10585_s1 + $0x120] sm:$0xff]  }
  0x11   :  { %7155 = vmatpush3.bf16.msra.mxu1 %v7987_v15  ;;  %7134 = vmatprep.subr.bf16.mxu0 %v7988_v16  ;;  %v8019_v49 = vld [vmem:[%s10585_s1 + $0x1a8] sm:$0xff]   ;;  %v8023_v53 = vld [vmem:[%s10585_s1 + $0x1a0] sm:$0xff]   ;;  %v8024_v54 = vld [vmem:[%s10585_s1 + $0x158] sm:$0xff]  }
  0x12   :  { %7156 = vmatprep.subr.bf16.mxu1 %v7989_v17  ;;  %4996 = vmatprep.mubr.bf16.mxu1 %v6480_v37  ;;  %v8025_v55 = vld [vmem:[%s10585_s1 + $0x1d8] sm:$0xff]   ;;  %v8028_v58 = vld [vmem:[%s10585_s1 + $0x150] sm:$0xff]   ;;  %v8032_v62 = vld [vmem:[%s10585_s1 + $0x148] sm:$0xff]  }
  0x13   :  { %v8026_v56 = vld [vmem:[%s10585_s1 + $0x118] sm:$0xff]   ;;  %v8029_v59 = vld [vmem:[%s10585_s1 + $0x1d0] sm:$0xff]   ;;  %v8033_v63 = vld [vmem:[%s10585_s1 + $0x1c8] sm:$0xff]  }
  0x14   :  { %7135 = vmatpush3.bf16.msra.mxu0 %v7990_v18  ;;  %v8027_v57 = vld [vmem:[%s10585_s1 + $0x198] sm:$0xff]   ;;  %v8030_v60 = vld [vmem:[%s10585_s1 + $0x110] sm:$0xff]   ;;  %v8034_v0 = vld [vmem:[%s10585_s1 + $0x108] sm:$0xff]  }
  0x15   :  { %7157 = vmatpush3.bf16.msra.mxu1 %v7991_v19  ;;  %7136 = vmatprep.subr.bf16.mxu0 %v7992_v20  ;;  %v8031_v61 = vld [vmem:[%s10585_s1 + $0x190] sm:$0xff]   ;;  %v8035_v1 = vld [vmem:[%s10585_s1 + $0x188] sm:$0xff]   ;;  %v8036_v2 = vld [vmem:[%s10585_s1 + $0x140] sm:$0xff]  }
  0x16   :  { %7158 = vmatprep.subr.bf16.mxu1 %v7993_v21  ;;  %v8037_v3 = vld [vmem:[%s10585_s1 + $0x1c0] sm:$0xff]   ;;  %v23_v6 = vld [vmem:[%s10586_s0 + $0x10] sm:$0xff]  ;;  %v24_v9 = vld [vmem:[%s10586_s0 + $0x18] sm:$0xff] }
  0x17   :  { %v8038_v4 = vld [vmem:[%s10585_s1 + $0x100] sm:$0xff]   ;;  %v6481_v7 = vcombine.low %v23_v6, %v23_v6  ;;  %v6482_v8 = vcombine.high %v23_v6, %v23_v6  ;;  %v6483_v10 = vcombine.low %v24_v9, %v24_v9  ;;  %v6484_v11 = vcombine.high %v24_v9, %v24_v9  ;;  %v8044_v12 = vld [vmem:[%s10585_s1 + $0x278] sm:$0xff]   ;;  %v8048_v16 = vld [vmem:[%s10585_s1 + $0x270] sm:$0xff]  }
  0x18   :  { %7137 = vmatpush3.bf16.msra.mxu0 %v7994_v22  ;;  %v8039_v5 = vld [vmem:[%s10585_s1 + $0x180] sm:$0xff]   ;;  %v8045_v13 = vld [vmem:[%s10585_s1 + $0x2f8] sm:$0xff]   ;;  %v8049_v17 = vld [vmem:[%s10585_s1 + $0x2f0] sm:$0xff]  }
  0x19   :  { %7159 = vmatpush3.bf16.msra.mxu1 %v7995_v23  ;;  %7138 = vmatprep.subr.bf16.mxu0 %v7996_v24  ;;  %v8046_v14 = vld [vmem:[%s10585_s1 + $0x238] sm:$0xff]   ;;  %v8050_v18 = vld [vmem:[%s10585_s1 + $0x230] sm:$0xff]   ;;  %v8052_v20 = vld [vmem:[%s10585_s1 + $0x268] sm:$0xff]  }
  0x1a   :  { %7160 = vmatprep.subr.bf16.mxu1 %v7997_v25  ;;  %v8047_v15 = vld [vmem:[%s10585_s1 + $0x2b8] sm:$0xff]   ;;  %v8051_v19 = vld [vmem:[%s10585_s1 + $0x2b0] sm:$0xff]   ;;  %v8053_v21 = vld [vmem:[%s10585_s1 + $0x2e8] sm:$0xff]  }
  0x1b   :  { %v8054_v22 = vld [vmem:[%s10585_s1 + $0x228] sm:$0xff]   ;;  %v8056_v24 = vld [vmem:[%s10585_s1 + $0x260] sm:$0xff]   ;;  %v8064_v32 = vld [vmem:[%s10585_s1 + $0x250] sm:$0xff]  }
  0x1c   :  { %7139 = vmatpush3.bf16.msra.mxu0 %v7998_v26  ;;  %v8055_v23 = vld [vmem:[%s10585_s1 + $0x2a8] sm:$0xff]   ;;  %v8057_v25 = vld [vmem:[%s10585_s1 + $0x2e0] sm:$0xff]   ;;  %v8065_v33 = vld [vmem:[%s10585_s1 + $0x2d0] sm:$0xff]  }
  0x1d   :  { %7161 = vmatpush3.bf16.msra.mxu1 %v7999_v27  ;;  %7140 = vmatprep.subr.bf16.mxu0 %v8000_v28  ;;  %v8058_v26 = vld [vmem:[%s10585_s1 + $0x220] sm:$0xff]   ;;  %v8060_v28 = vld [vmem:[%s10585_s1 + $0x258] sm:$0xff]   ;;  %v8067_v35 = vld [vmem:[%s10585_s1 + $0x290] sm:$0xff]  }
  0x1e   :  { %7162 = vmatprep.subr.bf16.mxu1 %v8001_v29  ;;  %v8059_v27 = vld [vmem:[%s10585_s1 + $0x2a0] sm:$0xff]   ;;  %v8061_v29 = vld [vmem:[%s10585_s1 + $0x2d8] sm:$0xff]   ;;  %v8069_v37 = vld [vmem:[%s10585_s1 + $0x2c8] sm:$0xff]  }
  0x1f   :  { %v8100_v6 = vld [vmem:[%s10585_s1 + $0x350] sm:$0xff]  }
  0x20   :  { %7141 = vmatpush3.bf16.msra.mxu0 %v8002_v30  ;;  %v8062_v30 = vld [vmem:[%s10585_s1 + $0x218] sm:$0xff]   ;;  %v8103_v9 = vld [vmem:[%s10585_s1 + $0x390] sm:$0xff]  }
  0x21   :  { %7163 = vmatpush3.bf16.msra.mxu1 %v8003_v31  ;;  %7170 = vmatprep.subr.bf16.mxu0 %v8008_v38  ;;  %v8063_v31 = vld [vmem:[%s10585_s1 + $0x298] sm:$0xff]   ;;  %v8070_v38 = vld [vmem:[%s10585_s1 + $0x208] sm:$0xff]  }
  0x22   :  { %7192 = vmatprep.subr.bf16.mxu1 %v8009_v39  ;;  %v8071_v39 = vld [vmem:[%s10585_s1 + $0x288] sm:$0xff]  }
  0x23   :  { %4957 = vmatmul.mubr.bf16.vlgmr.msra.gmra.mxu0 %v6477_v34  ;;  %v8066_v34 = vld [vmem:[%s10585_s1 + $0x210] sm:$0xff]  }
  0x24   :  { %4997 = vmatmul.mubr.bf16.vlgmr.msra.gmra.mxu1 %v6479_v36  ;;  %7171 = vmatpush3.bf16.msra.mxu0 %v8010_v40  ;;  %v8068_v36 = vld [vmem:[%s10585_s1 + $0x248] sm:$0xff]   ;;  %v8072_v40 = vld [vmem:[%s10585_s1 + $0x240] sm:$0xff]  }
  0x25   :  { %7193 = vmatpush3.bf16.msra.mxu1 %v8011_v41  ;;  %7172 = vmatprep.subr.bf16.mxu0 %v8012_v42  ;;  %v8073_v41 = vld [vmem:[%s10585_s1 + $0x2c0] sm:$0xff]  }
  0x26   :  { %7194 = vmatprep.subr.bf16.mxu1 %v8013_v43  ;;  %5036 = vmatprep.mubr.bf16.mxu0 %v6482_v8  ;;  %v8074_v42 = vld [vmem:[%s10585_s1 + $0x200] sm:$0xff]   ;;  %v8102_v8 = vld [vmem:[%s10585_s1 + $0x310] sm:$0xff]  }
  0x27   :  { %5076 = vmatprep.mubr.bf16.mxu1 %v6484_v11  ;;  %v8075_v43 = vld [vmem:[%s10585_s1 + $0x280] sm:$0xff]   ;;  %v8105_v11 = vld [vmem:[%s10585_s1 + $0x3c8] sm:$0xff]  }
  0x28   :  { %7173 = vmatpush3.bf16.msra.mxu0 %v8014_v44  ;;  %v25_v44 = vld [vmem:[%s10586_s0 + $0x20] sm:$0xff] }
  0x29   :  { %7195 = vmatpush3.bf16.msra.mxu1 %v8015_v45  ;;  %7174 = vmatprep.subr.bf16.mxu0 %v8016_v46  ;;  %v26_v45 = vld [vmem:[%s10586_s0 + $0x28] sm:$0xff]  ;;  %v6485_v46 = vcombine.low %v25_v44, %v25_v44 }
  0x2a   :  { %7196 = vmatprep.subr.bf16.mxu1 %v8017_v47  ;;  %v6486_v47 = vcombine.high %v25_v44, %v25_v44  ;;  %v8136_v44 = vld [vmem:[%s10585_s1 + $0x450] sm:$0xff]  }
  0x2c   :  { %7175 = vmatpush3.bf16.msra.mxu0 %v8018_v48  ;;  %v6487_v48 = vcombine.low %v26_v45, %v26_v45 }
  0x2d   :  { %7197 = vmatpush3.bf16.msra.mxu1 %v8019_v49  ;;  %7176 = vmatprep.subr.bf16.mxu0 %v8020_v50  ;;  %v6488_v49 = vcombine.high %v26_v45, %v26_v45  ;;  %v8080_v50 = vld [vmem:[%s10585_s1 + $0x378] sm:$0xff]   ;;  %v8137_v45 = vld [vmem:[%s10585_s1 + $0x4d0] sm:$0xff]  }
  0x2e   :  { %7198 = vmatprep.subr.bf16.mxu1 %v8021_v51  ;;  %v8081_v51 = vld [vmem:[%s10585_s1 + $0x3f8] sm:$0xff]  }
  0x30   :  { %7177 = vmatpush3.bf16.msra.mxu0 %v8022_v52  ;;  %v8082_v52 = vld [vmem:[%s10585_s1 + $0x338] sm:$0xff]  }
  0x31   :  { %7199 = vmatpush3.bf16.msra.mxu1 %v8023_v53  ;;  %7178 = vmatprep.subr.bf16.mxu0 %v8024_v54  ;;  %v8083_v53 = vld [vmem:[%s10585_s1 + $0x3b8] sm:$0xff]   ;;  %v8084_v54 = vld [vmem:[%s10585_s1 + $0x370] sm:$0xff]  }
  0x32   :  { %7200 = vmatprep.subr.bf16.mxu1 %v8025_v55  ;;  %v8085_v55 = vld [vmem:[%s10585_s1 + $0x3f0] sm:$0xff]  }
  0x34   :  { %7179 = vmatpush3.bf16.msra.mxu0 %v8026_v56  ;;  %v8086_v56 = vld [vmem:[%s10585_s1 + $0x330] sm:$0xff]  }
  0x35   :  { %7201 = vmatpush3.bf16.msra.mxu1 %v8027_v57  ;;  %7180 = vmatprep.subr.bf16.mxu0 %v8028_v58  ;;  %v8087_v57 = vld [vmem:[%s10585_s1 + $0x3b0] sm:$0xff]   ;;  %v8088_v58 = vld [vmem:[%s10585_s1 + $0x368] sm:$0xff]  }
  0x36   :  { %7202 = vmatprep.subr.bf16.mxu1 %v8029_v59  ;;  %v8089_v59 = vld [vmem:[%s10585_s1 + $0x3e8] sm:$0xff]  }
  0x38   :  { %7181 = vmatpush3.bf16.msra.mxu0 %v8030_v60  ;;  %v8090_v60 = vld [vmem:[%s10585_s1 + $0x328] sm:$0xff]  }
  0x39   :  { %7203 = vmatpush3.bf16.msra.mxu1 %v8031_v61  ;;  %7182 = vmatprep.subr.bf16.mxu0 %v8032_v62  ;;  %v8091_v61 = vld [vmem:[%s10585_s1 + $0x3a8] sm:$0xff]   ;;  %v8092_v62 = vld [vmem:[%s10585_s1 + $0x360] sm:$0xff]  }
  0x3a   :  { %7204 = vmatprep.subr.bf16.mxu1 %v8033_v63  ;;  %v8093_v63 = vld [vmem:[%s10585_s1 + $0x3e0] sm:$0xff]  }
  0x3c   :  { %7183 = vmatpush3.bf16.msra.mxu0 %v8034_v0  ;;  %v8094_v0 = vld [vmem:[%s10585_s1 + $0x320] sm:$0xff]  }
  0x3d   :  { %7205 = vmatpush3.bf16.msra.mxu1 %v8035_v1  ;;  %7184 = vmatprep.subr.bf16.mxu0 %v8036_v2  ;;  %v8095_v1 = vld [vmem:[%s10585_s1 + $0x3a0] sm:$0xff]   ;;  %v8096_v2 = vld [vmem:[%s10585_s1 + $0x358] sm:$0xff]  }
  0x3e   :  { %7206 = vmatprep.subr.bf16.mxu1 %v8037_v3  ;;  %v8097_v3 = vld [vmem:[%s10585_s1 + $0x3d8] sm:$0xff]  }
  0x40   :  { %7185 = vmatpush3.bf16.msra.mxu0 %v8038_v4  ;;  %v8098_v4 = vld [vmem:[%s10585_s1 + $0x318] sm:$0xff]  }
  0x41   :  { %7207 = vmatpush3.bf16.msra.mxu1 %v8039_v5  ;;  %7214 = vmatprep.subr.bf16.mxu0 %v8044_v12  ;;  %v8099_v5 = vld [vmem:[%s10585_s1 + $0x398] sm:$0xff]   ;;  %v8106_v12 = vld [vmem:[%s10585_s1 + $0x308] sm:$0xff]  }
  0x42   :  { %7236 = vmatprep.subr.bf16.mxu1 %v8045_v13  ;;  %v8107_v13 = vld [vmem:[%s10585_s1 + $0x388] sm:$0xff]  }
  0x43   :  { %5037 = vmatmul.mubr.bf16.vlgmr.msra.gmra.mxu0 %v6481_v7  ;;  %v8101_v7 = vld [vmem:[%s10585_s1 + $0x3d0] sm:$0xff]  }
  0x44   :  { %5077 = vmatmul.mubr.bf16.vlgmr.msra.gmra.mxu1 %v6483_v10  ;;  %7215 = vmatpush3.bf16.msra.mxu0 %v8046_v14  ;;  %v8104_v10 = vld [vmem:[%s10585_s1 + $0x348] sm:$0xff]   ;;  %v8108_v14 = vld [vmem:[%s10585_s1 + $0x340] sm:$0xff]  }
  0x45   :  { %7237 = vmatpush3.bf16.msra.mxu1 %v8047_v15  ;;  %7216 = vmatprep.subr.bf16.mxu0 %v8048_v16  ;;  %v8109_v15 = vld [vmem:[%s10585_s1 + $0x3c0] sm:$0xff]  }
  0x46   :  { %7238 = vmatprep.subr.bf16.mxu1 %v8049_v17  ;;  %5116 = vmatprep.mubr.bf16.mxu0 %v6486_v47  ;;  %v8110_v16 = vld [vmem:[%s10585_s1 + $0x300] sm:$0xff]   ;;  %v8139_v47 = vld [vmem:[%s10585_s1 + $0x490] sm:$0xff]  }
  0x47   :  { %5156 = vmatprep.mubr.bf16.mxu1 %v6488_v49  ;;  %v8111_v17 = vld [vmem:[%s10585_s1 + $0x380] sm:$0xff]   ;;  %v8141_v49 = vld [vmem:[%s10585_s1 + $0x4c8] sm:$0xff]  }
  0x48   :  { %7217 = vmatpush3.bf16.msra.mxu0 %v8050_v18  ;;  %v27_v18 = vld [vmem:[%s10586_s0 + $0x30] sm:$0xff] }
  0x49   :  { %7239 = vmatpush3.bf16.msra.mxu1 %v8051_v19  ;;  %7218 = vmatprep.subr.bf16.mxu0 %v8052_v20  ;;  %v28_v19 = vld [vmem:[%s10586_s0 + $0x38] sm:$0xff]  ;;  %v6489_v20 = vcombine.low %v27_v18, %v27_v18 }
  0x4a   :  { %7240 = vmatprep.subr.bf16.mxu1 %v8053_v21  ;;  %v6490_v21 = vcombine.high %v27_v18, %v27_v18  ;;  %v8172_v18 = vld [vmem:[%s10585_s1 + $0x550] sm:$0xff]  }
  0x4c   :  { %7219 = vmatpush3.bf16.msra.mxu0 %v8054_v22  ;;  %v6491_v22 = vcombine.low %v28_v19, %v28_v19 }
  0x4d   :  { %7241 = vmatpush3.bf16.msra.mxu1 %v8055_v23  ;;  %7220 = vmatprep.subr.bf16.mxu0 %v8056_v24  ;;  %v8116_v23 = vld [vmem:[%s10585_s1 + $0x478] sm:$0xff]   ;;  %v6492_v24 = vcombine.high %v28_v19, %v28_v19  ;;  %v8173_v19 = vld [vmem:[%s10585_s1 + $0x5d0] sm:$0xff]  }
  0x4e   :  { %7242 = vmatprep.subr.bf16.mxu1 %v8057_v25  ;;  %v8117_v25 = vld [vmem:[%s10585_s1 + $0x4f8] sm:$0xff]  }
  0x50   :  { %7221 = vmatpush3.bf16.msra.mxu0 %v8058_v26  ;;  %v8118_v26 = vld [vmem:[%s10585_s1 + $0x438] sm:$0xff]  }
  0x51   :  { %7243 = vmatpush3.bf16.msra.mxu1 %v8059_v27  ;;  %7222 = vmatprep.subr.bf16.mxu0 %v8060_v28  ;;  %v8119_v27 = vld [vmem:[%s10585_s1 + $0x4b8] sm:$0xff]   ;;  %v8120_v28 = vld [vmem:[%s10585_s1 + $0x470] sm:$0xff]  }
  0x52   :  { %7244 = vmatprep.subr.bf16.mxu1 %v8061_v29  ;;  %v8121_v29 = vld [vmem:[%s10585_s1 + $0x4f0] sm:$0xff]  }
  0x54   :  { %7223 = vmatpush3.bf16.msra.mxu0 %v8062_v30  ;;  %v8122_v30 = vld [vmem:[%s10585_s1 + $0x430] sm:$0xff]  }
  0x55   :  { %7245 = vmatpush3.bf16.msra.mxu1 %v8063_v31  ;;  %7224 = vmatprep.subr.bf16.mxu0 %v8064_v32  ;;  %v8123_v31 = vld [vmem:[%s10585_s1 + $0x4b0] sm:$0xff]   ;;  %v8124_v32 = vld [vmem:[%s10585_s1 + $0x468] sm:$0xff]  }
  0x56   :  { %7246 = vmatprep.subr.bf16.mxu1 %v8065_v33  ;;  %v8125_v33 = vld [vmem:[%s10585_s1 + $0x4e8] sm:$0xff]  }
  0x58   :  { %7225 = vmatpush3.bf16.msra.mxu0 %v8066_v34  ;;  %v8126_v34 = vld [vmem:[%s10585_s1 + $0x428] sm:$0xff]  }
  0x59   :  { %7247 = vmatpush3.bf16.msra.mxu1 %v8067_v35  ;;  %7226 = vmatprep.subr.bf16.mxu0 %v8068_v36  ;;  %v8127_v35 = vld [vmem:[%s10585_s1 + $0x4a8] sm:$0xff]   ;;  %v8128_v36 = vld [vmem:[%s10585_s1 + $0x460] sm:$0xff]  }
  0x5a   :  { %7248 = vmatprep.subr.bf16.mxu1 %v8069_v37  ;;  %v8129_v37 = vld [vmem:[%s10585_s1 + $0x4e0] sm:$0xff]  }
  0x5c   :  { %7227 = vmatpush3.bf16.msra.mxu0 %v8070_v38  ;;  %v8130_v38 = vld [vmem:[%s10585_s1 + $0x420] sm:$0xff]  }
  0x5d   :  { %7249 = vmatpush3.bf16.msra.mxu1 %v8071_v39  ;;  %7228 = vmatprep.subr.bf16.mxu0 %v8072_v40  ;;  %v8131_v39 = vld [vmem:[%s10585_s1 + $0x4a0] sm:$0xff]   ;;  %v8132_v40 = vld [vmem:[%s10585_s1 + $0x458] sm:$0xff]  }
  0x5e   :  { %7250 = vmatprep.subr.bf16.mxu1 %v8073_v41  ;;  %v8133_v41 = vld [vmem:[%s10585_s1 + $0x4d8] sm:$0xff]  }
  0x60   :  { %7229 = vmatpush3.bf16.msra.mxu0 %v8074_v42  ;;  %v8134_v42 = vld [vmem:[%s10585_s1 + $0x418] sm:$0xff]  }
  0x61   :  { %7251 = vmatpush3.bf16.msra.mxu1 %v8075_v43  ;;  %7258 = vmatprep.subr.bf16.mxu0 %v8080_v50  ;;  %v8135_v43 = vld [vmem:[%s10585_s1 + $0x498] sm:$0xff]   ;;  %v8142_v50 = vld [vmem:[%s10585_s1 + $0x408] sm:$0xff]  }
  0x62   :  { %7280 = vmatprep.subr.bf16.mxu1 %v8081_v51  ;;  %v8143_v51 = vld [vmem:[%s10585_s1 + $0x488] sm:$0xff]  }
  0x63   :  { %5117 = vmatmul.mubr.bf16.vlgmr.msra.gmra.mxu0 %v6485_v46  ;;  %v8138_v46 = vld [vmem:[%s10585_s1 + $0x410] sm:$0xff]  }
  0x64   :  { %5157 = vmatmul.mubr.bf16.vlgmr.msra.gmra.mxu1 %v6487_v48  ;;  %7259 = vmatpush3.bf16.msra.mxu0 %v8082_v52  ;;  %v8140_v48 = vld [vmem:[%s10585_s1 + $0x448] sm:$0xff]   ;;  %v8144_v52 = vld [vmem:[%s10585_s1 + $0x440] sm:$0xff]  }
  0x65   :  { %7281 = vmatpush3.bf16.msra.mxu1 %v8083_v53  ;;  %7260 = vmatprep.subr.bf16.mxu0 %v8084_v54  ;;  %v8145_v53 = vld [vmem:[%s10585_s1 + $0x4c0] sm:$0xff]  }
  0x66   :  { %7282 = vmatprep.subr.bf16.mxu1 %v8085_v55  ;;  %5196 = vmatprep.mubr.bf16.mxu0 %v6490_v21  ;;  %v8146_v54 = vld [vmem:[%s10585_s1 + $0x400] sm:$0xff]   ;;  %v8175_v21 = vld [vmem:[%s10585_s1 + $0x590] sm:$0xff]  }
  0x67   :  { %5236 = vmatprep.mubr.bf16.mxu1 %v6492_v24  ;;  %v8147_v55 = vld [vmem:[%s10585_s1 + $0x480] sm:$0xff]   ;;  %v8178_v24 = vld [vmem:[%s10585_s1 + $0x508] sm:$0xff]  }
  0x68   :  { %7261 = vmatpush3.bf16.msra.mxu0 %v8086_v56  ;;  %v29_v56 = vld [vmem:[%s10586_s0 + $0x40] sm:$0xff] }
  0x69   :  { %7283 = vmatpush3.bf16.msra.mxu1 %v8087_v57  ;;  %7262 = vmatprep.subr.bf16.mxu0 %v8088_v58  ;;  %v6493_v57 = vcombine.low %v29_v56, %v29_v56  ;;  %v6494_v58 = vcombine.high %v29_v56, %v29_v56  ;;  %v8208_v56 = vld [vmem:[%s10585_s1 + $0x650] sm:$0xff]  }
  0x6a   :  { %7284 = vmatprep.subr.bf16.mxu1 %v8089_v59  ;;  %v30_v59 = vld [vmem:[%s10586_s0 + $0x48] sm:$0xff] }
  0x6c   :  { %7263 = vmatpush3.bf16.msra.mxu0 %v8090_v60  ;;  %v6495_v60 = vcombine.low %v30_v59, %v30_v59 }
  0x6d   :  { %7285 = vmatpush3.bf16.msra.mxu1 %v8091_v61  ;;  %7264 = vmatprep.subr.bf16.mxu0 %v8092_v62  ;;  %v6496_v61 = vcombine.high %v30_v59, %v30_v59  ;;  %v8152_v62 = vld [vmem:[%s10585_s1 + $0x578] sm:$0xff]   ;;  %v8211_v59 = vld [vmem:[%s10585_s1 + $0x690] sm:$0xff]  }
  0x6e   :  { %7286 = vmatprep.subr.bf16.mxu1 %v8093_v63  ;;  %v8153_v63 = vld [vmem:[%s10585_s1 + $0x5f8] sm:$0xff]  }
  0x70   :  { %7265 = vmatpush3.bf16.msra.mxu0 %v8094_v0  ;;  %v8154_v0 = vld [vmem:[%s10585_s1 + $0x538] sm:$0xff]  }
  0x71   :  { %7287 = vmatpush3.bf16.msra.mxu1 %v8095_v1  ;;  %7266 = vmatprep.subr.bf16.mxu0 %v8096_v2  ;;  %v8155_v1 = vld [vmem:[%s10585_s1 + $0x5b8] sm:$0xff]   ;;  %v8156_v2 = vld [vmem:[%s10585_s1 + $0x570] sm:$0xff]  }
  0x72   :  { %7288 = vmatprep.subr.bf16.mxu1 %v8097_v3  ;;  %v8157_v3 = vld [vmem:[%s10585_s1 + $0x5f0] sm:$0xff]  }
  0x74   :  { %7267 = vmatpush3.bf16.msra.mxu0 %v8098_v4  ;;  %v8158_v4 = vld [vmem:[%s10585_s1 + $0x530] sm:$0xff]  }
  0x75   :  { %7289 = vmatpush3.bf16.msra.mxu1 %v8099_v5  ;;  %7268 = vmatprep.subr.bf16.mxu0 %v8100_v6  ;;  %v8159_v5 = vld [vmem:[%s10585_s1 + $0x5b0] sm:$0xff]   ;;  %v8160_v6 = vld [vmem:[%s10585_s1 + $0x568] sm:$0xff]  }
  0x76   :  { %7290 = vmatprep.subr.bf16.mxu1 %v8101_v7  ;;  %v8161_v7 = vld [vmem:[%s10585_s1 + $0x5e8] sm:$0xff]  }
  0x78   :  { %7269 = vmatpush3.bf16.msra.mxu0 %v8102_v8  ;;  %v8162_v8 = vld [vmem:[%s10585_s1 + $0x528] sm:$0xff]  }
  0x79   :  { %7291 = vmatpush3.bf16.msra.mxu1 %v8103_v9  ;;  %7270 = vmatprep.subr.bf16.mxu0 %v8104_v10  ;;  %v8163_v9 = vld [vmem:[%s10585_s1 + $0x5a8] sm:$0xff]   ;;  %v8164_v10 = vld [vmem:[%s10585_s1 + $0x560] sm:$0xff]  }
  0x7a   :  { %7292 = vmatprep.subr.bf16.mxu1 %v8105_v11  ;;  %v8165_v11 = vld [vmem:[%s10585_s1 + $0x5e0] sm:$0xff]  }
  0x7c   :  { %7271 = vmatpush3.bf16.msra.mxu0 %v8106_v12  ;;  %v8166_v12 = vld [vmem:[%s10585_s1 + $0x520] sm:$0xff]  }
  0x7d   :  { %7293 = vmatpush3.bf16.msra.mxu1 %v8107_v13  ;;  %7272 = vmatprep.subr.bf16.mxu0 %v8108_v14  ;;  %v8167_v13 = vld [vmem:[%s10585_s1 + $0x5a0] sm:$0xff]   ;;  %v8168_v14 = vld [vmem:[%s10585_s1 + $0x558] sm:$0xff]  }
  0x7e   :  { %7294 = vmatprep.subr.bf16.mxu1 %v8109_v15  ;;  %v8169_v15 = vld [vmem:[%s10585_s1 + $0x5d8] sm:$0xff]  }
  0x80   :  { %7273 = vmatpush3.bf16.msra.mxu0 %v8110_v16  ;;  %v8170_v16 = vld [vmem:[%s10585_s1 + $0x518] sm:$0xff]  }
  0x81   :  { %7295 = vmatpush3.bf16.msra.mxu1 %v8111_v17  ;;  %7302 = vmatprep.subr.bf16.mxu0 %v8116_v23  ;;  %v8171_v17 = vld [vmem:[%s10585_s1 + $0x598] sm:$0xff]   ;;  %v8177_v23 = vld [vmem:[%s10585_s1 + $0x5c8] sm:$0xff]  }
  0x82   :  { %7324 = vmatprep.subr.bf16.mxu1 %v8117_v25  ;;  %v8179_v25 = vld [vmem:[%s10585_s1 + $0x588] sm:$0xff]  }
  0x83   :  { %5197 = vmatmul.mubr.bf16.vlgmr.msra.gmra.mxu0 %v6489_v20  ;;  %v8174_v20 = vld [vmem:[%s10585_s1 + $0x510] sm:$0xff]  }
  0x84   :  { %5237 = vmatmul.mubr.bf16.vlgmr.msra.gmra.mxu1 %v6491_v22  ;;  %7303 = vmatpush3.bf16.msra.mxu0 %v8118_v26  ;;  %v8176_v22 = vld [vmem:[%s10585_s1 + $0x548] sm:$0xff]   ;;  %v8180_v26 = vld [vmem:[%s10585_s1 + $0x540] sm:$0xff]  }
  0x85   :  { %7325 = vmatpush3.bf16.msra.mxu1 %v8119_v27  ;;  %7304 = vmatprep.subr.bf16.mxu0 %v8120_v28  ;;  %v8181_v27 = vld [vmem:[%s10585_s1 + $0x5c0] sm:$0xff]  }
  0x86   :  { %7326 = vmatprep.subr.bf16.mxu1 %v8121_v29  ;;  %5276 = vmatprep.mubr.bf16.mxu0 %v6494_v58  ;;  %v8182_v28 = vld [vmem:[%s10585_s1 + $0x500] sm:$0xff]   ;;  %v8210_v58 = vld [vmem:[%s10585_s1 + $0x610] sm:$0xff]  }
  0x87   :  { %5316 = vmatprep.mubr.bf16.mxu1 %v6496_v61  ;;  %v8183_v29 = vld [vmem:[%s10585_s1 + $0x580] sm:$0xff]   ;;  %v8213_v61 = vld [vmem:[%s10585_s1 + $0x6c8] sm:$0xff]  }
  0x88   :  { %7305 = vmatpush3.bf16.msra.mxu0 %v8122_v30  ;;  %v31_v30 = vld [vmem:[%s10586_s0 + $0x50] sm:$0xff] }
  0x89   :  { %7327 = vmatpush3.bf16.msra.mxu1 %v8123_v31  ;;  %7306 = vmatprep.subr.bf16.mxu0 %v8124_v32  ;;  %v32_v31 = vld [vmem:[%s10586_s0 + $0x58] sm:$0xff]  ;;  %v6497_v32 = vcombine.low %v31_v30, %v31_v30 }
  0x8a   :  { %7328 = vmatprep.subr.bf16.mxu1 %v8125_v33  ;;  %v6498_v33 = vcombine.high %v31_v30, %v31_v30  ;;  %v8231_v30 = vld [vmem:[%s10585_s1 + $0x7b0] sm:$0xff]  }
  0x8c   :  { %7307 = vmatpush3.bf16.msra.mxu0 %v8126_v34  ;;  %v6499_v34 = vcombine.low %v32_v31, %v32_v31 }
  0x8d   :  { %7329 = vmatpush3.bf16.msra.mxu1 %v8127_v35  ;;  %7308 = vmatprep.subr.bf16.mxu0 %v8128_v36  ;;  %v6500_v35 = vcombine.high %v32_v31, %v32_v31  ;;  %v8188_v36 = vld [vmem:[%s10585_s1 + $0x678] sm:$0xff]   ;;  %v8232_v31 = vld [vmem:[%s10585_s1 + $0x768] sm:$0xff]  }
  0x8e   :  { %7330 = vmatprep.subr.bf16.mxu1 %v8129_v37  ;;  %v8189_v37 = vld [vmem:[%s10585_s1 + $0x6f8] sm:$0xff]  }
  0x90   :  { %7309 = vmatpush3.bf16.msra.mxu0 %v8130_v38  ;;  %v8190_v38 = vld [vmem:[%s10585_s1 + $0x638] sm:$0xff]  }
  0x91   :  { %7331 = vmatpush3.bf16.msra.mxu1 %v8131_v39  ;;  %7310 = vmatprep.subr.bf16.mxu0 %v8132_v40  ;;  %v8191_v39 = vld [vmem:[%s10585_s1 + $0x6b8] sm:$0xff]   ;;  %v8192_v40 = vld [vmem:[%s10585_s1 + $0x670] sm:$0xff]  }
  0x92   :  { %7332 = vmatprep.subr.bf16.mxu1 %v8133_v41  ;;  %v8193_v41 = vld [vmem:[%s10585_s1 + $0x6f0] sm:$0xff]  }
  0x94   :  { %7311 = vmatpush3.bf16.msra.mxu0 %v8134_v42  ;;  %v8194_v42 = vld [vmem:[%s10585_s1 + $0x630] sm:$0xff]  }
  0x95   :  { %7333 = vmatpush3.bf16.msra.mxu1 %v8135_v43  ;;  %7312 = vmatprep.subr.bf16.mxu0 %v8136_v44  ;;  %v8195_v43 = vld [vmem:[%s10585_s1 + $0x6b0] sm:$0xff]   ;;  %v8196_v44 = vld [vmem:[%s10585_s1 + $0x668] sm:$0xff]  }
  0x96   :  { %7334 = vmatprep.subr.bf16.mxu1 %v8137_v45  ;;  %v8197_v45 = vld [vmem:[%s10585_s1 + $0x6e8] sm:$0xff]  }
  0x98   :  { %7313 = vmatpush3.bf16.msra.mxu0 %v8138_v46  ;;  %v8198_v46 = vld [vmem:[%s10585_s1 + $0x628] sm:$0xff]  }
  0x99   :  { %7335 = vmatpush3.bf16.msra.mxu1 %v8139_v47  ;;  %7314 = vmatprep.subr.bf16.mxu0 %v8140_v48  ;;  %v8199_v47 = vld [vmem:[%s10585_s1 + $0x6a8] sm:$0xff]   ;;  %v8200_v48 = vld [vmem:[%s10585_s1 + $0x660] sm:$0xff]  }
  0x9a   :  { %7336 = vmatprep.subr.bf16.mxu1 %v8141_v49  ;;  %v8201_v49 = vld [vmem:[%s10585_s1 + $0x6e0] sm:$0xff]  }
  0x9c   :  { %7315 = vmatpush3.bf16.msra.mxu0 %v8142_v50  ;;  %v8202_v50 = vld [vmem:[%s10585_s1 + $0x620] sm:$0xff]  }
  0x9d   :  { %7337 = vmatpush3.bf16.msra.mxu1 %v8143_v51  ;;  %7316 = vmatprep.subr.bf16.mxu0 %v8144_v52  ;;  %v8203_v51 = vld [vmem:[%s10585_s1 + $0x6a0] sm:$0xff]   ;;  %v8204_v52 = vld [vmem:[%s10585_s1 + $0x658] sm:$0xff]  }
  0x9e   :  { %7338 = vmatprep.subr.bf16.mxu1 %v8145_v53  ;;  %v8205_v53 = vld [vmem:[%s10585_s1 + $0x6d8] sm:$0xff]  }
  0xa0   :  { %7317 = vmatpush3.bf16.msra.mxu0 %v8146_v54  ;;  %v8206_v54 = vld [vmem:[%s10585_s1 + $0x618] sm:$0xff]  }
  0xa1   :  { %7339 = vmatpush3.bf16.msra.mxu1 %v8147_v55  ;;  %7346 = vmatprep.subr.bf16.mxu0 %v8152_v62  ;;  %v8207_v55 = vld [vmem:[%s10585_s1 + $0x698] sm:$0xff]   ;;  %v8214_v62 = vld [vmem:[%s10585_s1 + $0x608] sm:$0xff]  }
  0xa2   :  { %7368 = vmatprep.subr.bf16.mxu1 %v8153_v63  ;;  %v8215_v63 = vld [vmem:[%s10585_s1 + $0x688] sm:$0xff]  }
  0xa3   :  { %5277 = vmatmul.mubr.bf16.vlgmr.msra.gmra.mxu0 %v6493_v57  ;;  %v8209_v57 = vld [vmem:[%s10585_s1 + $0x6d0] sm:$0xff]  }
  0xa4   :  { %5317 = vmatmul.mubr.bf16.vlgmr.msra.gmra.mxu1 %v6495_v60  ;;  %7347 = vmatpush3.bf16.msra.mxu0 %v8154_v0  ;;  %v8212_v60 = vld [vmem:[%s10585_s1 + $0x648] sm:$0xff]   ;;  %v8216_v0 = vld [vmem:[%s10585_s1 + $0x640] sm:$0xff]  }
  0xa5   :  { %7369 = vmatpush3.bf16.msra.mxu1 %v8155_v1  ;;  %7348 = vmatprep.subr.bf16.mxu0 %v8156_v2  ;;  %v8217_v1 = vld [vmem:[%s10585_s1 + $0x6c0] sm:$0xff]  }
  0xa6   :  { %7370 = vmatprep.subr.bf16.mxu1 %v8157_v3  ;;  %5356 = vmatprep.mubr.bf16.mxu0 %v6498_v33  ;;  %v8218_v2 = vld [vmem:[%s10585_s1 + $0x600] sm:$0xff]   ;;  %v8234_v33 = vld [vmem:[%s10585_s1 + $0x728] sm:$0xff]  }
  0xa7   :  { %5396 = vmatprep.mubr.bf16.mxu1 %v6500_v35  ;;  %v8219_v3 = vld [vmem:[%s10585_s1 + $0x680] sm:$0xff]  }
  0xa8   :  { %7349 = vmatpush3.bf16.msra.mxu0 %v8158_v4  ;;  %v33_v4 = vld [vmem:[%s10586_s0 + $0x60] sm:$0xff] }
  0xa9   :  { %7371 = vmatpush3.bf16.msra.mxu1 %v8159_v5  ;;  %7350 = vmatprep.subr.bf16.mxu0 %v8160_v6  ;;  %v34_v5 = vld [vmem:[%s10586_s0 + $0x68] sm:$0xff]  ;;  %v8236_v35 = vld [vmem:[%s10585_s1 + $0x760] sm:$0xff]  }
  0xaa   :  { %7372 = vmatprep.subr.bf16.mxu1 %v8161_v7 }
  0xac   :  { %7351 = vmatpush3.bf16.msra.mxu0 %v8162_v8  ;;  %v6501_v8 = vcombine.low %v33_v4, %v33_v4 }
  0xad   :  { %7373 = vmatpush3.bf16.msra.mxu1 %v8163_v9  ;;  %7352 = vmatprep.subr.bf16.mxu0 %v8164_v10  ;;  %v6502_v9 = vcombine.high %v33_v4, %v33_v4  ;;  %v6503_v10 = vcombine.low %v34_v5, %v34_v5 }
  0xae   :  { %7374 = vmatprep.subr.bf16.mxu1 %v8165_v11  ;;  %v8224_v11 = vld [vmem:[%s10585_s1 + $0x778] sm:$0xff]  }
  0xb0   :  { %7353 = vmatpush3.bf16.msra.mxu0 %v8166_v12  ;;  %v6504_v12 = vcombine.high %v34_v5, %v34_v5 }
  0xb1   :  { %7375 = vmatpush3.bf16.msra.mxu1 %v8167_v13  ;;  %7354 = vmatprep.subr.bf16.mxu0 %v8168_v14  ;;  %v8225_v13 = vld [vmem:[%s10585_s1 + $0x7f8] sm:$0xff]  }
  0xb2   :  { %7376 = vmatprep.subr.bf16.mxu1 %v8169_v15 }
  0xb4   :  { %7355 = vmatpush3.bf16.msra.mxu0 %v8170_v16  ;;  %v8226_v16 = vld [vmem:[%s10585_s1 + $0x738] sm:$0xff]  }
  0xb5   :  { %7377 = vmatpush3.bf16.msra.mxu1 %v8171_v17  ;;  %7356 = vmatprep.subr.bf16.mxu0 %v8172_v18 }
  0xb6   :  { %7378 = vmatprep.subr.bf16.mxu1 %v8173_v19  ;;  %v8227_v19 = vld [vmem:[%s10585_s1 + $0x7b8] sm:$0xff]  }
  0xb8   :  { %7357 = vmatpush3.bf16.msra.mxu0 %v8174_v20  ;;  %v6476_v20 = vld [vmem:[%s10587_s2] ss:$0 sm:$0xff] }
  0xb9   :  { %7379 = vmatpush3.bf16.msra.mxu1 %v8175_v21  ;;  %7358 = vmatprep.subr.bf16.mxu0 %v8176_v22 }
  0xba   :  { %7380 = vmatprep.subr.bf16.mxu1 %v8177_v23 }
  0xbc   :  { %7359 = vmatpush3.bf16.msra.mxu0 %v8178_v24  ;;  %v8228_v24 = vld [vmem:[%s10585_s1 + $0x770] sm:$0xff]  }
  0xbd   :  { %7381 = vmatpush3.bf16.msra.mxu1 %v8179_v25  ;;  %7360 = vmatprep.subr.bf16.mxu0 %v8180_v26  ;;  %v8229_v25 = vld [vmem:[%s10585_s1 + $0x7f0] sm:$0xff]  }
  0xbe   :  { %7382 = vmatprep.subr.bf16.mxu1 %v8181_v27 }
  0xc0   :  { %7361 = vmatpush3.bf16.msra.mxu0 %v8182_v28 }
  0xc1   :  { %7383 = vmatpush3.bf16.msra.mxu1 %v8183_v29  ;;  %7390 = vmatprep.subr.bf16.mxu0 %v8188_v36  ;;  %v8230_v29 = vld [vmem:[%s10585_s1 + $0x730] sm:$0xff]   ;;  %v8237_v36 = vld [vmem:[%s10585_s1 + $0x7e0] sm:$0xff]  }
  0xc2   :  { %7412 = vmatprep.subr.bf16.mxu1 %v8189_v37  ;;  %v8238_v37 = vld [vmem:[%s10585_s1 + $0x720] sm:$0xff]  }
  0xc3   :  { %5357 = vmatmul.mubr.bf16.vlgmr.msra.gmra.mxu0 %v6497_v32  ;;  %v8233_v32 = vld [vmem:[%s10585_s1 + $0x7e8] sm:$0xff]  }
  0xc4   :  { %5397 = vmatmul.mubr.bf16.vlgmr.msra.gmra.mxu1 %v6499_v34  ;;  %7391 = vmatpush3.bf16.msra.mxu0 %v8190_v38  ;;  %v8235_v34 = vld [vmem:[%s10585_s1 + $0x7a8] sm:$0xff]   ;;  %v8239_v38 = vld [vmem:[%s10585_s1 + $0x7a0] sm:$0xff]  }
  0xc5   :  { %7413 = vmatpush3.bf16.msra.mxu1 %v8191_v39  ;;  %7392 = vmatprep.subr.bf16.mxu0 %v8192_v40  ;;  %v8240_v39 = vld [vmem:[%s10585_s1 + $0x758] sm:$0xff]  }
  0xc6   :  { %7414 = vmatprep.subr.bf16.mxu1 %v8193_v41  ;;  %5436 = vmatprep.mubr.bf16.mxu0 %v6502_v9  ;;  %v8241_v40 = vld [vmem:[%s10585_s1 + $0x7d8] sm:$0xff]  }
  0xc7   :  { %5476 = vmatprep.mubr.bf16.mxu1 %v6504_v12  ;;  %v8242_v41 = vld [vmem:[%s10585_s1 + $0x718] sm:$0xff]  }
  0xc8   :  { %7393 = vmatpush3.bf16.msra.mxu0 %v8194_v42  ;;  %v8243_v42 = vld [vmem:[%s10585_s1 + $0x798] sm:$0xff]  }
  0xc9   :  { %7415 = vmatpush3.bf16.msra.mxu1 %v8195_v43  ;;  %7394 = vmatprep.subr.bf16.mxu0 %v8196_v44  ;;  %v8244_v43 = vld [vmem:[%s10585_s1 + $0x750] sm:$0xff]  }
  0xca   :  { %7416 = vmatprep.subr.bf16.mxu1 %v8197_v45  ;;  %v8245_v44 = vld [vmem:[%s10585_s1 + $0x7d0] sm:$0xff]  }
  0xcb   :  { %v8246_v45 = vld [vmem:[%s10585_s1 + $0x710] sm:$0xff]  }
  0xcc   :  { %7395 = vmatpush3.bf16.msra.mxu0 %v8198_v46  ;;  %v8247_v46 = vld [vmem:[%s10585_s1 + $0x790] sm:$0xff]  }
  0xcd   :  { %7417 = vmatpush3.bf16.msra.mxu1 %v8199_v47  ;;  %7396 = vmatprep.subr.bf16.mxu0 %v8200_v48  ;;  %v8248_v47 = vld [vmem:[%s10585_s1 + $0x748] sm:$0xff]  }
  0xce   :  { %7418 = vmatprep.subr.bf16.mxu1 %v8201_v49  ;;  %v8249_v48 = vld [vmem:[%s10585_s1 + $0x7c8] sm:$0xff]  }
  0xcf   :  { %v8250_v49 = vld [vmem:[%s10585_s1 + $0x708] sm:$0xff]  }
  0xd0   :  { %7397 = vmatpush3.bf16.msra.mxu0 %v8202_v50  ;;  %v8251_v50 = vld [vmem:[%s10585_s1 + $0x788] sm:$0xff]  }
  0xd1   :  { %7419 = vmatpush3.bf16.msra.mxu1 %v8203_v51  ;;  %7398 = vmatprep.subr.bf16.mxu0 %v8204_v52  ;;  %v8252_v51 = vld [vmem:[%s10585_s1 + $0x740] sm:$0xff]  }
  0xd2   :  { %7420 = vmatprep.subr.bf16.mxu1 %v8205_v53  ;;  %v8253_v52 = vld [vmem:[%s10585_s1 + $0x7c0] sm:$0xff]  }
  0xd3   :  { %v8254_v53 = vld [vmem:[%s10585_s1 + $0x700] sm:$0xff]  }
  0xd4   :  { %7399 = vmatpush3.bf16.msra.mxu0 %v8206_v54  ;;  %v8255_v54 = vld [vmem:[%s10585_s1 + $0x780] sm:$0xff]  }
  0xd5   :  { %7421 = vmatpush3.bf16.msra.mxu1 %v8207_v55  ;;  %7400 = vmatprep.subr.bf16.mxu0 %v8208_v56  ;;  %v35_v55 = vld [vmem:[%s10586_s0 + $0x70] sm:$0xff]  ;;  %v36_v56 = vld [vmem:[%s10586_s0 + $0x78] sm:$0xff] }
  0xd6   :  { %7422 = vmatprep.subr.bf16.mxu1 %v8209_v57 }
  0xd8   :  { %7401 = vmatpush3.bf16.msra.mxu0 %v8210_v58 }
  0xd9   :  { %7423 = vmatpush3.bf16.msra.mxu1 %v8211_v59  ;;  %7402 = vmatprep.subr.bf16.mxu0 %v8212_v60  ;;  %v6505_v59 = vcombine.low %v35_v55, %v35_v55  ;;  %v6506_v60 = vcombine.high %v35_v55, %v35_v55 }
  0xda   :  { %7424 = vmatprep.subr.bf16.mxu1 %v8213_v61  ;;  %v6507_v61 = vcombine.low %v36_v56, %v36_v56 }
  0xdc   :  { %7403 = vmatpush3.bf16.msra.mxu0 %v8214_v62  ;;  %v8260_v62 = vld [vmem:[%s10585_s1 + $0x878] sm:$0xff]  }
  0xdd   :  { %7425 = vmatpush3.bf16.msra.mxu1 %v8215_v63  ;;  %7404 = vmatprep.subr.bf16.mxu0 %v8216_v0  ;;  %v6508_v63 = vcombine.high %v36_v56, %v36_v56  ;;  %v8261_v0 = vld [vmem:[%s10585_s1 + $0x8f8] sm:$0xff]  }
  0xde   :  { %7426 = vmatprep.subr.bf16.mxu1 %v8217_v1 }
  0xe0   :  { %7405 = vmatpush3.bf16.msra.mxu0 %v8218_v2 }
  0xe1   :  { %7427 = vmatpush3.bf16.msra.mxu1 %v8219_v3  ;;  %7434 = vmatprep.subr.bf16.mxu0 %v8224_v11  ;;  %v8262_v3 = vld [vmem:[%s10585_s1 + $0x838] sm:$0xff]   ;;  %v8265_v11 = vld [vmem:[%s10585_s1 + $0x8f0] sm:$0xff]  }
  0xe2   :  { %7456 = vmatprep.subr.bf16.mxu1 %v8225_v13 }
  0xe3   :  { %v7142_v6 = vpop.f32.mrf.mxu0  ;;  %5437 = vmatmul.mubr.bf16.vlgmr.msra.gmra.mxu0 %v6501_v8 }
  0xe4   :  { %v7164_v7 = vpop.f32.mrf.mxu1  ;;  %5477 = vmatmul.mubr.bf16.vlgmr.msra.gmra.mxu1 %v6503_v10  ;;  %7435 = vmatpush3.bf16.msra.mxu0 %v8226_v16  ;;  %v8264_v10 = vld [vmem:[%s10585_s1 + $0x870] sm:$0xff]  }
  0xe5   :  { %v7143_v14 = vpop.f32.mrf.mxu0  ;;  %7457 = vmatpush3.bf16.msra.mxu1 %v8227_v19  ;;  %7436 = vmatprep.subr.bf16.mxu0 %v8228_v24  ;;  %v8267_v16 = vld [vmem:[%s10585_s1 + $0x8b0] sm:$0xff]   ;;  %v8270_v19 = vld [vmem:[%s10585_s1 + $0x828] sm:$0xff]   ;;  %v8275_v24 = vld [vmem:[%s10585_s1 + $0x8a0] sm:$0xff]  }
  0xe6   :  { %v7165_v15 = vpop.f32.mrf.mxu1  ;;  %v7144_v17 = vadd.f32 %v7143_v14, %v7142_v6  ;;  %7458 = vmatprep.subr.bf16.mxu1 %v8229_v25  ;;  %5516 = vmatprep.mubr.bf16.mxu0 %v6506_v60  ;;  %v8263_v6 = vld [vmem:[%s10585_s1 + $0x8b8] sm:$0xff]   ;;  %v8300_v60 = vld [vmem:[%s10585_s1 + $0x970] sm:$0xff]  }
  0xe7   :  { %v7166_v18 = vadd.f32 %v7165_v15, %v7164_v7  ;;  %v7145_v21 = vpop.f32.mrf.mxu0  ;;  %5556 = vmatprep.mubr.bf16.mxu1 %v6508_v63  ;;  %v8266_v15 = vld [vmem:[%s10585_s1 + $0x830] sm:$0xff]   ;;  %v8276_v25 = vld [vmem:[%s10585_s1 + $0x858] sm:$0xff]  }
  0xe8   :  { %v7167_v22 = vpop.f32.mrf.mxu1  ;;  %v4959_v23 = vadd.f32 %v7144_v17, %v6476_v20  ;;  %7437 = vmatpush3.bf16.msra.mxu0 %v8230_v29  ;;  %v8268_v17 = vld [vmem:[%s10585_s1 + $0x868] sm:$0xff]   ;;  %v8272_v21 = vld [vmem:[%s10585_s1 + $0x860] sm:$0xff]   ;;  %v8280_v29 = vld [vmem:[%s10585_s1 + $0x850] sm:$0xff]  }
  0xe9   :  { %v7146_v26 = vpop.f32.mrf.mxu0  ;;  %7459 = vmatpush3.bf16.msra.mxu1 %v8231_v30  ;;  %7438 = vmatprep.subr.bf16.mxu0 %v8232_v31  ;;  %v8271_v20 = vld [vmem:[%s10585_s1 + $0x8a8] sm:$0xff]   ;;  %v8273_v22 = vld [vmem:[%s10585_s1 + $0x8e0] sm:$0xff]   ;;  %v8281_v30 = vld [vmem:[%s10585_s1 + $0x8d0] sm:$0xff]  }
  0xea   :  { %v7168_v27 = vpop.f32.mrf.mxu1  ;;  %v9391_v28 = vadd.f32 %v7166_v18, %v4959_v23  ;;  %7460 = vmatprep.subr.bf16.mxu1 %v8233_v32  ;;  %v8269_v18 = vld [vmem:[%s10585_s1 + $0x8e8] sm:$0xff]   ;;  %v8274_v23 = vld [vmem:[%s10585_s1 + $0x820] sm:$0xff]   ;;  %v8277_v26 = vld [vmem:[%s10585_s1 + $0x8d8] sm:$0xff]  }
  0xeb   :  { %v8278_v27 = vld [vmem:[%s10585_s1 + $0x818] sm:$0xff]   ;;  %v8282_v31 = vld [vmem:[%s10585_s1 + $0x810] sm:$0xff]  }
  0xec   :  { %7439 = vmatpush3.bf16.msra.mxu0 %v8234_v33  ;;  %v8283_v32 = vld [vmem:[%s10585_s1 + $0x890] sm:$0xff]   ;;  %v8284_v33 = vld [vmem:[%s10585_s1 + $0x848] sm:$0xff]  }
  0xed   :  { %7461 = vmatpush3.bf16.msra.mxu1 %v8235_v34  ;;  %7440 = vmatprep.subr.bf16.mxu0 %v8236_v35  ;;  %v8285_v34 = vld [vmem:[%s10585_s1 + $0x8c8] sm:$0xff]   ;;  %v8301_v63 = vld [vmem:[%s10585_s1 + $0x9f0] sm:$0xff]  }
  0xee   :  { %7462 = vmatprep.subr.bf16.mxu1 %v8237_v36  ;;  %v8286_v35 = vld [vmem:[%s10585_s1 + $0x808] sm:$0xff]  }
  0xef   :  { %v8287_v36 = vld [vmem:[%s10585_s1 + $0x888] sm:$0xff]  }
  0xf0   :  { %7441 = vmatpush3.bf16.msra.mxu0 %v8238_v37  ;;  %v8288_v37 = vld [vmem:[%s10585_s1 + $0x840] sm:$0xff]  }
  0xf1   :  { %7463 = vmatpush3.bf16.msra.mxu1 %v8239_v38  ;;  %7442 = vmatprep.subr.bf16.mxu0 %v8240_v39  ;;  %v8289_v38 = vld [vmem:[%s10585_s1 + $0x8c0] sm:$0xff]  }
  0xf2   :  { %7464 = vmatprep.subr.bf16.mxu1 %v8241_v40  ;;  %v8290_v39 = vld [vmem:[%s10585_s1 + $0x800] sm:$0xff]  }
  0xf3   :  { %v8291_v40 = vld [vmem:[%s10585_s1 + $0x880] sm:$0xff]  }
  0xf4   :  { %7443 = vmatpush3.bf16.msra.mxu0 %v8242_v41  ;;  %v37_v41 = vld [vmem:[%s10586_s0 + $0x80] sm:$0xff] }
  0xf5   :  { %7465 = vmatpush3.bf16.msra.mxu1 %v8243_v42  ;;  %7444 = vmatprep.subr.bf16.mxu0 %v8244_v43  ;;  %v6509_v43 = vcombine.low %v37_v41, %v37_v41 }
  0xf6   :  { %7466 = vmatprep.subr.bf16.mxu1 %v8245_v44  ;;  %v6510_v44 = vcombine.high %v37_v41, %v37_v41  ;;  %v8335_v41 = vld [vmem:[%s10585_s1 + $0xab8] sm:$0xff]  }
  0xf8   :  { %7445 = vmatpush3.bf16.msra.mxu0 %v8246_v45  ;;  %v38_v45 = vld [vmem:[%s10586_s0 + $0x88] sm:$0xff] }
  0xf9   :  { %7467 = vmatpush3.bf16.msra.mxu1 %v8247_v46  ;;  %7446 = vmatprep.subr.bf16.mxu0 %v8248_v47  ;;  %v6511_v47 = vcombine.low %v38_v45, %v38_v45 }
  0xfa   :  { %7468 = vmatprep.subr.bf16.mxu1 %v8249_v48  ;;  %v6512_v48 = vcombine.high %v38_v45, %v38_v45 }
  0xfc   :  { %7447 = vmatpush3.bf16.msra.mxu0 %v8250_v49  ;;  %v8296_v49 = vld [vmem:[%s10585_s1 + $0x978] sm:$0xff]  }
  0xfd   :  { %7469 = vmatpush3.bf16.msra.mxu1 %v8251_v50  ;;  %7448 = vmatprep.subr.bf16.mxu0 %v8252_v51  ;;  %v8297_v51 = vld [vmem:[%s10585_s1 + $0x9f8] sm:$0xff]  }
  0xfe   :  { %7470 = vmatprep.subr.bf16.mxu1 %v8253_v52 }
 0x100   :  { %7449 = vmatpush3.bf16.msra.mxu0 %v8254_v53 }
 0x101   :  { %7471 = vmatpush3.bf16.msra.mxu1 %v8255_v54  ;;  %7478 = vmatprep.subr.bf16.mxu0 %v8260_v62  ;;  %v8298_v54 = vld [vmem:[%s10585_s1 + $0x938] sm:$0xff]  }
 0x102   :  { %7500 = vmatprep.subr.bf16.mxu1 %v8261_v0 }
 0x103   :  { %v7186_v57 = vpop.f32.mrf.mxu0  ;;  %5517 = vmatmul.mubr.bf16.vlgmr.msra.gmra.mxu0 %v6505_v59 }
 0x104   :  { %v7208_v58 = vpop.f32.mrf.mxu1  ;;  %5557 = vmatmul.mubr.bf16.vlgmr.msra.gmra.mxu1 %v6507_v61  ;;  %7479 = vmatpush3.bf16.msra.mxu0 %v8262_v3  ;;  %v8304_v3 = vld [vmem:[%s10585_s1 + $0x968] sm:$0xff]  }
 0x105   :  { %v7187_v1 = vpop.f32.mrf.mxu0  ;;  %7501 = vmatpush3.bf16.msra.mxu1 %v8263_v6  ;;  %7480 = vmatprep.subr.bf16.mxu0 %v8264_v10  ;;  %v8307_v6 = vld [vmem:[%s10585_s1 + $0x9a8] sm:$0xff]   ;;  %v8311_v10 = vld [vmem:[%s10585_s1 + $0x9a0] sm:$0xff]  }
 0x106   :  { %v7209_v2 = vpop.f32.mrf.mxu1  ;;  %v7188_v4 = vadd.f32 %v7187_v1, %v7186_v57  ;;  %7502 = vmatprep.subr.bf16.mxu1 %v8265_v11  ;;  %5596 = vmatprep.mubr.bf16.mxu0 %v6510_v44  ;;  %v8299_v57 = vld [vmem:[%s10585_s1 + $0x9b8] sm:$0xff]   ;;  %v8302_v1 = vld [vmem:[%s10585_s1 + $0x930] sm:$0xff]  }
 0x107   :  { %v7210_v5 = vadd.f32 %v7209_v2, %v7208_v58  ;;  %v7189_v7 = vpop.f32.mrf.mxu0  ;;  %5636 = vmatprep.mubr.bf16.mxu1 %v6512_v48  ;;  %v8303_v2 = vld [vmem:[%s10585_s1 + $0x9b0] sm:$0xff]   ;;  %v8312_v11 = vld [vmem:[%s10585_s1 + $0x958] sm:$0xff]  }
 0x108   :  { %v7211_v8 = vpop.f32.mrf.mxu1  ;;  %v5039_v9 = vadd.f32 %v7188_v4, %v9391_v28  ;;  %7481 = vmatpush3.bf16.msra.mxu0 %v8266_v15  ;;  %v8279_v28 = vld [vmem:[%s10585_s1 + $0x898] sm:$0xff]   ;;  %v8305_v4 = vld [vmem:[%s10585_s1 + $0x9e8] sm:$0xff]   ;;  %v8308_v7 = vld [vmem:[%s10585_s1 + $0x960] sm:$0xff]  }
 0x109   :  { %v7190_v12 = vpop.f32.mrf.mxu0  ;;  %7503 = vmatpush3.bf16.msra.mxu1 %v8267_v16  ;;  %7482 = vmatprep.subr.bf16.mxu0 %v8268_v17  ;;  %v8309_v8 = vld [vmem:[%s10585_s1 + $0x9e0] sm:$0xff]   ;;  %v8316_v15 = vld [vmem:[%s10585_s1 + $0x950] sm:$0xff]  }
 0x10a   :  { %v7212_v13 = vpop.f32.mrf.mxu1  ;;  %v9496_v14 = vadd.f32 %v7210_v5, %v5039_v9  ;;  %7504 = vmatprep.subr.bf16.mxu1 %v8269_v18  ;;  %v8306_v5 = vld [vmem:[%s10585_s1 + $0x928] sm:$0xff]   ;;  %v8310_v9 = vld [vmem:[%s10585_s1 + $0x920] sm:$0xff]   ;;  %v8313_v12 = vld [vmem:[%s10585_s1 + $0x9d8] sm:$0xff]  }
 0x10b   :  { %v8314_v13 = vld [vmem:[%s10585_s1 + $0x918] sm:$0xff]   ;;  %v8317_v16 = vld [vmem:[%s10585_s1 + $0x9d0] sm:$0xff]  }
 0x10c   :  { %7483 = vmatpush3.bf16.msra.mxu0 %v8270_v19  ;;  %v8318_v17 = vld [vmem:[%s10585_s1 + $0x910] sm:$0xff]   ;;  %v8320_v19 = vld [vmem:[%s10585_s1 + $0x948] sm:$0xff]  }
 0x10d   :  { %7505 = vmatpush3.bf16.msra.mxu1 %v8271_v20  ;;  %7484 = vmatprep.subr.bf16.mxu0 %v8272_v21  ;;  %v8319_v18 = vld [vmem:[%s10585_s1 + $0x990] sm:$0xff]   ;;  %v8321_v20 = vld [vmem:[%s10585_s1 + $0x9c8] sm:$0xff]  }
 0x10e   :  { %7506 = vmatprep.subr.bf16.mxu1 %v8273_v22  ;;  %v8322_v21 = vld [vmem:[%s10585_s1 + $0x908] sm:$0xff]  }
 0x10f   :  { %v8323_v22 = vld [vmem:[%s10585_s1 + $0x988] sm:$0xff]  }
 0x110   :  { %7485 = vmatpush3.bf16.msra.mxu0 %v8274_v23  ;;  %v8324_v23 = vld [vmem:[%s10585_s1 + $0x940] sm:$0xff]  }
 0x111   :  { %7507 = vmatpush3.bf16.msra.mxu1 %v8275_v24  ;;  %7486 = vmatprep.subr.bf16.mxu0 %v8276_v25  ;;  %v8325_v24 = vld [vmem:[%s10585_s1 + $0x9c0] sm:$0xff]  }
 0x112   :  { %7508 = vmatprep.subr.bf16.mxu1 %v8277_v26  ;;  %v8326_v25 = vld [vmem:[%s10585_s1 + $0x900] sm:$0xff]  }
 0x113   :  { %v8327_v26 = vld [vmem:[%s10585_s1 + $0x980] sm:$0xff]  }
 0x114   :  { %7487 = vmatpush3.bf16.msra.mxu0 %v8278_v27  ;;  %v39_v27 = vld [vmem:[%s10586_s0 + $0x90] sm:$0xff] }
 0x115   :  { %7509 = vmatpush3.bf16.msra.mxu1 %v8279_v28  ;;  %7488 = vmatprep.subr.bf16.mxu0 %v8280_v29  ;;  %v40_v28 = vld [vmem:[%s10586_s0 + $0x98] sm:$0xff] }
 0x116   :  { %7510 = vmatprep.subr.bf16.mxu1 %v8281_v30  ;;  %v6513_v30 = vcombine.low %v39_v27, %v39_v27 }
 0x118   :  { %7489 = vmatpush3.bf16.msra.mxu0 %v8282_v31  ;;  %v6514_v31 = vcombine.high %v39_v27, %v39_v27 }
 0x119   :  { %7511 = vmatpush3.bf16.msra.mxu1 %v8283_v32  ;;  %7490 = vmatprep.subr.bf16.mxu0 %v8284_v33  ;;  %v6515_v32 = vcombine.low %v40_v28, %v40_v28  ;;  %v6516_v33 = vcombine.high %v40_v28, %v40_v28  ;;  %v8371_v28 = vld [vmem:[%s10585_s1 + $0xbb8] sm:$0xff]  }
 0x11a   :  { %7512 = vmatprep.subr.bf16.mxu1 %v8285_v34 }
 0x11c   :  { %7491 = vmatpush3.bf16.msra.mxu0 %v8286_v35  ;;  %v8332_v35 = vld [vmem:[%s10585_s1 + $0xa78] sm:$0xff]  }
 0x11d   :  { %7513 = vmatpush3.bf16.msra.mxu1 %v8287_v36  ;;  %7492 = vmatprep.subr.bf16.mxu0 %v8288_v37  ;;  %v8333_v36 = vld [vmem:[%s10585_s1 + $0xaf8] sm:$0xff]  }
 0x11e   :  { %7514 = vmatprep.subr.bf16.mxu1 %v8289_v38  ;;  %v8334_v38 = vld [vmem:[%s10585_s1 + $0xa38] sm:$0xff]  }
 0x120   :  { %7493 = vmatpush3.bf16.msra.mxu0 %v8290_v39 }
 0x121   :  { %7515 = vmatpush3.bf16.msra.mxu1 %v8291_v40  ;;  %7522 = vmatprep.subr.bf16.mxu0 %v8296_v49 }
 0x122   :  { %7544 = vmatprep.subr.bf16.mxu1 %v8297_v51 }
 0x123   :  { %v7230_v42 = vpop.f32.mrf.mxu0  ;;  %5597 = vmatmul.mubr.bf16.vlgmr.msra.gmra.mxu0 %v6509_v43 }
 0x124   :  { %v7252_v46 = vpop.f32.mrf.mxu1  ;;  %5637 = vmatmul.mubr.bf16.vlgmr.msra.gmra.mxu1 %v6511_v47  ;;  %7523 = vmatpush3.bf16.msra.mxu0 %v8298_v54  ;;  %v8337_v47 = vld [vmem:[%s10585_s1 + $0xaf0] sm:$0xff]   ;;  %v8341_v54 = vld [vmem:[%s10585_s1 + $0xae8] sm:$0xff]  }
 0x125   :  { %v7231_v50 = vpop.f32.mrf.mxu0  ;;  %7545 = vmatpush3.bf16.msra.mxu1 %v8299_v57  ;;  %7524 = vmatprep.subr.bf16.mxu0 %v8300_v60  ;;  %v8344_v57 = vld [vmem:[%s10585_s1 + $0xa60] sm:$0xff]  }
 0x126   :  { %v7232_v52 = vadd.f32 %v7231_v50, %v7230_v42  ;;  %v7253_v53 = vpop.f32.mrf.mxu1  ;;  %7546 = vmatprep.subr.bf16.mxu1 %v8301_v63  ;;  %5676 = vmatprep.mubr.bf16.mxu0 %v6514_v31  ;;  %v8338_v50 = vld [vmem:[%s10585_s1 + $0xa30] sm:$0xff]   ;;  %v8347_v60 = vld [vmem:[%s10585_s1 + $0xaa0] sm:$0xff]   ;;  %v8350_v63 = vld [vmem:[%s10585_s1 + $0xa18] sm:$0xff]  }
 0x127   :  { %v7254_v55 = vadd.f32 %v7253_v53, %v7252_v46  ;;  %v7233_v56 = vpop.f32.mrf.mxu0  ;;  %5716 = vmatprep.mubr.bf16.mxu1 %v6516_v33  ;;  %v8336_v46 = vld [vmem:[%s10585_s1 + $0xa70] sm:$0xff]   ;;  %v8340_v53 = vld [vmem:[%s10585_s1 + $0xa68] sm:$0xff]  }
 0x128   :  { %v5119_v58 = vadd.f32 %v7232_v52, %v9496_v14  ;;  %v7255_v59 = vpop.f32.mrf.mxu1  ;;  %7525 = vmatpush3.bf16.msra.mxu0 %v8302_v1  ;;  %v8315_v14 = vld [vmem:[%s10585_s1 + $0x998] sm:$0xff]   ;;  %v8339_v52 = vld [vmem:[%s10585_s1 + $0xab0] sm:$0xff]   ;;  %v8343_v56 = vld [vmem:[%s10585_s1 + $0xaa8] sm:$0xff]  }
 0x129   :  { %v7234_v61 = vpop.f32.mrf.mxu0  ;;  %7547 = vmatpush3.bf16.msra.mxu1 %v8303_v2  ;;  %7526 = vmatprep.subr.bf16.mxu0 %v8304_v3  ;;  %v8346_v59 = vld [vmem:[%s10585_s1 + $0xa20] sm:$0xff]   ;;  %v8352_v1 = vld [vmem:[%s10585_s1 + $0xa50] sm:$0xff]  }
 0x12a   :  { %v9598_v62 = vadd.f32 %v7254_v55, %v5119_v58  ;;  %v7256_v0 = vpop.f32.mrf.mxu1  ;;  %7548 = vmatprep.subr.bf16.mxu1 %v8305_v4  ;;  %v8342_v55 = vld [vmem:[%s10585_s1 + $0xa28] sm:$0xff]   ;;  %v8345_v58 = vld [vmem:[%s10585_s1 + $0xae0] sm:$0xff]   ;;  %v8348_v61 = vld [vmem:[%s10585_s1 + $0xa58] sm:$0xff]  }
 0x12b   :  { %v8351_v0 = vld [vmem:[%s10585_s1 + $0xa98] sm:$0xff]   ;;  %v8353_v2 = vld [vmem:[%s10585_s1 + $0xad0] sm:$0xff]  }
 0x12c   :  { %7527 = vmatpush3.bf16.msra.mxu0 %v8306_v5  ;;  %v8354_v3 = vld [vmem:[%s10585_s1 + $0xa10] sm:$0xff]   ;;  %v8356_v5 = vld [vmem:[%s10585_s1 + $0xa48] sm:$0xff]  }
 0x12d   :  { %7549 = vmatpush3.bf16.msra.mxu1 %v8307_v6  ;;  %7528 = vmatprep.subr.bf16.mxu0 %v8308_v7  ;;  %v8355_v4 = vld [vmem:[%s10585_s1 + $0xa90] sm:$0xff]   ;;  %v8357_v6 = vld [vmem:[%s10585_s1 + $0xac8] sm:$0xff]  }
 0x12e   :  { %7550 = vmatprep.subr.bf16.mxu1 %v8309_v8  ;;  %v8358_v7 = vld [vmem:[%s10585_s1 + $0xa08] sm:$0xff]   ;;  %v8373_v33 = vld [vmem:[%s10585_s1 + $0xbf0] sm:$0xff]  }
 0x12f   :  { %v8359_v8 = vld [vmem:[%s10585_s1 + $0xa88] sm:$0xff]  }
 0x130   :  { %7529 = vmatpush3.bf16.msra.mxu0 %v8310_v9  ;;  %v8360_v9 = vld [vmem:[%s10585_s1 + $0xa40] sm:$0xff]  }
 0x131   :  { %7551 = vmatpush3.bf16.msra.mxu1 %v8311_v10  ;;  %7530 = vmatprep.subr.bf16.mxu0 %v8312_v11  ;;  %v8361_v10 = vld [vmem:[%s10585_s1 + $0xac0] sm:$0xff]  }
 0x132   :  { %7552 = vmatprep.subr.bf16.mxu1 %v8313_v12  ;;  %v8362_v11 = vld [vmem:[%s10585_s1 + $0xa00] sm:$0xff]  }
 0x133   :  { %v8363_v12 = vld [vmem:[%s10585_s1 + $0xa80] sm:$0xff]  }
 0x134   :  { %7531 = vmatpush3.bf16.msra.mxu0 %v8314_v13  ;;  %v41_v13 = vld [vmem:[%s10586_s0 + $0xa0] sm:$0xff] }
 0x135   :  { %7553 = vmatpush3.bf16.msra.mxu1 %v8315_v14  ;;  %7532 = vmatprep.subr.bf16.mxu0 %v8316_v15  ;;  %v42_v14 = vld [vmem:[%s10586_s0 + $0xa8] sm:$0xff] }
 0x136   :  { %7554 = vmatprep.subr.bf16.mxu1 %v8317_v16 }
 0x138   :  { %7533 = vmatpush3.bf16.msra.mxu0 %v8318_v17  ;;  %v6517_v17 = vcombine.low %v41_v13, %v41_v13 }
 0x139   :  { %7555 = vmatpush3.bf16.msra.mxu1 %v8319_v18  ;;  %7534 = vmatprep.subr.bf16.mxu0 %v8320_v19  ;;  %v6518_v18 = vcombine.high %v41_v13, %v41_v13  ;;  %v6519_v19 = vcombine.low %v42_v14, %v42_v14 }
 0x13a   :  { %7556 = vmatprep.subr.bf16.mxu1 %v8321_v20  ;;  %v8368_v20 = vld [vmem:[%s10585_s1 + $0xb78] sm:$0xff]  }
 0x13c   :  { %7535 = vmatpush3.bf16.msra.mxu0 %v8322_v21  ;;  %v6520_v21 = vcombine.high %v42_v14, %v42_v14 }
 0x13d   :  { %7557 = vmatpush3.bf16.msra.mxu1 %v8323_v22  ;;  %7536 = vmatprep.subr.bf16.mxu0 %v8324_v23  ;;  %v8369_v22 = vld [vmem:[%s10585_s1 + $0xbf8] sm:$0xff]  }
 0x13e   :  { %7558 = vmatprep.subr.bf16.mxu1 %v8325_v24 }
 0x140   :  { %7537 = vmatpush3.bf16.msra.mxu0 %v8326_v25  ;;  %v8370_v25 = vld [vmem:[%s10585_s1 + $0xb38] sm:$0xff]  }
 0x141   :  { %7559 = vmatpush3.bf16.msra.mxu1 %v8327_v26  ;;  %7566 = vmatprep.subr.bf16.mxu0 %v8332_v35 }
 0x142   :  { %7588 = vmatprep.subr.bf16.mxu1 %v8333_v36 }
 0x143   :  { %v7274_v29 = vpop.f32.mrf.mxu0  ;;  %5677 = vmatmul.mubr.bf16.vlgmr.msra.gmra.mxu0 %v6513_v30 }
 0x144   :  { %v7296_v34 = vpop.f32.mrf.mxu1  ;;  %5717 = vmatmul.mubr.bf16.vlgmr.msra.gmra.mxu1 %v6515_v32  ;;  %7567 = vmatpush3.bf16.msra.mxu0 %v8334_v38  ;;  %v8372_v32 = vld [vmem:[%s10585_s1 + $0xb70] sm:$0xff]  }
 0x145   :  { %v7275_v37 = vpop.f32.mrf.mxu0  ;;  %7589 = vmatpush3.bf16.msra.mxu1 %v8335_v41  ;;  %7568 = vmatprep.subr.bf16.mxu0 %v8336_v46  ;;  %v8375_v38 = vld [vmem:[%s10585_s1 + $0xbb0] sm:$0xff]   ;;  %v8378_v41 = vld [vmem:[%s10585_s1 + $0xb28] sm:$0xff]   ;;  %v8383_v46 = vld [vmem:[%s10585_s1 + $0xba0] sm:$0xff]  }
 0x146   :  { %v7276_v39 = vadd.f32 %v7275_v37, %v7274_v29  ;;  %v7297_v40 = vpop.f32.mrf.mxu1  ;;  %7590 = vmatprep.subr.bf16.mxu1 %v8337_v47  ;;  %5756 = vmatprep.mubr.bf16.mxu0 %v6518_v18  ;;  %v8374_v37 = vld [vmem:[%s10585_s1 + $0xb30] sm:$0xff]   ;;  %v8384_v47 = vld [vmem:[%s10585_s1 + $0xb58] sm:$0xff]  }
 0x147   :  { %v7298_v42 = vadd.f32 %v7297_v40, %v7296_v34  ;;  %v7277_v43 = vpop.f32.mrf.mxu0  ;;  %5796 = vmatprep.mubr.bf16.mxu1 %v6520_v21  ;;  %v8377_v40 = vld [vmem:[%s10585_s1 + $0xbe8] sm:$0xff]   ;;  %v8408_v18 = vld [vmem:[%s10585_s1 + $0xc70] sm:$0xff]  }
 0x148   :  { %v5199_v44 = vadd.f32 %v7276_v39, %v9598_v62  ;;  %v7299_v45 = vpop.f32.mrf.mxu1  ;;  %7569 = vmatpush3.bf16.msra.mxu0 %v8338_v50  ;;  %v8349_v62 = vld [vmem:[%s10585_s1 + $0xad8] sm:$0xff]   ;;  %v8376_v39 = vld [vmem:[%s10585_s1 + $0xb68] sm:$0xff]   ;;  %v8380_v43 = vld [vmem:[%s10585_s1 + $0xb60] sm:$0xff]  }
 0x149   :  { %v7278_v48 = vpop.f32.mrf.mxu0  ;;  %7591 = vmatpush3.bf16.msra.mxu1 %v8339_v52  ;;  %7570 = vmatprep.subr.bf16.mxu0 %v8340_v53  ;;  %v8382_v45 = vld [vmem:[%s10585_s1 + $0xb20] sm:$0xff]   ;;  %v8387_v50 = vld [vmem:[%s10585_s1 + $0xb98] sm:$0xff]   ;;  %v8389_v52 = vld [vmem:[%s10585_s1 + $0xbd0] sm:$0xff]  }
 0x14a   :  { %v9706_v49 = vadd.f32 %v7298_v42, %v5199_v44  ;;  %v7300_v51 = vpop.f32.mrf.mxu1  ;;  %7592 = vmatprep.subr.bf16.mxu1 %v8341_v54  ;;  %v8379_v42 = vld [vmem:[%s10585_s1 + $0xba8] sm:$0xff]   ;;  %v8381_v44 = vld [vmem:[%s10585_s1 + $0xbe0] sm:$0xff]   ;;  %v8385_v48 = vld [vmem:[%s10585_s1 + $0xbd8] sm:$0xff]  }
 0x14b   :  { %v8388_v51 = vld [vmem:[%s10585_s1 + $0xb50] sm:$0xff]  }
 0x14c   :  { %7571 = vmatpush3.bf16.msra.mxu0 %v8342_v55  ;;  %v8390_v53 = vld [vmem:[%s10585_s1 + $0xb10] sm:$0xff]   ;;  %v8392_v55 = vld [vmem:[%s10585_s1 + $0xb48] sm:$0xff]  }
 0x14d   :  { %7593 = vmatpush3.bf16.msra.mxu1 %v8343_v56  ;;  %7572 = vmatprep.subr.bf16.mxu0 %v8344_v57  ;;  %v8391_v54 = vld [vmem:[%s10585_s1 + $0xb90] sm:$0xff]   ;;  %v8393_v56 = vld [vmem:[%s10585_s1 + $0xbc8] sm:$0xff]  }
 0x14e   :  { %7594 = vmatprep.subr.bf16.mxu1 %v8345_v58  ;;  %v8394_v57 = vld [vmem:[%s10585_s1 + $0xb08] sm:$0xff]   ;;  %v8409_v21 = vld [vmem:[%s10585_s1 + $0xcf0] sm:$0xff]  }
 0x14f   :  { %v8395_v58 = vld [vmem:[%s10585_s1 + $0xb88] sm:$0xff]  }
 0x150   :  { %7573 = vmatpush3.bf16.msra.mxu0 %v8346_v59  ;;  %v8396_v59 = vld [vmem:[%s10585_s1 + $0xb40] sm:$0xff]  }
 0x151   :  { %7595 = vmatpush3.bf16.msra.mxu1 %v8347_v60  ;;  %7574 = vmatprep.subr.bf16.mxu0 %v8348_v61  ;;  %v8397_v60 = vld [vmem:[%s10585_s1 + $0xbc0] sm:$0xff]  }
 0x152   :  { %7596 = vmatprep.subr.bf16.mxu1 %v8349_v62  ;;  %v8398_v61 = vld [vmem:[%s10585_s1 + $0xb00] sm:$0xff]  }
 0x153   :  { %v8399_v62 = vld [vmem:[%s10585_s1 + $0xb80] sm:$0xff]  }
 0x154   :  { %7575 = vmatpush3.bf16.msra.mxu0 %v8350_v63  ;;  %v43_v63 = vld [vmem:[%s10586_s0 + $0xb0] sm:$0xff] }
 0x155   :  { %7597 = vmatpush3.bf16.msra.mxu1 %v8351_v0  ;;  %7576 = vmatprep.subr.bf16.mxu0 %v8352_v1  ;;  %v6521_v1 = vcombine.low %v43_v63, %v43_v63 }
 0x156   :  { %7598 = vmatprep.subr.bf16.mxu1 %v8353_v2  ;;  %v6522_v2 = vcombine.high %v43_v63, %v43_v63  ;;  %v8443_v63 = vld [vmem:[%s10585_s1 + $0xdb8] sm:$0xff]  }
 0x158   :  { %7577 = vmatpush3.bf16.msra.mxu0 %v8354_v3  ;;  %v44_v3 = vld [vmem:[%s10586_s0 + $0xb8] sm:$0xff] }
 0x159   :  { %7599 = vmatpush3.bf16.msra.mxu1 %v8355_v4  ;;  %7578 = vmatprep.subr.bf16.mxu0 %v8356_v5  ;;  %v6523_v5 = vcombine.low %v44_v3, %v44_v3 }
 0x15a   :  { %7600 = vmatprep.subr.bf16.mxu1 %v8357_v6  ;;  %v6524_v6 = vcombine.high %v44_v3, %v44_v3 }
 0x15c   :  { %7579 = vmatpush3.bf16.msra.mxu0 %v8358_v7  ;;  %v8404_v7 = vld [vmem:[%s10585_s1 + $0xc78] sm:$0xff]  }
 0x15d   :  { %7601 = vmatpush3.bf16.msra.mxu1 %v8359_v8  ;;  %7580 = vmatprep.subr.bf16.mxu0 %v8360_v9  ;;  %v8405_v9 = vld [vmem:[%s10585_s1 + $0xcf8] sm:$0xff]  }
 0x15e   :  { %7602 = vmatprep.subr.bf16.mxu1 %v8361_v10 }
 0x160   :  { %7581 = vmatpush3.bf16.msra.mxu0 %v8362_v11 }
 0x161   :  { %7603 = vmatpush3.bf16.msra.mxu1 %v8363_v12  ;;  %7610 = vmatprep.subr.bf16.mxu0 %v8368_v20  ;;  %v8406_v12 = vld [vmem:[%s10585_s1 + $0xc38] sm:$0xff]  }
 0x162   :  { %7632 = vmatprep.subr.bf16.mxu1 %v8369_v22 }
 0x163   :  { %v7318_v15 = vpop.f32.mrf.mxu0  ;;  %5757 = vmatmul.mubr.bf16.vlgmr.msra.gmra.mxu0 %v6517_v17 }
 0x164   :  { %v7340_v16 = vpop.f32.mrf.mxu1  ;;  %5797 = vmatmul.mubr.bf16.vlgmr.msra.gmra.mxu1 %v6519_v19  ;;  %7611 = vmatpush3.bf16.msra.mxu0 %v8370_v25  ;;  %v8412_v25 = vld [vmem:[%s10585_s1 + $0xc68] sm:$0xff]  }
 0x165   :  { %v7319_v23 = vpop.f32.mrf.mxu0  ;;  %7633 = vmatpush3.bf16.msra.mxu1 %v8371_v28  ;;  %7612 = vmatprep.subr.bf16.mxu0 %v8372_v32  ;;  %v8415_v28 = vld [vmem:[%s10585_s1 + $0xca8] sm:$0xff]   ;;  %v8419_v32 = vld [vmem:[%s10585_s1 + $0xca0] sm:$0xff]  }
 0x166   :  { %v7341_v24 = vpop.f32.mrf.mxu1  ;;  %v7320_v26 = vadd.f32 %v7319_v23, %v7318_v15  ;;  %7634 = vmatprep.subr.bf16.mxu1 %v8373_v33  ;;  %5836 = vmatprep.mubr.bf16.mxu0 %v6522_v2  ;;  %v8407_v15 = vld [vmem:[%s10585_s1 + $0xcb8] sm:$0xff]   ;;  %v8410_v23 = vld [vmem:[%s10585_s1 + $0xc30] sm:$0xff]  }
 0x167   :  { %v7342_v27 = vadd.f32 %v7341_v24, %v7340_v16  ;;  %v7321_v29 = vpop.f32.mrf.mxu0  ;;  %5876 = vmatprep.mubr.bf16.mxu1 %v6524_v6  ;;  %v8411_v24 = vld [vmem:[%s10585_s1 + $0xcb0] sm:$0xff]   ;;  %v8420_v33 = vld [vmem:[%s10585_s1 + $0xc58] sm:$0xff]  }
 0x168   :  { %v7343_v30 = vpop.f32.mrf.mxu1  ;;  %v5279_v31 = vadd.f32 %v7320_v26, %v9706_v49  ;;  %7613 = vmatpush3.bf16.msra.mxu0 %v8374_v37  ;;  %v8386_v49 = vld [vmem:[%s10585_s1 + $0xb18] sm:$0xff]   ;;  %v8413_v26 = vld [vmem:[%s10585_s1 + $0xce8] sm:$0xff]   ;;  %v8416_v29 = vld [vmem:[%s10585_s1 + $0xc60] sm:$0xff]  }
 0x169   :  { %v7322_v34 = vpop.f32.mrf.mxu0  ;;  %7635 = vmatpush3.bf16.msra.mxu1 %v8375_v38  ;;  %7614 = vmatprep.subr.bf16.mxu0 %v8376_v39  ;;  %v8417_v30 = vld [vmem:[%s10585_s1 + $0xce0] sm:$0xff]   ;;  %v8424_v37 = vld [vmem:[%s10585_s1 + $0xc50] sm:$0xff]  }
 0x16a   :  { %v7344_v35 = vpop.f32.mrf.mxu1  ;;  %v9811_v36 = vadd.f32 %v7342_v27, %v5279_v31  ;;  %7636 = vmatprep.subr.bf16.mxu1 %v8377_v40  ;;  %v8414_v27 = vld [vmem:[%s10585_s1 + $0xc28] sm:$0xff]   ;;  %v8418_v31 = vld [vmem:[%s10585_s1 + $0xc20] sm:$0xff]   ;;  %v8421_v34 = vld [vmem:[%s10585_s1 + $0xcd8] sm:$0xff]  }
 0x16b   :  { %v8422_v35 = vld [vmem:[%s10585_s1 + $0xc18] sm:$0xff]   ;;  %v8425_v38 = vld [vmem:[%s10585_s1 + $0xcd0] sm:$0xff]  }
 0x16c   :  { %7615 = vmatpush3.bf16.msra.mxu0 %v8378_v41  ;;  %v8426_v39 = vld [vmem:[%s10585_s1 + $0xc10] sm:$0xff]   ;;  %v8428_v41 = vld [vmem:[%s10585_s1 + $0xc48] sm:$0xff]  }
 0x16d   :  { %7637 = vmatpush3.bf16.msra.mxu1 %v8379_v42  ;;  %7616 = vmatprep.subr.bf16.mxu0 %v8380_v43  ;;  %v8427_v40 = vld [vmem:[%s10585_s1 + $0xc90] sm:$0xff]   ;;  %v8429_v42 = vld [vmem:[%s10585_s1 + $0xcc8] sm:$0xff]  }
 0x16e   :  { %7638 = vmatprep.subr.bf16.mxu1 %v8381_v44  ;;  %v8430_v43 = vld [vmem:[%s10585_s1 + $0xc08] sm:$0xff]  }
 0x16f   :  { %v8431_v44 = vld [vmem:[%s10585_s1 + $0xc88] sm:$0xff]  }
 0x170   :  { %7617 = vmatpush3.bf16.msra.mxu0 %v8382_v45  ;;  %v8432_v45 = vld [vmem:[%s10585_s1 + $0xc40] sm:$0xff]  }
 0x171   :  { %7639 = vmatpush3.bf16.msra.mxu1 %v8383_v46  ;;  %7618 = vmatprep.subr.bf16.mxu0 %v8384_v47  ;;  %v8433_v46 = vld [vmem:[%s10585_s1 + $0xcc0] sm:$0xff]  }
 0x172   :  { %7640 = vmatprep.subr.bf16.mxu1 %v8385_v48  ;;  %v8434_v47 = vld [vmem:[%s10585_s1 + $0xc00] sm:$0xff]  }
 0x173   :  { %v8435_v48 = vld [vmem:[%s10585_s1 + $0xc80] sm:$0xff]  }
 0x174   :  { %7619 = vmatpush3.bf16.msra.mxu0 %v8386_v49  ;;  %v45_v49 = vld [vmem:[%s10586_s0 + $0xc0] sm:$0xff] }
 0x175   :  { %7641 = vmatpush3.bf16.msra.mxu1 %v8387_v50  ;;  %7620 = vmatprep.subr.bf16.mxu0 %v8388_v51  ;;  %v46_v50 = vld [vmem:[%s10586_s0 + $0xc8] sm:$0xff] }
 0x176   :  { %7642 = vmatprep.subr.bf16.mxu1 %v8389_v52  ;;  %v6525_v52 = vcombine.low %v45_v49, %v45_v49 }
 0x178   :  { %7621 = vmatpush3.bf16.msra.mxu0 %v8390_v53  ;;  %v6526_v53 = vcombine.high %v45_v49, %v45_v49  ;;  %v8479_v49 = vld [vmem:[%s10585_s1 + $0xeb8] sm:$0xff]  }
 0x179   :  { %7643 = vmatpush3.bf16.msra.mxu1 %v8391_v54  ;;  %7622 = vmatprep.subr.bf16.mxu0 %v8392_v55  ;;  %v6527_v54 = vcombine.low %v46_v50, %v46_v50  ;;  %v6528_v55 = vcombine.high %v46_v50, %v46_v50 }
 0x17a   :  { %7644 = vmatprep.subr.bf16.mxu1 %v8393_v56 }
 0x17c   :  { %7623 = vmatpush3.bf16.msra.mxu0 %v8394_v57  ;;  %v8440_v57 = vld [vmem:[%s10585_s1 + $0xd78] sm:$0xff]  }
 0x17d   :  { %7645 = vmatpush3.bf16.msra.mxu1 %v8395_v58  ;;  %7624 = vmatprep.subr.bf16.mxu0 %v8396_v59  ;;  %v8441_v58 = vld [vmem:[%s10585_s1 + $0xdf8] sm:$0xff]  }
 0x17e   :  { %7646 = vmatprep.subr.bf16.mxu1 %v8397_v60  ;;  %v8442_v60 = vld [vmem:[%s10585_s1 + $0xd38] sm:$0xff]  }
 0x180   :  { %7625 = vmatpush3.bf16.msra.mxu0 %v8398_v61 }
 0x181   :  { %7647 = vmatpush3.bf16.msra.mxu1 %v8399_v62  ;;  %7654 = vmatprep.subr.bf16.mxu0 %v8404_v7 }
 0x182   :  { %7676 = vmatprep.subr.bf16.mxu1 %v8405_v9 }
 0x183   :  { %v7362_v0 = vpop.f32.mrf.mxu0  ;;  %5837 = vmatmul.mubr.bf16.vlgmr.msra.gmra.mxu0 %v6521_v1 }
 0x184   :  { %v7384_v4 = vpop.f32.mrf.mxu1  ;;  %5877 = vmatmul.mubr.bf16.vlgmr.msra.gmra.mxu1 %v6523_v5  ;;  %7655 = vmatpush3.bf16.msra.mxu0 %v8406_v12  ;;  %v8445_v5 = vld [vmem:[%s10585_s1 + $0xdf0] sm:$0xff]   ;;  %v8449_v12 = vld [vmem:[%s10585_s1 + $0xde8] sm:$0xff]  }
 0x185   :  { %v7363_v8 = vpop.f32.mrf.mxu0  ;;  %7677 = vmatpush3.bf16.msra.mxu1 %v8407_v15  ;;  %7656 = vmatprep.subr.bf16.mxu0 %v8408_v18  ;;  %v8452_v15 = vld [vmem:[%s10585_s1 + $0xd60] sm:$0xff]  }
 0x186   :  { %v7364_v10 = vadd.f32 %v7363_v8, %v7362_v0  ;;  %v7385_v11 = vpop.f32.mrf.mxu1  ;;  %7678 = vmatprep.subr.bf16.mxu1 %v8409_v21  ;;  %5916 = vmatprep.mubr.bf16.mxu0 %v6526_v53  ;;  %v8446_v8 = vld [vmem:[%s10585_s1 + $0xd30] sm:$0xff]   ;;  %v8455_v18 = vld [vmem:[%s10585_s1 + $0xda0] sm:$0xff]   ;;  %v8458_v21 = vld [vmem:[%s10585_s1 + $0xd18] sm:$0xff]  }
 0x187   :  { %v7386_v13 = vadd.f32 %v7385_v11, %v7384_v4  ;;  %v7365_v14 = vpop.f32.mrf.mxu0  ;;  %5956 = vmatprep.mubr.bf16.mxu1 %v6528_v55  ;;  %v8444_v4 = vld [vmem:[%s10585_s1 + $0xd70] sm:$0xff]   ;;  %v8448_v11 = vld [vmem:[%s10585_s1 + $0xd68] sm:$0xff]  }
 0x188   :  { %v5359_v16 = vadd.f32 %v7364_v10, %v9811_v36  ;;  %v7387_v17 = vpop.f32.mrf.mxu1  ;;  %7657 = vmatpush3.bf16.msra.mxu0 %v8410_v23  ;;  %v8423_v36 = vld [vmem:[%s10585_s1 + $0xc98] sm:$0xff]   ;;  %v8447_v10 = vld [vmem:[%s10585_s1 + $0xdb0] sm:$0xff]   ;;  %v8451_v14 = vld [vmem:[%s10585_s1 + $0xda8] sm:$0xff]  }
 0x189   :  { %v7366_v19 = vpop.f32.mrf.mxu0  ;;  %7679 = vmatpush3.bf16.msra.mxu1 %v8411_v24  ;;  %7658 = vmatprep.subr.bf16.mxu0 %v8412_v25  ;;  %v8454_v17 = vld [vmem:[%s10585_s1 + $0xd20] sm:$0xff]   ;;  %v8460_v23 = vld [vmem:[%s10585_s1 + $0xd50] sm:$0xff]  }
 0x18a   :  { %v9913_v20 = vadd.f32 %v7386_v13, %v5359_v16  ;;  %v7388_v22 = vpop.f32.mrf.mxu1  ;;  %7680 = vmatprep.subr.bf16.mxu1 %v8413_v26  ;;  %v8450_v13 = vld [vmem:[%s10585_s1 + $0xd28] sm:$0xff]   ;;  %v8453_v16 = vld [vmem:[%s10585_s1 + $0xde0] sm:$0xff]   ;;  %v8456_v19 = vld [vmem:[%s10585_s1 + $0xd58] sm:$0xff]  }
 0x18b   :  { %v8459_v22 = vld [vmem:[%s10585_s1 + $0xd98] sm:$0xff]   ;;  %v8461_v24 = vld [vmem:[%s10585_s1 + $0xdd0] sm:$0xff]  }
 0x18c   :  { %7659 = vmatpush3.bf16.msra.mxu0 %v8414_v27  ;;  %v8462_v25 = vld [vmem:[%s10585_s1 + $0xd10] sm:$0xff]   ;;  %v8464_v27 = vld [vmem:[%s10585_s1 + $0xd48] sm:$0xff]  }
 0x18d   :  { %7681 = vmatpush3.bf16.msra.mxu1 %v8415_v28  ;;  %7660 = vmatprep.subr.bf16.mxu0 %v8416_v29  ;;  %v8463_v26 = vld [vmem:[%s10585_s1 + $0xd90] sm:$0xff]   ;;  %v8465_v28 = vld [vmem:[%s10585_s1 + $0xdc8] sm:$0xff]  }
 0x18e   :  { %7682 = vmatprep.subr.bf16.mxu1 %v8417_v30  ;;  %v8466_v29 = vld [vmem:[%s10585_s1 + $0xd08] sm:$0xff]   ;;  %v8481_v55 = vld [vmem:[%s10585_s1 + $0xef0] sm:$0xff]  }
 0x18f   :  { %v8467_v30 = vld [vmem:[%s10585_s1 + $0xd88] sm:$0xff]  }
 0x190   :  { %7661 = vmatpush3.bf16.msra.mxu0 %v8418_v31  ;;  %v8468_v31 = vld [vmem:[%s10585_s1 + $0xd40] sm:$0xff]  }
 0x191   :  { %7683 = vmatpush3.bf16.msra.mxu1 %v8419_v32  ;;  %7662 = vmatprep.subr.bf16.mxu0 %v8420_v33  ;;  %v8469_v32 = vld [vmem:[%s10585_s1 + $0xdc0] sm:$0xff]  }
 0x192   :  { %7684 = vmatprep.subr.bf16.mxu1 %v8421_v34  ;;  %v8470_v33 = vld [vmem:[%s10585_s1 + $0xd00] sm:$0xff]  }
 0x193   :  { %v8471_v34 = vld [vmem:[%s10585_s1 + $0xd80] sm:$0xff]  }
 0x194   :  { %7663 = vmatpush3.bf16.msra.mxu0 %v8422_v35  ;;  %v47_v35 = vld [vmem:[%s10586_s0 + $0xd0] sm:$0xff] }
 0x195   :  { %7685 = vmatpush3.bf16.msra.mxu1 %v8423_v36  ;;  %7664 = vmatprep.subr.bf16.mxu0 %v8424_v37  ;;  %v48_v36 = vld [vmem:[%s10586_s0 + $0xd8] sm:$0xff] }
 0x196   :  { %7686 = vmatprep.subr.bf16.mxu1 %v8425_v38  ;;  %v6529_v38 = vcombine.low %v47_v35, %v47_v35 }
 0x198   :  { %7665 = vmatpush3.bf16.msra.mxu0 %v8426_v39  ;;  %v6530_v39 = vcombine.high %v47_v35, %v47_v35 }
 0x199   :  { %7687 = vmatpush3.bf16.msra.mxu1 %v8427_v40  ;;  %7666 = vmatprep.subr.bf16.mxu0 %v8428_v41  ;;  %v6531_v40 = vcombine.low %v48_v36, %v48_v36 }
 0x19a   :  { %7688 = vmatprep.subr.bf16.mxu1 %v8429_v42  ;;  %v8476_v42 = vld [vmem:[%s10585_s1 + $0xe78] sm:$0xff]  }
 0x19c   :  { %7667 = vmatpush3.bf16.msra.mxu0 %v8430_v43  ;;  %v6532_v43 = vcombine.high %v48_v36, %v48_v36  ;;  %v8515_v36 = vld [vmem:[%s10585_s1 + $0xfb8] sm:$0xff]  }
 0x19d   :  { %7689 = vmatpush3.bf16.msra.mxu1 %v8431_v44  ;;  %7668 = vmatprep.subr.bf16.mxu0 %v8432_v45  ;;  %v8477_v44 = vld [vmem:[%s10585_s1 + $0xef8] sm:$0xff]  }
 0x19e   :  { %7690 = vmatprep.subr.bf16.mxu1 %v8433_v46  ;;  %v8478_v46 = vld [vmem:[%s10585_s1 + $0xe38] sm:$0xff]  }
 0x1a0   :  { %7669 = vmatpush3.bf16.msra.mxu0 %v8434_v47 }
 0x1a1   :  { %7691 = vmatpush3.bf16.msra.mxu1 %v8435_v48  ;;  %7698 = vmatprep.subr.bf16.mxu0 %v8440_v57 }
 0x1a2   :  { %7720 = vmatprep.subr.bf16.mxu1 %v8441_v58  ;;  %v8482_v58 = vld [vmem:[%s10585_s1 + $0xe30] sm:$0xff]  }
 0x1a3   :  { %v7406_v51 = vpop.f32.mrf.mxu0  ;;  %5917 = vmatmul.mubr.bf16.vlgmr.msra.gmra.mxu0 %v6525_v52 }
 0x1a4   :  { %v7428_v56 = vpop.f32.mrf.mxu1  ;;  %5957 = vmatmul.mubr.bf16.vlgmr.msra.gmra.mxu1 %v6527_v54  ;;  %7699 = vmatpush3.bf16.msra.mxu0 %v8442_v60  ;;  %v8480_v54 = vld [vmem:[%s10585_s1 + $0xe70] sm:$0xff]  }
 0x1a5   :  { %v7407_v59 = vpop.f32.mrf.mxu0  ;;  %7721 = vmatpush3.bf16.msra.mxu1 %v8443_v63  ;;  %7700 = vmatprep.subr.bf16.mxu0 %v8444_v4  ;;  %v8483_v60 = vld [vmem:[%s10585_s1 + $0xeb0] sm:$0xff]   ;;  %v8486_v63 = vld [vmem:[%s10585_s1 + $0xe28] sm:$0xff]   ;;  %v8491_v4 = vld [vmem:[%s10585_s1 + $0xea0] sm:$0xff]  }
 0x1a6   :  { %v7408_v61 = vadd.f32 %v7407_v59, %v7406_v51  ;;  %v7429_v62 = vpop.f32.mrf.mxu1  ;;  %7722 = vmatprep.subr.bf16.mxu1 %v8445_v5  ;;  %5996 = vmatprep.mubr.bf16.mxu0 %v6530_v39  ;;  %v8492_v5 = vld [vmem:[%s10585_s1 + $0xe58] sm:$0xff]  }
 0x1a7   :  { %v7430_v0 = vadd.f32 %v7429_v62, %v7428_v56  ;;  %v7409_v1 = vpop.f32.mrf.mxu0  ;;  %6036 = vmatprep.mubr.bf16.mxu1 %v6532_v43  ;;  %v8485_v62 = vld [vmem:[%s10585_s1 + $0xee8] sm:$0xff]  }
 0x1a8   :  { %v5439_v2 = vadd.f32 %v7408_v61, %v9913_v20  ;;  %v7431_v3 = vpop.f32.mrf.mxu1  ;;  %7701 = vmatpush3.bf16.msra.mxu0 %v8446_v8  ;;  %v8457_v20 = vld [vmem:[%s10585_s1 + $0xdd8] sm:$0xff]   ;;  %v8484_v61 = vld [vmem:[%s10585_s1 + $0xe68] sm:$0xff]   ;;  %v8488_v1 = vld [vmem:[%s10585_s1 + $0xe60] sm:$0xff]  }
 0x1a9   :  { %v7410_v6 = vpop.f32.mrf.mxu0  ;;  %7723 = vmatpush3.bf16.msra.mxu1 %v8447_v10  ;;  %7702 = vmatprep.subr.bf16.mxu0 %v8448_v11  ;;  %v8490_v3 = vld [vmem:[%s10585_s1 + $0xe20] sm:$0xff]   ;;  %v8495_v8 = vld [vmem:[%s10585_s1 + $0xe98] sm:$0xff]   ;;  %v8497_v10 = vld [vmem:[%s10585_s1 + $0xed0] sm:$0xff]  }
 0x1aa   :  { %v10021_v7 = vadd.f32 %v7430_v0, %v5439_v2  ;;  %v7432_v9 = vpop.f32.mrf.mxu1  ;;  %7724 = vmatprep.subr.bf16.mxu1 %v8449_v12  ;;  %v8487_v0 = vld [vmem:[%s10585_s1 + $0xea8] sm:$0xff]   ;;  %v8489_v2 = vld [vmem:[%s10585_s1 + $0xee0] sm:$0xff]   ;;  %v8493_v6 = vld [vmem:[%s10585_s1 + $0xed8] sm:$0xff]  }
 0x1ab   :  { %v8496_v9 = vld [vmem:[%s10585_s1 + $0xe50] sm:$0xff]  }
 0x1ac   :  { %7703 = vmatpush3.bf16.msra.mxu0 %v8450_v13  ;;  %v8498_v11 = vld [vmem:[%s10585_s1 + $0xe10] sm:$0xff]   ;;  %v8500_v13 = vld [vmem:[%s10585_s1 + $0xe48] sm:$0xff]  }
 0x1ad   :  { %7725 = vmatpush3.bf16.msra.mxu1 %v8451_v14  ;;  %7704 = vmatprep.subr.bf16.mxu0 %v8452_v15  ;;  %v8499_v12 = vld [vmem:[%s10585_s1 + $0xe90] sm:$0xff]   ;;  %v8501_v14 = vld [vmem:[%s10585_s1 + $0xec8] sm:$0xff]  }
 0x1ae   :  { %7726 = vmatprep.subr.bf16.mxu1 %v8453_v16  ;;  %v8502_v15 = vld [vmem:[%s10585_s1 + $0xe08] sm:$0xff]  }
 0x1af   :  { %v8503_v16 = vld [vmem:[%s10585_s1 + $0xe88] sm:$0xff]  }
 0x1b0   :  { %7705 = vmatpush3.bf16.msra.mxu0 %v8454_v17  ;;  %v8504_v17 = vld [vmem:[%s10585_s1 + $0xe40] sm:$0xff]  }
 0x1b1   :  { %7727 = vmatpush3.bf16.msra.mxu1 %v8455_v18  ;;  %7706 = vmatprep.subr.bf16.mxu0 %v8456_v19  ;;  %v8505_v18 = vld [vmem:[%s10585_s1 + $0xec0] sm:$0xff]  }
 0x1b2   :  { %7728 = vmatprep.subr.bf16.mxu1 %v8457_v20  ;;  %v8506_v19 = vld [vmem:[%s10585_s1 + $0xe00] sm:$0xff]  }
 0x1b3   :  { %v8507_v20 = vld [vmem:[%s10585_s1 + $0xe80] sm:$0xff]  }
 0x1b4   :  { %7707 = vmatpush3.bf16.msra.mxu0 %v8458_v21  ;;  %v49_v21 = vld [vmem:[%s10586_s0 + $0xe0] sm:$0xff] }
 0x1b5   :  { %7729 = vmatpush3.bf16.msra.mxu1 %v8459_v22  ;;  %7708 = vmatprep.subr.bf16.mxu0 %v8460_v23  ;;  %v6533_v22 = vcombine.low %v49_v21, %v49_v21  ;;  %v6534_v23 = vcombine.high %v49_v21, %v49_v21  ;;  %v8551_v21 = vld [vmem:[%s10585_s1 + $0x10b8] sm:$0xff]  }
 0x1b6   :  { %7730 = vmatprep.subr.bf16.mxu1 %v8461_v24  ;;  %v50_v24 = vld [vmem:[%s10586_s0 + $0xe8] sm:$0xff] }
 0x1b8   :  { %7709 = vmatpush3.bf16.msra.mxu0 %v8462_v25 }
 0x1b9   :  { %7731 = vmatpush3.bf16.msra.mxu1 %v8463_v26  ;;  %7710 = vmatprep.subr.bf16.mxu0 %v8464_v27  ;;  %v6535_v27 = vcombine.low %v50_v24, %v50_v24 }
 0x1ba   :  { %7732 = vmatprep.subr.bf16.mxu1 %v8465_v28  ;;  %v6536_v28 = vcombine.high %v50_v24, %v50_v24 }
 0x1bc   :  { %7711 = vmatpush3.bf16.msra.mxu0 %v8466_v29  ;;  %v8512_v29 = vld [vmem:[%s10585_s1 + $0xf78] sm:$0xff]  }
 0x1bd   :  { %7733 = vmatpush3.bf16.msra.mxu1 %v8467_v30  ;;  %7712 = vmatprep.subr.bf16.mxu0 %v8468_v31  ;;  %v8513_v30 = vld [vmem:[%s10585_s1 + $0xff8] sm:$0xff]  }
 0x1be   :  { %7734 = vmatprep.subr.bf16.mxu1 %v8469_v32 }
 0x1c0   :  { %7713 = vmatpush3.bf16.msra.mxu0 %v8470_v33  ;;  %v8514_v33 = vld [vmem:[%s10585_s1 + $0xf38] sm:$0xff]  }
 0x1c1   :  { %7735 = vmatpush3.bf16.msra.mxu1 %v8471_v34  ;;  %7742 = vmatprep.subr.bf16.mxu0 %v8476_v42 }
 0x1c2   :  { %7764 = vmatprep.subr.bf16.mxu1 %v8477_v44 }
 0x1c3   :  { %v7450_v37 = vpop.f32.mrf.mxu0  ;;  %5997 = vmatmul.mubr.bf16.vlgmr.msra.gmra.mxu0 %v6529_v38 }
 0x1c4   :  { %v7472_v41 = vpop.f32.mrf.mxu1  ;;  %6037 = vmatmul.mubr.bf16.vlgmr.msra.gmra.mxu1 %v6531_v40  ;;  %7743 = vmatpush3.bf16.msra.mxu0 %v8478_v46  ;;  %v8516_v40 = vld [vmem:[%s10585_s1 + $0xf70] sm:$0xff]  }
 0x1c5   :  { %v7451_v45 = vpop.f32.mrf.mxu0  ;;  %7765 = vmatpush3.bf16.msra.mxu1 %v8479_v49  ;;  %7744 = vmatprep.subr.bf16.mxu0 %v8480_v54  ;;  %v8519_v46 = vld [vmem:[%s10585_s1 + $0xfb0] sm:$0xff]   ;;  %v8522_v49 = vld [vmem:[%s10585_s1 + $0xf28] sm:$0xff]   ;;  %v8527_v54 = vld [vmem:[%s10585_s1 + $0xfa0] sm:$0xff]  }
 0x1c6   :  { %v7452_v47 = vadd.f32 %v7451_v45, %v7450_v37  ;;  %v7473_v48 = vpop.f32.mrf.mxu1  ;;  %7766 = vmatprep.subr.bf16.mxu1 %v8481_v55  ;;  %6076 = vmatprep.mubr.bf16.mxu0 %v6534_v23  ;;  %v8518_v45 = vld [vmem:[%s10585_s1 + $0xf30] sm:$0xff]   ;;  %v8528_v55 = vld [vmem:[%s10585_s1 + $0xf58] sm:$0xff]  }
 0x1c7   :  { %v7474_v50 = vadd.f32 %v7473_v48, %v7472_v41  ;;  %v7453_v51 = vpop.f32.mrf.mxu0  ;;  %6116 = vmatprep.mubr.bf16.mxu1 %v6536_v28  ;;  %v8517_v41 = vld [vmem:[%s10585_s1 + $0xff0] sm:$0xff]   ;;  %v8521_v48 = vld [vmem:[%s10585_s1 + $0xfe8] sm:$0xff]  }
 0x1c8   :  { %v5519_v52 = vadd.f32 %v7452_v47, %v10021_v7  ;;  %v7475_v53 = vpop.f32.mrf.mxu1  ;;  %7745 = vmatpush3.bf16.msra.mxu0 %v8482_v58  ;;  %v8494_v7 = vld [vmem:[%s10585_s1 + $0xe18] sm:$0xff]   ;;  %v8520_v47 = vld [vmem:[%s10585_s1 + $0xf68] sm:$0xff]   ;;  %v8524_v51 = vld [vmem:[%s10585_s1 + $0xf60] sm:$0xff]  }
 0x1c9   :  { %v7454_v56 = vpop.f32.mrf.mxu0  ;;  %7767 = vmatpush3.bf16.msra.mxu1 %v8483_v60  ;;  %7746 = vmatprep.subr.bf16.mxu0 %v8484_v61  ;;  %v8526_v53 = vld [vmem:[%s10585_s1 + $0xf20] sm:$0xff]   ;;  %v8531_v58 = vld [vmem:[%s10585_s1 + $0xf98] sm:$0xff]   ;;  %v8533_v60 = vld [vmem:[%s10585_s1 + $0xfd0] sm:$0xff]  }
 0x1ca   :  { %v10126_v57 = vadd.f32 %v7474_v50, %v5519_v52  ;;  %v7476_v59 = vpop.f32.mrf.mxu1  ;;  %7768 = vmatprep.subr.bf16.mxu1 %v8485_v62  ;;  %v8523_v50 = vld [vmem:[%s10585_s1 + $0xfa8] sm:$0xff]   ;;  %v8525_v52 = vld [vmem:[%s10585_s1 + $0xfe0] sm:$0xff]   ;;  %v8529_v56 = vld [vmem:[%s10585_s1 + $0xfd8] sm:$0xff]  }
 0x1cb   :  { %v8532_v59 = vld [vmem:[%s10585_s1 + $0xf50] sm:$0xff]  }
 0x1cc   :  { %7747 = vmatpush3.bf16.msra.mxu0 %v8486_v63  ;;  %v8534_v61 = vld [vmem:[%s10585_s1 + $0xf10] sm:$0xff]   ;;  %v8536_v63 = vld [vmem:[%s10585_s1 + $0xf48] sm:$0xff]  }
 0x1cd   :  { %7769 = vmatpush3.bf16.msra.mxu1 %v8487_v0  ;;  %7748 = vmatprep.subr.bf16.mxu0 %v8488_v1  ;;  %v8535_v62 = vld [vmem:[%s10585_s1 + $0xf90] sm:$0xff]   ;;  %v8537_v0 = vld [vmem:[%s10585_s1 + $0xfc8] sm:$0xff]  }
 0x1ce   :  { %7770 = vmatprep.subr.bf16.mxu1 %v8489_v2  ;;  %v8538_v1 = vld [vmem:[%s10585_s1 + $0xf08] sm:$0xff]  }
 0x1cf   :  { %v8539_v2 = vld [vmem:[%s10585_s1 + $0xf88] sm:$0xff]  }
 0x1d0   :  { %7749 = vmatpush3.bf16.msra.mxu0 %v8490_v3  ;;  %v8540_v3 = vld [vmem:[%s10585_s1 + $0xf40] sm:$0xff]  }
 0x1d1   :  { %7771 = vmatpush3.bf16.msra.mxu1 %v8491_v4  ;;  %7750 = vmatprep.subr.bf16.mxu0 %v8492_v5  ;;  %v8541_v4 = vld [vmem:[%s10585_s1 + $0xfc0] sm:$0xff]  }
 0x1d2   :  { %7772 = vmatprep.subr.bf16.mxu1 %v8493_v6  ;;  %v8542_v5 = vld [vmem:[%s10585_s1 + $0xf00] sm:$0xff]  }
 0x1d3   :  { %v8543_v6 = vld [vmem:[%s10585_s1 + $0xf80] sm:$0xff]  }
 0x1d4   :  { %7751 = vmatpush3.bf16.msra.mxu0 %v8494_v7  ;;  %v51_v7 = vld [vmem:[%s10586_s0 + $0xf0] sm:$0xff] }
 0x1d5   :  { %7773 = vmatpush3.bf16.msra.mxu1 %v8495_v8  ;;  %7752 = vmatprep.subr.bf16.mxu0 %v8496_v9  ;;  %v52_v8 = vld [vmem:[%s10586_s0 + $0xf8] sm:$0xff] }
 0x1d6   :  { %7774 = vmatprep.subr.bf16.mxu1 %v8497_v10  ;;  %v6537_v10 = vcombine.low %v51_v7, %v51_v7 }
 0x1d8   :  { %7753 = vmatpush3.bf16.msra.mxu0 %v8498_v11  ;;  %v6538_v11 = vcombine.high %v51_v7, %v51_v7  ;;  %v8587_v7 = vld [vmem:[%s10585_s1 + $0x11b8] sm:$0xff]  }
 0x1d9   :  { %7775 = vmatpush3.bf16.msra.mxu1 %v8499_v12  ;;  %7754 = vmatprep.subr.bf16.mxu0 %v8500_v13  ;;  %v6539_v12 = vcombine.low %v52_v8, %v52_v8  ;;  %v6540_v13 = vcombine.high %v52_v8, %v52_v8 }
 0x1da   :  { %7776 = vmatprep.subr.bf16.mxu1 %v8501_v14 }
 0x1dc   :  { %7755 = vmatpush3.bf16.msra.mxu0 %v8502_v15  ;;  %v8548_v15 = vld [vmem:[%s10585_s1 + $0x1078] sm:$0xff]  }
 0x1dd   :  { %7777 = vmatpush3.bf16.msra.mxu1 %v8503_v16  ;;  %7756 = vmatprep.subr.bf16.mxu0 %v8504_v17  ;;  %v8549_v16 = vld [vmem:[%s10585_s1 + $0x10f8] sm:$0xff]  }
 0x1de   :  { %7778 = vmatprep.subr.bf16.mxu1 %v8505_v18  ;;  %v8550_v18 = vld [vmem:[%s10585_s1 + $0x1038] sm:$0xff]  }
 0x1e0   :  { %7757 = vmatpush3.bf16.msra.mxu0 %v8506_v19 }
 0x1e1   :  { %7779 = vmatpush3.bf16.msra.mxu1 %v8507_v20  ;;  %7786 = vmatprep.subr.bf16.mxu0 %v8512_v29 }
 0x1e2   :  { %7808 = vmatprep.subr.bf16.mxu1 %v8513_v30  ;;  %v8554_v30 = vld [vmem:[%s10585_s1 + $0x1030] sm:$0xff]  }
 0x1e3   :  { %v7494_v25 = vpop.f32.mrf.mxu0  ;;  %6077 = vmatmul.mubr.bf16.vlgmr.msra.gmra.mxu0 %v6533_v22 }
 0x1e4   :  { %v7516_v26 = vpop.f32.mrf.mxu1  ;;  %6117 = vmatmul.mubr.bf16.vlgmr.msra.gmra.mxu1 %v6535_v27  ;;  %7787 = vmatpush3.bf16.msra.mxu0 %v8514_v33  ;;  %v8553_v27 = vld [vmem:[%s10585_s1 + $0x10f0] sm:$0xff]   ;;  %v8556_v33 = vld [vmem:[%s10585_s1 + $0x1068] sm:$0xff]  }
 0x1e5   :  { %v7495_v31 = vpop.f32.mrf.mxu0  ;;  %7809 = vmatpush3.bf16.msra.mxu1 %v8515_v36  ;;  %7788 = vmatprep.subr.bf16.mxu0 %v8516_v40  ;;  %v8559_v36 = vld [vmem:[%s10585_s1 + $0x10a8] sm:$0xff]   ;;  %v8563_v40 = vld [vmem:[%s10585_s1 + $0x10a0] sm:$0xff]  }
 0x1e6   :  { %v7517_v32 = vpop.f32.mrf.mxu1  ;;  %v7496_v34 = vadd.f32 %v7495_v31, %v7494_v25  ;;  %7810 = vmatprep.subr.bf16.mxu1 %v8517_v41  ;;  %6156 = vmatprep.mubr.bf16.mxu0 %v6538_v11  ;;  %v8564_v41 = vld [vmem:[%s10585_s1 + $0x1058] sm:$0xff]  }
 0x1e7   :  { %v7518_v35 = vadd.f32 %v7517_v32, %v7516_v26  ;;  %v7497_v37 = vpop.f32.mrf.mxu0  ;;  %6196 = vmatprep.mubr.bf16.mxu1 %v6540_v13  ;;  %v8552_v26 = vld [vmem:[%s10585_s1 + $0x1070] sm:$0xff]  }
 0x1e8   :  { %v7519_v38 = vpop.f32.mrf.mxu1  ;;  %v5599_v39 = vadd.f32 %v7496_v34, %v10126_v57  ;;  %7789 = vmatpush3.bf16.msra.mxu0 %v8518_v45  ;;  %v8530_v57 = vld [vmem:[%s10585_s1 + $0xf18] sm:$0xff]   ;;  %v8555_v32 = vld [vmem:[%s10585_s1 + $0x10b0] sm:$0xff]   ;;  %v8557_v34 = vld [vmem:[%s10585_s1 + $0x10e8] sm:$0xff]  }
 0x1e9   :  { %v7498_v42 = vpop.f32.mrf.mxu0  ;;  %7811 = vmatpush3.bf16.msra.mxu1 %v8519_v46  ;;  %7790 = vmatprep.subr.bf16.mxu0 %v8520_v47  ;;  %v8560_v37 = vld [vmem:[%s10585_s1 + $0x1060] sm:$0xff]   ;;  %v8568_v45 = vld [vmem:[%s10585_s1 + $0x1050] sm:$0xff]  }
 0x1ea   :  { %v7520_v43 = vpop.f32.mrf.mxu1  ;;  %v10231_v44 = vadd.f32 %v7518_v35, %v5599_v39  ;;  %7812 = vmatprep.subr.bf16.mxu1 %v8521_v48  ;;  %v8558_v35 = vld [vmem:[%s10585_s1 + $0x1028] sm:$0xff]   ;;  %v8561_v38 = vld [vmem:[%s10585_s1 + $0x10e0] sm:$0xff]   ;;  %v8565_v42 = vld [vmem:[%s10585_s1 + $0x10d8] sm:$0xff]  }
 0x1eb   :  { %v8562_v39 = vld [vmem:[%s10585_s1 + $0x1020] sm:$0xff]   ;;  %v8566_v43 = vld [vmem:[%s10585_s1 + $0x1018] sm:$0xff]   ;;  %v8569_v46 = vld [vmem:[%s10585_s1 + $0x10d0] sm:$0xff]  }
 0x1ec   :  { %7791 = vmatpush3.bf16.msra.mxu0 %v8522_v49  ;;  %v8570_v47 = vld [vmem:[%s10585_s1 + $0x1010] sm:$0xff]   ;;  %v8572_v49 = vld [vmem:[%s10585_s1 + $0x1048] sm:$0xff]  }
 0x1ed   :  { %7813 = vmatpush3.bf16.msra.mxu1 %v8523_v50  ;;  %7792 = vmatprep.subr.bf16.mxu0 %v8524_v51  ;;  %v8571_v48 = vld [vmem:[%s10585_s1 + $0x1090] sm:$0xff]   ;;  %v8573_v50 = vld [vmem:[%s10585_s1 + $0x10c8] sm:$0xff]  }
 0x1ee   :  { %7814 = vmatprep.subr.bf16.mxu1 %v8525_v52  ;;  %v8574_v51 = vld [vmem:[%s10585_s1 + $0x1008] sm:$0xff]   ;;  %v8589_v13 = vld [vmem:[%s10585_s1 + $0x11f0] sm:$0xff]  }
 0x1ef   :  { %v8575_v52 = vld [vmem:[%s10585_s1 + $0x1088] sm:$0xff]  }
 0x1f0   :  { %7793 = vmatpush3.bf16.msra.mxu0 %v8526_v53  ;;  %v8576_v53 = vld [vmem:[%s10585_s1 + $0x1040] sm:$0xff]  }
 0x1f1   :  { %7815 = vmatpush3.bf16.msra.mxu1 %v8527_v54  ;;  %7794 = vmatprep.subr.bf16.mxu0 %v8528_v55  ;;  %v8577_v54 = vld [vmem:[%s10585_s1 + $0x10c0] sm:$0xff]  }
 0x1f2   :  { %7816 = vmatprep.subr.bf16.mxu1 %v8529_v56  ;;  %v8578_v55 = vld [vmem:[%s10585_s1 + $0x1000] sm:$0xff]  }
 0x1f3   :  { %v8579_v56 = vld [vmem:[%s10585_s1 + $0x1080] sm:$0xff]  }
 0x1f4   :  { %7795 = vmatpush3.bf16.msra.mxu0 %v8530_v57  ;;  %v53_v57 = vld [vmem:[%s10586_s0 + $0x100] sm:$0xff] }
 0x1f5   :  { %7817 = vmatpush3.bf16.msra.mxu1 %v8531_v58  ;;  %7796 = vmatprep.subr.bf16.mxu0 %v8532_v59  ;;  %v54_v58 = vld [vmem:[%s10586_s0 + $0x108] sm:$0xff] }
 0x1f6   :  { %7818 = vmatprep.subr.bf16.mxu1 %v8533_v60  ;;  %v6541_v60 = vcombine.low %v53_v57, %v53_v57 }
 0x1f8   :  { %7797 = vmatpush3.bf16.msra.mxu0 %v8534_v61  ;;  %v6542_v61 = vcombine.high %v53_v57, %v53_v57 }
 0x1f9   :  { %7819 = vmatpush3.bf16.msra.mxu1 %v8535_v62  ;;  %7798 = vmatprep.subr.bf16.mxu0 %v8536_v63  ;;  %v6543_v62 = vcombine.low %v54_v58, %v54_v58 }
 0x1fa   :  { %7820 = vmatprep.subr.bf16.mxu1 %v8537_v0  ;;  %v8584_v0 = vld [vmem:[%s10585_s1 + $0x1178] sm:$0xff]  }
 0x1fc   :  { %7799 = vmatpush3.bf16.msra.mxu0 %v8538_v1  ;;  %v6544_v1 = vcombine.high %v54_v58, %v54_v58 }
 0x1fd   :  { %7821 = vmatpush3.bf16.msra.mxu1 %v8539_v2  ;;  %7800 = vmatprep.subr.bf16.mxu0 %v8540_v3  ;;  %v8585_v2 = vld [vmem:[%s10585_s1 + $0x11f8] sm:$0xff]  }
 0x1fe   :  { %7822 = vmatprep.subr.bf16.mxu1 %v8541_v4  ;;  %v8586_v4 = vld [vmem:[%s10585_s1 + $0x1138] sm:$0xff]  }
 0x200   :  { %7801 = vmatpush3.bf16.msra.mxu0 %v8542_v5 }
 0x201   :  { %7823 = vmatpush3.bf16.msra.mxu1 %v8543_v6  ;;  %7830 = vmatprep.subr.bf16.mxu0 %v8548_v15 }
 0x202   :  { %7852 = vmatprep.subr.bf16.mxu1 %v8549_v16  ;;  %v8590_v16 = vld [vmem:[%s10585_s1 + $0x1130] sm:$0xff]  }
 0x203   :  { %v7538_v9 = vpop.f32.mrf.mxu0  ;;  %6157 = vmatmul.mubr.bf16.vlgmr.msra.gmra.mxu0 %v6537_v10 }
 0x204   :  { %v7560_v14 = vpop.f32.mrf.mxu1  ;;  %6197 = vmatmul.mubr.bf16.vlgmr.msra.gmra.mxu1 %v6539_v12  ;;  %7831 = vmatpush3.bf16.msra.mxu0 %v8550_v18  ;;  %v8588_v12 = vld [vmem:[%s10585_s1 + $0x1170] sm:$0xff]  }
 0x205   :  { %v7539_v17 = vpop.f32.mrf.mxu0  ;;  %7853 = vmatpush3.bf16.msra.mxu1 %v8551_v21  ;;  %7832 = vmatprep.subr.bf16.mxu0 %v8552_v26  ;;  %v8591_v18 = vld [vmem:[%s10585_s1 + $0x11b0] sm:$0xff]   ;;  %v8594_v21 = vld [vmem:[%s10585_s1 + $0x1128] sm:$0xff]   ;;  %v8599_v26 = vld [vmem:[%s10585_s1 + $0x11a0] sm:$0xff]  }
 0x206   :  { %v7540_v19 = vadd.f32 %v7539_v17, %v7538_v9  ;;  %v7561_v20 = vpop.f32.mrf.mxu1  ;;  %7854 = vmatprep.subr.bf16.mxu1 %v8553_v27  ;;  %6236 = vmatprep.mubr.bf16.mxu0 %v6542_v61  ;;  %v8600_v27 = vld [vmem:[%s10585_s1 + $0x1158] sm:$0xff]  }
 0x207   :  { %v7562_v22 = vadd.f32 %v7561_v20, %v7560_v14  ;;  %v7541_v23 = vpop.f32.mrf.mxu0  ;;  %6276 = vmatprep.mubr.bf16.mxu1 %v6544_v1  ;;  %v8593_v20 = vld [vmem:[%s10585_s1 + $0x11e8] sm:$0xff]  }
 0x208   :  { %v5679_v24 = vadd.f32 %v7540_v19, %v10231_v44  ;;  %v7563_v25 = vpop.f32.mrf.mxu1  ;;  %7833 = vmatpush3.bf16.msra.mxu0 %v8554_v30  ;;  %v8567_v44 = vld [vmem:[%s10585_s1 + $0x1098] sm:$0xff]   ;;  %v8592_v19 = vld [vmem:[%s10585_s1 + $0x1168] sm:$0xff]   ;;  %v8596_v23 = vld [vmem:[%s10585_s1 + $0x1160] sm:$0xff]  }
 0x209   :  { %v7542_v28 = vpop.f32.mrf.mxu0  ;;  %7855 = vmatpush3.bf16.msra.mxu1 %v8555_v32  ;;  %7834 = vmatprep.subr.bf16.mxu0 %v8556_v33  ;;  %v8598_v25 = vld [vmem:[%s10585_s1 + $0x1120] sm:$0xff]   ;;  %v8603_v30 = vld [vmem:[%s10585_s1 + $0x1198] sm:$0xff]   ;;  %v8605_v32 = vld [vmem:[%s10585_s1 + $0x11d0] sm:$0xff]  }
 0x20a   :  { %v10336_v29 = vadd.f32 %v7562_v22, %v5679_v24  ;;  %v7564_v31 = vpop.f32.mrf.mxu1  ;;  %7856 = vmatprep.subr.bf16.mxu1 %v8557_v34  ;;  %v8595_v22 = vld [vmem:[%s10585_s1 + $0x11a8] sm:$0xff]   ;;  %v8597_v24 = vld [vmem:[%s10585_s1 + $0x11e0] sm:$0xff]   ;;  %v8601_v28 = vld [vmem:[%s10585_s1 + $0x11d8] sm:$0xff]  }
 0x20b   :  { %v8604_v31 = vld [vmem:[%s10585_s1 + $0x1150] sm:$0xff]  }
 0x20c   :  { %7835 = vmatpush3.bf16.msra.mxu0 %v8558_v35  ;;  %v8606_v33 = vld [vmem:[%s10585_s1 + $0x1110] sm:$0xff]   ;;  %v8608_v35 = vld [vmem:[%s10585_s1 + $0x1148] sm:$0xff]  }
 0x20d   :  { %7857 = vmatpush3.bf16.msra.mxu1 %v8559_v36  ;;  %7836 = vmatprep.subr.bf16.mxu0 %v8560_v37  ;;  %v8607_v34 = vld [vmem:[%s10585_s1 + $0x1190] sm:$0xff]   ;;  %v8609_v36 = vld [vmem:[%s10585_s1 + $0x11c8] sm:$0xff]  }
 0x20e   :  { %7858 = vmatprep.subr.bf16.mxu1 %v8561_v38  ;;  %v8610_v37 = vld [vmem:[%s10585_s1 + $0x1108] sm:$0xff]  }
 0x20f   :  { %v8611_v38 = vld [vmem:[%s10585_s1 + $0x1188] sm:$0xff]  }
 0x210   :  { %7837 = vmatpush3.bf16.msra.mxu0 %v8562_v39  ;;  %v8612_v39 = vld [vmem:[%s10585_s1 + $0x1140] sm:$0xff]  }
 0x211   :  { %7859 = vmatpush3.bf16.msra.mxu1 %v8563_v40  ;;  %7838 = vmatprep.subr.bf16.mxu0 %v8564_v41  ;;  %v8613_v40 = vld [vmem:[%s10585_s1 + $0x11c0] sm:$0xff]  }
 0x212   :  { %7860 = vmatprep.subr.bf16.mxu1 %v8565_v42  ;;  %v8614_v41 = vld [vmem:[%s10585_s1 + $0x1100] sm:$0xff]  }
 0x213   :  { %v8615_v42 = vld [vmem:[%s10585_s1 + $0x1180] sm:$0xff]  }
 0x214   :  { %7839 = vmatpush3.bf16.msra.mxu0 %v8566_v43  ;;  %v55_v43 = vld [vmem:[%s10586_s0 + $0x110] sm:$0xff] }
 0x215   :  { %7861 = vmatpush3.bf16.msra.mxu1 %v8567_v44  ;;  %7840 = vmatprep.subr.bf16.mxu0 %v8568_v45  ;;  %v6545_v44 = vcombine.low %v55_v43, %v55_v43  ;;  %v6546_v45 = vcombine.high %v55_v43, %v55_v43 }
 0x216   :  { %7862 = vmatprep.subr.bf16.mxu1 %v8569_v46  ;;  %v56_v46 = vld [vmem:[%s10586_s0 + $0x118] sm:$0xff] }
 0x218   :  { %7841 = vmatpush3.bf16.msra.mxu0 %v8570_v47 }
 0x219   :  { %7863 = vmatpush3.bf16.msra.mxu1 %v8571_v48  ;;  %7842 = vmatprep.subr.bf16.mxu0 %v8572_v49  ;;  %v6547_v49 = vcombine.low %v56_v46, %v56_v46 }
 0x21a   :  { %7864 = vmatprep.subr.bf16.mxu1 %v8573_v50  ;;  %v6548_v50 = vcombine.high %v56_v46, %v56_v46 }
 0x21c   :  { %7843 = vmatpush3.bf16.msra.mxu0 %v8574_v51 }
 0x21d   :  { %7865 = vmatpush3.bf16.msra.mxu1 %v8575_v52  ;;  %7844 = vmatprep.subr.bf16.mxu0 %v8576_v53 }
 0x21e   :  { %7866 = vmatprep.subr.bf16.mxu1 %v8577_v54 }
 0x220   :  { %7845 = vmatpush3.bf16.msra.mxu0 %v8578_v55 }
 0x221   :  { %7867 = vmatpush3.bf16.msra.mxu1 %v8579_v56  ;;  %7874 = vmatprep.subr.bf16.mxu0 %v8584_v0 }
 0x222   :  { %7896 = vmatprep.subr.bf16.mxu1 %v8585_v2 }
 0x223   :  { %v7582_v59 = vpop.f32.mrf.mxu0  ;;  %6237 = vmatmul.mubr.bf16.vlgmr.msra.gmra.mxu0 %v6541_v60 }
 0x224   :  { %v7604_v63 = vpop.f32.mrf.mxu1  ;;  %6277 = vmatmul.mubr.bf16.vlgmr.msra.gmra.mxu1 %v6543_v62  ;;  %7875 = vmatpush3.bf16.msra.mxu0 %v8586_v4 }
 0x225   :  { %v7583_v3 = vpop.f32.mrf.mxu0  ;;  %7897 = vmatpush3.bf16.msra.mxu1 %v8587_v7  ;;  %7876 = vmatprep.subr.bf16.mxu0 %v8588_v12  ;;  %v6378_v12 = vld [vmem:[%s10588_s3 + $0x68] sm:$0xff] }
 0x226   :  { %v7584_v5 = vadd.f32 %v7583_v3, %v7582_v59  ;;  %v7605_v6 = vpop.f32.mrf.mxu1  ;;  %7898 = vmatprep.subr.bf16.mxu1 %v8589_v13  ;;  %6316 = vmatprep.mubr.bf16.mxu0 %v6546_v45  ;;  %v6377_v13 = vld [vmem:[%s10588_s3 + $0x60] sm:$0xff] }
 0x227   :  { %v7606_v8 = vadd.f32 %v7605_v6, %v7604_v63  ;;  %v7585_v9 = vpop.f32.mrf.mxu0  ;;  %6356 = vmatprep.mubr.bf16.mxu1 %v6548_v50 }
 0x228   :  { %v5759_v10 = vadd.f32 %v7584_v5, %v10336_v29  ;;  %v7607_v11 = vpop.f32.mrf.mxu1  ;;  %7877 = vmatpush3.bf16.msra.mxu0 %v8590_v16  ;;  %v8602_v29 = vld [vmem:[%s10585_s1 + $0x1118] sm:$0xff]   ;;  %v8624_v9 = vmov 0.0   ;;  %v6374_v16 = vld [vmem:[%s10588_s3 + $0x48] sm:$0xff] }
 0x229   :  { %v7586_v14 = vpop.f32.mrf.mxu0  ;;  %7899 = vmatpush3.bf16.msra.mxu1 %v8591_v18  ;;  %7878 = vmatprep.subr.bf16.mxu0 %v8592_v19  ;;  %v6379_v11 = vld [vmem:[%s10588_s3 + $0x70] sm:$0xff]  ;;  %v6372_v18 = vld [vmem:[%s10588_s3 + $0x38] sm:$0xff] }
 0x22a   :  { %v10441_v15 = vadd.f32 %v7606_v8, %v5759_v10  ;;  %v7608_v17 = vpop.f32.mrf.mxu1  ;;  %7900 = vmatprep.subr.bf16.mxu1 %v8593_v20  ;;  %v6380_v10 = vld [vmem:[%s10588_s3 + $0x78] sm:$0xff]  ;;  %v6371_v19 = vld [vmem:[%s10588_s3 + $0x30] sm:$0xff] }
 0x22b   :  { %v6376_v14 = vld [vmem:[%s10588_s3 + $0x58] sm:$0xff]  ;;  %v6373_v17 = vld [vmem:[%s10588_s3 + $0x40] sm:$0xff] }
 0x22c   :  { %7879 = vmatpush3.bf16.msra.mxu0 %v8594_v21 }
 0x22d   :  { %7901 = vmatpush3.bf16.msra.mxu1 %v8595_v22  ;;  %7880 = vmatprep.subr.bf16.mxu0 %v8596_v23  ;;  %v6370_v23 = vld [vmem:[%s10588_s3 + $0x28] sm:$0xff] }
 0x22e   :  { %7902 = vmatprep.subr.bf16.mxu1 %v8597_v24 }
 0x230   :  { %7881 = vmatpush3.bf16.msra.mxu0 %v8598_v25 }
 0x231   :  { %7903 = vmatpush3.bf16.msra.mxu1 %v8599_v26  ;;  %7882 = vmatprep.subr.bf16.mxu0 %v8600_v27 }
 0x232   :  { %7904 = vmatprep.subr.bf16.mxu1 %v8601_v28  ;;  %v6369_v28 = vld [vmem:[%s10588_s3 + $0x20] sm:$0xff] }
 0x234   :  { %7883 = vmatpush3.bf16.msra.mxu0 %v8602_v29 }
 0x235   :  { %7905 = vmatpush3.bf16.msra.mxu1 %v8603_v30  ;;  %7884 = vmatprep.subr.bf16.mxu0 %v8604_v31 }
 0x236   :  { %7906 = vmatprep.subr.bf16.mxu1 %v8605_v32  ;;  %v6368_v32 = vld [vmem:[%s10588_s3 + $0x18] sm:$0xff] }
 0x238   :  { %7885 = vmatpush3.bf16.msra.mxu0 %v8606_v33 }
 0x239   :  { %7907 = vmatpush3.bf16.msra.mxu1 %v8607_v34  ;;  %7886 = vmatprep.subr.bf16.mxu0 %v8608_v35  ;;  %v6367_v35 = vld [vmem:[%s10588_s3 + $0x10] sm:$0xff] }
 0x23a   :  { %7908 = vmatprep.subr.bf16.mxu1 %v8609_v36  ;;  %v6366_v36 = vld [vmem:[%s10588_s3 + $0x8] sm:$0xff] }
 0x23c   :  { %7887 = vmatpush3.bf16.msra.mxu0 %v8610_v37  ;;  %v6365_v37 = vld [vmem:[%s10588_s3] sm:$0xff] }
 0x23d   :  { %7909 = vmatpush3.bf16.msra.mxu1 %v8611_v38  ;;  %7888 = vmatprep.subr.bf16.mxu0 %v8612_v39 }
 0x23e   :  { %7910 = vmatprep.subr.bf16.mxu1 %v8613_v40 }
 0x240   :  { %7889 = vmatpush3.bf16.msra.mxu0 %v8614_v41 }
 0x241   :  { %7911 = vmatpush3.bf16.msra.mxu1 %v8615_v42  ;;  %7935 = vmatprep.subr.mxu0 %v8624_v9 }
 0x243   :  { %v7626_v47 = vpop.f32.mrf.mxu0  ;;  %6317 = vmatmul.mubr.bf16.vlgmr.msra.gmra.mxu0 %v6545_v44 }
 0x244   :  { %v7648_v48 = vpop.f32.mrf.mxu1  ;;  %6357 = vmatmul.mubr.bf16.vlgmr.msra.gmra.mxu1 %v6547_v49  ;;  %7936 = vmatpush3.msra.mxu0 %v6380_v10 }
 0x245   :  { %v7627_v51 = vpop.f32.mrf.mxu0  ;;  %7937 = vmatprep.subr.mxu0 %v8624_v9  ;;  %7967 = vmatprep.mubr.msk.f32.mxu0 %vm8625_vm0, %v8624_v9 }
 0x246   :  { %v7649_v52 = vpop.f32.mrf.mxu1  ;;  %v7628_v53 = vadd.f32 %v7627_v51, %v7626_v47  ;;  %7938 = vmatpush3.msra.mxu0 %v6379_v11 }
 0x247   :  { %v7650_v54 = vadd.f32 %v7649_v52, %v7648_v48  ;;  %v7629_v55 = vpop.f32.mrf.mxu0  ;;  %7939 = vmatprep.subr.mxu0 %v8624_v9 }
 0x248   :  { %v7651_v56 = vpop.f32.mrf.mxu1  ;;  %v5839_v57 = vadd.f32 %v7628_v53, %v10441_v15  ;;  %7940 = vmatpush3.msra.mxu0 %v6378_v12  ;;  %v6375_v15 = vld [vmem:[%s10588_s3 + $0x50] sm:$0xff] }
 0x249   :  { %v7630_v58 = vpop.f32.mrf.mxu0  ;;  %7941 = vmatprep.subr.mxu0 %v8624_v9 }
 0x24a   :  { %v7652_v59 = vpop.f32.mrf.mxu1  ;;  %v5879_v60 = vadd.f32 %v7650_v54, %v5839_v57  ;;  %7942 = vmatpush3.msra.mxu0 %v6377_v13 }
 0x24b   :  { %7943 = vmatprep.subr.mxu0 %v8624_v9 }
 0x24c   :  { %7944 = vmatpush3.msra.mxu0 %v6376_v14 }
 0x24d   :  { %7945 = vmatprep.subr.mxu0 %v8624_v9 }
 0x24e   :  { %7946 = vmatpush3.msra.mxu0 %v6375_v15 }
 0x24f   :  { %7947 = vmatprep.subr.mxu0 %v8624_v9 }
 0x250   :  { %7948 = vmatpush3.msra.mxu0 %v6374_v16 }
 0x251   :  { %7949 = vmatprep.subr.mxu0 %v8624_v9 }
 0x252   :  { %7950 = vmatpush3.msra.mxu0 %v6373_v17 }
 0x253   :  { %7951 = vmatprep.subr.mxu0 %v8624_v9 }
 0x254   :  { %7952 = vmatpush3.msra.mxu0 %v6372_v18 }
 0x255   :  { %7953 = vmatprep.subr.mxu0 %v8624_v9 }
 0x256   :  { %7954 = vmatpush3.msra.mxu0 %v6371_v19 }
 0x257   :  { %7955 = vmatprep.subr.mxu0 %v8624_v9 }
 0x258   :  { %7956 = vmatpush3.msra.mxu0 %v6370_v23  ;;  %v7125_v23 = vld [vmem:[%s10589_s4] ss:$0 sm:$0xff] }
 0x259   :  { %7957 = vmatprep.subr.mxu0 %v8624_v9 }
 0x25a   :  { %7958 = vmatpush3.msra.mxu0 %v6369_v28 }
 0x25b   :  { %7959 = vmatprep.subr.mxu0 %v8624_v9 }
 0x25c   :  { %7960 = vmatpush3.msra.mxu0 %v6368_v32 }
 0x25d   :  { %7961 = vmatprep.subr.mxu0 %v8624_v9 }
 0x25e   :  { %7962 = vmatpush3.msra.mxu0 %v6367_v35 }
 0x25f   :  { %7963 = vmatprep.subr.mxu0 %v8624_v9 }
 0x260   :  { %7964 = vmatpush3.msra.mxu0 %v6366_v36 }
 0x261   :  { %7965 = vmatprep.subr.mxu0 %v8624_v9 }
 0x262   :  { %7966 = vmatpush3.msra.mxu0 %v6365_v37 }
 0x263   :  { %v7670_v61 = vpop.f32.mrf.mxu0 }
 0x264   :  { %v7692_v62 = vpop.f32.mrf.mxu1 }
 0x265   :  { %v7671_v63 = vpop.f32.mrf.mxu0 }
 0x266   :  { %v7672_v0 = vadd.f32 %v7671_v63, %v7670_v61  ;;  %v7693_v1 = vpop.f32.mrf.mxu1 }
 0x267   :  { %v7694_v2 = vadd.f32 %v7693_v1, %v7692_v62  ;;  %v7673_v3 = vpop.f32.mrf.mxu0 }
 0x268   :  { %v5919_v4 = vadd.f32 %v7672_v0, %v5879_v60  ;;  %v7695_v5 = vpop.f32.mrf.mxu1 }
 0x269   :  { %v7674_v6 = vpop.f32.mrf.mxu0 }
 0x26a   :  { %v5959_v7 = vadd.f32 %v7694_v2, %v5919_v4  ;;  %v7696_v8 = vpop.f32.mrf.mxu1 }
 0x283   :  { %v7714_v20 = vpop.f32.mrf.mxu0 }
 0x284   :  { %v7736_v21 = vpop.f32.mrf.mxu1 }
 0x285   :  { %v7715_v22 = vpop.f32.mrf.mxu0 }
 0x286   :  { %v7716_v24 = vadd.f32 %v7715_v22, %v7714_v20  ;;  %v7737_v25 = vpop.f32.mrf.mxu1 }
 0x287   :  { %v7738_v26 = vadd.f32 %v7737_v25, %v7736_v21  ;;  %v7717_v27 = vpop.f32.mrf.mxu0 }
 0x288   :  { %v5999_v29 = vadd.f32 %v7716_v24, %v5959_v7  ;;  %v7739_v30 = vpop.f32.mrf.mxu1 }
 0x289   :  { %v7718_v31 = vpop.f32.mrf.mxu0 }
 0x28a   :  { %v6039_v33 = vadd.f32 %v7738_v26, %v5999_v29  ;;  %v7740_v34 = vpop.f32.mrf.mxu1 }
 0x2a3   :  { %v7758_v38 = vpop.f32.mrf.mxu0 }
 0x2a4   :  { %v7780_v39 = vpop.f32.mrf.mxu1 }
 0x2a5   :  { %v7759_v40 = vpop.f32.mrf.mxu0 }
 0x2a6   :  { %v7781_v41 = vpop.f32.mrf.mxu1  ;;  %v7760_v42 = vadd.f32 %v7759_v40, %v7758_v38 }
 0x2a7   :  { %v7782_v43 = vadd.f32 %v7781_v41, %v7780_v39  ;;  %v7761_v44 = vpop.f32.mrf.mxu0 }
 0x2a8   :  { %v7783_v45 = vpop.f32.mrf.mxu1  ;;  %v6079_v46 = vadd.f32 %v7760_v42, %v6039_v33 }
 0x2a9   :  { %v7762_v47 = vpop.f32.mrf.mxu0 }
 0x2aa   :  { %v7784_v48 = vpop.f32.mrf.mxu1  ;;  %v6119_v49 = vadd.f32 %v7782_v43, %v6079_v46 }
 0x2c3   :  { %v7802_v50 = vpop.f32.mrf.mxu0 }
 0x2c4   :  { %v7824_v51 = vpop.f32.mrf.mxu1 }
 0x2c5   :  { %v7803_v52 = vpop.f32.mrf.mxu0 }
 0x2c6   :  { %v7825_v53 = vpop.f32.mrf.mxu1  ;;  %v7804_v2 = vadd.f32 %v7803_v52, %v7802_v50 }
 0x2c7   :  { %v7805_v54 = vpop.f32.mrf.mxu0  ;;  %v7826_v4 = vadd.f32 %v7825_v53, %v7824_v51 }
 0x2c8   :  { %v7827_v55 = vpop.f32.mrf.mxu1  ;;  %v6159_v3 = vadd.f32 %v7804_v2, %v6119_v49 }
 0x2c9   :  { %v7806_v56 = vpop.f32.mrf.mxu0 }
 0x2ca   :  { %v7828_v57 = vpop.f32.mrf.mxu1  ;;  %v6199_v6 = vadd.f32 %v7826_v4, %v6159_v3 }
 0x2e3   :  { %v7846_v58 = vpop.f32.mrf.mxu0 }
 0x2e4   :  { %v7868_v59 = vpop.f32.mrf.mxu1 }
 0x2e5   :  { %v7847_v60 = vpop.f32.mrf.mxu0 }
 0x2e6   :  { %v7869_v61 = vpop.f32.mrf.mxu1  ;;  %v7848_v5 = vadd.f32 %v7847_v60, %v7846_v58 }
 0x2e7   :  { %v7849_v62 = vpop.f32.mrf.mxu0  ;;  %v7870_v8 = vadd.f32 %v7869_v61, %v7868_v59 }
 0x2e8   :  { %v7871_v63 = vpop.f32.mrf.mxu1  ;;  %v6239_v7 = vadd.f32 %v7848_v5, %v6199_v6 }
 0x2e9   :  { %v7850_v0 = vpop.f32.mrf.mxu0 }
 0x2ea   :  { %v7872_v1 = vpop.f32.mrf.mxu1  ;;  %v6279_v13 = vadd.f32 %v7870_v8, %v6239_v7 }
 0x303   :  { %v7890_v9 = vpop.f32.mrf.mxu0 }
 0x304   :  { %v7912_v10 = vpop.f32.mrf.mxu1 }
 0x305   :  { %v7891_v11 = vpop.f32.mrf.mxu0 }
 0x306   :  { %v7913_v12 = vpop.f32.mrf.mxu1  ;;  %v7892_v14 = vadd.f32 %v7891_v11, %v7890_v9 }
 0x307   :  { %v7893_v15 = vpop.f32.mrf.mxu0  ;;  %v7914_v18 = vadd.f32 %v7913_v12, %v7912_v10 }
 0x308   :  { %v7915_v16 = vpop.f32.mrf.mxu1  ;;  %v6319_v17 = vadd.f32 %v7892_v14, %v6279_v13 }
 0x309   :  { %v7894_v19 = vpop.f32.mrf.mxu0 }
 0x30a   :  { %v7916_v20 = vpop.f32.mrf.mxu1  ;;  %v6359_v21 = vadd.f32 %v7914_v18, %v6319_v17 }
 0x30c   :  { %v6364_v22 = vmax.f32 %v6359_v21, 0.0 }
 0x30e   :  { %7968 = vmatmul.mubr.f32.vlgmr.msra.gmra.mxu0 %v6364_v22 }
 0x3ce   :  { %v6454_v24 = vpop.f32.mrf.mxu0 }
 0x3cf   :  { %v6455_v25 = vadd.f32 %v7125_v23, %v6454_v24 }
 0x3d0   :  { %v7969_v26 = vpop.f32.mrf.mxu0 }
 0x3d1   :  { %v6459_v27 = vsel %vm6458_vm1, %v6455_v25, -inf }
 0x3d2   :  { %6460 = vmax.xlane.f32.xlu0 %v6459_v27 }
 0x45b   :  { %v6461_v28 = vpop.xlane.xlu0 %6460 }
 0x45c   :  { %v6462_v29 = vsub.f32 %v6455_v25, %v6461_v28 }
 0x45e   :  { %v6463_v30 = vmul.f32 1.442695, %v6462_v29 }
 0x460   :  { %8620 = vpow2.f32 %v6463_v30 }
 0x46d   :  { %v8621_v31 = vpop.eup %8620 }
 0x46e   :  { %v6465_v32 = vsel %vm6458_vm1, %v8621_v31, 0.0 }
 0x46f   :  { %6466 = vadd.xlane.f32.xlu0 %v6465_v32 }
 0x4f8   :  { %v6467_v33 = vpop.xlane.xlu0 %6466 }
 0x4f9   :  { %8622 = vlog2.f32 %v6467_v33 }
 0x506   :  { %v8623_v34 = vpop.eup %8622 }
 0x507   :  { %v6469_v35 = vmul.f32 0.6931472, %v8623_v34 }
 0x509   :  { %v6470_v36 = vsub.f32 %v6462_v29, %v6469_v35 }
 0x50b   :  { %6471 = vst.msk [vmem:[%s10590_s5] sm:$0xff] %vm6458_vm1, %v6470_v36 }

</bundles_post_ra>
